<compile_context>
chip_gen: v5e
topology: v5e:2x2
jax: 0.10.0
libtpu: 0.0.40
codegen_flags: <defaults>
</compile_context>

<pallas_src>
import jax
import jax.numpy as jnp
import numpy as np
from jax.experimental import pallas as pl
from jax.experimental.pallas import tpu as pltpu


# --------------------------- in-kernel helpers --------------------------------

def _store_reflect_padded(pad_ref, t_hw):
    """Write t_hw (H, W, C) into pad_ref (H+2, W+2, C) with 1-px reflect pad.

    Rows come from the register value; columns are copied inside the scratch
    afterwards, which also fills the corners correctly (PyTorch 'reflect').
    """
    H, W, _ = t_hw.shape
    pad_ref[1:H + 1, 1:W + 1, :] = t_hw                      # interior
    pad_ref[0:1, 1:W + 1, :] = t_hw[1:2]                     # top    = row 1
    pad_ref[H + 1:H + 2, 1:W + 1, :] = t_hw[H - 2:H - 1]     # bottom = row H-2
    pad_ref[:, 0:1, :] = pad_ref[:, 2:3, :]                  # left   = col 1
    pad_ref[:, W + 1:W + 2, :] = pad_ref[:, W - 1:W, :]      # right  = col W-2


def _conv3x3_accumulate(pad_ref, w_taps_ref, acc):
    """acc (M, Nout) f32 += 3x3 conv over the reflect-padded VMEM scratch.

    pad_ref    : (H+2, W+2, K) f32 scratch, already padded.
    w_taps_ref : (9, K, Nout) bf16 per-tap weights (may be zero-padded in
                 K and/or Nout so several convs can share inputs / outputs).
    """
    Hp, Wp, K = pad_ref.shape
    H, W = Hp - 2, Wp - 2
    for ky in range(3):
        for kx in range(3):
            patch = pad_ref[ky:ky + H, kx:kx + W, :]         # (H, W, K)
            patch = patch.reshape(H * W, K).astype(jnp.bfloat16)
            acc = acc + jnp.dot(patch, w_taps_ref[3 * ky + kx],
                                preferred_element_type=jnp.float32)
    return acc


# --------------------------- the fused kernel ---------------------------------

def _fia_kernel(xpad_ref, w_red_ref, b_red_ref, s_sel_ref,
                wc1_ref, wc2_ref, b_c2_ref, wc3_ref, w4_ref, b_cat_ref,
                o_ref, padR_ref, padT_ref):
    _, H, W, Ctot = o_ref.shape
    Cin = xpad_ref.shape[3]
    M = H * W

    # interior of the (-inf)-padded input == x (NHWC), flattened to (M, Cin)
    x_in = xpad_ref[0, 1:H + 1, 1:W + 1, :].reshape(M, Cin)

    # ---- merged 1x1 reduce convs (redu1 | redu2 | redu3): one GEMM + ReLU ----
    red = jnp.dot(x_in.astype(jnp.bfloat16), w_red_ref[...],
                  preferred_element_type=jnp.float32)
    red = jnp.maximum(red + b_red_ref[...], 0.0)             # (M, C1+C3r+C5r)

    # branch 1 (redu1) passes straight through: inject its channels of `red`
    # into the concatenated accumulator via a 0/1 selector matmul.
    acc = jnp.dot(red.astype(jnp.bfloat16), s_sel_ref[...],
                  preferred_element_type=jnp.float32)        # (M, Ctot)

    # ---- reflect-pad the merged reduce output once (shared by conv1 & conv2)
    _store_reflect_padded(padR_ref, red.reshape(H, W, red.shape[-1]))

    # ---- branch 2: conv1 (3x3 reflect) accumulates into its output slice ----
    acc = _conv3x3_accumulate(padR_ref, wc1_ref, acc)

    # ---- branch 3: conv2 -> ReLU -> reflect pad -> conv3 into its slice -----
    C5 = wc2_ref.shape[-1]
    t3 = jnp.zeros((M, C5), jnp.float32)
    t3 = _conv3x3_accumulate(padR_ref, wc2_ref, t3)
    t3 = jnp.maximum(t3 + b_c2_ref[...], 0.0)
    _store_reflect_padded(padT_ref, t3.reshape(H, W, C5))
    acc = _conv3x3_accumulate(padT_ref, wc3_ref, acc)

    # ---- branch 4: 3x3 max-pool (stride 1, -inf pad) + 1x1 conv -------------
    pooled = xpad_ref[0, 0:H, 0:W, :]
    for ky in range(3):
        for kx in range(3):
            if ky == 0 and kx == 0:
                continue
            pooled = jnp.maximum(pooled, xpad_ref[0, ky:ky + H, kx:kx + W, :])
    pooled = pooled.reshape(M, Cin).astype(jnp.bfloat16)
    acc = acc + jnp.dot(pooled, w4_ref[...], preferred_element_type=jnp.float32)

    # ---- fused bias + ReLU epilogue; single store of the channel concat -----
    out = jnp.maximum(acc + b_cat_ref[...], 0.0)
    o_ref[...] = out.reshape(1, H, W, Ctot).astype(o_ref.dtype)


# --------------------------- wrapper (glue) -----------------------------------

def _full_spec(arr):
    zeros = (0,) * arr.ndim
    return pl.BlockSpec(arr.shape, lambda n, _z=zeros: _z)


def factor_inception_a(x_nchw, p):
    N, Cin, H, W = x_nchw.shape
    C1 = p["w_redu1"].shape[1]
    C3r = p["w_redu2"].shape[1]
    C3 = p["w_conv1"].shape[-1]
    C5r = p["w_redu3"].shape[1]
    C5 = p["w_conv2"].shape[-1]
    Cp = p["w_redu4"].shape[1]
    Cred = C1 + C3r + C5r
    Ctot = C1 + C3 + C5 + Cp
    bf = jnp.bfloat16

    # merged reduce-conv weights:   red = relu(x @ [w1|w2|w3] + [b1|b2|b3])
    w_red = jnp.concatenate(
        [p["w_redu1"], p["w_redu2"], p["w_redu3"]], axis=1).astype(bf)
    b_red = jnp.concatenate(
        [p["b_redu1"], p["b_redu2"], p["b_redu3"]]).reshape(1, Cred)

    # selector that copies the redu1 block of `red` into output channels [0:C1]
    s_sel = jnp.zeros((Cred, Ctot), jnp.float32)
    s_sel = s_sel.at[:C1, :C1].set(jnp.eye(C1, dtype=jnp.float32)).astype(bf)

    def pad_kn(w_hwio, k_off, k_tot, n_off, n_tot):
        # (3,3,ci,co) -> (9, k_tot, n_tot), zero-padded so K indexes into the
        # shared `red` scratch and N indexes into the concatenated output.
        ci, co = w_hwio.shape[2], w_hwio.shape[3]
        w9 = w_hwio.reshape(9, ci, co)
        out = jnp.zeros((9, k_tot, n_tot), jnp.float32)
        out = out.at[:, k_off:k_off + ci, n_off:n_off + co].set(w9)
        return out.astype(bf)

    wc1 = pad_kn(p["w_conv1"], C1, Cred, C1, Ctot)        # t2 -> out[C1:C1+C3]
    wc2 = pad_kn(p["w_conv2"], C1 + C3r, Cred, 0, C5)     # t3 -> intermediate
    wc3 = pad_kn(p["w_conv3"], 0, C5, C1 + C3, Ctot)      # t3a -> out[..:..+C5]
    b_c2 = p["b_conv2"].reshape(1, C5)

    w4 = jnp.zeros((Cin, Ctot), jnp.float32)
    w4 = w4.at[:, C1 + C3 + C5:].set(p["w_redu4"]).astype(bf)

    b_cat = jnp.concatenate(
        [jnp.zeros((C1,), jnp.float32), p["b_conv1"], p["b_conv3"],
         p["b_redu4"]]).reshape(1, Ctot)

    # NCHW -> NHWC, one -inf spatial pad (used only by the in-kernel max-pool;
    # the other branches read the interior).
    x = jnp.transpose(x_nchw, (0, 2, 3, 1))
    xpad = jnp.pad(x, ((0, 0), (1, 1), (1, 1), (0, 0)),
                   mode="constant", constant_values=-jnp.inf)

    out = pl.pallas_call(
        _fia_kernel,
        out_shape=jax.ShapeDtypeStruct((N, H, W, Ctot), x_nchw.dtype),
        grid_spec=pltpu.PrefetchScalarGridSpec(
            num_scalar_prefetch=0,
            grid=(N,),
            in_specs=[
                pl.BlockSpec((1, H + 2, W + 2, Cin), lambda n: (n, 0, 0, 0)),
                _full_spec(w_red), _full_spec(b_red), _full_spec(s_sel),
                _full_spec(wc1), _full_spec(wc2), _full_spec(b_c2),
                _full_spec(wc3), _full_spec(w4), _full_spec(b_cat),
            ],
            out_specs=pl.BlockSpec((1, H, W, Ctot), lambda n: (n, 0, 0, 0)),
            scratch_shapes=[
                pltpu.VMEM((H + 2, W + 2, Cred), jnp.float32),  # shared reflect pad
                pltpu.VMEM((H + 2, W + 2, C5), jnp.float32),    # conv2 output pad
            ]),
        compiler_params=pltpu.CompilerParams(
            dimension_semantics=("parallel",),
            vmem_limit_bytes=32 * 1024 * 1024),
    )(xpad, w_red, b_red, s_sel, wc1, wc2, b_c2, wc3, w4, b_cat)

    return jnp.transpose(out, (0, 3, 1, 2))                  # NHWC -> NCHW


# --------------------------- params + pure-JAX reference ----------------------

def init_params(key, dim_in, dim_1, dims_3, dims_5, dim_pool):
    ks = jax.random.split(key, 14)

    def u(k, shape, fan_in):
        bound = float(1.0 / np.sqrt(fan_in))
        return jax.random.uniform(k, shape, jnp.float32, -bound, bound)

    p = {}
    p["w_redu1"] = u(ks[0], (dim_in, dim_1), dim_in)
    p["b_redu1"] = u(ks[1], (dim_1,), dim_in)
    p["w_redu2"] = u(ks[2], (dim_in, dims_3[0]), dim_in)
    p["b_redu2"] = u(ks[3], (dims_3[0],), dim_in)
    p["w_conv1"] = u(ks[4], (3, 3, dims_3[0], dims_3[1]), dims_3[0] * 9)
    p["b_conv1"] = u(ks[5], (dims_3[1],), dims_3[0] * 9)
    p["w_redu3"] = u(ks[6], (dim_in, dims_5[0]), dim_in)
    p["b_redu3"] = u(ks[7], (dims_5[0],), dim_in)
    p["w_conv2"] = u(ks[8], (3, 3, dims_5[0], dims_5[1]), dims_5[0] * 9)
    p["b_conv2"] = u(ks[9], (dims_5[1],), dims_5[0] * 9)
    p["w_conv3"] = u(ks[10], (3, 3, dims_5[1], dims_5[1]), dims_5[1] * 9)
    p["b_conv3"] = u(ks[11], (dims_5[1],), dims_5[1] * 9)
    p["w_redu4"] = u(ks[12], (dim_in, dim_pool), dim_in)
    p["b_redu4"] = u(ks[13], (dim_pool,), dim_in)
    return p


def ref_forward(x_nchw, p):
    hp = jax.lax.Precision.HIGHEST
    x = jnp.transpose(x_nchw, (0, 2, 3, 1))

    def c1(x, w, b):
        return jax.nn.relu(
            jnp.tensordot(x, w, axes=([3], [0]), precision=hp) + b)

    def c3(x, w, b):
        xp = jnp.pad(x, ((0, 0), (1, 1), (1, 1), (0, 0)), mode="reflect")
        y = jax.lax.conv_general_dilated(
            xp, w, (1, 1), "VALID",
            dimension_numbers=("NHWC", "HWIO", "NHWC"), precision=hp)
        return jax.nn.relu(y + b)

    def mp(x):
        xp = jnp.pad(x, ((0, 0), (1, 1), (1, 1), (0, 0)),
                     mode="constant", constant_values=-jnp.inf)
        return jax.lax.reduce_window(xp, -jnp.inf, jax.lax.max,
                                     (1, 3, 3, 1), (1, 1, 1, 1), "VALID")

    x1 = c1(x, p["w_redu1"], p["b_redu1"])
    x2 = c3(c1(x, p["w_redu2"], p["b_redu2"]), p["w_conv1"], p["b_conv1"])
    x3 = c1(x, p["w_redu3"], p["b_redu3"])
    x3 = c3(x3, p["w_conv2"], p["b_conv2"])
    x3 = c3(x3, p["w_conv3"], p["b_conv3"])
    x4 = c1(mp(x), p["w_redu4"], p["b_redu4"])
    y = jnp.concatenate([x1, x2, x3, x4], axis=-1)
    return jnp.transpose(y, (0, 3, 1, 2))


if __name__ == "__main__":
    key = jax.random.PRNGKey(0)
    kx_, kp_ = jax.random.split(key)

    dim_in, dim_1, dims_3, dims_5, dim_pool = 4, 8, (4, 8), (4, 8), 8
    x = jax.random.normal(kx_, (2, dim_in, 16, 16), jnp.float32)   # NCHW
    params = init_params(kp_, dim_in, dim_1, dims_3, dims_5, dim_pool)

    fwd = jax.jit(factor_inception_a)
    y = jax.block_until_ready(fwd(x, params))
    y_ref = jax.block_until_ready(ref_forward(x, params))

    assert y.shape == (2, dim_1 + dims_3[1] + dims_5[1] + dim_pool, 16, 16)
    # bf16 matmul operands with f32 accumulation -> slightly looser tolerance.
    np.testing.assert_allclose(np.asarray(y), np.asarray(y_ref),
                               rtol=3e-2, atol=3e-2)
    print("KERNEL_OK")
</pallas_src>

<mosaic_0001>
module attributes {stable_mosaic.version = 11 : i64} {
  func.func @_fia_kernel(%arg0: i32, %arg1: memref<1x18x18x4xf32, #tpu.memory_space<vmem>>, %arg2: memref<4x16xbf16, #tpu.memory_space<vmem>>, %arg3: memref<1x16xf32, #tpu.memory_space<vmem>>, %arg4: memref<16x32xbf16, #tpu.memory_space<vmem>>, %arg5: memref<9x16x32xbf16, #tpu.memory_space<vmem>>, %arg6: memref<9x16x8xbf16, #tpu.memory_space<vmem>>, %arg7: memref<1x8xf32, #tpu.memory_space<vmem>>, %arg8: memref<9x8x32xbf16, #tpu.memory_space<vmem>>, %arg9: memref<4x32xbf16, #tpu.memory_space<vmem>>, %arg10: memref<1x32xf32, #tpu.memory_space<vmem>>, %arg11: memref<1x16x16x32xf32, #tpu.memory_space<vmem>>, %arg12: memref<18x18x16xf32, #tpu.memory_space<vmem>>, %arg13: memref<18x18x8xf32, #tpu.memory_space<vmem>>) attributes {dimension_semantics = [#tpu.dimension_semantics<parallel>], iteration_bounds = array<i64: 2>, scalar_prefetch = 0 : i64, scratch_operands = 2 : i64, tpu.core_type = #tpu.core_type<tc>, window_params = [{transform_indices = @transform_0, window_bounds = array<i64: 1, 18, 18, 4>}, {pipeline_mode = #tpu.pipeline_mode<synchronous>, transform_indices = @transform_1, window_bounds = array<i64: 4, 16>}, {pipeline_mode = #tpu.pipeline_mode<synchronous>, transform_indices = @transform_2, window_bounds = array<i64: 1, 16>}, {pipeline_mode = #tpu.pipeline_mode<synchronous>, transform_indices = @transform_3, window_bounds = array<i64: 16, 32>}, {pipeline_mode = #tpu.pipeline_mode<synchronous>, transform_indices = @transform_4, window_bounds = array<i64: 9, 16, 32>}, {pipeline_mode = #tpu.pipeline_mode<synchronous>, transform_indices = @transform_5, window_bounds = array<i64: 9, 16, 8>}, {pipeline_mode = #tpu.pipeline_mode<synchronous>, transform_indices = @transform_6, window_bounds = array<i64: 1, 8>}, {pipeline_mode = #tpu.pipeline_mode<synchronous>, transform_indices = @transform_7, window_bounds = array<i64: 9, 8, 32>}, {pipeline_mode = #tpu.pipeline_mode<synchronous>, transform_indices = @transform_8, window_bounds = array<i64: 4, 32>}, {pipeline_mode = #tpu.pipeline_mode<synchronous>, transform_indices = @transform_9, window_bounds = array<i64: 1, 32>}, {transform_indices = @transform_10, window_bounds = array<i64: 1, 16, 16, 32>}]} {
    %c0 = arith.constant 0 : index
    %c1 = arith.constant 1 : index
    %c1_0 = arith.constant 1 : index
    %c0_1 = arith.constant 0 : index
    %0 = vector.load %arg1[%c0, %c1, %c1_0, %c0_1] : memref<1x18x18x4xf32, #tpu.memory_space<vmem>>, vector<1x16x16x4xf32>
    %1 = vector.shape_cast %0 : vector<1x16x16x4xf32> to vector<16x16x4xf32>
    %2 = vector.shape_cast %1 : vector<16x16x4xf32> to vector<256x4xf32>
    %3 = arith.truncf %2 : vector<256x4xf32> to vector<256x4xbf16>
    %c0_2 = arith.constant 0 : index
    %c0_3 = arith.constant 0 : index
    %4 = vector.load %arg2[%c0_2, %c0_3] : memref<4x16xbf16, #tpu.memory_space<vmem>>, vector<4x16xbf16>
    %cst = arith.constant dense<0.000000e+00> : vector<256x16xf32>
    %5 = tpu.matmul %3, %4, %cst {dimension_numbers = #tpu.dot_dimension_numbers<[1], [0], [0], [1], [0, 0, 1, 1], [], []>} : vector<256x4xbf16>, vector<4x16xbf16>, vector<256x16xf32> -> vector<256x16xf32>
    %c0_4 = arith.constant 0 : index
    %c0_5 = arith.constant 0 : index
    %6 = vector.load %arg3[%c0_4, %c0_5] : memref<1x16xf32, #tpu.memory_space<vmem>>, vector<1x16xf32>
    %7 = vector.broadcast %6 : vector<1x16xf32> to vector<256x16xf32>
    %8 = arith.addf %5, %7 : vector<256x16xf32>
    %cst_6 = arith.constant 0.000000e+00 : f32
    %9 = vector.broadcast %cst_6 : f32 to vector<256x16xf32>
    %10 = arith.maximumf %8, %9 : vector<256x16xf32>
    %11 = arith.truncf %10 : vector<256x16xf32> to vector<256x16xbf16>
    %c0_7 = arith.constant 0 : index
    %c0_8 = arith.constant 0 : index
    %12 = vector.load %arg4[%c0_7, %c0_8] : memref<16x32xbf16, #tpu.memory_space<vmem>>, vector<16x32xbf16>
    %cst_9 = arith.constant dense<0.000000e+00> : vector<256x32xf32>
    %13 = tpu.matmul %11, %12, %cst_9 {dimension_numbers = #tpu.dot_dimension_numbers<[1], [0], [0], [1], [0, 0, 1, 1], [], []>} : vector<256x16xbf16>, vector<16x32xbf16>, vector<256x32xf32> -> vector<256x32xf32>
    %14 = vector.shape_cast %10 : vector<256x16xf32> to vector<16x16x16xf32>
    %c1_10 = arith.constant 1 : index
    %c1_11 = arith.constant 1 : index
    %c0_12 = arith.constant 0 : index
    %15 = vector.load %arg12[%c1_10, %c1_11, %c0_12] : memref<18x18x16xf32, #tpu.memory_space<vmem>>, vector<16x16x16xf32>
    tpu.vector_store %arg12[%c1_10, %c1_11, %c0_12], %14 {strides = array<i32>} : memref<18x18x16xf32, #tpu.memory_space<vmem>>, vector<16x16x16xf32>,
    %16 = vector.extract_strided_slice %14 {offsets = [1, 0, 0], sizes = [1, 16, 16], strides = [1, 1, 1]} : vector<16x16x16xf32> to vector<1x16x16xf32>
    %c0_13 = arith.constant 0 : index
    %c1_14 = arith.constant 1 : index
    %c0_15 = arith.constant 0 : index
    %17 = vector.load %arg12[%c0_13, %c1_14, %c0_15] : memref<18x18x16xf32, #tpu.memory_space<vmem>>, vector<1x16x16xf32>
    tpu.vector_store %arg12[%c0_13, %c1_14, %c0_15], %16 {strides = array<i32>} : memref<18x18x16xf32, #tpu.memory_space<vmem>>, vector<1x16x16xf32>,
    %18 = vector.extract_strided_slice %14 {offsets = [14, 0, 0], sizes = [1, 16, 16], strides = [1, 1, 1]} : vector<16x16x16xf32> to vector<1x16x16xf32>
    %c17 = arith.constant 17 : index
    %c1_16 = arith.constant 1 : index
    %c0_17 = arith.constant 0 : index
    %19 = vector.load %arg12[%c17, %c1_16, %c0_17] : memref<18x18x16xf32, #tpu.memory_space<vmem>>, vector<1x16x16xf32>
    tpu.vector_store %arg12[%c17, %c1_16, %c0_17], %18 {strides = array<i32>} : memref<18x18x16xf32, #tpu.memory_space<vmem>>, vector<1x16x16xf32>,
    %c0_18 = arith.constant 0 : index
    %c2 = arith.constant 2 : index
    %c0_19 = arith.constant 0 : index
    %20 = vector.load %arg12[%c0_18, %c2, %c0_19] : memref<18x18x16xf32, #tpu.memory_space<vmem>>, vector<18x1x16xf32>
    %c0_20 = arith.constant 0 : index
    %c0_21 = arith.constant 0 : index
    %c0_22 = arith.constant 0 : index
    %21 = vector.load %arg12[%c0_20, %c0_21, %c0_22] : memref<18x18x16xf32, #tpu.memory_space<vmem>>, vector<18x1x16xf32>
    tpu.vector_store %arg12[%c0_20, %c0_21, %c0_22], %20 {strides = array<i32>} : memref<18x18x16xf32, #tpu.memory_space<vmem>>, vector<18x1x16xf32>,
    %c0_23 = arith.constant 0 : index
    %c15 = arith.constant 15 : index
    %c0_24 = arith.constant 0 : index
    %22 = vector.load %arg12[%c0_23, %c15, %c0_24] : memref<18x18x16xf32, #tpu.memory_space<vmem>>, vector<18x1x16xf32>
    %c0_25 = arith.constant 0 : index
    %c17_26 = arith.constant 17 : index
    %c0_27 = arith.constant 0 : index
    %23 = vector.load %arg12[%c0_25, %c17_26, %c0_27] : memref<18x18x16xf32, #tpu.memory_space<vmem>>, vector<18x1x16xf32>
    tpu.vector_store %arg12[%c0_25, %c17_26, %c0_27], %22 {strides = array<i32>} : memref<18x18x16xf32, #tpu.memory_space<vmem>>, vector<18x1x16xf32>,
    %c0_28 = arith.constant 0 : index
    %c0_29 = arith.constant 0 : index
    %c0_30 = arith.constant 0 : index
    %24 = vector.load %arg12[%c0_28, %c0_29, %c0_30] : memref<18x18x16xf32, #tpu.memory_space<vmem>>, vector<16x16x16xf32>
    %25 = vector.shape_cast %24 : vector<16x16x16xf32> to vector<256x16xf32>
    %26 = arith.truncf %25 : vector<256x16xf32> to vector<256x16xbf16>
    %c0_31 = arith.constant 0 : index
    %c0_32 = arith.constant 0 : index
    %c0_33 = arith.constant 0 : index
    %27 = vector.load %arg5[%c0_31, %c0_32, %c0_33] : memref<9x16x32xbf16, #tpu.memory_space<vmem>>, vector<1x16x32xbf16>
    %28 = vector.shape_cast %27 : vector<1x16x32xbf16> to vector<16x32xbf16>
    %cst_34 = arith.constant dense<0.000000e+00> : vector<256x32xf32>
    %29 = tpu.matmul %26, %28, %cst_34 {dimension_numbers = #tpu.dot_dimension_numbers<[1], [0], [0], [1], [0, 0, 1, 1], [], []>} : vector<256x16xbf16>, vector<16x32xbf16>, vector<256x32xf32> -> vector<256x32xf32>
    %30 = arith.addf %13, %29 : vector<256x32xf32>
    %c0_35 = arith.constant 0 : index
    %c1_36 = arith.constant 1 : index
    %c0_37 = arith.constant 0 : index
    %31 = vector.load %arg12[%c0_35, %c1_36, %c0_37] : memref<18x18x16xf32, #tpu.memory_space<vmem>>, vector<16x16x16xf32>
    %32 = vector.shape_cast %31 : vector<16x16x16xf32> to vector<256x16xf32>
    %33 = arith.truncf %32 : vector<256x16xf32> to vector<256x16xbf16>
    %c1_38 = arith.constant 1 : index
    %c0_39 = arith.constant 0 : index
    %c0_40 = arith.constant 0 : index
    %34 = vector.load %arg5[%c1_38, %c0_39, %c0_40] : memref<9x16x32xbf16, #tpu.memory_space<vmem>>, vector<1x16x32xbf16>
    %35 = vector.shape_cast %34 : vector<1x16x32xbf16> to vector<16x32xbf16>
    %cst_41 = arith.constant dense<0.000000e+00> : vector<256x32xf32>
    %36 = tpu.matmul %33, %35, %cst_41 {dimension_numbers = #tpu.dot_dimension_numbers<[1], [0], [0], [1], [0, 0, 1, 1], [], []>} : vector<256x16xbf16>, vector<16x32xbf16>, vector<256x32xf32> -> vector<256x32xf32>
    %37 = arith.addf %30, %36 : vector<256x32xf32>
    %c0_42 = arith.constant 0 : index
    %c2_43 = arith.constant 2 : index
    %c0_44 = arith.constant 0 : index
    %38 = vector.load %arg12[%c0_42, %c2_43, %c0_44] : memref<18x18x16xf32, #tpu.memory_space<vmem>>, vector<16x16x16xf32>
    %39 = vector.shape_cast %38 : vector<16x16x16xf32> to vector<256x16xf32>
    %40 = arith.truncf %39 : vector<256x16xf32> to vector<256x16xbf16>
    %c2_45 = arith.constant 2 : index
    %c0_46 = arith.constant 0 : index
    %c0_47 = arith.constant 0 : index
    %41 = vector.load %arg5[%c2_45, %c0_46, %c0_47] : memref<9x16x32xbf16, #tpu.memory_space<vmem>>, vector<1x16x32xbf16>
    %42 = vector.shape_cast %41 : vector<1x16x32xbf16> to vector<16x32xbf16>
    %cst_48 = arith.constant dense<0.000000e+00> : vector<256x32xf32>
    %43 = tpu.matmul %40, %42, %cst_48 {dimension_numbers = #tpu.dot_dimension_numbers<[1], [0], [0], [1], [0, 0, 1, 1], [], []>} : vector<256x16xbf16>, vector<16x32xbf16>, vector<256x32xf32> -> vector<256x32xf32>
    %44 = arith.addf %37, %43 : vector<256x32xf32>
    %c1_49 = arith.constant 1 : index
    %c0_50 = arith.constant 0 : index
    %c0_51 = arith.constant 0 : index
    %45 = vector.load %arg12[%c1_49, %c0_50, %c0_51] : memref<18x18x16xf32, #tpu.memory_space<vmem>>, vector<16x16x16xf32>
    %46 = vector.shape_cast %45 : vector<16x16x16xf32> to vector<256x16xf32>
    %47 = arith.truncf %46 : vector<256x16xf32> to vector<256x16xbf16>
    %c3 = arith.constant 3 : index
    %c0_52 = arith.constant 0 : index
    %c0_53 = arith.constant 0 : index
    %48 = vector.load %arg5[%c3, %c0_52, %c0_53] : memref<9x16x32xbf16, #tpu.memory_space<vmem>>, vector<1x16x32xbf16>
    %49 = vector.shape_cast %48 : vector<1x16x32xbf16> to vector<16x32xbf16>
    %cst_54 = arith.constant dense<0.000000e+00> : vector<256x32xf32>
    %50 = tpu.matmul %47, %49, %cst_54 {dimension_numbers = #tpu.dot_dimension_numbers<[1], [0], [0], [1], [0, 0, 1, 1], [], []>} : vector<256x16xbf16>, vector<16x32xbf16>, vector<256x32xf32> -> vector<256x32xf32>
    %51 = arith.addf %44, %50 : vector<256x32xf32>
    %c1_55 = arith.constant 1 : index
    %c1_56 = arith.constant 1 : index
    %c0_57 = arith.constant 0 : index
    %52 = vector.load %arg12[%c1_55, %c1_56, %c0_57] : memref<18x18x16xf32, #tpu.memory_space<vmem>>, vector<16x16x16xf32>
    %53 = vector.shape_cast %52 : vector<16x16x16xf32> to vector<256x16xf32>
    %54 = arith.truncf %53 : vector<256x16xf32> to vector<256x16xbf16>
    %c4 = arith.constant 4 : index
    %c0_58 = arith.constant 0 : index
    %c0_59 = arith.constant 0 : index
    %55 = vector.load %arg5[%c4, %c0_58, %c0_59] : memref<9x16x32xbf16, #tpu.memory_space<vmem>>, vector<1x16x32xbf16>
    %56 = vector.shape_cast %55 : vector<1x16x32xbf16> to vector<16x32xbf16>
    %cst_60 = arith.constant dense<0.000000e+00> : vector<256x32xf32>
    %57 = tpu.matmul %54, %56, %cst_60 {dimension_numbers = #tpu.dot_dimension_numbers<[1], [0], [0], [1], [0, 0, 1, 1], [], []>} : vector<256x16xbf16>, vector<16x32xbf16>, vector<256x32xf32> -> vector<256x32xf32>
    %58 = arith.addf %51, %57 : vector<256x32xf32>
    %c1_61 = arith.constant 1 : index
    %c2_62 = arith.constant 2 : index
    %c0_63 = arith.constant 0 : index
    %59 = vector.load %arg12[%c1_61, %c2_62, %c0_63] : memref<18x18x16xf32, #tpu.memory_space<vmem>>, vector<16x16x16xf32>
    %60 = vector.shape_cast %59 : vector<16x16x16xf32> to vector<256x16xf32>
    %61 = arith.truncf %60 : vector<256x16xf32> to vector<256x16xbf16>
    %c5 = arith.constant 5 : index
    %c0_64 = arith.constant 0 : index
    %c0_65 = arith.constant 0 : index
    %62 = vector.load %arg5[%c5, %c0_64, %c0_65] : memref<9x16x32xbf16, #tpu.memory_space<vmem>>, vector<1x16x32xbf16>
    %63 = vector.shape_cast %62 : vector<1x16x32xbf16> to vector<16x32xbf16>
    %cst_66 = arith.constant dense<0.000000e+00> : vector<256x32xf32>
    %64 = tpu.matmul %61, %63, %cst_66 {dimension_numbers = #tpu.dot_dimension_numbers<[1], [0], [0], [1], [0, 0, 1, 1], [], []>} : vector<256x16xbf16>, vector<16x32xbf16>, vector<256x32xf32> -> vector<256x32xf32>
    %65 = arith.addf %58, %64 : vector<256x32xf32>
    %c2_67 = arith.constant 2 : index
    %c0_68 = arith.constant 0 : index
    %c0_69 = arith.constant 0 : index
    %66 = vector.load %arg12[%c2_67, %c0_68, %c0_69] : memref<18x18x16xf32, #tpu.memory_space<vmem>>, vector<16x16x16xf32>
    %67 = vector.shape_cast %66 : vector<16x16x16xf32> to vector<256x16xf32>
    %68 = arith.truncf %67 : vector<256x16xf32> to vector<256x16xbf16>
    %c6 = arith.constant 6 : index
    %c0_70 = arith.constant 0 : index
    %c0_71 = arith.constant 0 : index
    %69 = vector.load %arg5[%c6, %c0_70, %c0_71] : memref<9x16x32xbf16, #tpu.memory_space<vmem>>, vector<1x16x32xbf16>
    %70 = vector.shape_cast %69 : vector<1x16x32xbf16> to vector<16x32xbf16>
    %cst_72 = arith.constant dense<0.000000e+00> : vector<256x32xf32>
    %71 = tpu.matmul %68, %70, %cst_72 {dimension_numbers = #tpu.dot_dimension_numbers<[1], [0], [0], [1], [0, 0, 1, 1], [], []>} : vector<256x16xbf16>, vector<16x32xbf16>, vector<256x32xf32> -> vector<256x32xf32>
    %72 = arith.addf %65, %71 : vector<256x32xf32>
    %c2_73 = arith.constant 2 : index
    %c1_74 = arith.constant 1 : index
    %c0_75 = arith.constant 0 : index
    %73 = vector.load %arg12[%c2_73, %c1_74, %c0_75] : memref<18x18x16xf32, #tpu.memory_space<vmem>>, vector<16x16x16xf32>
    %74 = vector.shape_cast %73 : vector<16x16x16xf32> to vector<256x16xf32>
    %75 = arith.truncf %74 : vector<256x16xf32> to vector<256x16xbf16>
    %c7 = arith.constant 7 : index
    %c0_76 = arith.constant 0 : index
    %c0_77 = arith.constant 0 : index
    %76 = vector.load %arg5[%c7, %c0_76, %c0_77] : memref<9x16x32xbf16, #tpu.memory_space<vmem>>, vector<1x16x32xbf16>
    %77 = vector.shape_cast %76 : vector<1x16x32xbf16> to vector<16x32xbf16>
    %cst_78 = arith.constant dense<0.000000e+00> : vector<256x32xf32>
    %78 = tpu.matmul %75, %77, %cst_78 {dimension_numbers = #tpu.dot_dimension_numbers<[1], [0], [0], [1], [0, 0, 1, 1], [], []>} : vector<256x16xbf16>, vector<16x32xbf16>, vector<256x32xf32> -> vector<256x32xf32>
    %79 = arith.addf %72, %78 : vector<256x32xf32>
    %c2_79 = arith.constant 2 : index
    %c2_80 = arith.constant 2 : index
    %c0_81 = arith.constant 0 : index
    %80 = vector.load %arg12[%c2_79, %c2_80, %c0_81] : memref<18x18x16xf32, #tpu.memory_space<vmem>>, vector<16x16x16xf32>
    %81 = vector.shape_cast %80 : vector<16x16x16xf32> to vector<256x16xf32>
    %82 = arith.truncf %81 : vector<256x16xf32> to vector<256x16xbf16>
    %c8 = arith.constant 8 : index
    %c0_82 = arith.constant 0 : index
    %c0_83 = arith.constant 0 : index
    %83 = vector.load %arg5[%c8, %c0_82, %c0_83] : memref<9x16x32xbf16, #tpu.memory_space<vmem>>, vector<1x16x32xbf16>
    %84 = vector.shape_cast %83 : vector<1x16x32xbf16> to vector<16x32xbf16>
    %cst_84 = arith.constant dense<0.000000e+00> : vector<256x32xf32>
    %85 = tpu.matmul %82, %84, %cst_84 {dimension_numbers = #tpu.dot_dimension_numbers<[1], [0], [0], [1], [0, 0, 1, 1], [], []>} : vector<256x16xbf16>, vector<16x32xbf16>, vector<256x32xf32> -> vector<256x32xf32>
    %86 = arith.addf %79, %85 : vector<256x32xf32>
    %cst_85 = arith.constant 0.000000e+00 : f32
    %87 = vector.broadcast %cst_85 : f32 to vector<256x8xf32>
    %c0_86 = arith.constant 0 : index
    %c0_87 = arith.constant 0 : index
    %c0_88 = arith.constant 0 : index
    %88 = vector.load %arg12[%c0_86, %c0_87, %c0_88] : memref<18x18x16xf32, #tpu.memory_space<vmem>>, vector<16x16x16xf32>
    %89 = vector.shape_cast %88 : vector<16x16x16xf32> to vector<256x16xf32>
    %90 = arith.truncf %89 : vector<256x16xf32> to vector<256x16xbf16>
    %c0_89 = arith.constant 0 : index
    %c0_90 = arith.constant 0 : index
    %c0_91 = arith.constant 0 : index
    %91 = vector.load %arg6[%c0_89, %c0_90, %c0_91] : memref<9x16x8xbf16, #tpu.memory_space<vmem>>, vector<1x16x8xbf16>
    %92 = vector.shape_cast %91 : vector<1x16x8xbf16> to vector<16x8xbf16>
    %cst_92 = arith.constant dense<0.000000e+00> : vector<256x8xf32>
    %93 = tpu.matmul %90, %92, %cst_92 {dimension_numbers = #tpu.dot_dimension_numbers<[1], [0], [0], [1], [0, 0, 1, 1], [], []>} : vector<256x16xbf16>, vector<16x8xbf16>, vector<256x8xf32> -> vector<256x8xf32>
    %94 = arith.addf %87, %93 : vector<256x8xf32>
    %c0_93 = arith.constant 0 : index
    %c1_94 = arith.constant 1 : index
    %c0_95 = arith.constant 0 : index
    %95 = vector.load %arg12[%c0_93, %c1_94, %c0_95] : memref<18x18x16xf32, #tpu.memory_space<vmem>>, vector<16x16x16xf32>
    %96 = vector.shape_cast %95 : vector<16x16x16xf32> to vector<256x16xf32>
    %97 = arith.truncf %96 : vector<256x16xf32> to vector<256x16xbf16>
    %c1_96 = arith.constant 1 : index
    %c0_97 = arith.constant 0 : index
    %c0_98 = arith.constant 0 : index
    %98 = vector.load %arg6[%c1_96, %c0_97, %c0_98] : memref<9x16x8xbf16, #tpu.memory_space<vmem>>, vector<1x16x8xbf16>
    %99 = vector.shape_cast %98 : vector<1x16x8xbf16> to vector<16x8xbf16>
    %cst_99 = arith.constant dense<0.000000e+00> : vector<256x8xf32>
    %100 = tpu.matmul %97, %99, %cst_99 {dimension_numbers = #tpu.dot_dimension_numbers<[1], [0], [0], [1], [0, 0, 1, 1], [], []>} : vector<256x16xbf16>, vector<16x8xbf16>, vector<256x8xf32> -> vector<256x8xf32>
    %101 = arith.addf %94, %100 : vector<256x8xf32>
    %c0_100 = arith.constant 0 : index
    %c2_101 = arith.constant 2 : index
    %c0_102 = arith.constant 0 : index
    %102 = vector.load %arg12[%c0_100, %c2_101, %c0_102] : memref<18x18x16xf32, #tpu.memory_space<vmem>>, vector<16x16x16xf32>
    %103 = vector.shape_cast %102 : vector<16x16x16xf32> to vector<256x16xf32>
    %104 = arith.truncf %103 : vector<256x16xf32> to vector<256x16xbf16>
    %c2_103 = arith.constant 2 : index
    %c0_104 = arith.constant 0 : index
    %c0_105 = arith.constant 0 : index
    %105 = vector.load %arg6[%c2_103, %c0_104, %c0_105] : memref<9x16x8xbf16, #tpu.memory_space<vmem>>, vector<1x16x8xbf16>
    %106 = vector.shape_cast %105 : vector<1x16x8xbf16> to vector<16x8xbf16>
    %cst_106 = arith.constant dense<0.000000e+00> : vector<256x8xf32>
    %107 = tpu.matmul %104, %106, %cst_106 {dimension_numbers = #tpu.dot_dimension_numbers<[1], [0], [0], [1], [0, 0, 1, 1], [], []>} : vector<256x16xbf16>, vector<16x8xbf16>, vector<256x8xf32> -> vector<256x8xf32>
    %108 = arith.addf %101, %107 : vector<256x8xf32>
    %c1_107 = arith.constant 1 : index
    %c0_108 = arith.constant 0 : index
    %c0_109 = arith.constant 0 : index
    %109 = vector.load %arg12[%c1_107, %c0_108, %c0_109] : memref<18x18x16xf32, #tpu.memory_space<vmem>>, vector<16x16x16xf32>
    %110 = vector.shape_cast %109 : vector<16x16x16xf32> to vector<256x16xf32>
    %111 = arith.truncf %110 : vector<256x16xf32> to vector<256x16xbf16>
    %c3_110 = arith.constant 3 : index
    %c0_111 = arith.constant 0 : index
    %c0_112 = arith.constant 0 : index
    %112 = vector.load %arg6[%c3_110, %c0_111, %c0_112] : memref<9x16x8xbf16, #tpu.memory_space<vmem>>, vector<1x16x8xbf16>
    %113 = vector.shape_cast %112 : vector<1x16x8xbf16> to vector<16x8xbf16>
    %cst_113 = arith.constant dense<0.000000e+00> : vector<256x8xf32>
    %114 = tpu.matmul %111, %113, %cst_113 {dimension_numbers = #tpu.dot_dimension_numbers<[1], [0], [0], [1], [0, 0, 1, 1], [], []>} : vector<256x16xbf16>, vector<16x8xbf16>, vector<256x8xf32> -> vector<256x8xf32>
    %115 = arith.addf %108, %114 : vector<256x8xf32>
    %c1_114 = arith.constant 1 : index
    %c1_115 = arith.constant 1 : index
    %c0_116 = arith.constant 0 : index
    %116 = vector.load %arg12[%c1_114, %c1_115, %c0_116] : memref<18x18x16xf32, #tpu.memory_space<vmem>>, vector<16x16x16xf32>
    %117 = vector.shape_cast %116 : vector<16x16x16xf32> to vector<256x16xf32>
    %118 = arith.truncf %117 : vector<256x16xf32> to vector<256x16xbf16>
    %c4_117 = arith.constant 4 : index
    %c0_118 = arith.constant 0 : index
    %c0_119 = arith.constant 0 : index
    %119 = vector.load %arg6[%c4_117, %c0_118, %c0_119] : memref<9x16x8xbf16, #tpu.memory_space<vmem>>, vector<1x16x8xbf16>
    %120 = vector.shape_cast %119 : vector<1x16x8xbf16> to vector<16x8xbf16>
    %cst_120 = arith.constant dense<0.000000e+00> : vector<256x8xf32>
    %121 = tpu.matmul %118, %120, %cst_120 {dimension_numbers = #tpu.dot_dimension_numbers<[1], [0], [0], [1], [0, 0, 1, 1], [], []>} : vector<256x16xbf16>, vector<16x8xbf16>, vector<256x8xf32> -> vector<256x8xf32>
    %122 = arith.addf %115, %121 : vector<256x8xf32>
    %c1_121 = arith.constant 1 : index
    %c2_122 = arith.constant 2 : index
    %c0_123 = arith.constant 0 : index
    %123 = vector.load %arg12[%c1_121, %c2_122, %c0_123] : memref<18x18x16xf32, #tpu.memory_space<vmem>>, vector<16x16x16xf32>
    %124 = vector.shape_cast %123 : vector<16x16x16xf32> to vector<256x16xf32>
    %125 = arith.truncf %124 : vector<256x16xf32> to vector<256x16xbf16>
    %c5_124 = arith.constant 5 : index
    %c0_125 = arith.constant 0 : index
    %c0_126 = arith.constant 0 : index
    %126 = vector.load %arg6[%c5_124, %c0_125, %c0_126] : memref<9x16x8xbf16, #tpu.memory_space<vmem>>, vector<1x16x8xbf16>
    %127 = vector.shape_cast %126 : vector<1x16x8xbf16> to vector<16x8xbf16>
    %cst_127 = arith.constant dense<0.000000e+00> : vector<256x8xf32>
    %128 = tpu.matmul %125, %127, %cst_127 {dimension_numbers = #tpu.dot_dimension_numbers<[1], [0], [0], [1], [0, 0, 1, 1], [], []>} : vector<256x16xbf16>, vector<16x8xbf16>, vector<256x8xf32> -> vector<256x8xf32>
    %129 = arith.addf %122, %128 : vector<256x8xf32>
    %c2_128 = arith.constant 2 : index
    %c0_129 = arith.constant 0 : index
    %c0_130 = arith.constant 0 : index
    %130 = vector.load %arg12[%c2_128, %c0_129, %c0_130] : memref<18x18x16xf32, #tpu.memory_space<vmem>>, vector<16x16x16xf32>
    %131 = vector.shape_cast %130 : vector<16x16x16xf32> to vector<256x16xf32>
    %132 = arith.truncf %131 : vector<256x16xf32> to vector<256x16xbf16>
    %c6_131 = arith.constant 6 : index
    %c0_132 = arith.constant 0 : index
    %c0_133 = arith.constant 0 : index
    %133 = vector.load %arg6[%c6_131, %c0_132, %c0_133] : memref<9x16x8xbf16, #tpu.memory_space<vmem>>, vector<1x16x8xbf16>
    %134 = vector.shape_cast %133 : vector<1x16x8xbf16> to vector<16x8xbf16>
    %cst_134 = arith.constant dense<0.000000e+00> : vector<256x8xf32>
    %135 = tpu.matmul %132, %134, %cst_134 {dimension_numbers = #tpu.dot_dimension_numbers<[1], [0], [0], [1], [0, 0, 1, 1], [], []>} : vector<256x16xbf16>, vector<16x8xbf16>, vector<256x8xf32> -> vector<256x8xf32>
    %136 = arith.addf %129, %135 : vector<256x8xf32>
    %c2_135 = arith.constant 2 : index
    %c1_136 = arith.constant 1 : index
    %c0_137 = arith.constant 0 : index
    %137 = vector.load %arg12[%c2_135, %c1_136, %c0_137] : memref<18x18x16xf32, #tpu.memory_space<vmem>>, vector<16x16x16xf32>
    %138 = vector.shape_cast %137 : vector<16x16x16xf32> to vector<256x16xf32>
    %139 = arith.truncf %138 : vector<256x16xf32> to vector<256x16xbf16>
    %c7_138 = arith.constant 7 : index
    %c0_139 = arith.constant 0 : index
    %c0_140 = arith.constant 0 : index
    %140 = vector.load %arg6[%c7_138, %c0_139, %c0_140] : memref<9x16x8xbf16, #tpu.memory_space<vmem>>, vector<1x16x8xbf16>
    %141 = vector.shape_cast %140 : vector<1x16x8xbf16> to vector<16x8xbf16>
    %cst_141 = arith.constant dense<0.000000e+00> : vector<256x8xf32>
    %142 = tpu.matmul %139, %141, %cst_141 {dimension_numbers = #tpu.dot_dimension_numbers<[1], [0], [0], [1], [0, 0, 1, 1], [], []>} : vector<256x16xbf16>, vector<16x8xbf16>, vector<256x8xf32> -> vector<256x8xf32>
    %143 = arith.addf %136, %142 : vector<256x8xf32>
    %c2_142 = arith.constant 2 : index
    %c2_143 = arith.constant 2 : index
    %c0_144 = arith.constant 0 : index
    %144 = vector.load %arg12[%c2_142, %c2_143, %c0_144] : memref<18x18x16xf32, #tpu.memory_space<vmem>>, vector<16x16x16xf32>
    %145 = vector.shape_cast %144 : vector<16x16x16xf32> to vector<256x16xf32>
    %146 = arith.truncf %145 : vector<256x16xf32> to vector<256x16xbf16>
    %c8_145 = arith.constant 8 : index
    %c0_146 = arith.constant 0 : index
    %c0_147 = arith.constant 0 : index
    %147 = vector.load %arg6[%c8_145, %c0_146, %c0_147] : memref<9x16x8xbf16, #tpu.memory_space<vmem>>, vector<1x16x8xbf16>
    %148 = vector.shape_cast %147 : vector<1x16x8xbf16> to vector<16x8xbf16>
    %cst_148 = arith.constant dense<0.000000e+00> : vector<256x8xf32>
    %149 = tpu.matmul %146, %148, %cst_148 {dimension_numbers = #tpu.dot_dimension_numbers<[1], [0], [0], [1], [0, 0, 1, 1], [], []>} : vector<256x16xbf16>, vector<16x8xbf16>, vector<256x8xf32> -> vector<256x8xf32>
    %150 = arith.addf %143, %149 : vector<256x8xf32>
    %c0_149 = arith.constant 0 : index
    %c0_150 = arith.constant 0 : index
    %151 = vector.load %arg7[%c0_149, %c0_150] : memref<1x8xf32, #tpu.memory_space<vmem>>, vector<1x8xf32>
    %152 = vector.broadcast %151 : vector<1x8xf32> to vector<256x8xf32>
    %153 = arith.addf %150, %152 : vector<256x8xf32>
    %cst_151 = arith.constant 0.000000e+00 : f32
    %154 = vector.broadcast %cst_151 : f32 to vector<256x8xf32>
    %155 = arith.maximumf %153, %154 : vector<256x8xf32>
    %156 = vector.shape_cast %155 : vector<256x8xf32> to vector<16x16x8xf32>
    %c1_152 = arith.constant 1 : index
    %c1_153 = arith.constant 1 : index
    %c0_154 = arith.constant 0 : index
    %157 = vector.load %arg13[%c1_152, %c1_153, %c0_154] : memref<18x18x8xf32, #tpu.memory_space<vmem>>, vector<16x16x8xf32>
    tpu.vector_store %arg13[%c1_152, %c1_153, %c0_154], %156 {strides = array<i32>} : memref<18x18x8xf32, #tpu.memory_space<vmem>>, vector<16x16x8xf32>,
    %158 = vector.extract_strided_slice %156 {offsets = [1, 0, 0], sizes = [1, 16, 8], strides = [1, 1, 1]} : vector<16x16x8xf32> to vector<1x16x8xf32>
    %c0_155 = arith.constant 0 : index
    %c1_156 = arith.constant 1 : index
    %c0_157 = arith.constant 0 : index
    %159 = vector.load %arg13[%c0_155, %c1_156, %c0_157] : memref<18x18x8xf32, #tpu.memory_space<vmem>>, vector<1x16x8xf32>
    tpu.vector_store %arg13[%c0_155, %c1_156, %c0_157], %158 {strides = array<i32>} : memref<18x18x8xf32, #tpu.memory_space<vmem>>, vector<1x16x8xf32>,
    %160 = vector.extract_strided_slice %156 {offsets = [14, 0, 0], sizes = [1, 16, 8], strides = [1, 1, 1]} : vector<16x16x8xf32> to vector<1x16x8xf32>
    %c17_158 = arith.constant 17 : index
    %c1_159 = arith.constant 1 : index
    %c0_160 = arith.constant 0 : index
    %161 = vector.load %arg13[%c17_158, %c1_159, %c0_160] : memref<18x18x8xf32, #tpu.memory_space<vmem>>, vector<1x16x8xf32>
    tpu.vector_store %arg13[%c17_158, %c1_159, %c0_160], %160 {strides = array<i32>} : memref<18x18x8xf32, #tpu.memory_space<vmem>>, vector<1x16x8xf32>,
    %c0_161 = arith.constant 0 : index
    %c2_162 = arith.constant 2 : index
    %c0_163 = arith.constant 0 : index
    %162 = vector.load %arg13[%c0_161, %c2_162, %c0_163] : memref<18x18x8xf32, #tpu.memory_space<vmem>>, vector<18x1x8xf32>
    %c0_164 = arith.constant 0 : index
    %c0_165 = arith.constant 0 : index
    %c0_166 = arith.constant 0 : index
    %163 = vector.load %arg13[%c0_164, %c0_165, %c0_166] : memref<18x18x8xf32, #tpu.memory_space<vmem>>, vector<18x1x8xf32>
    tpu.vector_store %arg13[%c0_164, %c0_165, %c0_166], %162 {strides = array<i32>} : memref<18x18x8xf32, #tpu.memory_space<vmem>>, vector<18x1x8xf32>,
    %c0_167 = arith.constant 0 : index
    %c15_168 = arith.constant 15 : index
    %c0_169 = arith.constant 0 : index
    %164 = vector.load %arg13[%c0_167, %c15_168, %c0_169] : memref<18x18x8xf32, #tpu.memory_space<vmem>>, vector<18x1x8xf32>
    %c0_170 = arith.constant 0 : index
    %c17_171 = arith.constant 17 : index
    %c0_172 = arith.constant 0 : index
    %165 = vector.load %arg13[%c0_170, %c17_171, %c0_172] : memref<18x18x8xf32, #tpu.memory_space<vmem>>, vector<18x1x8xf32>
    tpu.vector_store %arg13[%c0_170, %c17_171, %c0_172], %164 {strides = array<i32>} : memref<18x18x8xf32, #tpu.memory_space<vmem>>, vector<18x1x8xf32>,
    %c0_173 = arith.constant 0 : index
    %c0_174 = arith.constant 0 : index
    %c0_175 = arith.constant 0 : index
    %166 = vector.load %arg13[%c0_173, %c0_174, %c0_175] : memref<18x18x8xf32, #tpu.memory_space<vmem>>, vector<16x16x8xf32>
    %167 = vector.shape_cast %166 : vector<16x16x8xf32> to vector<256x8xf32>
    %168 = arith.truncf %167 : vector<256x8xf32> to vector<256x8xbf16>
    %c0_176 = arith.constant 0 : index
    %c0_177 = arith.constant 0 : index
    %c0_178 = arith.constant 0 : index
    %169 = vector.load %arg8[%c0_176, %c0_177, %c0_178] : memref<9x8x32xbf16, #tpu.memory_space<vmem>>, vector<1x8x32xbf16>
    %170 = vector.shape_cast %169 : vector<1x8x32xbf16> to vector<8x32xbf16>
    %cst_179 = arith.constant dense<0.000000e+00> : vector<256x32xf32>
    %171 = tpu.matmul %168, %170, %cst_179 {dimension_numbers = #tpu.dot_dimension_numbers<[1], [0], [0], [1], [0, 0, 1, 1], [], []>} : vector<256x8xbf16>, vector<8x32xbf16>, vector<256x32xf32> -> vector<256x32xf32>
    %172 = arith.addf %86, %171 : vector<256x32xf32>
    %c0_180 = arith.constant 0 : index
    %c1_181 = arith.constant 1 : index
    %c0_182 = arith.constant 0 : index
    %173 = vector.load %arg13[%c0_180, %c1_181, %c0_182] : memref<18x18x8xf32, #tpu.memory_space<vmem>>, vector<16x16x8xf32>
    %174 = vector.shape_cast %173 : vector<16x16x8xf32> to vector<256x8xf32>
    %175 = arith.truncf %174 : vector<256x8xf32> to vector<256x8xbf16>
    %c1_183 = arith.constant 1 : index
    %c0_184 = arith.constant 0 : index
    %c0_185 = arith.constant 0 : index
    %176 = vector.load %arg8[%c1_183, %c0_184, %c0_185] : memref<9x8x32xbf16, #tpu.memory_space<vmem>>, vector<1x8x32xbf16>
    %177 = vector.shape_cast %176 : vector<1x8x32xbf16> to vector<8x32xbf16>
    %cst_186 = arith.constant dense<0.000000e+00> : vector<256x32xf32>
    %178 = tpu.matmul %175, %177, %cst_186 {dimension_numbers = #tpu.dot_dimension_numbers<[1], [0], [0], [1], [0, 0, 1, 1], [], []>} : vector<256x8xbf16>, vector<8x32xbf16>, vector<256x32xf32> -> vector<256x32xf32>
    %179 = arith.addf %172, %178 : vector<256x32xf32>
    %c0_187 = arith.constant 0 : index
    %c2_188 = arith.constant 2 : index
    %c0_189 = arith.constant 0 : index
    %180 = vector.load %arg13[%c0_187, %c2_188, %c0_189] : memref<18x18x8xf32, #tpu.memory_space<vmem>>, vector<16x16x8xf32>
    %181 = vector.shape_cast %180 : vector<16x16x8xf32> to vector<256x8xf32>
    %182 = arith.truncf %181 : vector<256x8xf32> to vector<256x8xbf16>
    %c2_190 = arith.constant 2 : index
    %c0_191 = arith.constant 0 : index
    %c0_192 = arith.constant 0 : index
    %183 = vector.load %arg8[%c2_190, %c0_191, %c0_192] : memref<9x8x32xbf16, #tpu.memory_space<vmem>>, vector<1x8x32xbf16>
    %184 = vector.shape_cast %183 : vector<1x8x32xbf16> to vector<8x32xbf16>
    %cst_193 = arith.constant dense<0.000000e+00> : vector<256x32xf32>
    %185 = tpu.matmul %182, %184, %cst_193 {dimension_numbers = #tpu.dot_dimension_numbers<[1], [0], [0], [1], [0, 0, 1, 1], [], []>} : vector<256x8xbf16>, vector<8x32xbf16>, vector<256x32xf32> -> vector<256x32xf32>
    %186 = arith.addf %179, %185 : vector<256x32xf32>
    %c1_194 = arith.constant 1 : index
    %c0_195 = arith.constant 0 : index
    %c0_196 = arith.constant 0 : index
    %187 = vector.load %arg13[%c1_194, %c0_195, %c0_196] : memref<18x18x8xf32, #tpu.memory_space<vmem>>, vector<16x16x8xf32>
    %188 = vector.shape_cast %187 : vector<16x16x8xf32> to vector<256x8xf32>
    %189 = arith.truncf %188 : vector<256x8xf32> to vector<256x8xbf16>
    %c3_197 = arith.constant 3 : index
    %c0_198 = arith.constant 0 : index
    %c0_199 = arith.constant 0 : index
    %190 = vector.load %arg8[%c3_197, %c0_198, %c0_199] : memref<9x8x32xbf16, #tpu.memory_space<vmem>>, vector<1x8x32xbf16>
    %191 = vector.shape_cast %190 : vector<1x8x32xbf16> to vector<8x32xbf16>
    %cst_200 = arith.constant dense<0.000000e+00> : vector<256x32xf32>
    %192 = tpu.matmul %189, %191, %cst_200 {dimension_numbers = #tpu.dot_dimension_numbers<[1], [0], [0], [1], [0, 0, 1, 1], [], []>} : vector<256x8xbf16>, vector<8x32xbf16>, vector<256x32xf32> -> vector<256x32xf32>
    %193 = arith.addf %186, %192 : vector<256x32xf32>
    %c1_201 = arith.constant 1 : index
    %c1_202 = arith.constant 1 : index
    %c0_203 = arith.constant 0 : index
    %194 = vector.load %arg13[%c1_201, %c1_202, %c0_203] : memref<18x18x8xf32, #tpu.memory_space<vmem>>, vector<16x16x8xf32>
    %195 = vector.shape_cast %194 : vector<16x16x8xf32> to vector<256x8xf32>
    %196 = arith.truncf %195 : vector<256x8xf32> to vector<256x8xbf16>
    %c4_204 = arith.constant 4 : index
    %c0_205 = arith.constant 0 : index
    %c0_206 = arith.constant 0 : index
    %197 = vector.load %arg8[%c4_204, %c0_205, %c0_206] : memref<9x8x32xbf16, #tpu.memory_space<vmem>>, vector<1x8x32xbf16>
    %198 = vector.shape_cast %197 : vector<1x8x32xbf16> to vector<8x32xbf16>
    %cst_207 = arith.constant dense<0.000000e+00> : vector<256x32xf32>
    %199 = tpu.matmul %196, %198, %cst_207 {dimension_numbers = #tpu.dot_dimension_numbers<[1], [0], [0], [1], [0, 0, 1, 1], [], []>} : vector<256x8xbf16>, vector<8x32xbf16>, vector<256x32xf32> -> vector<256x32xf32>
    %200 = arith.addf %193, %199 : vector<256x32xf32>
    %c1_208 = arith.constant 1 : index
    %c2_209 = arith.constant 2 : index
    %c0_210 = arith.constant 0 : index
    %201 = vector.load %arg13[%c1_208, %c2_209, %c0_210] : memref<18x18x8xf32, #tpu.memory_space<vmem>>, vector<16x16x8xf32>
    %202 = vector.shape_cast %201 : vector<16x16x8xf32> to vector<256x8xf32>
    %203 = arith.truncf %202 : vector<256x8xf32> to vector<256x8xbf16>
    %c5_211 = arith.constant 5 : index
    %c0_212 = arith.constant 0 : index
    %c0_213 = arith.constant 0 : index
    %204 = vector.load %arg8[%c5_211, %c0_212, %c0_213] : memref<9x8x32xbf16, #tpu.memory_space<vmem>>, vector<1x8x32xbf16>
    %205 = vector.shape_cast %204 : vector<1x8x32xbf16> to vector<8x32xbf16>
    %cst_214 = arith.constant dense<0.000000e+00> : vector<256x32xf32>
    %206 = tpu.matmul %203, %205, %cst_214 {dimension_numbers = #tpu.dot_dimension_numbers<[1], [0], [0], [1], [0, 0, 1, 1], [], []>} : vector<256x8xbf16>, vector<8x32xbf16>, vector<256x32xf32> -> vector<256x32xf32>
    %207 = arith.addf %200, %206 : vector<256x32xf32>
    %c2_215 = arith.constant 2 : index
    %c0_216 = arith.constant 0 : index
    %c0_217 = arith.constant 0 : index
    %208 = vector.load %arg13[%c2_215, %c0_216, %c0_217] : memref<18x18x8xf32, #tpu.memory_space<vmem>>, vector<16x16x8xf32>
    %209 = vector.shape_cast %208 : vector<16x16x8xf32> to vector<256x8xf32>
    %210 = arith.truncf %209 : vector<256x8xf32> to vector<256x8xbf16>
    %c6_218 = arith.constant 6 : index
    %c0_219 = arith.constant 0 : index
    %c0_220 = arith.constant 0 : index
    %211 = vector.load %arg8[%c6_218, %c0_219, %c0_220] : memref<9x8x32xbf16, #tpu.memory_space<vmem>>, vector<1x8x32xbf16>
    %212 = vector.shape_cast %211 : vector<1x8x32xbf16> to vector<8x32xbf16>
    %cst_221 = arith.constant dense<0.000000e+00> : vector<256x32xf32>
    %213 = tpu.matmul %210, %212, %cst_221 {dimension_numbers = #tpu.dot_dimension_numbers<[1], [0], [0], [1], [0, 0, 1, 1], [], []>} : vector<256x8xbf16>, vector<8x32xbf16>, vector<256x32xf32> -> vector<256x32xf32>
    %214 = arith.addf %207, %213 : vector<256x32xf32>
    %c2_222 = arith.constant 2 : index
    %c1_223 = arith.constant 1 : index
    %c0_224 = arith.constant 0 : index
    %215 = vector.load %arg13[%c2_222, %c1_223, %c0_224] : memref<18x18x8xf32, #tpu.memory_space<vmem>>, vector<16x16x8xf32>
    %216 = vector.shape_cast %215 : vector<16x16x8xf32> to vector<256x8xf32>
    %217 = arith.truncf %216 : vector<256x8xf32> to vector<256x8xbf16>
    %c7_225 = arith.constant 7 : index
    %c0_226 = arith.constant 0 : index
    %c0_227 = arith.constant 0 : index
    %218 = vector.load %arg8[%c7_225, %c0_226, %c0_227] : memref<9x8x32xbf16, #tpu.memory_space<vmem>>, vector<1x8x32xbf16>
    %219 = vector.shape_cast %218 : vector<1x8x32xbf16> to vector<8x32xbf16>
    %cst_228 = arith.constant dense<0.000000e+00> : vector<256x32xf32>
    %220 = tpu.matmul %217, %219, %cst_228 {dimension_numbers = #tpu.dot_dimension_numbers<[1], [0], [0], [1], [0, 0, 1, 1], [], []>} : vector<256x8xbf16>, vector<8x32xbf16>, vector<256x32xf32> -> vector<256x32xf32>
    %221 = arith.addf %214, %220 : vector<256x32xf32>
    %c2_229 = arith.constant 2 : index
    %c2_230 = arith.constant 2 : index
    %c0_231 = arith.constant 0 : index
    %222 = vector.load %arg13[%c2_229, %c2_230, %c0_231] : memref<18x18x8xf32, #tpu.memory_space<vmem>>, vector<16x16x8xf32>
    %223 = vector.shape_cast %222 : vector<16x16x8xf32> to vector<256x8xf32>
    %224 = arith.truncf %223 : vector<256x8xf32> to vector<256x8xbf16>
    %c8_232 = arith.constant 8 : index
    %c0_233 = arith.constant 0 : index
    %c0_234 = arith.constant 0 : index
    %225 = vector.load %arg8[%c8_232, %c0_233, %c0_234] : memref<9x8x32xbf16, #tpu.memory_space<vmem>>, vector<1x8x32xbf16>
    %226 = vector.shape_cast %225 : vector<1x8x32xbf16> to vector<8x32xbf16>
    %cst_235 = arith.constant dense<0.000000e+00> : vector<256x32xf32>
    %227 = tpu.matmul %224, %226, %cst_235 {dimension_numbers = #tpu.dot_dimension_numbers<[1], [0], [0], [1], [0, 0, 1, 1], [], []>} : vector<256x8xbf16>, vector<8x32xbf16>, vector<256x32xf32> -> vector<256x32xf32>
    %228 = arith.addf %221, %227 : vector<256x32xf32>
    %c0_236 = arith.constant 0 : index
    %c0_237 = arith.constant 0 : index
    %c0_238 = arith.constant 0 : index
    %c0_239 = arith.constant 0 : index
    %229 = vector.load %arg1[%c0_236, %c0_237, %c0_238, %c0_239] : memref<1x18x18x4xf32, #tpu.memory_space<vmem>>, vector<1x16x16x4xf32>
    %230 = vector.shape_cast %229 : vector<1x16x16x4xf32> to vector<16x16x4xf32>
    %c0_240 = arith.constant 0 : index
    %c0_241 = arith.constant 0 : index
    %c1_242 = arith.constant 1 : index
    %c0_243 = arith.constant 0 : index
    %231 = vector.load %arg1[%c0_240, %c0_241, %c1_242, %c0_243] : memref<1x18x18x4xf32, #tpu.memory_space<vmem>>, vector<1x16x16x4xf32>
    %232 = vector.shape_cast %231 : vector<1x16x16x4xf32> to vector<16x16x4xf32>
    %233 = arith.maximumf %230, %232 : vector<16x16x4xf32>
    %c0_244 = arith.constant 0 : index
    %c0_245 = arith.constant 0 : index
    %c2_246 = arith.constant 2 : index
    %c0_247 = arith.constant 0 : index
    %234 = vector.load %arg1[%c0_244, %c0_245, %c2_246, %c0_247] : memref<1x18x18x4xf32, #tpu.memory_space<vmem>>, vector<1x16x16x4xf32>
    %235 = vector.shape_cast %234 : vector<1x16x16x4xf32> to vector<16x16x4xf32>
    %236 = arith.maximumf %233, %235 : vector<16x16x4xf32>
    %c0_248 = arith.constant 0 : index
    %c1_249 = arith.constant 1 : index
    %c0_250 = arith.constant 0 : index
    %c0_251 = arith.constant 0 : index
    %237 = vector.load %arg1[%c0_248, %c1_249, %c0_250, %c0_251] : memref<1x18x18x4xf32, #tpu.memory_space<vmem>>, vector<1x16x16x4xf32>
    %238 = vector.shape_cast %237 : vector<1x16x16x4xf32> to vector<16x16x4xf32>
    %239 = arith.maximumf %236, %238 : vector<16x16x4xf32>
    %c0_252 = arith.constant 0 : index
    %c1_253 = arith.constant 1 : index
    %c1_254 = arith.constant 1 : index
    %c0_255 = arith.constant 0 : index
    %240 = vector.load %arg1[%c0_252, %c1_253, %c1_254, %c0_255] : memref<1x18x18x4xf32, #tpu.memory_space<vmem>>, vector<1x16x16x4xf32>
    %241 = vector.shape_cast %240 : vector<1x16x16x4xf32> to vector<16x16x4xf32>
    %242 = arith.maximumf %239, %241 : vector<16x16x4xf32>
    %c0_256 = arith.constant 0 : index
    %c1_257 = arith.constant 1 : index
    %c2_258 = arith.constant 2 : index
    %c0_259 = arith.constant 0 : index
    %243 = vector.load %arg1[%c0_256, %c1_257, %c2_258, %c0_259] : memref<1x18x18x4xf32, #tpu.memory_space<vmem>>, vector<1x16x16x4xf32>
    %244 = vector.shape_cast %243 : vector<1x16x16x4xf32> to vector<16x16x4xf32>
    %245 = arith.maximumf %242, %244 : vector<16x16x4xf32>
    %c0_260 = arith.constant 0 : index
    %c2_261 = arith.constant 2 : index
    %c0_262 = arith.constant 0 : index
    %c0_263 = arith.constant 0 : index
    %246 = vector.load %arg1[%c0_260, %c2_261, %c0_262, %c0_263] : memref<1x18x18x4xf32, #tpu.memory_space<vmem>>, vector<1x16x16x4xf32>
    %247 = vector.shape_cast %246 : vector<1x16x16x4xf32> to vector<16x16x4xf32>
    %248 = arith.maximumf %245, %247 : vector<16x16x4xf32>
    %c0_264 = arith.constant 0 : index
    %c2_265 = arith.constant 2 : index
    %c1_266 = arith.constant 1 : index
    %c0_267 = arith.constant 0 : index
    %249 = vector.load %arg1[%c0_264, %c2_265, %c1_266, %c0_267] : memref<1x18x18x4xf32, #tpu.memory_space<vmem>>, vector<1x16x16x4xf32>
    %250 = vector.shape_cast %249 : vector<1x16x16x4xf32> to vector<16x16x4xf32>
    %251 = arith.maximumf %248, %250 : vector<16x16x4xf32>
    %c0_268 = arith.constant 0 : index
    %c2_269 = arith.constant 2 : index
    %c2_270 = arith.constant 2 : index
    %c0_271 = arith.constant 0 : index
    %252 = vector.load %arg1[%c0_268, %c2_269, %c2_270, %c0_271] : memref<1x18x18x4xf32, #tpu.memory_space<vmem>>, vector<1x16x16x4xf32>
    %253 = vector.shape_cast %252 : vector<1x16x16x4xf32> to vector<16x16x4xf32>
    %254 = arith.maximumf %251, %253 : vector<16x16x4xf32>
    %255 = vector.shape_cast %254 : vector<16x16x4xf32> to vector<256x4xf32>
    %256 = arith.truncf %255 : vector<256x4xf32> to vector<256x4xbf16>
    %c0_272 = arith.constant 0 : index
    %c0_273 = arith.constant 0 : index
    %257 = vector.load %arg9[%c0_272, %c0_273] : memref<4x32xbf16, #tpu.memory_space<vmem>>, vector<4x32xbf16>
    %cst_274 = arith.constant dense<0.000000e+00> : vector<256x32xf32>
    %258 = tpu.matmul %256, %257, %cst_274 {dimension_numbers = #tpu.dot_dimension_numbers<[1], [0], [0], [1], [0, 0, 1, 1], [], []>} : vector<256x4xbf16>, vector<4x32xbf16>, vector<256x32xf32> -> vector<256x32xf32>
    %259 = arith.addf %228, %258 : vector<256x32xf32>
    %c0_275 = arith.constant 0 : index
    %c0_276 = arith.constant 0 : index
    %260 = vector.load %arg10[%c0_275, %c0_276] : memref<1x32xf32, #tpu.memory_space<vmem>>, vector<1x32xf32>
    %261 = vector.broadcast %260 : vector<1x32xf32> to vector<256x32xf32>
    %262 = arith.addf %259, %261 : vector<256x32xf32>
    %cst_277 = arith.constant 0.000000e+00 : f32
    %263 = vector.broadcast %cst_277 : f32 to vector<256x32xf32>
    %264 = arith.maximumf %262, %263 : vector<256x32xf32>
    %265 = vector.shape_cast %264 : vector<256x32xf32> to vector<1x16x16x32xf32>
    %c0_278 = arith.constant 0 : index
    %c0_279 = arith.constant 0 : index
    %c0_280 = arith.constant 0 : index
    %c0_281 = arith.constant 0 : index
    %266 = vector.load %arg11[%c0_278, %c0_279, %c0_280, %c0_281] : memref<1x16x16x32xf32, #tpu.memory_space<vmem>>, vector<1x16x16x32xf32>
    tpu.vector_store %arg11[%c0_278, %c0_279, %c0_280, %c0_281], %265 {strides = array<i32>} : memref<1x16x16x32xf32, #tpu.memory_space<vmem>>, vector<1x16x16x32xf32>,
    return
  }
  func.func @transform_0(%arg0: i32) -> (i32, i32, i32, i32) {
    %c0_i32 = arith.constant 0 : i32
    %c0_i32_0 = arith.constant 0 : i32
    %c0_i32_1 = arith.constant 0 : i32
    %c0_i32_2 = arith.constant 0 : i32
    return %arg0, %c0_i32, %c0_i32_0, %c0_i32_1 : i32, i32, i32, i32
  }
  func.func @transform_1(%arg0: i32) -> (i32, i32) {
    %c0_i32 = arith.constant 0 : i32
    %c0_i32_0 = arith.constant 0 : i32
    %c0_i32_1 = arith.constant 0 : i32
    return %c0_i32, %c0_i32_0 : i32, i32
  }
  func.func @transform_2(%arg0: i32) -> (i32, i32) {
    %c0_i32 = arith.constant 0 : i32
    %c0_i32_0 = arith.constant 0 : i32
    %c0_i32_1 = arith.constant 0 : i32
    return %c0_i32, %c0_i32_0 : i32, i32
  }
  func.func @transform_3(%arg0: i32) -> (i32, i32) {
    %c0_i32 = arith.constant 0 : i32
    %c0_i32_0 = arith.constant 0 : i32
    %c0_i32_1 = arith.constant 0 : i32
    return %c0_i32, %c0_i32_0 : i32, i32
  }
  func.func @transform_4(%arg0: i32) -> (i32, i32, i32) {
    %c0_i32 = arith.constant 0 : i32
    %c0_i32_0 = arith.constant 0 : i32
    %c0_i32_1 = arith.constant 0 : i32
    %c0_i32_2 = arith.constant 0 : i32
    return %c0_i32, %c0_i32_0, %c0_i32_1 : i32, i32, i32
  }
  func.func @transform_5(%arg0: i32) -> (i32, i32, i32) {
    %c0_i32 = arith.constant 0 : i32
    %c0_i32_0 = arith.constant 0 : i32
    %c0_i32_1 = arith.constant 0 : i32
    %c0_i32_2 = arith.constant 0 : i32
    return %c0_i32, %c0_i32_0, %c0_i32_1 : i32, i32, i32
  }
  func.func @transform_6(%arg0: i32) -> (i32, i32) {
    %c0_i32 = arith.constant 0 : i32
    %c0_i32_0 = arith.constant 0 : i32
    %c0_i32_1 = arith.constant 0 : i32
    return %c0_i32, %c0_i32_0 : i32, i32
  }
  func.func @transform_7(%arg0: i32) -> (i32, i32, i32) {
    %c0_i32 = arith.constant 0 : i32
    %c0_i32_0 = arith.constant 0 : i32
    %c0_i32_1 = arith.constant 0 : i32
    %c0_i32_2 = arith.constant 0 : i32
    return %c0_i32, %c0_i32_0, %c0_i32_1 : i32, i32, i32
  }
  func.func @transform_8(%arg0: i32) -> (i32, i32) {
    %c0_i32 = arith.constant 0 : i32
    %c0_i32_0 = arith.constant 0 : i32
    %c0_i32_1 = arith.constant 0 : i32
    return %c0_i32, %c0_i32_0 : i32, i32
  }
  func.func @transform_9(%arg0: i32) -> (i32, i32) {
    %c0_i32 = arith.constant 0 : i32
    %c0_i32_0 = arith.constant 0 : i32
    %c0_i32_1 = arith.constant 0 : i32
    return %c0_i32, %c0_i32_0 : i32, i32
  }
  func.func @transform_10(%arg0: i32) -> (i32, i32, i32, i32) {
    %c0_i32 = arith.constant 0 : i32
    %c0_i32_0 = arith.constant 0 : i32
    %c0_i32_1 = arith.constant 0 : i32
    %c0_i32_2 = arith.constant 0 : i32
    return %arg0, %c0_i32, %c0_i32_0, %c0_i32_1 : i32, i32, i32, i32
  }
}

</mosaic_0001>

<bundles_post_ra>
// kernel: factor_inception_a.1
= control target key start
LH: loop header
LB: loop body
LE: loop exit
PB: predicated region body
PF: predicated region fallthrough
CT: control target
= control target key end

     0   :  { %15 = vsyncpa [#allocation5], 0  ;;  %s11496_s0 = inlined_call_operand.vmem [shape: f32[2,18,18,4], index: 0, kind: input, shape index: {}]   ;;  %s11497_s1 = inlined_call_operand.vmem [shape: bf16[4,16], index: 1, kind: input, shape index: {}]   ;;  %s11498_s2 = inlined_call_operand.vmem [shape: f32[1,16], index: 2, kind: input, shape index: {}]   ;;  %s11499_s3 = inlined_call_operand.vmem [shape: bf16[16,32], index: 3, kind: input, shape index: {}]   ;;  %s11500_s4 = inlined_call_operand.vmem [shape: bf16[9,16,32], index: 4, kind: input, shape index: {}]   ;;  %s11501_s5 = inlined_call_operand.vmem [shape: bf16[9,16,8], index: 5, kind: input, shape index: {}]   ;;  %s11502_s6 = inlined_call_operand.vmem [shape: f32[1,8], index: 6, kind: input, shape index: {}]   ;;  %s11503_s7 = inlined_call_operand.vmem [shape: bf16[9,8,32], index: 7, kind: input, shape index: {}]   ;;  %s11504_s8 = inlined_call_operand.vmem [shape: bf16[4,32], index: 8, kind: input, shape index: {}]   ;;  %s11505_s9 = inlined_call_operand.vmem [shape: f32[1,32], index: 9, kind: input, shape index: {}]   ;;  %s11506_s10 = inlined_call_operand.hbm [shape: f32[2,16,16,32], index: 10, kind: output, shape index: {}]  }
   0x1   :  { %17 = vsyncpa [#allocation5 + $0x1], 0  ;;  %s8079_s13 = smov 0   ;;  %s8081_s14 = smov 0  }
   0x2   :  { %s8083_s15 = smov 0   ;;  %s8085_s16 = smov 0  }
   0x3 LB: > { %s8100_s17 = sadd.s32 4294967295, %s8020_s16   ;;  %s7059_s18 = sadd.s32 4294967294, %s8020_s16   ;;  %s8020_s16 = sphi %s8085_s16, %s12056_s16   ;;  %s8016_s15 = sphi %s8083_s15, %s12055_s15   ;;  %s8012_s14 = sphi %s8081_s14, %s12054_s14   ;;  %s8008_s13 = sphi %s8079_s13, %s12053_s13  }
   0x4   : > { %s8104_s19 = sadd.s32 1, %s8020_s16   ;;  %s245_s20 = sadd.s32 1, %s8016_s15 }
   0x5   : > { %s242_s21 = ssub.s32 %s8020_s16, %s8104_s19  ;;  %p255_p0 = scmp.ne.s32.totalorder %s8016_s15, %s8012_s14 }
   0x6   : > { %p243_p1 = scmp.eq.s32.totalorder %s242_s21, 0  ;;  %p256_p2 = scmp.eq.s32.totalorder %s8100_s17, 1 }
   0x7   : > { %p261_p3 = scmp.ne.s32.totalorder %s8012_s14, %s8008_s13  ;;  %p262_p4 = scmp.eq.s32.totalorder %s7059_s18, 1 }
   0x8   : > { %s8115_s22 = scalar_select %p243_p1, %s8016_s15, %s245_s20  }
   0x9   : > { %p8117_p5 = por %p256_p2, %p255_p0  ;;  %p8121_p6 = por %p262_p4, %p261_p3 }
   0xa   : > { %p7062_p7 = scmp.ge.s32.totalorder %s8020_s16, 1  ;;  %p315_p8 = scmp.lt.s32.totalorder %s8020_s16, 3 }
   0xc   : > { %p316_p9 = pnand %p7062_p7, %p315_p8 }
   0xe   : > { %319 = sbr.rel (%p316_p9) target bundleno = 2517 (0x9d5), region = 60 }
  0x13   : > { %v408_v0 = vld [vmem:[%s11497_s1] sm:$0x3]  ;;  %vm462_vm0 = vcmask 1041408   ;;  %p353_p10 = scmp.lt.s32.totalorder %s8100_s17, 1  ;;  %vm413_vm1 = vcmask 31744   ;;  %vm606_vm2 = vcmask 130048  }
  0x14   : > { %v464_v1 = vsel %vm462_vm0, %v408_v0, 0  ;;  %v7890_v44 = vld [vmem:[%s11499_s3] sm:$0xff]  ;;  %vm662_vm3 = vcmask 122880   ;;  %v7893_v0 = vld [vmem:[%s11500_s4 + $0x10] sm:$0xff]  ;;  %vm4244_vm4 = vcmask 1043456   ;;  %vm4036_vm5 = vcmask 64512  }
  0x15   : > { %473 = vmatpush.bf16.msra.mxu0 %v464_v1  ;;  %s354_s27 = scalar_select %p353_p10, %s8100_s17, 1  ;;  %7910 = vmatpush.bf16.msra.mxu2 %v464_v1  ;;  %v8192_v51 = vld [vmem:[%s11498_s2] ss:$0 sm:$0xff]  ;;  %vm4092_vm6 = vcmask 57344   ;;  %vm6948_vm7 = vcmask 261120  }
  0x16   : > { %v7891_v55 = vld [vmem:[%s11500_s4] sm:$0xff]  ;;  %s350_s25 = sand.u32 1, %s8012_s14   ;;  %s7978_s30 = scalar_lea.hbm %s11506_s10, 512 }
  0x17   : > { %s7912_s28 = smul.u32 432, %s354_s27  ;;  %828 = vmatpush.bf16.msra.mxu1 %v7891_v55  ;;  %7911 = vmatpush.bf16.msra.mxu3 %v7891_v55 }
  0x19   : > { %s8136_s11 = scalar_lea.vmem %s11496_s0, %s7912_s28  ;;  %971 = vmatpush.bf16.msrb.mxu2 %v7890_v44  ;;  %1391 = vmatpush.bf16.msrb.mxu0 %v7893_v0  ;;  %s7063_s28 = sshll.u32 %s350_s25, 8 }
  0x1a   : > { %v7065_v2 = vld [vmem:[%s8136_s11 + $0x19] sm:$0xff]  ;;  %v7066_v3 = vld [vmem:[%s8136_s11 + $0x21] sm:$0xff]  ;;  %v7067_v8 = vld [vmem:[%s8136_s11 + $0x31] sm:$0xff]  ;;  %s11230_s29 = scalar_lea.vmem [#allocation4], %s7063_s28 }
  0x1b   : > { %v7081_v4 = vld [vmem:[%s8136_s11 + $0xd9] sm:$0xff]  ;;  %v392_v5 = vpack.c.bf16 %v7066_v3, %v7065_v2  ;;  %v7082_v6 = vld [vmem:[%s8136_s11 + $0xe1] sm:$0xff]  ;;  %v7083_v10 = vld [vmem:[%s8136_s11 + $0xf1] sm:$0xff]  ;;  %s6994_s20 = sshll.u32 %s11230_s29, 4  ;;  %s6995_s20 = int_to_ptr.vmem [resolvable:$true] %s6994_s20 }
  0x1c   : > { %v400_v7 = vpack.c.bf16 %v7082_v6, %v7081_v4  ;;  %v7068_v9 = vld [vmem:[%s8136_s11 + $0x39] sm:$0xff]  ;;  %v7069_v14 = vld [vmem:[%s8136_s11 + $0x49] sm:$0xff]  ;;  %v7070_v15 = vld [vmem:[%s8136_s11 + $0x51] sm:$0xff] }
  0x1d   : > { %7097 = vmatmul.msk.bf16.vlgmr.msra.gmra.mxu0 %vm413_vm1, %v392_v5  ;;  %v7084_v11 = vld [vmem:[%s8136_s11 + $0xf9] sm:$0xff]  ;;  %v393_v12 = vpack.c.bf16 %v7068_v9, %v7067_v8  ;;  %v7085_v16 = vld [vmem:[%s8136_s11 + $0x109] sm:$0xff]  ;;  %v7086_v17 = vld [vmem:[%s8136_s11 + $0x111] sm:$0xff]  ;;  %v394_v18 = vpack.c.bf16 %v7070_v15, %v7069_v14 }
  0x1e   : > { %7105 = vmatmul.msk.bf16.vlgmr.msra.gmra.mxu2 %vm413_vm1, %v400_v7  ;;  %v401_v13 = vpack.c.bf16 %v7084_v11, %v7083_v10  ;;  %v402_v19 = vpack.c.bf16 %v7086_v17, %v7085_v16  ;;  %v7071_v20 = vld [vmem:[%s8136_s11 + $0x61] sm:$0xff]  ;;  %v7072_v21 = vld [vmem:[%s8136_s11 + $0x69] sm:$0xff]  ;;  %v7073_v26 = vld [vmem:[%s8136_s11 + $0x79] sm:$0xff] }
  0x1f   : > { %v7087_v22 = vld [vmem:[%s8136_s11 + $0x121] sm:$0xff]  ;;  %v7088_v23 = vld [vmem:[%s8136_s11 + $0x129] sm:$0xff]  ;;  %v395_v24 = vpack.c.bf16 %v7072_v21, %v7071_v20  ;;  %v7089_v28 = vld [vmem:[%s8136_s11 + $0x139] sm:$0xff] }
  0x20   : > { %v403_v25 = vpack.c.bf16 %v7088_v23, %v7087_v22  ;;  %v7074_v27 = vld [vmem:[%s8136_s11 + $0x81] sm:$0xff]  ;;  %v7075_v32 = vld [vmem:[%s8136_s11 + $0x91] sm:$0xff]  ;;  %v7076_v33 = vld [vmem:[%s8136_s11 + $0x99] sm:$0xff] }
  0x21   : > { %v7090_v29 = vld [vmem:[%s8136_s11 + $0x141] sm:$0xff]  ;;  %v396_v30 = vpack.c.bf16 %v7074_v27, %v7073_v26  ;;  %v7091_v34 = vld [vmem:[%s8136_s11 + $0x151] sm:$0xff]  ;;  %v7092_v35 = vld [vmem:[%s8136_s11 + $0x159] sm:$0xff]  ;;  %v397_v36 = vpack.c.bf16 %v7076_v33, %v7075_v32 }
  0x22   : > { %v404_v31 = vpack.c.bf16 %v7090_v29, %v7089_v28  ;;  %v405_v37 = vpack.c.bf16 %v7092_v35, %v7091_v34  ;;  %v7077_v38 = vld [vmem:[%s8136_s11 + $0xa9] sm:$0xff]  ;;  %v7078_v39 = vld [vmem:[%s8136_s11 + $0xb1] sm:$0xff]  ;;  %v7079_v45 = vld [vmem:[%s8136_s11 + $0xc1] sm:$0xff] }
  0x23   : > { %v7093_v40 = vld [vmem:[%s8136_s11 + $0x169] sm:$0xff]  ;;  %v7094_v41 = vld [vmem:[%s8136_s11 + $0x171] sm:$0xff]  ;;  %v398_v42 = vpack.c.bf16 %v7078_v39, %v7077_v38  ;;  %v7095_v47 = vld [vmem:[%s8136_s11 + $0x181] sm:$0xff] }
  0x24   : > { %v406_v43 = vpack.c.bf16 %v7094_v41, %v7093_v40  ;;  %v7080_v46 = vld [vmem:[%s8136_s11 + $0xc9] sm:$0xff] }
  0x25   : > { %v7096_v48 = vld [vmem:[%s8136_s11 + $0x189] sm:$0xff]  ;;  %v399_v49 = vpack.c.bf16 %v7080_v46, %v7079_v45 }
  0x26   : > { %v407_v50 = vpack.c.bf16 %v7096_v48, %v7095_v47 }
  0x2d   : > { %7098 = vmatmul.msk.bf16.gmra.mxu0 %vm413_vm1, %v393_v12 }
  0x2e   : > { %7106 = vmatmul.msk.bf16.gmra.mxu2 %vm413_vm1, %v401_v13 }
  0x3d   : > { %7099 = vmatmul.msk.bf16.gmra.mxu0 %vm413_vm1, %v394_v18 }
  0x3e   : > { %7107 = vmatmul.msk.bf16.gmra.mxu2 %vm413_vm1, %v402_v19 }
  0x4d   : > { %7100 = vmatmul.msk.bf16.gmra.mxu0 %vm413_vm1, %v395_v24 }
  0x4e   : > { %7108 = vmatmul.msk.bf16.gmra.mxu2 %vm413_vm1, %v403_v25 }
  0x5d   : > { %7101 = vmatmul.msk.bf16.gmra.mxu0 %vm413_vm1, %v396_v30 }
  0x5e   : > { %7109 = vmatmul.msk.bf16.gmra.mxu2 %vm413_vm1, %v404_v31 }
  0x6d   : > { %7102 = vmatmul.msk.bf16.gmra.mxu0 %vm413_vm1, %v397_v36 }
  0x6e   : > { %7110 = vmatmul.msk.bf16.gmra.mxu2 %vm413_vm1, %v405_v37 }
  0x7d   : > { %7103 = vmatmul.msk.bf16.gmra.mxu0 %vm413_vm1, %v398_v42 }
  0x7e   : > { %7111 = vmatmul.msk.bf16.gmra.mxu2 %vm413_vm1, %v406_v43 }
  0x8d   : > { %7104 = vmatmul.msk.bf16.gmra.mxu0 %vm413_vm1, %v399_v49 }
  0x8e   : > { %7112 = vmatmul.msk.bf16.gmra.mxu2 %vm413_vm1, %v407_v50 }
  0x9a   : > { %v475_v52 = vpop.f32.mrf.mxu0 }
  0x9b   : > { %v476_v53 = vadd.f32 %v8192_v51, %v475_v52 }
  0x9d   : > { %v555_v54 = vmax.f32 %v476_v53, 0.0 }
  0x9f   : > { %607 = vst.msk [vmem:[#allocation2 + $0x19] sm:$0xff] %vm606_vm2, %v555_v54 }
  0xa1   : > { %v515_v56 = vpop.f32.mrf.mxu2 }
  0xa2   : > { %v477_v57 = vpop.f32.mrf.mxu0  ;;  %v516_v58 = vadd.f32 %v8192_v51, %v515_v56 }
  0xa3   : > { %v478_v59 = vadd.f32 %v8192_v51, %v477_v57 }
  0xa4   : > { %v571_v60 = vmax.f32 %v516_v58, 0.0 }
  0xa5   : > { %v556_v61 = vmax.f32 %v478_v59, 0.0 }
  0xa6   : > { %v645_v62 = vld [vmem:[#allocation2 + $0x1a] sm:$0x1]  ;;  %623 = vst.msk [vmem:[#allocation2 + $0xd9] sm:$0xff] %vm606_vm2, %v571_v60 }
  0xa7   : > { %664 = vst.msk [vmem:[#allocation2 + $0x18] sm:$0x1] %vm662_vm3, %v645_v62  ;;  %v587_v63 = vpack.c.bf16 %v556_v61, %v555_v54 }
  0xa8   : > { %608 = vst.msk [vmem:[#allocation2 + $0x21] sm:$0xff] %vm606_vm2, %v556_v61 }
  0xa9   : > { %7137 = vmatmul.msk.bf16.vlgmr.msrb.gmra.mxu2 %vm606_vm2, %v587_v63  ;;  %v517_v1 = vpop.f32.mrf.mxu2 }
  0xaa   : > { %v480_v2 = vpop.f32.mrf.mxu0  ;;  %v518_v3 = vadd.f32 %v8192_v51, %v517_v1 }
  0xab   : > { %v481_v4 = vadd.f32 %v8192_v51, %v480_v2 }
  0xac   : > { %v572_v5 = vmax.f32 %v518_v3, 0.0 }
  0xad   : > { %v557_v6 = vmax.f32 %v481_v4, 0.0  ;;  %v653_v7 = vld [vmem:[#allocation2 + $0xda] sm:$0x1] }
  0xae   : > { %672 = vst.msk [vmem:[#allocation2 + $0xd8] sm:$0x1] %vm662_vm3, %v653_v7  ;;  %v8211_v8 = vpack.c.bf16 %v572_v5, %v571_v60  ;;  %v719_v55 = vld [vmem:[#allocation2 + $0x18] sm:$0xff] }
  0xaf   : > { %v682_v9 = vld [vmem:[#allocation2 + $0x27] sm:$0x1]  ;;  %609 = vst.msk [vmem:[#allocation2 + $0x31] sm:$0xff] %vm606_vm2, %v557_v6  ;;  %v1281_v4 = vld [vmem:[#allocation2 + $0x1a] sm:$0xff] }
  0xb0   : > { %700 = vst.msk [vmem:[#allocation2 + $0x29] sm:$0x1] %vm662_vm3, %v682_v9  ;;  %v720_v56 = vld [vmem:[#allocation2 + $0x20] sm:$0xff] }
  0xb1   : > { %639 = vst.msk [vmem:[#allocation2 + $0x1] sm:$0xff] %vm606_vm2, %v557_v6  ;;  %v520_v10 = vpop.f32.mrf.mxu2  ;;  %v8258_v58 = vpack.c.bf16 %v720_v56, %v719_v55 }
  0xb2   : > { %v482_v11 = vpop.f32.mrf.mxu0  ;;  %624 = vst.msk [vmem:[#allocation2 + $0xe1] sm:$0xff] %vm606_vm2, %v572_v5  ;;  %v521_v12 = vadd.f32 %v8192_v51, %v520_v10 }
  0xb3   : > { %v483_v13 = vadd.f32 %v8192_v51, %v482_v11  ;;  %11624 = vst [vmem:[#allocation9_spill] sm:$0xff] %v8258_v58 }
  0xb4   : > { %v573_v14 = vmax.f32 %v521_v12, 0.0 }
  0xb5   : > { %v558_v15 = vmax.f32 %v483_v13, 0.0 }
  0xb6   : > { %v646_v16 = vld [vmem:[#allocation2 + $0x32] sm:$0x1]  ;;  %625 = vst.msk [vmem:[#allocation2 + $0xf1] sm:$0xff] %vm606_vm2, %v573_v14 }
  0xb7   : > { %665 = vst.msk [vmem:[#allocation2 + $0x30] sm:$0x1] %vm662_vm3, %v646_v16  ;;  %v588_v17 = vpack.c.bf16 %v558_v15, %v557_v6  ;;  %v1282_v2 = vld [vmem:[#allocation2 + $0x22] sm:$0xff] }
  0xb8   : > { %v644_v18 = vld [vmem:[#allocation2 + $0x2] sm:$0x1]  ;;  %610 = vst.msk [vmem:[#allocation2 + $0x39] sm:$0xff] %vm606_vm2, %v558_v15  ;;  %v8269_v6 = vpack.c.bf16 %v1282_v2, %v1281_v4 }
  0xb9   : > { %663 = vst.msk [vmem:[#allocation2] sm:$0x1] %vm662_vm3, %v644_v18  ;;  %v690_v19 = vld [vmem:[#allocation2 + $0xe7] sm:$0x1]  ;;  %7138 = vmatmul.msk.bf16.gmra.mxu2 %vm606_vm2, %v588_v17  ;;  %v522_v20 = vpop.f32.mrf.mxu2 }
  0xba   : > { %640 = vst.msk [vmem:[#allocation2 + $0x9] sm:$0xff] %vm606_vm2, %v558_v15  ;;  %v485_v21 = vpop.f32.mrf.mxu0  ;;  %v523_v22 = vadd.f32 %v8192_v51, %v522_v20 }
  0xbb   : > { %708 = vst.msk [vmem:[#allocation2 + $0xe9] sm:$0x1] %vm662_vm3, %v690_v19  ;;  %v486_v23 = vadd.f32 %v8192_v51, %v485_v21 }
  0xbc   : > { %v574_v24 = vmax.f32 %v523_v22, 0.0  ;;  %11625 = vst [vmem:[#allocation10_spill] sm:$0xff] %v8269_v6 }
  0xbd   : > { %v559_v25 = vmax.f32 %v486_v23, 0.0  ;;  %v654_v26 = vld [vmem:[#allocation2 + $0xf2] sm:$0x1] }
  0xbe   : > { %673 = vst.msk [vmem:[#allocation2 + $0xf0] sm:$0x1] %vm662_vm3, %v654_v26  ;;  %v8229_v27 = vpack.c.bf16 %v574_v24, %v573_v14  ;;  %v721_v16 = vld [vmem:[#allocation2 + $0x30] sm:$0xff] }
  0xbf   : > { %611 = vst.msk [vmem:[#allocation2 + $0x49] sm:$0xff] %vm606_vm2, %v559_v25  ;;  %v683_v28 = vld [vmem:[#allocation2 + $0x3f] sm:$0x1] }
  0xc0   : > { %v717_v29 = vld [vmem:[#allocation2] sm:$0xff]  ;;  %626 = vst.msk [vmem:[#allocation2 + $0xf9] sm:$0xff] %vm606_vm2, %v574_v24  ;;  %v722_v17 = vld [vmem:[#allocation2 + $0x38] sm:$0xff] }
  0xc1   : > { %v681_v30 = vld [vmem:[#allocation2 + $0xf] sm:$0x1]  ;;  %v525_v32 = vpop.f32.mrf.mxu2  ;;  %701 = vst.msk [vmem:[#allocation2 + $0x41] sm:$0x1] %vm662_vm3, %v683_v28  ;;  %v1279_v42 = vld [vmem:[#allocation2 + $0x2] sm:$0xff]  ;;  %v8281_v19 = vpack.c.bf16 %v722_v17, %v721_v16 }
  0xc2   : > { %v718_v31 = vld [vmem:[#allocation2 + $0x8] sm:$0xff]  ;;  %699 = vst.msk [vmem:[#allocation2 + $0x11] sm:$0x1] %vm662_vm3, %v681_v30  ;;  %v487_v34 = vpop.f32.mrf.mxu0  ;;  %v526_v35 = vadd.f32 %v8192_v51, %v525_v32  ;;  %v1283_v30 = vld [vmem:[#allocation2 + $0x32] sm:$0xff] }
  0xc3   : > { %v8235_v33 = vpack.c.bf16 %v718_v31, %v717_v29  ;;  %v488_v36 = vadd.f32 %v8192_v51, %v487_v34  ;;  %11626 = vst [vmem:[#allocation11_spill] sm:$0xff] %v8281_v19  ;;  %v7892_v17 = vld [vmem:[%s11500_s4 + $0x8] sm:$0xff] }
  0xc4   : > { %v575_v37 = vmax.f32 %v526_v35, 0.0  ;;  %1165 = vmatpush.bf16.msrb.mxu3 %v7892_v17 }
  0xc5   : > { %11622 = vst [vmem:[#allocation7_spill] sm:$0xff] %v8235_v33  ;;  %7117 = vmatmul.msk.bf16.vlgmr.msra.gmra.mxu1 %vm606_vm2, %v8235_v33  ;;  %v560_v38 = vmax.f32 %v488_v36, 0.0 }
  0xc6   : > { %v647_v39 = vld [vmem:[#allocation2 + $0x4a] sm:$0x1]  ;;  %627 = vst.msk [vmem:[#allocation2 + $0x109] sm:$0xff] %vm606_vm2, %v575_v37 }
  0xc7   : > { %666 = vst.msk [vmem:[#allocation2 + $0x48] sm:$0x1] %vm662_vm3, %v647_v39  ;;  %v691_v40 = vld [vmem:[#allocation2 + $0xff] sm:$0x1]  ;;  %v589_v41 = vpack.c.bf16 %v560_v38, %v559_v25 }
  0xc8   : > { %612 = vst.msk [vmem:[#allocation2 + $0x51] sm:$0xff] %vm606_vm2, %v560_v38  ;;  %v1284_v28 = vld [vmem:[#allocation2 + $0x3a] sm:$0xff] }
  0xc9   : > { %709 = vst.msk [vmem:[#allocation2 + $0x101] sm:$0x1] %vm662_vm3, %v691_v40  ;;  %7139 = vmatmul.msk.bf16.gmra.mxu2 %vm606_vm2, %v589_v41  ;;  %v1280_v43 = vld [vmem:[#allocation2 + $0xa] sm:$0xff]  ;;  %v527_v44 = vpop.f32.mrf.mxu2  ;;  %v8292_v32 = vpack.c.bf16 %v1284_v28, %v1283_v30 }
  0xca   : > { %v8246_v45 = vpack.c.bf16 %v1280_v43, %v1279_v42  ;;  %v490_v46 = vpop.f32.mrf.mxu0  ;;  %v528_v47 = vadd.f32 %v8192_v51, %v527_v44 }
  0xcb   : > { %v491_v48 = vadd.f32 %v8192_v51, %v490_v46  ;;  %11627 = vst [vmem:[#allocation12_spill] sm:$0xff] %v8292_v32 }
  0xcc   : > { %11623 = vst [vmem:[#allocation8_spill] sm:$0xff] %v8246_v45  ;;  %7181 = vmatmul.msk.bf16.vlgmr.msrb.gmra.mxu0 %vm606_vm2, %v8246_v45  ;;  %v576_v49 = vmax.f32 %v528_v47, 0.0 }
  0xcd   : > { %v561_v50 = vmax.f32 %v491_v48, 0.0  ;;  %v655_v52 = vld [vmem:[#allocation2 + $0x10a] sm:$0x1] }
  0xce   : > { %674 = vst.msk [vmem:[#allocation2 + $0x108] sm:$0x1] %vm662_vm3, %v655_v52  ;;  %v8253_v53 = vpack.c.bf16 %v576_v49, %v575_v37  ;;  %v723_v42 = vld [vmem:[#allocation2 + $0x48] sm:$0xff] }
  0xcf   : > { %v684_v54 = vld [vmem:[#allocation2 + $0x57] sm:$0x1]  ;;  %613 = vst.msk [vmem:[#allocation2 + $0x61] sm:$0xff] %vm606_vm2, %v561_v50 }
  0xd0   : > { %702 = vst.msk [vmem:[#allocation2 + $0x59] sm:$0x1] %vm662_vm3, %v684_v54  ;;  %v724_v43 = vld [vmem:[#allocation2 + $0x50] sm:$0xff] }
  0xd1   : > { %628 = vst.msk [vmem:[#allocation2 + $0x111] sm:$0xff] %vm606_vm2, %v576_v49  ;;  %v530_v57 = vpop.f32.mrf.mxu2  ;;  %v8304_v46 = vpack.c.bf16 %v724_v43, %v723_v42 }
  0xd2   : > { %v492_v59 = vpop.f32.mrf.mxu0  ;;  %v531_v60 = vadd.f32 %v8192_v51, %v530_v57 }
  0xd3   : > { %v493_v61 = vadd.f32 %v8192_v51, %v492_v59  ;;  %11628 = vst [vmem:[#allocation13_spill] sm:$0xff] %v8304_v46  ;;  %v1285_v59 = vld [vmem:[#allocation2 + $0x4a] sm:$0xff] }
  0xd4   : > { %v577_v62 = vmax.f32 %v531_v60, 0.0 }
  0xd5   : > { %7118 = vmatmul.msk.bf16.gmra.mxu1 %vm606_vm2, %v8258_v58  ;;  %v562_v63 = vmax.f32 %v493_v61, 0.0 }
  0xd6   : > { %v648_v0 = vld [vmem:[#allocation2 + $0x62] sm:$0x1]  ;;  %629 = vst.msk [vmem:[#allocation2 + $0x121] sm:$0xff] %vm606_vm2, %v577_v62 }
  0xd7   : > { %667 = vst.msk [vmem:[#allocation2 + $0x60] sm:$0x1] %vm662_vm3, %v648_v0  ;;  %v590_v1 = vpack.c.bf16 %v562_v63, %v561_v50  ;;  %v1286_v56 = vld [vmem:[#allocation2 + $0x52] sm:$0xff] }
  0xd8   : > { %614 = vst.msk [vmem:[#allocation2 + $0x69] sm:$0xff] %vm606_vm2, %v562_v63  ;;  %v692_v3 = vld [vmem:[#allocation2 + $0x117] sm:$0x1]  ;;  %v8315_v61 = vpack.c.bf16 %v1286_v56, %v1285_v59 }
  0xd9   : > { %710 = vst.msk [vmem:[#allocation2 + $0x119] sm:$0x1] %vm662_vm3, %v692_v3  ;;  %7140 = vmatmul.msk.bf16.gmra.mxu2 %vm606_vm2, %v590_v1  ;;  %v532_v5 = vpop.f32.mrf.mxu2 }
  0xda   : > { %v495_v7 = vpop.f32.mrf.mxu0  ;;  %v533_v9 = vadd.f32 %v8192_v51, %v532_v5  ;;  %11629 = vst [vmem:[#allocation14_spill] sm:$0xff] %v8315_v61 }
  0xdb   : > { %v496_v10 = vadd.f32 %v8192_v51, %v495_v7 }
  0xdc   : > { %7182 = vmatmul.msk.bf16.gmra.mxu0 %vm606_vm2, %v8269_v6  ;;  %v578_v11 = vmax.f32 %v533_v9, 0.0 }
  0xdd   : > { %v563_v12 = vmax.f32 %v496_v10, 0.0  ;;  %v656_v13 = vld [vmem:[#allocation2 + $0x122] sm:$0x1] }
  0xde   : > { %675 = vst.msk [vmem:[#allocation2 + $0x120] sm:$0x1] %vm662_vm3, %v656_v13  ;;  %v8276_v14 = vpack.c.bf16 %v578_v11, %v577_v62  ;;  %v725_v7 = vld [vmem:[#allocation2 + $0x60] sm:$0xff] }
  0xdf   : > { %v685_v15 = vld [vmem:[#allocation2 + $0x6f] sm:$0x1]  ;;  %615 = vst.msk [vmem:[#allocation2 + $0x79] sm:$0xff] %vm606_vm2, %v563_v12 }
  0xe0   : > { %703 = vst.msk [vmem:[#allocation2 + $0x71] sm:$0x1] %vm662_vm3, %v685_v15  ;;  %v726_v9 = vld [vmem:[#allocation2 + $0x68] sm:$0xff] }
  0xe1   : > { %630 = vst.msk [vmem:[#allocation2 + $0x129] sm:$0xff] %vm606_vm2, %v578_v11  ;;  %v535_v18 = vpop.f32.mrf.mxu2  ;;  %v8327_v11 = vpack.c.bf16 %v726_v9, %v725_v7 }
  0xe2   : > { %v497_v20 = vpop.f32.mrf.mxu0  ;;  %v536_v21 = vadd.f32 %v8192_v51, %v535_v18 }
  0xe3   : > { %v498_v22 = vadd.f32 %v8192_v51, %v497_v20  ;;  %11630 = vst [vmem:[#allocation15_spill] sm:$0xff] %v8327_v11 }
  0xe4   : > { %v579_v23 = vmax.f32 %v536_v21, 0.0 }
  0xe5   : > { %7119 = vmatmul.msk.bf16.gmra.mxu1 %vm606_vm2, %v8281_v19  ;;  %v564_v24 = vmax.f32 %v498_v22, 0.0 }
  0xe6   : > { %v649_v25 = vld [vmem:[#allocation2 + $0x7a] sm:$0x1]  ;;  %631 = vst.msk [vmem:[#allocation2 + $0x139] sm:$0xff] %vm606_vm2, %v579_v23 }
  0xe7   : > { %668 = vst.msk [vmem:[#allocation2 + $0x78] sm:$0x1] %vm662_vm3, %v649_v25  ;;  %v591_v26 = vpack.c.bf16 %v564_v24, %v563_v12  ;;  %v1288_v22 = vld [vmem:[#allocation2 + $0x6a] sm:$0xff] }
  0xe8   : > { %616 = vst.msk [vmem:[#allocation2 + $0x81] sm:$0xff] %vm606_vm2, %v564_v24  ;;  %v693_v29 = vld [vmem:[#allocation2 + $0x12f] sm:$0x1]  ;;  %v1287_v24 = vld [vmem:[#allocation2 + $0x62] sm:$0xff] }
  0xe9   : > { %711 = vst.msk [vmem:[#allocation2 + $0x131] sm:$0x1] %vm662_vm3, %v693_v29  ;;  %7141 = vmatmul.msk.bf16.gmra.mxu2 %vm606_vm2, %v591_v26  ;;  %v537_v31 = vpop.f32.mrf.mxu2  ;;  %v8344_v26 = vpack.c.bf16 %v1288_v22, %v1287_v24  ;;  %v735_v22 = vld [vmem:[#allocation2 + $0xd8] sm:$0xff] }
  0xea   : > { %v500_v34 = vpop.f32.mrf.mxu0  ;;  %v538_v35 = vadd.f32 %v8192_v51, %v537_v31 }
  0xeb   : > { %v501_v36 = vadd.f32 %v8192_v51, %v500_v34  ;;  %11631 = vst [vmem:[#allocation16_spill] sm:$0xff] %v8344_v26 }
  0xec   : > { %7183 = vmatmul.msk.bf16.gmra.mxu0 %vm606_vm2, %v8292_v32  ;;  %v580_v37 = vmax.f32 %v538_v35, 0.0 }
  0xed   : > { %v565_v38 = vmax.f32 %v501_v36, 0.0  ;;  %v657_v39 = vld [vmem:[#allocation2 + $0x13a] sm:$0x1] }
  0xee   : > { %676 = vst.msk [vmem:[#allocation2 + $0x138] sm:$0x1] %vm662_vm3, %v657_v39  ;;  %v8299_v40 = vpack.c.bf16 %v580_v37, %v579_v23 }
  0xef   : > { %v686_v41 = vld [vmem:[#allocation2 + $0x87] sm:$0x1]  ;;  %617 = vst.msk [vmem:[#allocation2 + $0x91] sm:$0xff] %vm606_vm2, %v565_v38 }
  0xf0   : > { %704 = vst.msk [vmem:[#allocation2 + $0x89] sm:$0x1] %vm662_vm3, %v686_v41  ;;  %v728_v39 = vld [vmem:[#allocation2 + $0x80] sm:$0xff] }
  0xf1   : > { %632 = vst.msk [vmem:[#allocation2 + $0x141] sm:$0xff] %vm606_vm2, %v580_v37  ;;  %v540_v44 = vpop.f32.mrf.mxu2 }
  0xf2   : > { %v502_v47 = vpop.f32.mrf.mxu0  ;;  %v541_v48 = vadd.f32 %v8192_v51, %v540_v44 }
  0xf3   : > { %v503_v49 = vadd.f32 %v8192_v51, %v502_v47 }
  0xf4   : > { %v581_v50 = vmax.f32 %v541_v48, 0.0 }
  0xf5   : > { %7120 = vmatmul.msk.bf16.gmra.mxu1 %vm606_vm2, %v8304_v46  ;;  %v566_v52 = vmax.f32 %v503_v49, 0.0 }
  0xf6   : > { %v650_v54 = vld [vmem:[#allocation2 + $0x92] sm:$0x1]  ;;  %633 = vst.msk [vmem:[#allocation2 + $0x151] sm:$0xff] %vm606_vm2, %v581_v50 }
  0xf7   : > { %669 = vst.msk [vmem:[#allocation2 + $0x90] sm:$0x1] %vm662_vm3, %v650_v54  ;;  %v592_v55 = vpack.c.bf16 %v566_v52, %v565_v38  ;;  %v727_v38 = vld [vmem:[#allocation2 + $0x78] sm:$0xff] }
  0xf8   : > { %618 = vst.msk [vmem:[#allocation2 + $0x99] sm:$0xff] %vm606_vm2, %v566_v52  ;;  %v694_v57 = vld [vmem:[#allocation2 + $0x147] sm:$0x1]  ;;  %v8362_v43 = vpack.c.bf16 %v728_v39, %v727_v38  ;;  %v737_v38 = vld [vmem:[#allocation2 + $0xf0] sm:$0xff]  ;;  %v738_v39 = vld [vmem:[#allocation2 + $0xf8] sm:$0xff] }
  0xf9   : > { %712 = vst.msk [vmem:[#allocation2 + $0x149] sm:$0x1] %vm662_vm3, %v694_v57  ;;  %7142 = vmatmul.msk.bf16.gmra.mxu2 %vm606_vm2, %v592_v55  ;;  %v542_v60 = vpop.f32.mrf.mxu2  ;;  %v1290_v55 = vld [vmem:[#allocation2 + $0x82] sm:$0xff]  ;;  %v1289_v57 = vld [vmem:[#allocation2 + $0x7a] sm:$0xff] }
  0xfa   : > { %v505_v62 = vpop.f32.mrf.mxu0  ;;  %v543_v63 = vadd.f32 %v8192_v51, %v542_v60  ;;  %11632 = vst [vmem:[#allocation17_spill] sm:$0xff] %v8362_v43 }
  0xfb   : > { %v506_v0 = vadd.f32 %v8192_v51, %v505_v62  ;;  %v8375_v62 = vpack.c.bf16 %v1290_v55, %v1289_v57  ;;  %v740_v57 = vld [vmem:[#allocation2 + $0x110] sm:$0xff] }
  0xfc   : > { %7184 = vmatmul.msk.bf16.gmra.mxu0 %vm606_vm2, %v8315_v61  ;;  %v582_v1 = vmax.f32 %v543_v63, 0.0 }
  0xfd   : > { %v567_v2 = vmax.f32 %v506_v0, 0.0  ;;  %v658_v3 = vld [vmem:[#allocation2 + $0x152] sm:$0x1]  ;;  %11633 = vst [vmem:[#allocation18_spill] sm:$0xff] %v8375_v62 }
  0xfe   : > { %677 = vst.msk [vmem:[#allocation2 + $0x150] sm:$0x1] %vm662_vm3, %v658_v3  ;;  %v8322_v4 = vpack.c.bf16 %v582_v1, %v581_v50 }
  0xff   : > { %v687_v5 = vld [vmem:[#allocation2 + $0x9f] sm:$0x1]  ;;  %619 = vst.msk [vmem:[#allocation2 + $0xa9] sm:$0xff] %vm606_vm2, %v567_v2 }
 0x100   : > { %705 = vst.msk [vmem:[#allocation2 + $0xa1] sm:$0x1] %vm662_vm3, %v687_v5  ;;  %v730_v3 = vld [vmem:[#allocation2 + $0x98] sm:$0xff] }
 0x101   : > { %634 = vst.msk [vmem:[#allocation2 + $0x159] sm:$0xff] %vm606_vm2, %v582_v1  ;;  %v545_v10 = vpop.f32.mrf.mxu2 }
 0x102   : > { %v507_v12 = vpop.f32.mrf.mxu0  ;;  %v546_v13 = vadd.f32 %v8192_v51, %v545_v10 }
 0x103   : > { %v508_v15 = vadd.f32 %v8192_v51, %v507_v12 }
 0x104   : > { %v8333_v16 = vmax.f32 %v546_v13, 0.0 }
 0x105   : > { %7121 = vmatmul.msk.bf16.gmra.mxu1 %vm606_vm2, %v8327_v11  ;;  %v568_v18 = vmax.f32 %v508_v15, 0.0 }
 0x106   : > { %v651_v20 = vld [vmem:[#allocation2 + $0xaa] sm:$0x1]  ;;  %635 = vst.msk [vmem:[#allocation2 + $0x169] sm:$0xff] %vm606_vm2, %v8333_v16 }
 0x107   : > { %670 = vst.msk [vmem:[#allocation2 + $0xa8] sm:$0x1] %vm662_vm3, %v651_v20  ;;  %v593_v21 = vpack.c.bf16 %v568_v18, %v567_v2  ;;  %v729_v2 = vld [vmem:[#allocation2 + $0x90] sm:$0xff]  ;;  %v1292_v17 = vld [vmem:[#allocation2 + $0x9a] sm:$0xff] }
 0x108   : > { %620 = vst.msk [vmem:[#allocation2 + $0xb1] sm:$0xff] %vm606_vm2, %v568_v18  ;;  %v695_v23 = vld [vmem:[#allocation2 + $0x15f] sm:$0x1]  ;;  %v8391_v13 = vpack.c.bf16 %v730_v3, %v729_v2  ;;  %v1291_v18 = vld [vmem:[#allocation2 + $0x92] sm:$0xff]  ;;  %v1298_v2 = vld [vmem:[#allocation2 + $0xe2] sm:$0xff] }
 0x109   : > { %713 = vst.msk [vmem:[#allocation2 + $0x161] sm:$0x1] %vm662_vm3, %v695_v23  ;;  %7143 = vmatmul.msk.bf16.gmra.mxu2 %vm606_vm2, %v593_v21  ;;  %v547_v25 = vpop.f32.mrf.mxu2  ;;  %v8400_v20 = vpack.c.bf16 %v1292_v17, %v1291_v18  ;;  %v736_v23 = vld [vmem:[#allocation2 + $0xe0] sm:$0xff]  ;;  %v742_v17 = vld [vmem:[#allocation2 + $0x128] sm:$0xff] }
 0x10a   : > { %v510_v28 = vpop.f32.mrf.mxu0  ;;  %642 = vst.msk [vmem:[#allocation2 + $0x199] sm:$0xff] %vm606_vm2, %v8333_v16  ;;  %v548_v29 = vadd.f32 %v8192_v51, %v547_v25 }
 0x10b   : > { %v511_v30 = vadd.f32 %v8192_v51, %v510_v28  ;;  %11635 = vst [vmem:[#allocation20_spill] sm:$0xff] %v8391_v13  ;;  %v8404_v28 = vpack.c.bf16 %v736_v23, %v735_v22 }
 0x10c   : > { %7185 = vmatmul.msk.bf16.gmra.mxu0 %vm606_vm2, %v8344_v26  ;;  %v8352_v31 = vmax.f32 %v548_v29, 0.0  ;;  %11636 = vst [vmem:[#allocation21_spill] sm:$0xff] %v8400_v20 }
 0x10d   : > { %v569_v34 = vmax.f32 %v511_v30, 0.0  ;;  %v659_v35 = vld [vmem:[#allocation2 + $0x16a] sm:$0x1] }
 0x10e   : > { %678 = vst.msk [vmem:[#allocation2 + $0x168] sm:$0x1] %vm662_vm3, %v659_v35  ;;  %v601_v36 = vpack.c.bf16 %v8352_v31, %v8333_v16  ;;  %v731_v24 = vld [vmem:[#allocation2 + $0xa8] sm:$0xff] }
 0x10f   : > { %v688_v37 = vld [vmem:[#allocation2 + $0xb7] sm:$0x1]  ;;  %621 = vst.msk [vmem:[#allocation2 + $0xc1] sm:$0xff] %vm606_vm2, %v569_v34 }
 0x110   : > { %706 = vst.msk [vmem:[#allocation2 + $0xb9] sm:$0x1] %vm662_vm3, %v688_v37  ;;  %v732_v25 = vld [vmem:[#allocation2 + $0xb0] sm:$0xff] }
 0x111   : > { %v661_v41 = vld [vmem:[#allocation2 + $0x19a] sm:$0x1]  ;;  %636 = vst.msk [vmem:[#allocation2 + $0x171] sm:$0xff] %vm606_vm2, %v8352_v31  ;;  %v550_v42 = vpop.f32.mrf.mxu2  ;;  %v8406_v29 = vpack.c.bf16 %v732_v25, %v731_v24  ;;  %v1299_v24 = vld [vmem:[#allocation2 + $0xf2] sm:$0xff] }
 0x112   : > { %680 = vst.msk [vmem:[#allocation2 + $0x198] sm:$0x1] %vm662_vm3, %v661_v41  ;;  %v512_v44 = vpop.f32.mrf.mxu0  ;;  %v551_v47 = vadd.f32 %v8192_v51, %v550_v42  ;;  %v8418_v41 = vpack.c.bf16 %v738_v39, %v737_v38  ;;  %v1300_v25 = vld [vmem:[#allocation2 + $0xfa] sm:$0xff] }
 0x113   : > { %v513_v48 = vadd.f32 %v8192_v51, %v512_v44  ;;  %643 = vst.msk [vmem:[#allocation2 + $0x1a1] sm:$0xff] %vm606_vm2, %v8352_v31  ;;  %v743_v39 = vld [vmem:[#allocation2 + $0x138] sm:$0xff] }
 0x114   : > { %v585_v49 = vmax.f32 %v551_v47, 0.0  ;;  %11637 = vst [vmem:[#allocation22_spill] sm:$0xff] %v8406_v29  ;;  %v1305_v31 = vld [vmem:[#allocation2 + $0x13a] sm:$0xff] }
 0x115   : > { %7122 = vmatmul.msk.bf16.gmra.mxu1 %vm606_vm2, %v8362_v43  ;;  %v570_v50 = vmax.f32 %v513_v48, 0.0 }
 0x116   : > { %v652_v52 = vld [vmem:[#allocation2 + $0xc2] sm:$0x1]  ;;  %637 = vst.msk [vmem:[#allocation2 + $0x181] sm:$0xff] %vm606_vm2, %v585_v49 }
 0x117   : > { %671 = vst.msk [vmem:[#allocation2 + $0xc0] sm:$0x1] %vm662_vm3, %v652_v52  ;;  %v594_v54 = vpack.c.bf16 %v570_v50, %v569_v34  ;;  %v1294_v30 = vld [vmem:[#allocation2 + $0xb2] sm:$0xff]  ;;  %v1293_v34 = vld [vmem:[#allocation2 + $0xaa] sm:$0xff] }
 0x118   : > { %622 = vst.msk [vmem:[#allocation2 + $0xc9] sm:$0xff] %vm606_vm2, %v570_v50  ;;  %v696_v56 = vld [vmem:[#allocation2 + $0x177] sm:$0x1]  ;;  %v8414_v35 = vpack.c.bf16 %v1294_v30, %v1293_v34 }
 0x119   : > { %714 = vst.msk [vmem:[#allocation2 + $0x179] sm:$0x1] %vm662_vm3, %v696_v56  ;;  %7144 = vmatmul.msk.bf16.gmra.mxu2 %vm606_vm2, %v594_v54  ;;  %v552_v59 = vpop.f32.mrf.mxu2  ;;  %v739_v56 = vld [vmem:[#allocation2 + $0x108] sm:$0xff] }
 0x11a   : > { %v698_v60 = vld [vmem:[#allocation2 + $0x1a7] sm:$0x1]  ;;  %v553_v63 = vadd.f32 %v8192_v51, %v552_v59  ;;  %v7894_v51 = vld [vmem:[%s11500_s4 + $0x18] sm:$0xff]  ;;  %11638 = vst [vmem:[#allocation23_spill] sm:$0xff] %v8414_v35  ;;  %v8436_v59 = vpack.c.bf16 %v740_v57, %v739_v56 }
 0x11b   : > { %716 = vst.msk [vmem:[#allocation2 + $0x1a9] sm:$0x1] %vm662_vm3, %v698_v60  ;;  %1617 = vmatpush.bf16.msrb.mxu1 %v7894_v51  ;;  %v1302_v56 = vld [vmem:[#allocation2 + $0x112] sm:$0xff] }
 0x11c   : > { %7186 = vmatmul.msk.bf16.gmra.mxu0 %vm606_vm2, %v8375_v62  ;;  %v586_v0 = vmax.f32 %v553_v63, 0.0  ;;  %11640 = vst [vmem:[#allocation25_spill] sm:$0xff] %v8436_v59 }
 0x11d   : > { %v660_v1 = vld [vmem:[#allocation2 + $0x182] sm:$0x1] }
 0x11e   : > { %679 = vst.msk [vmem:[#allocation2 + $0x180] sm:$0x1] %vm662_vm3, %v660_v1  ;;  %v733_v5 = vld [vmem:[#allocation2 + $0xc0] sm:$0xff]  ;;  %v8382_v7 = vpack.c.bf16 %v586_v0, %v585_v49 }
 0x11f   : > { %v689_v9 = vld [vmem:[#allocation2 + $0xcf] sm:$0x1]  ;;  %638 = vst.msk [vmem:[#allocation2 + $0x189] sm:$0xff] %vm606_vm2, %v586_v0  ;;  %v1295_v50 = vld [vmem:[#allocation2 + $0xc2] sm:$0xff]  ;;  %v1297_v1 = vld [vmem:[#allocation2 + $0xda] sm:$0xff] }
 0x120   : > { %v734_v10 = vld [vmem:[#allocation2 + $0xc8] sm:$0xff]  ;;  %707 = vst.msk [vmem:[#allocation2 + $0xd1] sm:$0x1] %vm662_vm3, %v689_v9 }
 0x121   : > { %v8389_v12 = vpack.c.bf16 %v734_v10, %v733_v5  ;;  %v8452_v10 = vpack.c.bf16 %v1298_v2, %v1297_v1 }
 0x123   : > { %11634 = vst [vmem:[#allocation19_spill] sm:$0xff] %v8389_v12  ;;  %7125 = vmatmul.msk.bf16.vlgmr.msra.gmra.mxu3 %vm606_vm2, %v8389_v12 }
 0x124   : > { %11641 = vst [vmem:[#allocation26_spill] sm:$0xff] %v8452_v10 }
 0x125   : > { %7123 = vmatmul.msk.bf16.gmra.mxu1 %vm606_vm2, %v8391_v13 }
 0x126   : > { %v697_v15 = vld [vmem:[#allocation2 + $0x18f] sm:$0x1] }
 0x127   : > { %715 = vst.msk [vmem:[#allocation2 + $0x191] sm:$0x1] %vm662_vm3, %v697_v15  ;;  %v1296_v47 = vld [vmem:[#allocation2 + $0xca] sm:$0xff]  ;;  %v741_v15 = vld [vmem:[#allocation2 + $0x120] sm:$0xff] }
 0x128   : > { %v8432_v54 = vpack.c.bf16 %v1296_v47, %v1295_v50  ;;  %v8456_v18 = vpack.c.bf16 %v742_v17, %v741_v15 }
 0x129   : > { %7145 = vmatmul.msk.bf16.gmra.mxu2 %vm606_vm2, %v8211_v8 }
 0x12a   : > { %11639 = vst [vmem:[#allocation24_spill] sm:$0xff] %v8432_v54 }
 0x12b   : > { %11642 = vst [vmem:[#allocation27_spill] sm:$0xff] %v8456_v18 }
 0x12c   : > { %7187 = vmatmul.msk.bf16.gmra.mxu0 %vm606_vm2, %v8400_v20  ;;  %v973_v21 = vpop.f32.mrf.mxu2 }
 0x133   : > { %7126 = vmatmul.msk.bf16.gmra.mxu3 %vm606_vm2, %v8404_v28 }
 0x134   : > { %v975_v8 = vpop.f32.mrf.mxu2 }
 0x135   : > { %7124 = vmatmul.msk.bf16.gmra.mxu1 %vm606_vm2, %v8406_v29 }
 0x139   : > { %7146 = vmatmul.msk.bf16.gmra.mxu2 %vm606_vm2, %v8229_v27 }
 0x13c   : > { %7188 = vmatmul.msk.bf16.gmra.mxu0 %vm606_vm2, %v8414_v35  ;;  %v978_v37 = vpop.f32.mrf.mxu2 }
 0x142   : > { %v830_v42 = vpop.f32.mrf.mxu1 }
 0x143   : > { %v8420_v44 = vadd.f32 %v973_v21, %v830_v42  ;;  %7127 = vmatmul.msk.bf16.gmra.mxu3 %vm606_vm2, %v8418_v41  ;;  %v744_v42 = vld [vmem:[#allocation2 + $0x140] sm:$0xff] }
 0x144   : > { %v980_v27 = vpop.f32.mrf.mxu2 }
 0x145   : > { %7203 = vmatmul.msk.bf16.vlgmr.msrb.gmra.mxu1 %vm606_vm2, %v8258_v58 }
 0x149   : > { %v8426_v49 = vpop.f32.mrf.mxu0  ;;  %7147 = vmatmul.msk.bf16.gmra.mxu2 %vm606_vm2, %v8253_v53 }
 0x14a   : > { %v832_v48 = vpop.f32.mrf.mxu1 }
 0x14b   : > { %v8430_v52 = vadd.f32 %v975_v8, %v832_v48 }
 0x14c   : > { %7189 = vmatmul.msk.bf16.gmra.mxu0 %vm606_vm2, %v8432_v54  ;;  %v983_v55 = vpop.f32.mrf.mxu2 }
 0x151   : > { %v8438_v63 = vpop.f32.mrf.mxu0 }
 0x152   : > { %v835_v60 = vpop.f32.mrf.mxu1 }
 0x153   : > { %v8440_v0 = vadd.f32 %v978_v37, %v835_v60  ;;  %7128 = vmatmul.msk.bf16.gmra.mxu3 %vm606_vm2, %v8436_v59  ;;  %v8472_v37 = vpack.c.bf16 %v1300_v25, %v1299_v24  ;;  %v7896_v25 = vld [vmem:[%s11500_s4 + $0x28] sm:$0xff] }
 0x154   : > { %v985_v53 = vpop.f32.mrf.mxu2  ;;  %2069 = vmatpush.bf16.msra.mxu3 %v7896_v25 }
 0x155   : > { %7204 = vmatmul.msk.bf16.gmra.mxu1 %vm606_vm2, %v8281_v19  ;;  %11643 = vst [vmem:[#allocation28_spill] sm:$0xff] %v8472_v37 }
 0x159   : > { %v8446_v5 = vpop.f32.mrf.mxu0  ;;  %7148 = vmatmul.msk.bf16.gmra.mxu2 %vm606_vm2, %v8276_v14 }
 0x15a   : > { %v837_v3 = vpop.f32.mrf.mxu1 }
 0x15b   : > { %v8450_v9 = vadd.f32 %v980_v27, %v837_v3  ;;  %v8476_v27 = vpack.c.bf16 %v744_v42, %v743_v39  ;;  %v745_v3 = vld [vmem:[#allocation2 + $0x150] sm:$0xff] }
 0x15c   : > { %7190 = vmatmul.msk.bf16.gmra.mxu0 %vm606_vm2, %v8452_v10  ;;  %v988_v51 = vpop.f32.mrf.mxu2 }
 0x15d   : > { %11644 = vst [vmem:[#allocation29_spill] sm:$0xff] %v8476_v27 }
 0x161   : > { %v8458_v22 = vpop.f32.mrf.mxu0 }
 0x162   : > { %v840_v21 = vpop.f32.mrf.mxu1 }
 0x163   : > { %v8460_v23 = vadd.f32 %v983_v55, %v840_v21  ;;  %7129 = vmatmul.msk.bf16.gmra.mxu3 %vm606_vm2, %v8456_v18  ;;  %v1301_v55 = vld [vmem:[#allocation2 + $0x10a] sm:$0xff] }
 0x164   : > { %v990_v14 = vpop.f32.mrf.mxu2  ;;  %v8492_v1 = vpack.c.bf16 %v1302_v56, %v1301_v55 }
 0x165   : > { %7205 = vmatmul.msk.bf16.gmra.mxu1 %vm606_vm2, %v8304_v46 }
 0x166   : > { %11645 = vst [vmem:[#allocation30_spill] sm:$0xff] %v8492_v1 }
 0x169   : > { %v8466_v30 = vpop.f32.mrf.mxu0  ;;  %7149 = vmatmul.msk.bf16.gmra.mxu2 %vm606_vm2, %v8299_v40 }
 0x16a   : > { %v842_v8 = vpop.f32.mrf.mxu1 }
 0x16b   : > { %v8470_v34 = vadd.f32 %v985_v53, %v842_v8  ;;  %v1303_v8 = vld [vmem:[#allocation2 + $0x122] sm:$0xff] }
 0x16c   : > { %7191 = vmatmul.msk.bf16.gmra.mxu0 %vm606_vm2, %v8472_v37  ;;  %v993_v38 = vpop.f32.mrf.mxu2 }
 0x171   : > { %v8478_v48 = vpop.f32.mrf.mxu0 }
 0x172   : > { %v845_v47 = vpop.f32.mrf.mxu1 }
 0x173   : > { %v8480_v50 = vadd.f32 %v988_v51, %v845_v47  ;;  %7130 = vmatmul.msk.bf16.gmra.mxu3 %vm606_vm2, %v8476_v27  ;;  %v746_v51 = vld [vmem:[#allocation2 + $0x158] sm:$0xff] }
 0x174   : > { %v995_v40 = vpop.f32.mrf.mxu2  ;;  %v8496_v15 = vpack.c.bf16 %v746_v51, %v745_v3  ;;  %v748_v3 = vld [vmem:[#allocation2 + $0x170] sm:$0xff] }
 0x175   : > { %7206 = vmatmul.msk.bf16.gmra.mxu1 %vm606_vm2, %v8327_v11 }
 0x176   : > { %11646 = vst [vmem:[#allocation31_spill] sm:$0xff] %v8496_v15 }
 0x179   : > { %v8486_v60 = vpop.f32.mrf.mxu0  ;;  %7150 = vmatmul.msk.bf16.gmra.mxu2 %vm606_vm2, %v8322_v4  ;;  %v7895_v4 = vld [vmem:[%s11500_s4 + $0x20] sm:$0xff] }
 0x17a   : > { %v847_v57 = vpop.f32.mrf.mxu1  ;;  %1843 = vmatpush.bf16.msra.mxu2 %v7895_v4 }
 0x17b   : > { %v8490_v53 = vadd.f32 %v990_v14, %v847_v57  ;;  %v747_v57 = vld [vmem:[#allocation2 + $0x168] sm:$0xff] }
 0x17c   : > { %7192 = vmatmul.msk.bf16.gmra.mxu0 %vm606_vm2, %v8492_v1  ;;  %v998_v2 = vpop.f32.mrf.mxu2  ;;  %v8524_v51 = vpack.c.bf16 %v748_v3, %v747_v57  ;;  %v1054_v57 = vld [vmem:[#allocation2 + $0x9] sm:$0xff]  ;;  %v1053_v3 = vld [vmem:[#allocation2 + $0x1] sm:$0xff] }
 0x17e   : > { %11648 = vst [vmem:[#allocation33_spill] sm:$0xff] %v8524_v51 }
 0x181   : > { %v8498_v21 = vpop.f32.mrf.mxu0 }
 0x182   : > { %v850_v17 = vpop.f32.mrf.mxu1 }
 0x183   : > { %v8500_v24 = vadd.f32 %v993_v38, %v850_v17  ;;  %7131 = vmatmul.msk.bf16.gmra.mxu3 %vm606_vm2, %v8496_v15  ;;  %v1304_v38 = vld [vmem:[#allocation2 + $0x12a] sm:$0xff] }
 0x184   : > { %v1000_v14 = vpop.f32.mrf.mxu2  ;;  %v8520_v55 = vpack.c.bf16 %v1304_v38, %v1303_v8 }
 0x185   : > { %7207 = vmatmul.msk.bf16.gmra.mxu1 %vm606_vm2, %v8362_v43 }
 0x186   : > { %11647 = vst [vmem:[#allocation32_spill] sm:$0xff] %v8520_v55 }
 0x189   : > { %v8512_v42 = vpop.f32.mrf.mxu0  ;;  %7151 = vmatmul.msk.bf16.gmra.mxu2 %vm606_vm2, %v601_v36  ;;  %v1306_v36 = vld [vmem:[#allocation2 + $0x142] sm:$0xff] }
 0x18a   : > { %v852_v39 = vpop.f32.mrf.mxu1 }
 0x18b   : > { %v8518_v47 = vadd.f32 %v995_v40, %v852_v39  ;;  %v8540_v39 = vpack.c.bf16 %v1306_v36, %v1305_v31  ;;  %v1731_v36 = vld [vmem:[#allocation2 + $0x19] sm:$0xff] }
 0x18c   : > { %7193 = vmatmul.msk.bf16.gmra.mxu0 %vm606_vm2, %v8520_v55  ;;  %v1003_v56 = vpop.f32.mrf.mxu2 }
 0x18d   : > { %11649 = vst [vmem:[#allocation34_spill] sm:$0xff] %v8540_v39 }
 0x191   : > { %v8526_v4 = vpop.f32.mrf.mxu0 }
 0x192   : > { %v855_v17 = vpop.f32.mrf.mxu1 }
 0x193   : > { %v8528_v25 = vadd.f32 %v998_v2, %v855_v17  ;;  %7132 = vmatmul.msk.bf16.gmra.mxu3 %vm606_vm2, %v8524_v51  ;;  %v8544_v17 = vpack.c.bf16 %v1054_v57, %v1053_v3  ;;  %v7897_v57 = vld [vmem:[%s11500_s4 + $0x30] sm:$0xff] }
 0x194   : > { %v1005_v16 = vpop.f32.mrf.mxu2  ;;  %2296 = vmatpush.bf16.msra.mxu0 %v7897_v57 }
 0x195   : > { %7208 = vmatmul.msk.bf16.gmra.mxu1 %vm606_vm2, %v8391_v13  ;;  %11650 = vst [vmem:[#allocation35_spill] sm:$0xff] %v8544_v17 }
 0x199   : > { %v8534_v8 = vpop.f32.mrf.mxu0  ;;  %7152 = vmatmul.msk.bf16.gmra.mxu2 %vm606_vm2, %v8382_v7 }
 0x19a   : > { %v857_v40 = vpop.f32.mrf.mxu1 }
 0x19b   : > { %v8538_v38 = vadd.f32 %v1000_v14, %v857_v40  ;;  %v1732_v14 = vld [vmem:[#allocation2 + $0x21] sm:$0xff]  ;;  %v1307_v40 = vld [vmem:[#allocation2 + $0x152] sm:$0xff] }
 0x19c   : > { %7194 = vmatmul.msk.bf16.gmra.mxu0 %vm606_vm2, %v8540_v39  ;;  %v1008_v2 = vpop.f32.mrf.mxu2  ;;  %v1308_v39 = vld [vmem:[#allocation2 + $0x15a] sm:$0xff]  ;;  %v8554_v10 = vpack.c.bf16 %v1732_v14, %v1731_v36 }
 0x19d   : > { %v8565_v54 = vpack.c.bf16 %v1308_v39, %v1307_v40  ;;  %v1734_v39 = vld [vmem:[#allocation2 + $0x39] sm:$0xff] }
 0x19e   : > { %11651 = vst [vmem:[#allocation36_spill] sm:$0xff] %v8554_v10 }
 0x19f   : > { %11653 = vst [vmem:[#allocation38_spill] sm:$0xff] %v8565_v54 }
 0x1a1   : > { %v8546_v1 = vpop.f32.mrf.mxu0 }
 0x1a2   : > { %v860_v55 = vpop.f32.mrf.mxu1 }
 0x1a3   : > { %v8548_v37 = vadd.f32 %v1003_v56, %v860_v55  ;;  %7159 = vmatmul.msk.bf16.vlgmr.msrb.gmra.mxu3 %vm606_vm2, %v8544_v17 }
 0x1a4   : > { %v1010_v7 = vpop.f32.mrf.mxu2 }
 0x1a5   : > { %7209 = vmatmul.msk.bf16.gmra.mxu1 %vm606_vm2, %v8406_v29 }
 0x1a6   : > { %v870_v31 = vpop.f32.mrf.mxu3 }
 0x1a9   : > { %v8559_v56 = vpop.f32.mrf.mxu0  ;;  %7225 = vmatmul.msk.bf16.vlgmr.msra.gmra.mxu2 %vm606_vm2, %v8554_v10 }
 0x1aa   : > { %v862_v55 = vpop.f32.mrf.mxu1 }
 0x1ab   : > { %v8563_v3 = vadd.f32 %v1005_v16, %v862_v55  ;;  %v1733_v55 = vld [vmem:[#allocation2 + $0x31] sm:$0xff] }
 0x1ac   : > { %7195 = vmatmul.msk.bf16.gmra.mxu0 %vm606_vm2, %v8565_v54  ;;  %v1013_v14 = vpop.f32.mrf.mxu2  ;;  %v1309_v54 = vld [vmem:[#allocation2 + $0x16a] sm:$0xff] }
 0x1ad   : > { %11652 = vst [vmem:[#allocation37_spill] sm:$0xff] %v8563_v3  ;;  %v8569_v35 = vadd.f32 %v1013_v14, %v870_v31  ;;  %v1310_v31 = vld [vmem:[#allocation2 + $0x172] sm:$0xff]  ;;  %v8581_v14 = vpack.c.bf16 %v1734_v39, %v1733_v55 }
 0x1ae   : > { %v872_v36 = vpop.f32.mrf.mxu3 }
 0x1af   : > { %11654 = vst [vmem:[#allocation39_spill] sm:$0xff] %v8569_v35 }
 0x1b0   : > { %11658 = vst [vmem:[#allocation43_spill] sm:$0xff] %v8581_v14 }
 0x1b1   : > { %v8571_v17 = vpop.f32.mrf.mxu0 }
 0x1b2   : > { %v865_v20 = vpop.f32.mrf.mxu1  ;;  %11655 = vst [vmem:[#allocation40_spill] sm:$0xff] %v8571_v17 }
 0x1b3   : > { %v8573_v62 = vadd.f32 %v1008_v2, %v865_v20  ;;  %7160 = vmatmul.msk.bf16.gmra.mxu3 %vm606_vm2, %v8554_v10  ;;  %v8589_v2 = vpack.c.bf16 %v1310_v31, %v1309_v54  ;;  %v1736_v54 = vld [vmem:[#allocation2 + $0x51] sm:$0xff]  ;;  %v1735_v31 = vld [vmem:[#allocation2 + $0x49] sm:$0xff] }
 0x1b4   : > { %v1015_v16 = vpop.f32.mrf.mxu2 }
 0x1b5   : > { %11656 = vst [vmem:[#allocation41_spill] sm:$0xff] %v8573_v62  ;;  %7210 = vmatmul.msk.bf16.gmra.mxu1 %vm606_vm2, %v8389_v12  ;;  %v8579_v57 = vadd.f32 %v1015_v16, %v872_v36 }
 0x1b6   : > { %v875_v40 = vpop.f32.mrf.mxu3  ;;  %11661 = vst [vmem:[#allocation46_spill] sm:$0xff] %v8589_v2 }
 0x1b7   : > { %11657 = vst [vmem:[#allocation42_spill] sm:$0xff] %v8579_v57 }
 0x1b9   : > { %v8583_v61 = vpop.f32.mrf.mxu0  ;;  %7226 = vmatmul.msk.bf16.gmra.mxu2 %vm606_vm2, %v8581_v14 }
 0x1ba   : > { %v867_v26 = vpop.f32.mrf.mxu1  ;;  %11659 = vst [vmem:[#allocation44_spill] sm:$0xff] %v8583_v61 }
 0x1bb   : > { %v8587_v20 = vadd.f32 %v1010_v7, %v867_v26 }
 0x1bc   : > { %7196 = vmatmul.msk.bf16.gmra.mxu0 %vm606_vm2, %v8589_v2  ;;  %v1018_v36 = vpop.f32.mrf.mxu2  ;;  %v8605_v2 = vpack.c.bf16 %v1736_v54, %v1735_v31  ;;  %v1738_v54 = vld [vmem:[#allocation2 + $0x69] sm:$0xff] }
 0x1bd   : > { %11660 = vst [vmem:[#allocation45_spill] sm:$0xff] %v8587_v20  ;;  %v8593_v10 = vadd.f32 %v1018_v36, %v875_v40 }
 0x1be   : > { %v877_v16 = vpop.f32.mrf.mxu3  ;;  %11665 = vst [vmem:[#allocation50_spill] sm:$0xff] %v8605_v2 }
 0x1bf   : > { %11662 = vst [vmem:[#allocation47_spill] sm:$0xff] %v8593_v10 }
 0x1c1   : > { %v8595_v32 = vpop.f32.mrf.mxu0 }
 0x1c2   : > { %11663 = vst [vmem:[#allocation48_spill] sm:$0xff] %v8595_v32  ;;  %v8597_v39 = vpop.f32.mrf.mxu1 }
 0x1c3   : > { %7161 = vmatmul.msk.bf16.gmra.mxu3 %vm606_vm2, %v8581_v14 }
 0x1c4   : > { %v1020_v26 = vpop.f32.mrf.mxu2 }
 0x1c5   : > { %7211 = vmatmul.msk.bf16.gmra.mxu1 %vm606_vm2, %v8404_v28  ;;  %v8603_v55 = vadd.f32 %v1020_v26, %v877_v16 }
 0x1c6   : > { %v880_v7 = vpop.f32.mrf.mxu3 }
 0x1c7   : > { %11664 = vst [vmem:[#allocation49_spill] sm:$0xff] %v8603_v55 }
 0x1c9   : > { %v8607_v40 = vpop.f32.mrf.mxu0  ;;  %7227 = vmatmul.msk.bf16.gmra.mxu2 %vm606_vm2, %v8605_v2 }
 0x1ca   : > { %11666 = vst [vmem:[#allocation51_spill] sm:$0xff] %v8607_v40  ;;  %v8609_v36 = vpop.f32.mrf.mxu1 }
 0x1cc   : > { %7269 = vmatmul.msk.bf16.vlgmr.msra.gmra.mxu0 %vm606_vm2, %v8281_v19  ;;  %v1023_v6 = vpop.f32.mrf.mxu2  ;;  %v1737_v19 = vld [vmem:[#allocation2 + $0x61] sm:$0xff] }
 0x1cd   : > { %v8615_v58 = vadd.f32 %v1023_v6, %v880_v7  ;;  %v8627_v10 = vpack.c.bf16 %v1738_v54, %v1737_v19 }
 0x1ce   : > { %v882_v45 = vpop.f32.mrf.mxu3 }
 0x1cf   : > { %11667 = vst [vmem:[#allocation52_spill] sm:$0xff] %v8615_v58 }
 0x1d0   : > { %11670 = vst [vmem:[#allocation55_spill] sm:$0xff] %v8627_v10 }
 0x1d1   : > { %v8617_v33 = vpop.f32.mrf.mxu0 }
 0x1d2   : > { %11668 = vst [vmem:[#allocation53_spill] sm:$0xff] %v8617_v33  ;;  %v8619_v16 = vpop.f32.mrf.mxu1 }
 0x1d3   : > { %7162 = vmatmul.msk.bf16.gmra.mxu3 %vm606_vm2, %v8605_v2 }
 0x1d4   : > { %v1025_v26 = vpop.f32.mrf.mxu2 }
 0x1d5   : > { %7212 = vmatmul.msk.bf16.gmra.mxu1 %vm606_vm2, %v8418_v41  ;;  %v8625_v55 = vadd.f32 %v1025_v26, %v882_v45  ;;  %v1740_v26 = vld [vmem:[#allocation2 + $0x81] sm:$0xff] }
 0x1d6   : > { %v885_v31 = vpop.f32.mrf.mxu3 }
 0x1d7   : > { %11669 = vst [vmem:[#allocation54_spill] sm:$0xff] %v8625_v55 }
 0x1d9   : > { %v8629_v6 = vpop.f32.mrf.mxu0  ;;  %7228 = vmatmul.msk.bf16.gmra.mxu2 %vm606_vm2, %v8627_v10 }
 0x1da   : > { %11671 = vst [vmem:[#allocation56_spill] sm:$0xff] %v8629_v6  ;;  %v8631_v7 = vpop.f32.mrf.mxu1 }
 0x1dc   : > { %7270 = vmatmul.msk.bf16.gmra.mxu0 %vm606_vm2, %v8304_v46  ;;  %v1028_v58 = vpop.f32.mrf.mxu2  ;;  %v1739_v46 = vld [vmem:[#allocation2 + $0x79] sm:$0xff] }
 0x1dd   : > { %v8637_v57 = vadd.f32 %v1028_v58, %v885_v31  ;;  %v8649_v6 = vpack.c.bf16 %v1740_v26, %v1739_v46 }
 0x1de   : > { %v887_v33 = vpop.f32.mrf.mxu3 }
 0x1df   : > { %11672 = vst [vmem:[#allocation57_spill] sm:$0xff] %v8637_v57 }
 0x1e0   : > { %11675 = vst [vmem:[#allocation60_spill] sm:$0xff] %v8649_v6 }
 0x1e1   : > { %v8639_v40 = vpop.f32.mrf.mxu0 }
 0x1e2   : > { %11673 = vst [vmem:[#allocation58_spill] sm:$0xff] %v8639_v40  ;;  %v8641_v45 = vpop.f32.mrf.mxu1 }
 0x1e3   : > { %7163 = vmatmul.msk.bf16.gmra.mxu3 %vm606_vm2, %v8627_v10 }
 0x1e4   : > { %v1030_v19 = vpop.f32.mrf.mxu2 }
 0x1e5   : > { %7213 = vmatmul.msk.bf16.gmra.mxu1 %vm606_vm2, %v8436_v59  ;;  %v8647_v55 = vadd.f32 %v1030_v19, %v887_v33  ;;  %v1742_v19 = vld [vmem:[#allocation2 + $0x99] sm:$0xff] }
 0x1e6   : > { %v890_v54 = vpop.f32.mrf.mxu3 }
 0x1e7   : > { %11674 = vst [vmem:[#allocation59_spill] sm:$0xff] %v8647_v55 }
 0x1e9   : > { %v8651_v58 = vpop.f32.mrf.mxu0  ;;  %7229 = vmatmul.msk.bf16.gmra.mxu2 %vm606_vm2, %v8649_v6 }
 0x1ea   : > { %11676 = vst [vmem:[#allocation61_spill] sm:$0xff] %v8651_v58  ;;  %v8653_v31 = vpop.f32.mrf.mxu1 }
 0x1ec   : > { %7271 = vmatmul.msk.bf16.gmra.mxu0 %vm606_vm2, %v8327_v11  ;;  %v1033_v57 = vpop.f32.mrf.mxu2  ;;  %v1741_v11 = vld [vmem:[#allocation2 + $0x91] sm:$0xff] }
 0x1ed   : > { %v8659_v35 = vadd.f32 %v1033_v57, %v890_v54  ;;  %v8671_v58 = vpack.c.bf16 %v1742_v19, %v1741_v11 }
 0x1ee   : > { %v892_v40 = vpop.f32.mrf.mxu3 }
 0x1ef   : > { %11677 = vst [vmem:[#allocation62_spill] sm:$0xff] %v8659_v35 }
 0x1f0   : > { %11680 = vst [vmem:[#allocation65_spill] sm:$0xff] %v8671_v58 }
 0x1f1   : > { %v8661_v32 = vpop.f32.mrf.mxu0 }
 0x1f2   : > { %11678 = vst [vmem:[#allocation63_spill] sm:$0xff] %v8661_v32  ;;  %v8663_v33 = vpop.f32.mrf.mxu1 }
 0x1f3   : > { %7164 = vmatmul.msk.bf16.gmra.mxu3 %vm606_vm2, %v8649_v6 }
 0x1f4   : > { %v1035_v46 = vpop.f32.mrf.mxu2 }
 0x1f5   : > { %7214 = vmatmul.msk.bf16.gmra.mxu1 %vm606_vm2, %v8456_v18  ;;  %v8669_v55 = vadd.f32 %v1035_v46, %v892_v40  ;;  %v1744_v46 = vld [vmem:[#allocation2 + $0xb1] sm:$0xff] }
 0x1f6   : > { %v895_v26 = vpop.f32.mrf.mxu3 }
 0x1f7   : > { %11679 = vst [vmem:[#allocation64_spill] sm:$0xff] %v8669_v55 }
 0x1f9   : > { %v8673_v57 = vpop.f32.mrf.mxu0  ;;  %7230 = vmatmul.msk.bf16.gmra.mxu2 %vm606_vm2, %v8671_v58 }
 0x1fa   : > { %11681 = vst [vmem:[#allocation66_spill] sm:$0xff] %v8673_v57  ;;  %v8675_v54 = vpop.f32.mrf.mxu1 }
 0x1fc   : > { %7272 = vmatmul.msk.bf16.gmra.mxu0 %vm606_vm2, %v8362_v43  ;;  %v1038_v35 = vpop.f32.mrf.mxu2  ;;  %v1743_v43 = vld [vmem:[#allocation2 + $0xa9] sm:$0xff] }
 0x1fd   : > { %v8681_v20 = vadd.f32 %v1038_v35, %v895_v26  ;;  %v8693_v57 = vpack.c.bf16 %v1744_v46, %v1743_v43 }
 0x1fe   : > { %v897_v32 = vpop.f32.mrf.mxu3 }
 0x1ff   : > { %11682 = vst [vmem:[#allocation67_spill] sm:$0xff] %v8681_v20 }
 0x200   : > { %11685 = vst [vmem:[#allocation70_spill] sm:$0xff] %v8693_v57 }
 0x201   : > { %v8683_v61 = vpop.f32.mrf.mxu0 }
 0x202   : > { %11683 = vst [vmem:[#allocation68_spill] sm:$0xff] %v8683_v61  ;;  %v8685_v40 = vpop.f32.mrf.mxu1 }
 0x203   : > { %7165 = vmatmul.msk.bf16.gmra.mxu3 %vm606_vm2, %v8671_v58 }
 0x204   : > { %v1040_v11 = vpop.f32.mrf.mxu2 }
 0x205   : > { %7215 = vmatmul.msk.bf16.gmra.mxu1 %vm606_vm2, %v8476_v27  ;;  %v8691_v55 = vadd.f32 %v1040_v11, %v897_v32  ;;  %v1746_v11 = vld [vmem:[#allocation2 + $0xc9] sm:$0xff] }
 0x206   : > { %v900_v19 = vpop.f32.mrf.mxu3 }
 0x207   : > { %11684 = vst [vmem:[#allocation69_spill] sm:$0xff] %v8691_v55 }
 0x209   : > { %v8695_v35 = vpop.f32.mrf.mxu0  ;;  %7231 = vmatmul.msk.bf16.gmra.mxu2 %vm606_vm2, %v8693_v57 }
 0x20a   : > { %11686 = vst [vmem:[#allocation71_spill] sm:$0xff] %v8695_v35  ;;  %v8697_v26 = vpop.f32.mrf.mxu1 }
 0x20c   : > { %7273 = vmatmul.msk.bf16.gmra.mxu0 %vm606_vm2, %v8391_v13  ;;  %v1043_v20 = vpop.f32.mrf.mxu2  ;;  %v1745_v13 = vld [vmem:[#allocation2 + $0xc1] sm:$0xff] }
 0x20d   : > { %v8703_v62 = vadd.f32 %v1043_v20, %v900_v19  ;;  %v8715_v35 = vpack.c.bf16 %v1746_v11, %v1745_v13 }
 0x20e   : > { %v902_v61 = vpop.f32.mrf.mxu3 }
 0x20f   : > { %11687 = vst [vmem:[#allocation72_spill] sm:$0xff] %v8703_v62 }
 0x210   : > { %11690 = vst [vmem:[#allocation75_spill] sm:$0xff] %v8715_v35 }
 0x211   : > { %v8705_v17 = vpop.f32.mrf.mxu0 }
 0x212   : > { %11688 = vst [vmem:[#allocation73_spill] sm:$0xff] %v8705_v17  ;;  %v8707_v32 = vpop.f32.mrf.mxu1 }
 0x213   : > { %7166 = vmatmul.msk.bf16.gmra.mxu3 %vm606_vm2, %v8693_v57 }
 0x214   : > { %v1045_v43 = vpop.f32.mrf.mxu2 }
 0x215   : > { %7216 = vmatmul.msk.bf16.gmra.mxu1 %vm606_vm2, %v8496_v15  ;;  %v8713_v55 = vadd.f32 %v1045_v43, %v902_v61  ;;  %v7898_v61 = vld [vmem:[%s11500_s4 + $0x38] sm:$0xff] }
 0x216   : > { %v905_v46 = vpop.f32.mrf.mxu3  ;;  %2522 = vmatpush.bf16.msra.mxu1 %v7898_v61 }
 0x217   : > { %11689 = vst [vmem:[#allocation74_spill] sm:$0xff] %v8713_v55  ;;  %v1748_v55 = vld [vmem:[#allocation2 + $0xe1] sm:$0xff] }
 0x219   : > { %v8717_v20 = vpop.f32.mrf.mxu0  ;;  %7232 = vmatmul.msk.bf16.gmra.mxu2 %vm606_vm2, %v8715_v35 }
 0x21a   : > { %11691 = vst [vmem:[#allocation76_spill] sm:$0xff] %v8717_v20  ;;  %v8719_v19 = vpop.f32.mrf.mxu1 }
 0x21c   : > { %7274 = vmatmul.msk.bf16.gmra.mxu0 %vm606_vm2, %v8406_v29  ;;  %v1048_v62 = vpop.f32.mrf.mxu2  ;;  %v1747_v29 = vld [vmem:[#allocation2 + $0xd9] sm:$0xff] }
 0x21d   : > { %v8725_v57 = vadd.f32 %v1048_v62, %v905_v46  ;;  %v8741_v20 = vpack.c.bf16 %v1748_v55, %v1747_v29 }
 0x21e   : > { %v907_v17 = vpop.f32.mrf.mxu3 }
 0x21f   : > { %11692 = vst [vmem:[#allocation77_spill] sm:$0xff] %v8725_v57 }
 0x220   : > { %11695 = vst [vmem:[#allocation80_spill] sm:$0xff] %v8741_v20 }
 0x221   : > { %v8730_v13 = vpop.f32.mrf.mxu0 }
 0x222   : > { %11693 = vst [vmem:[#allocation78_spill] sm:$0xff] %v8730_v13  ;;  %v8732_v43 = vpop.f32.mrf.mxu1 }
 0x223   : > { %7167 = vmatmul.msk.bf16.gmra.mxu3 %vm606_vm2, %v8715_v35 }
 0x224   : > { %v1050_v11 = vpop.f32.mrf.mxu2 }
 0x225   : > { %7217 = vmatmul.msk.bf16.gmra.mxu1 %vm606_vm2, %v8524_v51  ;;  %v8738_v62 = vadd.f32 %v1050_v11, %v907_v17 }
 0x226   : > { %v1167_v46 = vpop.f32.mrf.mxu3 }
 0x227   : > { %11694 = vst [vmem:[#allocation79_spill] sm:$0xff] %v8738_v62  ;;  %v1247_v57 = vadd.f32 %v1167_v46, %v8420_v44  ;;  %v1535_v44 = vld [vmem:[#allocation2 + $0x180] sm:$0xff] }
 0x229   : > { %v1473_v13 = vadd.f32 %v8426_v49, %v1247_v57  ;;  %v8744_v3 = vpop.f32.mrf.mxu0  ;;  %7233 = vmatmul.msk.bf16.gmra.mxu2 %vm606_vm2, %v8741_v20  ;;  %v1536_v49 = vld [vmem:[#allocation2 + $0x188] sm:$0xff] }
 0x22a   : > { %v8746_v15 = vpop.f32.mrf.mxu1 }
 0x22b   : > { %v1699_v61 = vadd.f32 %v8597_v39, %v1473_v13  ;;  %v8763_v39 = vpack.c.bf16 %v1536_v49, %v1535_v44 }
 0x22c   : > { %7275 = vmatmul.msk.bf16.gmra.mxu0 %vm606_vm2, %v8389_v12  ;;  %v1845_v17 = vpop.f32.mrf.mxu2 }
 0x22d   : > { %v8753_v62 = vadd.f32 %v1845_v17, %v1699_v61  ;;  %11698 = vst [vmem:[#allocation83_spill] sm:$0xff] %v8763_v39  ;;  %v1750_v17 = vld [vmem:[#allocation2 + $0xf9] sm:$0xff] }
 0x22e   : > { %v1169_v11 = vpop.f32.mrf.mxu3 }
 0x22f   : > { %11696 = vst [vmem:[#allocation81_spill] sm:$0xff] %v8753_v62  ;;  %v1248_v29 = vadd.f32 %v1169_v11, %v8430_v52  ;;  %v1749_v52 = vld [vmem:[#allocation2 + $0xf1] sm:$0xff] }
 0x231   : > { %v1474_v55 = vadd.f32 %v8438_v63, %v1248_v29  ;;  %v8757_v57 = vpop.f32.mrf.mxu0  ;;  %v8771_v29 = vpack.c.bf16 %v1750_v17, %v1749_v52  ;;  %v1751_v17 = vld [vmem:[#allocation2 + $0x109] sm:$0xff] }
 0x232   : > { %11697 = vst [vmem:[#allocation82_spill] sm:$0xff] %v8757_v57  ;;  %v8759_v46 = vpop.f32.mrf.mxu1 }
 0x233   : > { %7168 = vmatmul.msk.bf16.gmra.mxu3 %vm606_vm2, %v8741_v20  ;;  %v1700_v13 = vadd.f32 %v8609_v36, %v1474_v55  ;;  %11699 = vst [vmem:[#allocation84_spill] sm:$0xff] %v8771_v29 }
 0x234   : > { %v1847_v61 = vpop.f32.mrf.mxu2 }
 0x235   : > { %7218 = vmatmul.msk.bf16.gmra.mxu1 %vm606_vm2, %v8763_v39  ;;  %v8768_v12 = vadd.f32 %v1847_v61, %v1700_v13 }
 0x236   : > { %v1172_v11 = vpop.f32.mrf.mxu3 }
 0x237   : > { %v1249_v63 = vadd.f32 %v1172_v11, %v8440_v0  ;;  %v1752_v11 = vld [vmem:[#allocation2 + $0x111] sm:$0xff] }
 0x239   : > { %v1475_v62 = vadd.f32 %v8446_v5, %v1249_v63  ;;  %v8774_v57 = vpop.f32.mrf.mxu0  ;;  %7234 = vmatmul.msk.bf16.gmra.mxu2 %vm606_vm2, %v8771_v29 }
 0x23a   : > { %v8776_v44 = vpop.f32.mrf.mxu1 }
 0x23b   : > { %v1701_v36 = vadd.f32 %v8619_v16, %v1475_v62 }
 0x23c   : > { %7276 = vmatmul.msk.bf16.gmra.mxu0 %vm606_vm2, %v8404_v28  ;;  %v1850_v49 = vpop.f32.mrf.mxu2 }
 0x23d   : > { %v8783_v13 = vadd.f32 %v1850_v49, %v1701_v36 }
 0x23e   : > { %v1174_v55 = vpop.f32.mrf.mxu3 }
 0x23f   : > { %v1250_v0 = vadd.f32 %v1174_v55, %v8450_v9 }
 0x241   : > { %v1476_v5 = vadd.f32 %v8458_v22, %v1250_v0  ;;  %v8787_v61 = vpop.f32.mrf.mxu0  ;;  %v8799_v22 = vpack.c.bf16 %v1752_v11, %v1751_v17 }
 0x242   : > { %v8789_v52 = vpop.f32.mrf.mxu1 }
 0x243   : > { %7169 = vmatmul.msk.bf16.gmra.mxu3 %vm606_vm2, %v8771_v29  ;;  %v1702_v16 = vadd.f32 %v8631_v7, %v1476_v5  ;;  %11700 = vst [vmem:[#allocation85_spill] sm:$0xff] %v8799_v22 }
 0x244   : > { %v1852_v62 = vpop.f32.mrf.mxu2 }
 0x245   : > { %7291 = vmatmul.msk.bf16.vlgmr.msra.gmra.mxu1 %vm606_vm2, %v8581_v14  ;;  %v8796_v36 = vadd.f32 %v1852_v62, %v1702_v16 }
 0x246   : > { %v1177_v63 = vpop.f32.mrf.mxu3 }
 0x247   : > { %v1251_v9 = vadd.f32 %v1177_v63, %v8460_v23 }
 0x249   : > { %v1477_v49 = vadd.f32 %v8466_v30, %v1251_v9  ;;  %v8804_v0 = vpop.f32.mrf.mxu0  ;;  %7235 = vmatmul.msk.bf16.gmra.mxu2 %vm606_vm2, %v8799_v22  ;;  %v1753_v9 = vld [vmem:[#allocation2 + $0x121] sm:$0xff] }
 0x24a   : > { %v8802_v55 = vpop.f32.mrf.mxu1 }
 0x24b   : > { %v1703_v7 = vadd.f32 %v8641_v45, %v1477_v49  ;;  %v1754_v49 = vld [vmem:[#allocation2 + $0x129] sm:$0xff] }
 0x24c   : > { %7277 = vmatmul.msk.bf16.gmra.mxu0 %vm606_vm2, %v8418_v41  ;;  %v1855_v5 = vpop.f32.mrf.mxu2 }
 0x24d   : > { %v8811_v62 = vadd.f32 %v1855_v5, %v1703_v7 }
 0x24e   : > { %v1179_v16 = vpop.f32.mrf.mxu3 }
 0x24f   : > { %v1252_v23 = vadd.f32 %v1179_v16, %v8470_v34 }
 0x251   : > { %v1478_v30 = vadd.f32 %v8478_v48, %v1252_v23  ;;  %v8817_v11 = vpop.f32.mrf.mxu0  ;;  %v8827_v48 = vpack.c.bf16 %v1754_v49, %v1753_v9 }
 0x252   : > { %v8815_v17 = vpop.f32.mrf.mxu1 }
 0x253   : > { %7170 = vmatmul.msk.bf16.gmra.mxu3 %vm606_vm2, %v8799_v22  ;;  %v1704_v45 = vadd.f32 %v8653_v31, %v1478_v30  ;;  %11701 = vst [vmem:[#allocation86_spill] sm:$0xff] %v8827_v48 }
 0x254   : > { %v1857_v63 = vpop.f32.mrf.mxu2 }
 0x255   : > { %7292 = vmatmul.msk.bf16.gmra.mxu1 %vm606_vm2, %v8605_v2  ;;  %v8824_v5 = vadd.f32 %v1857_v63, %v1704_v45 }
 0x256   : > { %v1182_v7 = vpop.f32.mrf.mxu3 }
 0x257   : > { %v1253_v34 = vadd.f32 %v1182_v7, %v8480_v50 }
 0x259   : > { %v1479_v16 = vadd.f32 %v8486_v60, %v1253_v34  ;;  %v8832_v14 = vpop.f32.mrf.mxu0  ;;  %7236 = vmatmul.msk.bf16.gmra.mxu2 %vm606_vm2, %v8827_v48  ;;  %v1755_v34 = vld [vmem:[#allocation2 + $0x139] sm:$0xff] }
 0x25a   : > { %v8830_v23 = vpop.f32.mrf.mxu1 }
 0x25b   : > { %v1705_v31 = vadd.f32 %v8663_v33, %v1479_v16  ;;  %v1756_v16 = vld [vmem:[#allocation2 + $0x141] sm:$0xff] }
 0x25c   : > { %7278 = vmatmul.msk.bf16.gmra.mxu0 %vm606_vm2, %v8436_v59  ;;  %v1860_v30 = vpop.f32.mrf.mxu2 }
 0x25d   : > { %v8839_v63 = vadd.f32 %v1860_v30, %v1705_v31 }
 0x25e   : > { %v1184_v45 = vpop.f32.mrf.mxu3 }
 0x25f   : > { %v1254_v50 = vadd.f32 %v1184_v45, %v8490_v53 }
 0x261   : > { %v1480_v60 = vadd.f32 %v8498_v21, %v1254_v50  ;;  %v8845_v49 = vpop.f32.mrf.mxu0  ;;  %v8855_v21 = vpack.c.bf16 %v1756_v16, %v1755_v34 }
 0x262   : > { %v8843_v9 = vpop.f32.mrf.mxu1 }
 0x263   : > { %7171 = vmatmul.msk.bf16.gmra.mxu3 %vm606_vm2, %v8827_v48  ;;  %v1706_v33 = vadd.f32 %v8675_v54, %v1480_v60  ;;  %11702 = vst [vmem:[#allocation87_spill] sm:$0xff] %v8855_v21 }
 0x264   : > { %v1862_v7 = vpop.f32.mrf.mxu2 }
 0x265   : > { %7293 = vmatmul.msk.bf16.gmra.mxu1 %vm606_vm2, %v8627_v10  ;;  %v8852_v30 = vadd.f32 %v1862_v7, %v1706_v33 }
 0x266   : > { %v1187_v31 = vpop.f32.mrf.mxu3 }
 0x267   : > { %v1255_v53 = vadd.f32 %v1187_v31, %v8500_v24 }
 0x269   : > { %v1481_v45 = vadd.f32 %v8512_v42, %v1255_v53  ;;  %v8860_v2 = vpop.f32.mrf.mxu0  ;;  %7237 = vmatmul.msk.bf16.gmra.mxu2 %vm606_vm2, %v8855_v21  ;;  %v1757_v53 = vld [vmem:[#allocation2 + $0x151] sm:$0xff] }
 0x26a   : > { %v8858_v50 = vpop.f32.mrf.mxu1 }
 0x26b   : > { %v1707_v54 = vadd.f32 %v8685_v40, %v1481_v45  ;;  %v1758_v45 = vld [vmem:[#allocation2 + $0x159] sm:$0xff] }
 0x26c   : > { %7279 = vmatmul.msk.bf16.gmra.mxu0 %vm606_vm2, %v8456_v18  ;;  %v1865_v60 = vpop.f32.mrf.mxu2 }
 0x26d   : > { %v8867_v7 = vadd.f32 %v1865_v60, %v1707_v54 }
 0x26e   : > { %v1189_v33 = vpop.f32.mrf.mxu3 }
 0x26f   : > { %v1256_v24 = vadd.f32 %v1189_v33, %v8518_v47 }
 0x271   : > { %v1482_v42 = vadd.f32 %v8526_v4, %v1256_v24  ;;  %v8873_v16 = vpop.f32.mrf.mxu0  ;;  %v8883_v4 = vpack.c.bf16 %v1758_v45, %v1757_v53 }
 0x272   : > { %v8871_v34 = vpop.f32.mrf.mxu1 }
 0x273   : > { %7172 = vmatmul.msk.bf16.gmra.mxu3 %vm606_vm2, %v8855_v21  ;;  %v1708_v40 = vadd.f32 %v8697_v26, %v1482_v42  ;;  %11703 = vst [vmem:[#allocation88_spill] sm:$0xff] %v8883_v4 }
 0x274   : > { %v1867_v31 = vpop.f32.mrf.mxu2 }
 0x275   : > { %7294 = vmatmul.msk.bf16.gmra.mxu1 %vm606_vm2, %v8649_v6  ;;  %v8880_v60 = vadd.f32 %v1867_v31, %v1708_v40  ;;  %v11706_v6 = vld [vmem:[#allocation31_spill] sm:$0xff] }
 0x276   : > { %v1192_v54 = vpop.f32.mrf.mxu3 }
 0x277   : > { %v1257_v47 = vadd.f32 %v1192_v54, %v8528_v25  ;;  %v7899_v54 = vld [vmem:[%s11500_s4 + $0x40] sm:$0xff] }
 0x278   : > { %2748 = vmatpush.bf16.msrb.mxu2 %v7899_v54 }
 0x279   : > { %v1483_v33 = vadd.f32 %v8534_v8, %v1257_v47  ;;  %v8888_v10 = vpop.f32.mrf.mxu0  ;;  %7238 = vmatmul.msk.bf16.gmra.mxu2 %vm606_vm2, %v8883_v4  ;;  %v1759_v47 = vld [vmem:[#allocation2 + $0x169] sm:$0xff] }
 0x27a   : > { %v8886_v24 = vpop.f32.mrf.mxu1 }
 0x27b   : > { %v1709_v26 = vadd.f32 %v8707_v32, %v1483_v33  ;;  %v7901_v33 = vld [vmem:[%s11501_s5 + $0x8] sm:$0xff] }
 0x27c   : > { %7280 = vmatmul.msk.bf16.gmra.mxu0 %vm606_vm2, %v8476_v27  ;;  %v1870_v42 = vpop.f32.mrf.mxu2  ;;  %2880 = vmatpush.bf16.msrb.mxu3 %v7901_v33  ;;  %v11709_v33 = vld [vmem:[#allocation40_spill] sm:$0xff] }
 0x27d   : > { %v8895_v31 = vadd.f32 %v1870_v42, %v1709_v26  ;;  %v1761_v27 = vld [vmem:[#allocation2 + $0x181] sm:$0xff] }
 0x27e   : > { %v1194_v40 = vpop.f32.mrf.mxu3 }
 0x27f   : > { %v1258_v25 = vadd.f32 %v1194_v40, %v8538_v38 }
 0x281   : > { %v1484_v8 = vadd.f32 %v8546_v1, %v1258_v25  ;;  %v8901_v45 = vpop.f32.mrf.mxu0  ;;  %v1760_v1 = vld [vmem:[#allocation2 + $0x171] sm:$0xff] }
 0x282   : > { %v8899_v53 = vpop.f32.mrf.mxu1  ;;  %v8917_v25 = vpack.c.bf16 %v1760_v1, %v1759_v47  ;;  %v11708_v47 = vld [vmem:[#allocation37_spill] sm:$0xff] }
 0x283   : > { %7173 = vmatmul.msk.bf16.gmra.mxu3 %vm606_vm2, %v8883_v4  ;;  %v1710_v32 = vadd.f32 %v8719_v19, %v1484_v8 }
 0x284   : > { %v1872_v38 = vpop.f32.mrf.mxu2  ;;  %11705 = vst [vmem:[#allocation90_spill] sm:$0xff] %v8917_v25 }
 0x285   : > { %7295 = vmatmul.msk.bf16.gmra.mxu1 %vm606_vm2, %v8671_v58  ;;  %v8914_v42 = vadd.f32 %v1872_v38, %v1710_v32 }
 0x286   : > { %v1197_v26 = vpop.f32.mrf.mxu3 }
 0x287   : > { %11704 = vst [vmem:[#allocation89_spill] sm:$0xff] %v8914_v42  ;;  %v1259_v40 = vadd.f32 %v1197_v26, %v8548_v37 }
 0x289   : > { %v1485_v19 = vadd.f32 %v8559_v56, %v1259_v40  ;;  %v8922_v54 = vpop.f32.mrf.mxu0  ;;  %7239 = vmatmul.msk.bf16.gmra.mxu2 %vm606_vm2, %v8917_v25 }
 0x28a   : > { %v8920_v8 = vpop.f32.mrf.mxu1 }
 0x28b   : > { %v1711_v58 = vadd.f32 %v8732_v43, %v1485_v19  ;;  %v11710_v19 = vld [vmem:[#allocation70_spill] sm:$0xff] }
 0x28c   : > { %7281 = vmatmul.msk.bf16.gmra.mxu0 %vm606_vm2, %v11706_v6  ;;  %v1875_v32 = vpop.f32.mrf.mxu2 }
 0x28d   : > { %v8929_v37 = vadd.f32 %v1875_v32, %v1711_v58  ;;  %v1762_v58 = vld [vmem:[#allocation2 + $0x189] sm:$0xff] }
 0x28e   : > { %v1199_v38 = vpop.f32.mrf.mxu3 }
 0x28f   : > { %11707 = vst [vmem:[#allocation91_spill] sm:$0xff] %v8929_v37  ;;  %v1260_v1 = vadd.f32 %v1199_v38, %v11708_v47  ;;  %v11712_v38 = vld [vmem:[#allocation41_spill] sm:$0xff] }
 0x291   : > { %v1486_v56 = vadd.f32 %v11709_v33, %v1260_v1  ;;  %v8935_v40 = vpop.f32.mrf.mxu0  ;;  %v8945_v1 = vpack.c.bf16 %v1762_v58, %v1761_v27  ;;  %v11714_v33 = vld [vmem:[#allocation44_spill] sm:$0xff]  ;;  %v11717_v58 = vld [vmem:[#allocation45_spill] sm:$0xff] }
 0x292   : > { %v8933_v26 = vpop.f32.mrf.mxu1  ;;  %v1958_v27 = vld [vmem:[#allocation2 + $0x22] sm:$0xff] }
 0x293   : > { %7174 = vmatmul.msk.bf16.gmra.mxu3 %vm606_vm2, %v8917_v25  ;;  %v1712_v43 = vadd.f32 %v8746_v15, %v1486_v56  ;;  %11713 = vst [vmem:[#allocation40_spill] sm:$0xff] %v8945_v1 }
 0x294   : > { %v1877_v6 = vpop.f32.mrf.mxu2 }
 0x295   : > { %7296 = vmatmul.msk.bf16.gmra.mxu1 %vm606_vm2, %v11710_v19  ;;  %v8942_v18 = vadd.f32 %v1877_v6, %v1712_v43 }
 0x296   : > { %v1202_v32 = vpop.f32.mrf.mxu3 }
 0x297   : > { %11711 = vst [vmem:[#allocation37_spill] sm:$0xff] %v8942_v18  ;;  %v1261_v47 = vadd.f32 %v1202_v32, %v11712_v38  ;;  %v1957_v38 = vld [vmem:[#allocation2 + $0x1a] sm:$0xff] }
 0x298   : > { %v8961_v19 = vpack.c.bf16 %v1958_v27, %v1957_v38 }
 0x299   : > { %v1487_v37 = vadd.f32 %v11714_v33, %v1261_v47  ;;  %v8950_v59 = vpop.f32.mrf.mxu0  ;;  %7240 = vmatmul.msk.bf16.gmra.mxu2 %vm606_vm2, %v8945_v1  ;;  %v11718_v47 = vld [vmem:[#allocation48_spill] sm:$0xff] }
 0x29a   : > { %v8948_v42 = vpop.f32.mrf.mxu1  ;;  %11715 = vst [vmem:[#allocation41_spill] sm:$0xff] %v8950_v59 }
 0x29b   : > { %v1713_v15 = vadd.f32 %v8759_v46, %v1487_v37  ;;  %11719 = vst [vmem:[#allocation45_spill] sm:$0xff] %v8961_v19 }
 0x29c   : > { %7282 = vmatmul.msk.bf16.gmra.mxu0 %vm606_vm2, %v8524_v51  ;;  %v1880_v6 = vpop.f32.mrf.mxu2 }
 0x29d   : > { %v8957_v43 = vadd.f32 %v1880_v6, %v1713_v15  ;;  %v2637_v15 = vld [vmem:[#allocation2 + $0x3a] sm:$0xff] }
 0x29e   : > { %v1204_v56 = vpop.f32.mrf.mxu3 }
 0x29f   : > { %11716 = vst [vmem:[#allocation44_spill] sm:$0xff] %v8957_v43  ;;  %v1262_v32 = vadd.f32 %v1204_v56, %v11717_v58  ;;  %v11721_v58 = vld [vmem:[#allocation39_spill] sm:$0xff]  ;;  %v11731_v43 = vld [vmem:[#allocation56_spill] sm:$0xff] }
 0x2a1   : > { %v1488_v33 = vadd.f32 %v11718_v47, %v1262_v32  ;;  %v8965_v59 = vpop.f32.mrf.mxu0  ;;  %v2636_v32 = vld [vmem:[#allocation2 + $0x32] sm:$0xff]  ;;  %v11723_v47 = vld [vmem:[#allocation51_spill] sm:$0xff] }
 0x2a2   : > { %v8963_v18 = vpop.f32.mrf.mxu1  ;;  %v8975_v38 = vpack.c.bf16 %v2637_v15, %v2636_v32  ;;  %v11726_v32 = vld [vmem:[#allocation53_spill] sm:$0xff] }
 0x2a3   : > { %7247 = vmatmul.msk.bf16.vlgmr.msra.gmra.mxu3 %vm606_vm2, %v8961_v19  ;;  %v1714_v46 = vadd.f32 %v8776_v44, %v1488_v33  ;;  %v7900_v19 = vld [vmem:[%s11501_s5] sm:$0xff] }
 0x2a4   : > { %v1882_v37 = vpop.f32.mrf.mxu2  ;;  %11722 = vst [vmem:[#allocation39_spill] sm:$0xff] %v8975_v38  ;;  %2975 = vmatpush.bf16.msrb.mxu0 %v7900_v19  ;;  %v2639_v19 = vld [vmem:[#allocation2 + $0x52] sm:$0xff] }
 0x2a5   : > { %7297 = vmatmul.msk.bf16.gmra.mxu1 %vm606_vm2, %v8715_v35  ;;  %v8972_v56 = vadd.f32 %v1882_v37, %v1714_v46 }
 0x2a6   : > { %v1207_v6 = vpop.f32.mrf.mxu3 }
 0x2a7   : > { %11720 = vst [vmem:[#allocation48_spill] sm:$0xff] %v8972_v56  ;;  %v1263_v27 = vadd.f32 %v1207_v6, %v11721_v58  ;;  %v11725_v58 = vld [vmem:[#allocation42_spill] sm:$0xff] }
 0x2a9   : > { %v1489_v51 = vadd.f32 %v11723_v47, %v1263_v27  ;;  %v8983_v33 = vpop.f32.mrf.mxu0  ;;  %7313 = vmatmul.msk.bf16.vlgmr.msrb.gmra.mxu2 %vm606_vm2, %v8975_v38 }
 0x2aa   : > { %v8981_v44 = vpop.f32.mrf.mxu1 }
 0x2ab   : > { %v1715_v46 = vadd.f32 %v8789_v52, %v1489_v51 }
 0x2ac   : > { %7283 = vmatmul.msk.bf16.gmra.mxu0 %vm606_vm2, %v8763_v39  ;;  %v1885_v37 = vpop.f32.mrf.mxu2  ;;  %v2215_v39 = vld [vmem:[#allocation2 + $0x1a0] sm:$0xff] }
 0x2ad   : > { %v8990_v6 = vadd.f32 %v1885_v37, %v1715_v46 }
 0x2ae   : > { %v1209_v15 = vpop.f32.mrf.mxu3 }
 0x2af   : > { %11724 = vst [vmem:[#allocation51_spill] sm:$0xff] %v8990_v6  ;;  %v1264_v27 = vadd.f32 %v1209_v15, %v11725_v58  ;;  %v11729_v15 = vld [vmem:[#allocation47_spill] sm:$0xff] }
 0x2b1   : > { %v1490_v47 = vadd.f32 %v11726_v32, %v1264_v27  ;;  %v8996_v56 = vpop.f32.mrf.mxu0  ;;  %v2638_v27 = vld [vmem:[#allocation2 + $0x4a] sm:$0xff]  ;;  %v2214_v32 = vld [vmem:[#allocation2 + $0x198] sm:$0xff] }
 0x2b2   : > { %v8994_v35 = vpop.f32.mrf.mxu1  ;;  %11727 = vst [vmem:[#allocation42_spill] sm:$0xff] %v8996_v56  ;;  %v9006_v6 = vpack.c.bf16 %v2639_v19, %v2638_v27 }
 0x2b3   : > { %7248 = vmatmul.msk.bf16.gmra.mxu3 %vm606_vm2, %v8975_v38  ;;  %v1716_v51 = vadd.f32 %v8802_v55, %v1490_v47  ;;  %v9015_v47 = vpack.c.bf16 %v2215_v39, %v2214_v32 }
 0x2b4   : > { %v1887_v52 = vpop.f32.mrf.mxu2  ;;  %11730 = vst [vmem:[#allocation47_spill] sm:$0xff] %v9006_v6 }
 0x2b5   : > { %7298 = vmatmul.msk.bf16.gmra.mxu1 %vm606_vm2, %v8741_v20  ;;  %v9003_v37 = vadd.f32 %v1887_v52, %v1716_v51  ;;  %11732 = vst [vmem:[#allocation56_spill] sm:$0xff] %v9015_v47 }
 0x2b6   : > { %v1212_v46 = vpop.f32.mrf.mxu3 }
 0x2b7   : > { %11728 = vst [vmem:[#allocation53_spill] sm:$0xff] %v9003_v37  ;;  %v1265_v58 = vadd.f32 %v1212_v46, %v11729_v15  ;;  %v11734_v15 = vld [vmem:[#allocation49_spill] sm:$0xff] }
 0x2b9   : > { %v1491_v56 = vadd.f32 %v11731_v43, %v1265_v58  ;;  %v9011_v55 = vpop.f32.mrf.mxu0  ;;  %7314 = vmatmul.msk.bf16.gmra.mxu2 %vm606_vm2, %v9006_v6  ;;  %v11735_v58 = vld [vmem:[#allocation58_spill] sm:$0xff] }
 0x2ba   : > { %v9009_v38 = vpop.f32.mrf.mxu1 }
 0x2bb   : > { %v1717_v51 = vadd.f32 %v8815_v17, %v1491_v56  ;;  %v2641_v56 = vld [vmem:[#allocation2 + $0x6a] sm:$0xff] }
 0x2bc   : > { %7284 = vmatmul.msk.bf16.gmra.mxu0 %vm606_vm2, %v9015_v47  ;;  %v1890_v52 = vpop.f32.mrf.mxu2 }
 0x2bd   : > { %v9020_v19 = vadd.f32 %v1890_v52, %v1717_v51  ;;  %v11737_v52 = vld [vmem:[#allocation52_spill] sm:$0xff] }
 0x2be   : > { %v1214_v46 = vpop.f32.mrf.mxu3 }
 0x2bf   : > { %11733 = vst [vmem:[#allocation92_spill] sm:$0xff] %v9020_v19  ;;  %v1266_v43 = vadd.f32 %v1214_v46, %v11734_v15  ;;  %v2640_v15 = vld [vmem:[#allocation2 + $0x62] sm:$0xff] }
 0x2c1   : > { %v1492_v27 = vadd.f32 %v11735_v58, %v1266_v43  ;;  %v9024_v20 = vpop.f32.mrf.mxu0  ;;  %v9036_v43 = vpack.c.bf16 %v2641_v56, %v2640_v15  ;;  %v11739_v58 = vld [vmem:[#allocation61_spill] sm:$0xff]  ;;  %v11742_v56 = vld [vmem:[#allocation54_spill] sm:$0xff]  ;;  %v11743_v15 = vld [vmem:[#allocation63_spill] sm:$0xff] }
 0x2c2   : > { %v9026_v37 = vpop.f32.mrf.mxu1 }
 0x2c3   : > { %7249 = vmatmul.msk.bf16.gmra.mxu3 %vm606_vm2, %v9006_v6  ;;  %v1718_v39 = vadd.f32 %v8830_v23, %v1492_v27  ;;  %11738 = vst [vmem:[#allocation58_spill] sm:$0xff] %v9036_v43  ;;  %v11740_v27 = vld [vmem:[#allocation7_spill] sm:$0xff] }
 0x2c4   : > { %v1892_v17 = vpop.f32.mrf.mxu2 }
 0x2c5   : > { %7299 = vmatmul.msk.bf16.gmra.mxu1 %vm606_vm2, %v8771_v29  ;;  %v9033_v51 = vadd.f32 %v1892_v17, %v1718_v39 }
 0x2c6   : > { %v1217_v32 = vpop.f32.mrf.mxu3 }
 0x2c7   : > { %11736 = vst [vmem:[#allocation49_spill] sm:$0xff] %v9033_v51  ;;  %v1267_v46 = vadd.f32 %v1217_v32, %v11737_v52 }
 0x2c9   : > { %v1493_v47 = vadd.f32 %v11739_v58, %v1267_v46  ;;  %v9039_v19 = vpop.f32.mrf.mxu0  ;;  %7315 = vmatmul.msk.bf16.gmra.mxu2 %vm606_vm2, %v9036_v43 }
 0x2ca   : > { %v9041_v6 = vpop.f32.mrf.mxu1 }
 0x2cb   : > { %v1719_v23 = vadd.f32 %v8843_v9, %v1493_v47 }
 0x2cc   : > { %7355 = vmatmul.msk.bf16.vlgmr.msrb.gmra.mxu0 %vm606_vm2, %v11740_v27  ;;  %v1895_v39 = vpop.f32.mrf.mxu2  ;;  %v2643_v27 = vld [vmem:[#allocation2 + $0x82] sm:$0xff] }
 0x2cd   : > { %v9048_v32 = vadd.f32 %v1895_v39, %v1719_v23 }
 0x2ce   : > { %v1219_v17 = vpop.f32.mrf.mxu3 }
 0x2cf   : > { %11741 = vst [vmem:[#allocation52_spill] sm:$0xff] %v9048_v32  ;;  %v1268_v52 = vadd.f32 %v1219_v17, %v11742_v56  ;;  %v11746_v17 = vld [vmem:[#allocation57_spill] sm:$0xff]  ;;  %v11748_v32 = vld [vmem:[#allocation66_spill] sm:$0xff] }
 0x2d1   : > { %v1494_v46 = vadd.f32 %v11743_v15, %v1268_v52  ;;  %v9052_v58 = vpop.f32.mrf.mxu0  ;;  %v2642_v52 = vld [vmem:[#allocation2 + $0x7a] sm:$0xff] }
 0x2d2   : > { %11744 = vst [vmem:[#allocation61_spill] sm:$0xff] %v9052_v58  ;;  %v9054_v29 = vpop.f32.mrf.mxu1  ;;  %v9064_v15 = vpack.c.bf16 %v2643_v27, %v2642_v52  ;;  %v11752_v27 = vld [vmem:[#allocation59_spill] sm:$0xff]  ;;  %v11753_v52 = vld [vmem:[#allocation68_spill] sm:$0xff] }
 0x2d3   : > { %7250 = vmatmul.msk.bf16.gmra.mxu3 %vm606_vm2, %v9036_v43  ;;  %v1720_v9 = vadd.f32 %v8858_v50, %v1494_v46  ;;  %v11750_v46 = vld [vmem:[#allocation9_spill] sm:$0xff] }
 0x2d4   : > { %v1897_v47 = vpop.f32.mrf.mxu2  ;;  %11747 = vst [vmem:[#allocation54_spill] sm:$0xff] %v9064_v15 }
 0x2d5   : > { %7300 = vmatmul.msk.bf16.gmra.mxu1 %vm606_vm2, %v8799_v22  ;;  %v9061_v39 = vadd.f32 %v1897_v47, %v1720_v9 }
 0x2d6   : > { %v1222_v23 = vpop.f32.mrf.mxu3 }
 0x2d7   : > { %11745 = vst [vmem:[#allocation7_spill] sm:$0xff] %v9061_v39  ;;  %v1269_v56 = vadd.f32 %v1222_v23, %v11746_v17  ;;  %v2645_v39 = vld [vmem:[#allocation2 + $0x9a] sm:$0xff] }
 0x2d9   : > { %v1495_v51 = vadd.f32 %v11748_v32, %v1269_v56  ;;  %v9067_v58 = vpop.f32.mrf.mxu0  ;;  %7316 = vmatmul.msk.bf16.gmra.mxu2 %vm606_vm2, %v9064_v15 }
 0x2da   : > { %11749 = vst [vmem:[#allocation63_spill] sm:$0xff] %v9067_v58  ;;  %v9069_v43 = vpop.f32.mrf.mxu1 }
 0x2db   : > { %v1721_v50 = vadd.f32 %v8871_v34, %v1495_v51 }
 0x2dc   : > { %7356 = vmatmul.msk.bf16.gmra.mxu0 %vm606_vm2, %v11750_v46  ;;  %v1900_v9 = vpop.f32.mrf.mxu2 }
 0x2dd   : > { %v9076_v23 = vadd.f32 %v1900_v9, %v1721_v50 }
 0x2de   : > { %v1224_v47 = vpop.f32.mrf.mxu3 }
 0x2df   : > { %11751 = vst [vmem:[#allocation57_spill] sm:$0xff] %v9076_v23  ;;  %v1270_v17 = vadd.f32 %v1224_v47, %v11752_v27  ;;  %v11756_v47 = vld [vmem:[#allocation62_spill] sm:$0xff]  ;;  %v11758_v23 = vld [vmem:[#allocation71_spill] sm:$0xff] }
 0x2e1   : > { %v1496_v32 = vadd.f32 %v11753_v52, %v1270_v17  ;;  %v9080_v56 = vpop.f32.mrf.mxu0  ;;  %v2644_v17 = vld [vmem:[#allocation2 + $0x92] sm:$0xff] }
 0x2e2   : > { %11754 = vst [vmem:[#allocation66_spill] sm:$0xff] %v9080_v56  ;;  %v9082_v22 = vpop.f32.mrf.mxu1  ;;  %v9092_v52 = vpack.c.bf16 %v2645_v39, %v2644_v17  ;;  %v11762_v39 = vld [vmem:[#allocation64_spill] sm:$0xff]  ;;  %v11763_v17 = vld [vmem:[#allocation73_spill] sm:$0xff] }
 0x2e3   : > { %7251 = vmatmul.msk.bf16.gmra.mxu3 %vm606_vm2, %v9064_v15  ;;  %v1722_v34 = vadd.f32 %v8886_v24, %v1496_v32  ;;  %v11760_v32 = vld [vmem:[#allocation11_spill] sm:$0xff] }
 0x2e4   : > { %v1902_v51 = vpop.f32.mrf.mxu2  ;;  %11757 = vst [vmem:[#allocation59_spill] sm:$0xff] %v9092_v52 }
 0x2e5   : > { %7301 = vmatmul.msk.bf16.gmra.mxu1 %vm606_vm2, %v8827_v48  ;;  %v9089_v9 = vadd.f32 %v1902_v51, %v1722_v34 }
 0x2e6   : > { %v1227_v50 = vpop.f32.mrf.mxu3 }
 0x2e7   : > { %11755 = vst [vmem:[#allocation9_spill] sm:$0xff] %v9089_v9  ;;  %v1271_v27 = vadd.f32 %v1227_v50, %v11756_v47  ;;  %v2647_v9 = vld [vmem:[#allocation2 + $0xb2] sm:$0xff] }
 0x2e9   : > { %v1497_v56 = vadd.f32 %v11758_v23, %v1271_v27  ;;  %v9095_v58 = vpop.f32.mrf.mxu0  ;;  %7317 = vmatmul.msk.bf16.gmra.mxu2 %vm606_vm2, %v9092_v52 }
 0x2ea   : > { %11759 = vst [vmem:[#allocation68_spill] sm:$0xff] %v9095_v58  ;;  %v9097_v15 = vpop.f32.mrf.mxu1 }
 0x2eb   : > { %v1723_v24 = vadd.f32 %v8899_v53, %v1497_v56 }
 0x2ec   : > { %7357 = vmatmul.msk.bf16.gmra.mxu0 %vm606_vm2, %v11760_v32  ;;  %v1905_v34 = vpop.f32.mrf.mxu2 }
 0x2ed   : > { %v9104_v50 = vadd.f32 %v1905_v34, %v1723_v24 }
 0x2ee   : > { %v1229_v51 = vpop.f32.mrf.mxu3 }
 0x2ef   : > { %11761 = vst [vmem:[#allocation62_spill] sm:$0xff] %v9104_v50  ;;  %v1272_v47 = vadd.f32 %v1229_v51, %v11762_v39  ;;  %v11766_v51 = vld [vmem:[#allocation67_spill] sm:$0xff]  ;;  %v11768_v50 = vld [vmem:[#allocation76_spill] sm:$0xff] }
 0x2f1   : > { %v1498_v23 = vadd.f32 %v11763_v17, %v1272_v47  ;;  %v9108_v27 = vpop.f32.mrf.mxu0  ;;  %v2646_v47 = vld [vmem:[#allocation2 + $0xaa] sm:$0xff] }
 0x2f2   : > { %11764 = vst [vmem:[#allocation71_spill] sm:$0xff] %v9108_v27  ;;  %v9110_v48 = vpop.f32.mrf.mxu1  ;;  %v9120_v17 = vpack.c.bf16 %v2647_v9, %v2646_v47  ;;  %v11771_v9 = vld [vmem:[#allocation69_spill] sm:$0xff]  ;;  %v11772_v47 = vld [vmem:[#allocation78_spill] sm:$0xff] }
 0x2f3   : > { %7252 = vmatmul.msk.bf16.gmra.mxu3 %vm606_vm2, %v9092_v52  ;;  %v1724_v53 = vadd.f32 %v8920_v8, %v1498_v23  ;;  %v11769_v23 = vld [vmem:[#allocation13_spill] sm:$0xff] }
 0x2f4   : > { %v1907_v56 = vpop.f32.mrf.mxu2  ;;  %11767 = vst [vmem:[#allocation64_spill] sm:$0xff] %v9120_v17 }
 0x2f5   : > { %7302 = vmatmul.msk.bf16.gmra.mxu1 %vm606_vm2, %v8855_v21  ;;  %v9117_v34 = vadd.f32 %v1907_v56, %v1724_v53 }
 0x2f6   : > { %v1232_v24 = vpop.f32.mrf.mxu3 }
 0x2f7   : > { %11765 = vst [vmem:[#allocation11_spill] sm:$0xff] %v9117_v34  ;;  %v1273_v39 = vadd.f32 %v1232_v24, %v11766_v51  ;;  %v2649_v34 = vld [vmem:[#allocation2 + $0xca] sm:$0xff] }
 0x2f9   : > { %v1499_v27 = vadd.f32 %v11768_v50, %v1273_v39  ;;  %v9123_v58 = vpop.f32.mrf.mxu0  ;;  %7318 = vmatmul.msk.bf16.gmra.mxu2 %vm606_vm2, %v9120_v17 }
 0x2fa   : > { %v9125_v52 = vpop.f32.mrf.mxu1 }
 0x2fb   : > { %v1725_v8 = vadd.f32 %v8933_v26, %v1499_v27 }
 0x2fc   : > { %7358 = vmatmul.msk.bf16.gmra.mxu0 %vm606_vm2, %v11769_v23  ;;  %v1910_v53 = vpop.f32.mrf.mxu2 }
 0x2fd   : > { %v9132_v24 = vadd.f32 %v1910_v53, %v1725_v8 }
 0x2fe   : > { %v1234_v56 = vpop.f32.mrf.mxu3 }
 0x2ff   : > { %11770 = vst [vmem:[#allocation73_spill] sm:$0xff] %v9132_v24  ;;  %v1274_v51 = vadd.f32 %v1234_v56, %v11771_v9  ;;  %v11775_v56 = vld [vmem:[#allocation72_spill] sm:$0xff] }
 0x301   : > { %v1500_v50 = vadd.f32 %v11772_v47, %v1274_v51  ;;  %v9136_v39 = vpop.f32.mrf.mxu0  ;;  %v2648_v51 = vld [vmem:[#allocation2 + $0xc2] sm:$0xff] }
 0x302   : > { %11773 = vst [vmem:[#allocation67_spill] sm:$0xff] %v9136_v39  ;;  %v9138_v21 = vpop.f32.mrf.mxu1  ;;  %v9148_v47 = vpack.c.bf16 %v2649_v34, %v2648_v51  ;;  %v11779_v34 = vld [vmem:[#allocation74_spill] sm:$0xff] }
 0x303   : > { %7253 = vmatmul.msk.bf16.gmra.mxu3 %vm606_vm2, %v9120_v17  ;;  %v1726_v26 = vadd.f32 %v8948_v42, %v1500_v50  ;;  %v11777_v50 = vld [vmem:[#allocation15_spill] sm:$0xff]  ;;  %v11780_v51 = vld [vmem:[#allocation82_spill] sm:$0xff] }
 0x304   : > { %v1912_v27 = vpop.f32.mrf.mxu2  ;;  %11776 = vst [vmem:[#allocation13_spill] sm:$0xff] %v9148_v47 }
 0x305   : > { %7303 = vmatmul.msk.bf16.gmra.mxu1 %vm606_vm2, %v8883_v4  ;;  %v9145_v53 = vadd.f32 %v1912_v27, %v1726_v26 }
 0x306   : > { %v1237_v8 = vpop.f32.mrf.mxu3 }
 0x307   : > { %11774 = vst [vmem:[#allocation76_spill] sm:$0xff] %v9145_v53  ;;  %v1275_v9 = vadd.f32 %v1237_v8, %v11775_v56  ;;  %v2650_v53 = vld [vmem:[#allocation2 + $0xda] sm:$0xff] }
 0x309   : > { %v1501_v24 = vadd.f32 %v8744_v3, %v1275_v9  ;;  %v9151_v39 = vpop.f32.mrf.mxu0  ;;  %7319 = vmatmul.msk.bf16.gmra.mxu2 %vm606_vm2, %v9148_v47 }
 0x30a   : > { %v9153_v17 = vpop.f32.mrf.mxu1 }
 0x30b   : > { %v1727_v42 = vadd.f32 %v8963_v18, %v1501_v24 }
 0x30c   : > { %7359 = vmatmul.msk.bf16.gmra.mxu0 %vm606_vm2, %v11777_v50  ;;  %v1915_v26 = vpop.f32.mrf.mxu2 }
 0x30d   : > { %v9160_v8 = vadd.f32 %v1915_v26, %v1727_v42  ;;  %v2651_v42 = vld [vmem:[#allocation2 + $0xe2] sm:$0xff] }
 0x30e   : > { %v1239_v27 = vpop.f32.mrf.mxu3 }
 0x30f   : > { %11778 = vst [vmem:[#allocation69_spill] sm:$0xff] %v9160_v8  ;;  %v1276_v56 = vadd.f32 %v1239_v27, %v11779_v34  ;;  %v11783_v27 = vld [vmem:[#allocation77_spill] sm:$0xff] }
 0x311   : > { %v1502_v3 = vadd.f32 %v11780_v51, %v1276_v56  ;;  %v9164_v9 = vpop.f32.mrf.mxu0  ;;  %v9176_v56 = vpack.c.bf16 %v2651_v42, %v2650_v53  ;;  %v11787_v53 = vld [vmem:[#allocation79_spill] sm:$0xff] }
 0x312   : > { %11781 = vst [vmem:[#allocation78_spill] sm:$0xff] %v9164_v9  ;;  %v9166_v4 = vpop.f32.mrf.mxu1 }
 0x313   : > { %7254 = vmatmul.msk.bf16.gmra.mxu3 %vm606_vm2, %v9148_v47  ;;  %v1728_v18 = vadd.f32 %v8981_v44, %v1502_v3  ;;  %11784 = vst [vmem:[#allocation15_spill] sm:$0xff] %v9176_v56  ;;  %v11785_v3 = vld [vmem:[#allocation17_spill] sm:$0xff] }
 0x314   : > { %v1917_v24 = vpop.f32.mrf.mxu2 }
 0x315   : > { %7304 = vmatmul.msk.bf16.gmra.mxu1 %vm606_vm2, %v8917_v25  ;;  %v9173_v8 = vadd.f32 %v1917_v24, %v1728_v18 }
 0x316   : > { %v1242_v26 = vpop.f32.mrf.mxu3 }
 0x317   : > { %11782 = vst [vmem:[#allocation72_spill] sm:$0xff] %v9173_v8  ;;  %v1277_v34 = vadd.f32 %v1242_v26, %v11783_v27  ;;  %v7902_v26 = vld [vmem:[%s11501_s5 + $0x10] sm:$0xff] }
 0x318   : > { %3073 = vmatpush.bf16.msrb.mxu1 %v7902_v26 }
 0x319   : > { %v1503_v51 = vadd.f32 %v8774_v57, %v1277_v34  ;;  %v9179_v9 = vpop.f32.mrf.mxu0  ;;  %7320 = vmatmul.msk.bf16.gmra.mxu2 %vm606_vm2, %v9176_v56 }
 0x31a   : > { %v9181_v47 = vpop.f32.mrf.mxu1 }
 0x31b   : > { %v1729_v44 = vadd.f32 %v8994_v35, %v1503_v51 }
 0x31c   : > { %7360 = vmatmul.msk.bf16.gmra.mxu0 %vm606_vm2, %v11785_v3  ;;  %v1920_v18 = vpop.f32.mrf.mxu2 }
 0x31d   : > { %v9188_v25 = vadd.f32 %v1920_v18, %v1729_v44  ;;  %v2652_v44 = vld [vmem:[#allocation2 + $0xf2] sm:$0xff] }
 0x31e   : > { %v1244_v24 = vpop.f32.mrf.mxu3 }
 0x31f   : > { %11786 = vst [vmem:[#allocation74_spill] sm:$0xff] %v9188_v25  ;;  %v1278_v42 = vadd.f32 %v1244_v24, %v11787_v53  ;;  %v11789_v53 = vld [vmem:[#allocation81_spill] sm:$0xff] }
 0x321   : > { %v1504_v57 = vadd.f32 %v8787_v61, %v1278_v42  ;;  %v9195_v27 = vpop.f32.mrf.mxu0  ;;  %v2653_v61 = vld [vmem:[#allocation2 + $0xfa] sm:$0xff] }
 0x322   : > { %11788 = vst [vmem:[#allocation82_spill] sm:$0xff] %v9195_v27  ;;  %v9197_v34 = vpop.f32.mrf.mxu1  ;;  %v9207_v25 = vpack.c.bf16 %v2653_v61, %v2652_v44  ;;  %v2440_v61 = vld [vmem:[#allocation2 + $0x199] sm:$0xff] }
 0x323   : > { %7255 = vmatmul.msk.bf16.gmra.mxu3 %vm606_vm2, %v9176_v56  ;;  %v1730_v35 = vadd.f32 %v9009_v38, %v1504_v57  ;;  %v11791_v57 = vld [vmem:[#allocation20_spill] sm:$0xff] }
 0x324   : > { %v1922_v51 = vpop.f32.mrf.mxu2  ;;  %11790 = vst [vmem:[#allocation77_spill] sm:$0xff] %v9207_v25 }
 0x325   : > { %7305 = vmatmul.msk.bf16.gmra.mxu1 %vm606_vm2, %v8945_v1  ;;  %v9204_v18 = vadd.f32 %v1922_v51, %v1730_v35 }
 0x326   : > { %v2071_v24 = vpop.f32.mrf.mxu3 }
 0x327   : > { %v2151_v42 = vadd.f32 %v2071_v24, %v11789_v53 }
 0x329   : > { %v2378_v8 = vadd.f32 %v8804_v0, %v2151_v42  ;;  %v9210_v27 = vpop.f32.mrf.mxu0  ;;  %7321 = vmatmul.msk.bf16.gmra.mxu2 %vm606_vm2, %v9207_v25  ;;  %v2441_v0 = vld [vmem:[#allocation2 + $0x1a1] sm:$0xff] }
 0x32a   : > { %v9212_v26 = vpop.f32.mrf.mxu1 }
 0x32b   : > { %v2604_v38 = vadd.f32 %v9026_v37, %v2378_v8  ;;  %v9229_v37 = vpack.c.bf16 %v2441_v0, %v2440_v61  ;;  %v11796_v0 = vld [vmem:[#allocation22_spill] sm:$0xff] }
 0x32c   : > { %7361 = vmatmul.msk.bf16.gmra.mxu0 %vm606_vm2, %v11791_v57  ;;  %v2750_v35 = vpop.f32.mrf.mxu2 }
 0x32d   : > { %v9219_v1 = vadd.f32 %v2750_v35, %v2604_v38  ;;  %11793 = vst [vmem:[#allocation79_spill] sm:$0xff] %v9229_v37  ;;  %v2655_v35 = vld [vmem:[#allocation2 + $0x112] sm:$0xff] }
 0x32e   : > { %v2073_v51 = vpop.f32.mrf.mxu3 }
 0x32f   : > { %11792 = vst [vmem:[#allocation17_spill] sm:$0xff] %v9219_v1  ;;  %v2152_v44 = vadd.f32 %v2073_v51, %v8768_v12  ;;  %v2654_v12 = vld [vmem:[#allocation2 + $0x10a] sm:$0xff] }
 0x331   : > { %v2379_v24 = vadd.f32 %v8817_v11, %v2152_v44  ;;  %v9223_v53 = vpop.f32.mrf.mxu0  ;;  %v9237_v44 = vpack.c.bf16 %v2655_v35, %v2654_v12 }
 0x332   : > { %v9225_v42 = vpop.f32.mrf.mxu1 }
 0x333   : > { %7256 = vmatmul.msk.bf16.gmra.mxu3 %vm606_vm2, %v9207_v25  ;;  %v2605_v8 = vadd.f32 %v9041_v6, %v2379_v24  ;;  %11795 = vst [vmem:[#allocation20_spill] sm:$0xff] %v9237_v44 }
 0x334   : > { %v2752_v38 = vpop.f32.mrf.mxu2 }
 0x335   : > { %7306 = vmatmul.msk.bf16.gmra.mxu1 %vm606_vm2, %v9229_v37  ;;  %v9234_v1 = vadd.f32 %v2752_v38, %v2605_v8  ;;  %v11822_v37 = vld [vmem:[#allocation27_spill] sm:$0xff] }
 0x336   : > { %v2076_v51 = vpop.f32.mrf.mxu3 }
 0x337   : > { %11794 = vst [vmem:[#allocation81_spill] sm:$0xff] %v9234_v1  ;;  %v2153_v11 = vadd.f32 %v2076_v51, %v8783_v13 }
 0x339   : > { %v2380_v56 = vadd.f32 %v8832_v14, %v2153_v11  ;;  %v9240_v25 = vpop.f32.mrf.mxu0  ;;  %7322 = vmatmul.msk.bf16.gmra.mxu2 %vm606_vm2, %v9237_v44  ;;  %v2656_v11 = vld [vmem:[#allocation2 + $0x122] sm:$0xff] }
 0x33a   : > { %v9242_v61 = vpop.f32.mrf.mxu1 }
 0x33b   : > { %v2606_v6 = vadd.f32 %v9054_v29, %v2380_v56  ;;  %v11798_v56 = vld [vmem:[#allocation8_spill] sm:$0xff] }
 0x33c   : > { %7362 = vmatmul.msk.bf16.gmra.mxu0 %vm606_vm2, %v11796_v0  ;;  %v2755_v24 = vpop.f32.mrf.mxu2 }
 0x33d   : > { %v9249_v38 = vadd.f32 %v2755_v24, %v2606_v6  ;;  %v2657_v6 = vld [vmem:[#allocation2 + $0x12a] sm:$0xff] }
 0x33e   : > { %v2078_v8 = vpop.f32.mrf.mxu3 }
 0x33f   : > { %11797 = vst [vmem:[#allocation22_spill] sm:$0xff] %v9249_v38  ;;  %v2154_v13 = vadd.f32 %v2078_v8, %v8796_v36 }
 0x341   : > { %v2381_v14 = vadd.f32 %v8845_v49, %v2154_v13  ;;  %v9253_v12 = vpop.f32.mrf.mxu0  ;;  %v9265_v49 = vpack.c.bf16 %v2657_v6, %v2656_v11 }
 0x342   : > { %v9255_v35 = vpop.f32.mrf.mxu1 }
 0x343   : > { %7257 = vmatmul.msk.bf16.gmra.mxu3 %vm606_vm2, %v9237_v44  ;;  %v2607_v29 = vadd.f32 %v9069_v43, %v2381_v14  ;;  %11800 = vst [vmem:[#allocation93_spill] sm:$0xff] %v9265_v49  ;;  %v11801_v14 = vld [vmem:[#allocation19_spill] sm:$0xff] }
 0x344   : > { %v2757_v51 = vpop.f32.mrf.mxu2 }
 0x345   : > { %7377 = vmatmul.msk.bf16.vlgmr.msrb.gmra.mxu1 %vm606_vm2, %v11798_v56  ;;  %v9262_v38 = vadd.f32 %v2757_v51, %v2607_v29 }
 0x346   : > { %v2081_v24 = vpop.f32.mrf.mxu3 }
 0x347   : > { %11799 = vst [vmem:[#allocation8_spill] sm:$0xff] %v9262_v38  ;;  %v2155_v36 = vadd.f32 %v2081_v24, %v8811_v62  ;;  %v11803_v24 = vld [vmem:[#allocation10_spill] sm:$0xff] }
 0x349   : > { %v2382_v8 = vadd.f32 %v8860_v2, %v2155_v36  ;;  %v9270_v1 = vpop.f32.mrf.mxu0  ;;  %7323 = vmatmul.msk.bf16.gmra.mxu2 %vm606_vm2, %v9265_v49 }
 0x34a   : > { %v9268_v13 = vpop.f32.mrf.mxu1 }
 0x34b   : > { %v2608_v43 = vadd.f32 %v9082_v22, %v2382_v8  ;;  %v2658_v8 = vld [vmem:[#allocation2 + $0x13a] sm:$0xff] }
 0x34c   : > { %7363 = vmatmul.msk.bf16.gmra.mxu0 %vm606_vm2, %v11801_v14  ;;  %v2760_v29 = vpop.f32.mrf.mxu2 }
 0x34d   : > { %v9277_v51 = vadd.f32 %v2760_v29, %v2608_v43  ;;  %v2659_v43 = vld [vmem:[#allocation2 + $0x142] sm:$0xff] }
 0x34e   : > { %v2083_v56 = vpop.f32.mrf.mxu3 }
 0x34f   : > { %11802 = vst [vmem:[#allocation19_spill] sm:$0xff] %v9277_v51  ;;  %v2156_v62 = vadd.f32 %v2083_v56, %v8824_v5 }
 0x351   : > { %v2383_v2 = vadd.f32 %v8873_v16, %v2156_v62  ;;  %v9283_v6 = vpop.f32.mrf.mxu0  ;;  %v9293_v16 = vpack.c.bf16 %v2659_v43, %v2658_v8  ;;  %v11807_v43 = vld [vmem:[#allocation12_spill] sm:$0xff] }
 0x352   : > { %v9281_v11 = vpop.f32.mrf.mxu1 }
 0x353   : > { %7258 = vmatmul.msk.bf16.gmra.mxu3 %vm606_vm2, %v9265_v49  ;;  %v2609_v22 = vadd.f32 %v9097_v15, %v2383_v2  ;;  %11805 = vst [vmem:[#allocation94_spill] sm:$0xff] %v9293_v16 }
 0x354   : > { %v2762_v36 = vpop.f32.mrf.mxu2 }
 0x355   : > { %7378 = vmatmul.msk.bf16.gmra.mxu1 %vm606_vm2, %v11803_v24  ;;  %v9290_v51 = vadd.f32 %v2762_v36, %v2609_v22 }
 0x356   : > { %v2086_v29 = vpop.f32.mrf.mxu3 }
 0x357   : > { %11804 = vst [vmem:[#allocation10_spill] sm:$0xff] %v9290_v51  ;;  %v2157_v5 = vadd.f32 %v2086_v29, %v8839_v63 }
 0x359   : > { %v2384_v56 = vadd.f32 %v8888_v10, %v2157_v5  ;;  %v9298_v38 = vpop.f32.mrf.mxu0  ;;  %7324 = vmatmul.msk.bf16.gmra.mxu2 %vm606_vm2, %v9293_v16  ;;  %v2660_v5 = vld [vmem:[#allocation2 + $0x152] sm:$0xff] }
 0x35a   : > { %v9296_v62 = vpop.f32.mrf.mxu1 }
 0x35b   : > { %v2610_v15 = vadd.f32 %v9110_v48, %v2384_v56  ;;  %v2661_v56 = vld [vmem:[#allocation2 + $0x15a] sm:$0xff] }
 0x35c   : > { %7364 = vmatmul.msk.bf16.gmra.mxu0 %vm606_vm2, %v8404_v28  ;;  %v2765_v2 = vpop.f32.mrf.mxu2 }
 0x35d   : > { %v9305_v24 = vadd.f32 %v2765_v2, %v2610_v15 }
 0x35e   : > { %v2088_v22 = vpop.f32.mrf.mxu3 }
 0x35f   : > { %11806 = vst [vmem:[#allocation95_spill] sm:$0xff] %v9305_v24  ;;  %v2158_v63 = vadd.f32 %v2088_v22, %v8852_v30 }
 0x361   : > { %v2385_v10 = vadd.f32 %v8901_v45, %v2158_v63  ;;  %v9311_v8 = vpop.f32.mrf.mxu0  ;;  %v9321_v45 = vpack.c.bf16 %v2661_v56, %v2660_v5  ;;  %v11811_v56 = vld [vmem:[#allocation14_spill] sm:$0xff] }
 0x362   : > { %v9309_v36 = vpop.f32.mrf.mxu1 }
 0x363   : > { %7259 = vmatmul.msk.bf16.gmra.mxu3 %vm606_vm2, %v9293_v16  ;;  %v2611_v48 = vadd.f32 %v9125_v52, %v2385_v10  ;;  %11809 = vst [vmem:[#allocation96_spill] sm:$0xff] %v9321_v45 }
 0x364   : > { %v2767_v29 = vpop.f32.mrf.mxu2 }
 0x365   : > { %7379 = vmatmul.msk.bf16.gmra.mxu1 %vm606_vm2, %v11807_v43  ;;  %v9318_v2 = vadd.f32 %v2767_v29, %v2611_v48 }
 0x366   : > { %v2091_v15 = vpop.f32.mrf.mxu3 }
 0x367   : > { %11808 = vst [vmem:[#allocation12_spill] sm:$0xff] %v9318_v2  ;;  %v2159_v30 = vadd.f32 %v2091_v15, %v8867_v7 }
 0x369   : > { %v2386_v22 = vadd.f32 %v8922_v54, %v2159_v30  ;;  %v9326_v24 = vpop.f32.mrf.mxu0  ;;  %7325 = vmatmul.msk.bf16.gmra.mxu2 %vm606_vm2, %v9321_v45  ;;  %v2662_v30 = vld [vmem:[#allocation2 + $0x16a] sm:$0xff] }
 0x36a   : > { %v9324_v63 = vpop.f32.mrf.mxu1 }
 0x36b   : > { %v2612_v52 = vadd.f32 %v9138_v21, %v2386_v22  ;;  %v2663_v22 = vld [vmem:[#allocation2 + $0x172] sm:$0xff] }
 0x36c   : > { %7365 = vmatmul.msk.bf16.gmra.mxu0 %vm606_vm2, %v8418_v41  ;;  %v2770_v10 = vpop.f32.mrf.mxu2 }
 0x36d   : > { %v9333_v43 = vadd.f32 %v2770_v10, %v2612_v52 }
 0x36e   : > { %v2093_v48 = vpop.f32.mrf.mxu3 }
 0x36f   : > { %11810 = vst [vmem:[#allocation97_spill] sm:$0xff] %v9333_v43  ;;  %v2160_v7 = vadd.f32 %v2093_v48, %v8880_v60  ;;  %v11814_v48 = vld [vmem:[#allocation41_spill] sm:$0xff] }
 0x371   : > { %v2387_v54 = vadd.f32 %v8935_v40, %v2160_v7  ;;  %v9339_v5 = vpop.f32.mrf.mxu0  ;;  %v9349_v40 = vpack.c.bf16 %v2663_v22, %v2662_v30 }
 0x372   : > { %v9337_v29 = vpop.f32.mrf.mxu1 }
 0x373   : > { %7260 = vmatmul.msk.bf16.gmra.mxu3 %vm606_vm2, %v9321_v45  ;;  %v2613_v21 = vadd.f32 %v9153_v17, %v2387_v54  ;;  %11813 = vst [vmem:[#allocation98_spill] sm:$0xff] %v9349_v40  ;;  %v11815_v54 = vld [vmem:[#allocation25_spill] sm:$0xff] }
 0x374   : > { %v2772_v15 = vpop.f32.mrf.mxu2 }
 0x375   : > { %7380 = vmatmul.msk.bf16.gmra.mxu1 %vm606_vm2, %v11811_v56  ;;  %v9346_v10 = vadd.f32 %v2772_v15, %v2613_v21 }
 0x376   : > { %v2096_v52 = vpop.f32.mrf.mxu3 }
 0x377   : > { %11812 = vst [vmem:[#allocation14_spill] sm:$0xff] %v9346_v10  ;;  %v2161_v60 = vadd.f32 %v2096_v52, %v8895_v31  ;;  %v11817_v31 = vld [vmem:[#allocation89_spill] sm:$0xff] }
 0x379   : > { %v2388_v7 = vadd.f32 %v11814_v48, %v2161_v60  ;;  %v9354_v2 = vpop.f32.mrf.mxu0  ;;  %7326 = vmatmul.msk.bf16.gmra.mxu2 %vm606_vm2, %v9349_v40  ;;  %v7903_v48 = vld [vmem:[%s11501_s5 + $0x18] sm:$0xff] }
 0x37a   : > { %v9352_v43 = vpop.f32.mrf.mxu1  ;;  %3203 = vmatpush.bf16.msra.mxu2 %v7903_v48 }
 0x37b   : > { %v2614_v17 = vadd.f32 %v9166_v4, %v2388_v7  ;;  %v11818_v7 = vld [vmem:[#allocation16_spill] sm:$0xff] }
 0x37c   : > { %7366 = vmatmul.msk.bf16.gmra.mxu0 %vm606_vm2, %v11815_v54  ;;  %v2775_v21 = vpop.f32.mrf.mxu2 }
 0x37d   : > { %v9361_v15 = vadd.f32 %v2775_v21, %v2614_v17  ;;  %v2664_v21 = vld [vmem:[#allocation2 + $0x182] sm:$0xff] }
 0x37e   : > { %v2098_v56 = vpop.f32.mrf.mxu3 }
 0x37f   : > { %11816 = vst [vmem:[#allocation41_spill] sm:$0xff] %v9361_v15  ;;  %v2162_v30 = vadd.f32 %v2098_v56, %v11817_v31  ;;  %v7904_v56 = vld [vmem:[%s11501_s5 + $0x20] sm:$0xff] }
 0x380   : > { %v11820_v15 = vld [vmem:[#allocation91_spill] sm:$0xff]  ;;  %3333 = vmatpush.bf16.msra.mxu3 %v7904_v56  ;;  %v11825_v56 = vld [vmem:[#allocation42_spill] sm:$0xff] }
 0x381   : > { %v2389_v22 = vadd.f32 %v8965_v59, %v2162_v30  ;;  %v9367_v60 = vpop.f32.mrf.mxu0  ;;  %v2665_v59 = vld [vmem:[#allocation2 + $0x18a] sm:$0xff] }
 0x382   : > { %v9365_v52 = vpop.f32.mrf.mxu1  ;;  %v9383_v51 = vpack.c.bf16 %v2665_v59, %v2664_v21  ;;  %v11824_v21 = vld [vmem:[#allocation37_spill] sm:$0xff] }
 0x383   : > { %7261 = vmatmul.msk.bf16.gmra.mxu3 %vm606_vm2, %v9349_v40  ;;  %v2615_v4 = vadd.f32 %v9181_v47, %v2389_v22  ;;  %v2666_v40 = vld [vmem:[#allocation2 + $0x19a] sm:$0xff] }
 0x384   : > { %v2777_v17 = vpop.f32.mrf.mxu2  ;;  %11821 = vst [vmem:[#allocation89_spill] sm:$0xff] %v9383_v51 }
 0x385   : > { %7381 = vmatmul.msk.bf16.gmra.mxu1 %vm606_vm2, %v11818_v7  ;;  %v9380_v30 = vadd.f32 %v2777_v17, %v2615_v4 }
 0x386   : > { %v2101_v31 = vpop.f32.mrf.mxu3 }
 0x387   : > { %11819 = vst [vmem:[#allocation25_spill] sm:$0xff] %v9380_v30  ;;  %v2163_v10 = vadd.f32 %v2101_v31, %v11820_v15 }
 0x389   : > { %v2390_v47 = vadd.f32 %v8983_v33, %v2163_v10  ;;  %v9388_v48 = vpop.f32.mrf.mxu0  ;;  %7327 = vmatmul.msk.bf16.gmra.mxu2 %vm606_vm2, %v9383_v51 }
 0x38a   : > { %v9386_v22 = vpop.f32.mrf.mxu1 }
 0x38b   : > { %v2616_v7 = vadd.f32 %v9197_v34, %v2390_v47  ;;  %v11826_v47 = vld [vmem:[#allocation18_spill] sm:$0xff] }
 0x38c   : > { %7367 = vmatmul.msk.bf16.gmra.mxu0 %vm606_vm2, %v11822_v37  ;;  %v2780_v4 = vpop.f32.mrf.mxu2 }
 0x38d   : > { %v9395_v15 = vadd.f32 %v2780_v4, %v2616_v7  ;;  %v2667_v7 = vld [vmem:[#allocation2 + $0x1a2] sm:$0xff] }
 0x38e   : > { %v2103_v17 = vpop.f32.mrf.mxu3 }
 0x38f   : > { %11823 = vst [vmem:[#allocation16_spill] sm:$0xff] %v9395_v15  ;;  %v2164_v59 = vadd.f32 %v2103_v17, %v11824_v21  ;;  %v11828_v17 = vld [vmem:[#allocation44_spill] sm:$0xff] }
 0x391   : > { %v2391_v33 = vadd.f32 %v11825_v56, %v2164_v59  ;;  %v9401_v31 = vpop.f32.mrf.mxu0  ;;  %v9411_v59 = vpack.c.bf16 %v2667_v7, %v2666_v40  ;;  %v11832_v40 = vld [vmem:[#allocation48_spill] sm:$0xff] }
 0x392   : > { %v9399_v10 = vpop.f32.mrf.mxu1 }
 0x393   : > { %7262 = vmatmul.msk.bf16.gmra.mxu3 %vm606_vm2, %v9383_v51  ;;  %v2617_v34 = vadd.f32 %v9212_v26, %v2391_v33  ;;  %11829 = vst [vmem:[#allocation27_spill] sm:$0xff] %v9411_v59  ;;  %v11830_v33 = vld [vmem:[#allocation29_spill] sm:$0xff] }
 0x394   : > { %v2782_v30 = vpop.f32.mrf.mxu2 }
 0x395   : > { %7382 = vmatmul.msk.bf16.gmra.mxu1 %vm606_vm2, %v11826_v47  ;;  %v9408_v15 = vadd.f32 %v2782_v30, %v2617_v34 }
 0x396   : > { %v2106_v4 = vpop.f32.mrf.mxu3 }
 0x397   : > { %11827 = vst [vmem:[#allocation91_spill] sm:$0xff] %v9408_v15  ;;  %v2165_v21 = vadd.f32 %v2106_v4, %v11828_v17  ;;  %v11833_v17 = vld [vmem:[#allocation35_spill] sm:$0xff] }
 0x399   : > { %v2392_v56 = vadd.f32 %v9011_v55, %v2165_v21  ;;  %v9416_v51 = vpop.f32.mrf.mxu0  ;;  %7328 = vmatmul.msk.bf16.gmra.mxu2 %vm606_vm2, %v9411_v59 }
 0x39a   : > { %v9414_v45 = vpop.f32.mrf.mxu1 }
 0x39b   : > { %v2618_v26 = vadd.f32 %v9225_v42, %v2392_v56  ;;  %v11834_v56 = vld [vmem:[#allocation21_spill] sm:$0xff] }
 0x39c   : > { %7368 = vmatmul.msk.bf16.gmra.mxu0 %vm606_vm2, %v11830_v33  ;;  %v2785_v30 = vpop.f32.mrf.mxu2 }
 0x39d   : > { %v9423_v47 = vadd.f32 %v2785_v30, %v2618_v26  ;;  %v11836_v30 = vld [vmem:[#allocation51_spill] sm:$0xff] }
 0x39e   : > { %v2108_v34 = vpop.f32.mrf.mxu3 }
 0x39f   : > { %11831 = vst [vmem:[#allocation37_spill] sm:$0xff] %v9423_v47  ;;  %v2166_v7 = vadd.f32 %v2108_v34, %v11832_v40  ;;  %v7905_v40 = vld [vmem:[%s11501_s5 + $0x28] sm:$0xff] }
 0x3a0   : > { %3463 = vmatpush.bf16.msra.mxu0 %v7905_v40  ;;  %v11841_v47 = vld [vmem:[#allocation36_spill] sm:$0xff] }
 0x3a1   : > { %v2393_v55 = vadd.f32 %v9024_v20, %v2166_v7  ;;  %v9431_v21 = vpop.f32.mrf.mxu0 }
 0x3a2   : > { %v9427_v4 = vpop.f32.mrf.mxu1 }
 0x3a3   : > { %7335 = vmatmul.msk.bf16.vlgmr.msrb.gmra.mxu3 %vm606_vm2, %v11833_v17  ;;  %v2619_v42 = vadd.f32 %v9242_v61, %v2393_v55  ;;  %v11837_v55 = vld [vmem:[#allocation31_spill] sm:$0xff] }
 0x3a4   : > { %v2787_v15 = vpop.f32.mrf.mxu2 }
 0x3a5   : > { %7383 = vmatmul.msk.bf16.gmra.mxu1 %vm606_vm2, %v11834_v56  ;;  %v9436_v26 = vadd.f32 %v2787_v15, %v2619_v42  ;;  %v11839_v42 = vld [vmem:[#allocation53_spill] sm:$0xff] }
 0x3a6   : > { %v2111_v59 = vpop.f32.mrf.mxu3 }
 0x3a7   : > { %11835 = vst [vmem:[#allocation42_spill] sm:$0xff] %v9436_v26  ;;  %v2167_v34 = vadd.f32 %v2111_v59, %v11836_v30  ;;  %v11840_v30 = vld [vmem:[#allocation61_spill] sm:$0xff] }
 0x3a9   : > { %v2394_v20 = vadd.f32 %v9039_v19, %v2167_v34  ;;  %7399 = vmatmul.msk.bf16.vlgmr.msra.gmra.mxu2 %vm606_vm2, %v11750_v46  ;;  %v9450_v17 = vpop.f32.mrf.mxu0 }
 0x3aa   : > { %v9443_v7 = vpop.f32.mrf.mxu1 }
 0x3ab   : > { %v2620_v61 = vadd.f32 %v9255_v35, %v2394_v20  ;;  %v11842_v35 = vld [vmem:[#allocation23_spill] sm:$0xff] }
 0x3ac   : > { %7369 = vmatmul.msk.bf16.gmra.mxu0 %vm606_vm2, %v11837_v55  ;;  %v2790_v15 = vpop.f32.mrf.mxu2 }
 0x3ad   : > { %v9452_v19 = vadd.f32 %v2790_v15, %v2620_v61  ;;  %v11844_v61 = vld [vmem:[#allocation92_spill] sm:$0xff] }
 0x3ae   : > { %v2113_v59 = vpop.f32.mrf.mxu3 }
 0x3af   : > { %11838 = vst [vmem:[#allocation18_spill] sm:$0xff] %v9452_v19  ;;  %v2168_v56 = vadd.f32 %v2113_v59, %v11839_v42  ;;  %v11846_v59 = vld [vmem:[#allocation63_spill] sm:$0xff] }
 0x3b1   : > { %v2395_v34 = vadd.f32 %v11840_v30, %v2168_v56  ;;  %v9466_v19 = vpop.f32.mrf.mxu0  ;;  %v11847_v30 = vld [vmem:[#allocation33_spill] sm:$0xff] }
 0x3b2   : > { %v9456_v26 = vpop.f32.mrf.mxu1  ;;  %11845 = vst [vmem:[#allocation29_spill] sm:$0xff] %v9466_v19 }
 0x3b3   : > { %7336 = vmatmul.msk.bf16.gmra.mxu3 %vm606_vm2, %v11841_v47  ;;  %v2621_v46 = vadd.f32 %v9268_v13, %v2395_v34 }
 0x3b4   : > { %v2792_v20 = vpop.f32.mrf.mxu2 }
 0x3b5   : > { %7384 = vmatmul.msk.bf16.gmra.mxu1 %vm606_vm2, %v11842_v35  ;;  %v9463_v16 = vadd.f32 %v2792_v20, %v2621_v46  ;;  %v11849_v20 = vld [vmem:[#allocation49_spill] sm:$0xff] }
 0x3b6   : > { %v2116_v40 = vpop.f32.mrf.mxu3 }
 0x3b7   : > { %11843 = vst [vmem:[#allocation44_spill] sm:$0xff] %v9463_v16  ;;  %v2169_v15 = vadd.f32 %v2116_v40, %v11844_v61  ;;  %v11850_v61 = vld [vmem:[#allocation66_spill] sm:$0xff] }
 0x3b9   : > { %v2396_v42 = vadd.f32 %v11846_v59, %v2169_v15  ;;  %7400 = vmatmul.msk.bf16.gmra.mxu2 %vm606_vm2, %v11760_v32  ;;  %v9480_v47 = vpop.f32.mrf.mxu0  ;;  %v11852_v59 = vld [vmem:[#allocation43_spill] sm:$0xff] }
 0x3ba   : > { %v9469_v56 = vpop.f32.mrf.mxu1  ;;  %11851 = vst [vmem:[#allocation35_spill] sm:$0xff] %v9480_v47  ;;  %v11863_v47 = vld [vmem:[#allocation26_spill] sm:$0xff] }
 0x3bb   : > { %v2622_v13 = vadd.f32 %v9281_v11, %v2396_v42  ;;  %v11853_v42 = vld [vmem:[#allocation24_spill] sm:$0xff] }
 0x3bc   : > { %7370 = vmatmul.msk.bf16.gmra.mxu0 %vm606_vm2, %v11847_v30  ;;  %v2795_v34 = vpop.f32.mrf.mxu2 }
 0x3bd   : > { %v9476_v46 = vadd.f32 %v2795_v34, %v2622_v13  ;;  %v11855_v34 = vld [vmem:[#allocation52_spill] sm:$0xff] }
 0x3be   : > { %v2118_v35 = vpop.f32.mrf.mxu3 }
 0x3bf   : > { %11848 = vst [vmem:[#allocation48_spill] sm:$0xff] %v9476_v46  ;;  %v2170_v40 = vadd.f32 %v2118_v35, %v11849_v20  ;;  %v11856_v20 = vld [vmem:[#allocation68_spill] sm:$0xff] }
 0x3c1   : > { %v2397_v16 = vadd.f32 %v11850_v61, %v2170_v40  ;;  %v9497_v46 = vpop.f32.mrf.mxu0 }
 0x3c2   : > { %v9482_v15 = vpop.f32.mrf.mxu1  ;;  %11857 = vst [vmem:[#allocation51_spill] sm:$0xff] %v9497_v46 }
 0x3c3   : > { %7337 = vmatmul.msk.bf16.gmra.mxu3 %vm606_vm2, %v11852_v59  ;;  %v2623_v11 = vadd.f32 %v9296_v62, %v2397_v16  ;;  %v11858_v62 = vld [vmem:[#allocation45_spill] sm:$0xff] }
 0x3c4   : > { %v2797_v19 = vpop.f32.mrf.mxu2 }
 0x3c5   : > { %7385 = vmatmul.msk.bf16.gmra.mxu1 %vm606_vm2, %v11853_v42  ;;  %v9489_v13 = vadd.f32 %v2797_v19, %v2623_v11  ;;  %v11860_v11 = vld [vmem:[#allocation7_spill] sm:$0xff] }
 0x3c6   : > { %v2121_v30 = vpop.f32.mrf.mxu3 }
 0x3c7   : > { %11854 = vst [vmem:[#allocation21_spill] sm:$0xff] %v9489_v13  ;;  %v2171_v35 = vadd.f32 %v2121_v30, %v11855_v34  ;;  %v11861_v34 = vld [vmem:[#allocation71_spill] sm:$0xff]  ;;  %v11862_v13 = vld [vmem:[#allocation50_spill] sm:$0xff] }
 0x3c9   : > { %v2398_v40 = vadd.f32 %v11856_v20, %v2171_v35  ;;  %7401 = vmatmul.msk.bf16.gmra.mxu2 %vm606_vm2, %v11769_v23 }
 0x3ca   : > { %v9493_v61 = vpop.f32.mrf.mxu1 }
 0x3cb   : > { %v2624_v16 = vadd.f32 %v9309_v36, %v2398_v40  ;;  %v9513_v40 = vpop.f32.mrf.mxu0 }
 0x3cc   : > { %7443 = vmatmul.msk.bf16.vlgmr.msra.gmra.mxu0 %vm606_vm2, %v11858_v62  ;;  %v2800_v42 = vpop.f32.mrf.mxu2 }
 0x3cd   : > { %v9502_v19 = vadd.f32 %v2800_v42, %v2624_v16  ;;  %v11865_v42 = vld [vmem:[#allocation57_spill] sm:$0xff] }
 0x3ce   : > { %v2123_v59 = vpop.f32.mrf.mxu3 }
 0x3cf   : > { %11859 = vst [vmem:[#allocation31_spill] sm:$0xff] %v9502_v19  ;;  %v2172_v30 = vadd.f32 %v2123_v59, %v11860_v11 }
 0x3d1   : > { %v2399_v35 = vadd.f32 %v11861_v34, %v2172_v30  ;;  %v11866_v34 = vld [vmem:[#allocation39_spill] sm:$0xff] }
 0x3d2   : > { %v9506_v20 = vpop.f32.mrf.mxu1 }
 0x3d3   : > { %7338 = vmatmul.msk.bf16.gmra.mxu3 %vm606_vm2, %v11862_v13  ;;  %v2625_v46 = vadd.f32 %v9324_v63, %v2399_v35 }
 0x3d4   : > { %v2802_v36 = vpop.f32.mrf.mxu2 }
 0x3d5   : > { %7386 = vmatmul.msk.bf16.gmra.mxu1 %vm606_vm2, %v11863_v47  ;;  %v9515_v16 = vadd.f32 %v2802_v36, %v2625_v46  ;;  %v11868_v46 = vld [vmem:[#allocation9_spill] sm:$0xff] }
 0x3d6   : > { %v2126_v62 = vpop.f32.mrf.mxu3 }
 0x3d7   : > { %11864 = vst [vmem:[#allocation53_spill] sm:$0xff] %v9515_v16  ;;  %v2173_v59 = vadd.f32 %v2126_v62, %v11865_v42  ;;  %v9529_v16 = vpop.f32.mrf.mxu0  ;;  %v11869_v62 = vld [vmem:[#allocation67_spill] sm:$0xff] }
 0x3d9   : > { %v2400_v11 = vadd.f32 %v9123_v58, %v2173_v59  ;;  %7402 = vmatmul.msk.bf16.gmra.mxu2 %vm606_vm2, %v11777_v50  ;;  %v11870_v59 = vld [vmem:[#allocation55_spill] sm:$0xff] }
 0x3da   : > { %v9519_v30 = vpop.f32.mrf.mxu1 }
 0x3db   : > { %v2626_v63 = vadd.f32 %v9337_v29, %v2400_v11  ;;  %v11871_v11 = vld [vmem:[#allocation28_spill] sm:$0xff] }
 0x3dc   : > { %7444 = vmatmul.msk.bf16.gmra.mxu0 %vm606_vm2, %v11866_v34  ;;  %v2805_v47 = vpop.f32.mrf.mxu2 }
 0x3dd   : > { %v9526_v19 = vadd.f32 %v2805_v47, %v2626_v63  ;;  %v11873_v47 = vld [vmem:[#allocation62_spill] sm:$0xff] }
 0x3de   : > { %v2128_v35 = vpop.f32.mrf.mxu3 }
 0x3df   : > { %11867 = vst [vmem:[#allocation61_spill] sm:$0xff] %v9526_v19  ;;  %v2174_v36 = vadd.f32 %v2128_v35, %v11868_v46  ;;  %v9543_v19 = vpop.f32.mrf.mxu0 }
 0x3e0   : > { %11874 = vst [vmem:[#allocation92_spill] sm:$0xff] %v9543_v19 }
 0x3e1   : > { %v2401_v58 = vadd.f32 %v11869_v62, %v2174_v36  ;;  %v11875_v62 = vld [vmem:[#allocation47_spill] sm:$0xff] }
 0x3e2   : > { %v9532_v42 = vpop.f32.mrf.mxu1 }
 0x3e3   : > { %7339 = vmatmul.msk.bf16.gmra.mxu3 %vm606_vm2, %v11870_v59  ;;  %v2627_v29 = vadd.f32 %v9352_v43, %v2401_v58 }
 0x3e4   : > { %v2807_v34 = vpop.f32.mrf.mxu2 }
 0x3e5   : > { %7387 = vmatmul.msk.bf16.gmra.mxu1 %vm606_vm2, %v11871_v11  ;;  %v9539_v63 = vadd.f32 %v2807_v34, %v2627_v29  ;;  %v11877_v29 = vld [vmem:[#allocation11_spill] sm:$0xff] }
 0x3e6   : > { %v2131_v13 = vpop.f32.mrf.mxu3 }
 0x3e7   : > { %11872 = vst [vmem:[#allocation23_spill] sm:$0xff] %v9539_v63  ;;  %v2175_v35 = vadd.f32 %v2131_v13, %v11873_v47  ;;  %v11878_v47 = vld [vmem:[#allocation78_spill] sm:$0xff]  ;;  %v11879_v63 = vld [vmem:[#allocation60_spill] sm:$0xff]  ;;  %v9560_v59 = vpop.f32.mrf.mxu0 }
 0x3e9   : > { %v2402_v46 = vadd.f32 %v9151_v39, %v2175_v35  ;;  %7403 = vmatmul.msk.bf16.gmra.mxu2 %vm606_vm2, %v11785_v3 }
 0x3ea   : > { %v9545_v36 = vpop.f32.mrf.mxu1 }
 0x3eb   : > { %v2628_v43 = vadd.f32 %v9365_v52, %v2402_v46  ;;  %v11880_v46 = vld [vmem:[#allocation30_spill] sm:$0xff] }
 0x3ec   : > { %7445 = vmatmul.msk.bf16.gmra.mxu0 %vm606_vm2, %v11875_v62  ;;  %v2810_v58 = vpop.f32.mrf.mxu2 }
 0x3ed   : > { %v9552_v34 = vadd.f32 %v2810_v58, %v2628_v43  ;;  %v11882_v58 = vld [vmem:[#allocation73_spill] sm:$0xff] }
 0x3ee   : > { %v2133_v11 = vpop.f32.mrf.mxu3 }
 0x3ef   : > { %11876 = vst [vmem:[#allocation63_spill] sm:$0xff] %v9552_v34  ;;  %v2176_v13 = vadd.f32 %v2133_v11, %v11877_v29  ;;  %v11883_v34 = vld [vmem:[#allocation58_spill] sm:$0xff] }
 0x3f1   : > { %v2403_v39 = vadd.f32 %v11878_v47, %v2176_v13 }
 0x3f2   : > { %v9556_v35 = vpop.f32.mrf.mxu1 }
 0x3f3   : > { %7340 = vmatmul.msk.bf16.gmra.mxu3 %vm606_vm2, %v11879_v63  ;;  %v2629_v52 = vadd.f32 %v9386_v22, %v2403_v39  ;;  %v9576_v39 = vpop.f32.mrf.mxu0 }
 0x3f4   : > { %v2812_v62 = vpop.f32.mrf.mxu2  ;;  %11884 = vst [vmem:[#allocation66_spill] sm:$0xff] %v9576_v39 }
 0x3f5   : > { %7388 = vmatmul.msk.bf16.gmra.mxu1 %vm606_vm2, %v11880_v46  ;;  %v9565_v43 = vadd.f32 %v2812_v62, %v2629_v52  ;;  %v11886_v52 = vld [vmem:[#allocation76_spill] sm:$0xff] }
 0x3f6   : > { %v2136_v19 = vpop.f32.mrf.mxu3 }
 0x3f7   : > { %11881 = vst [vmem:[#allocation49_spill] sm:$0xff] %v9565_v43  ;;  %v2177_v11 = vadd.f32 %v2136_v19, %v11882_v58  ;;  %v11887_v58 = vld [vmem:[#allocation82_spill] sm:$0xff]  ;;  %v11888_v43 = vld [vmem:[#allocation65_spill] sm:$0xff] }
 0x3f9   : > { %v2404_v29 = vadd.f32 %v9179_v9, %v2177_v11  ;;  %7404 = vmatmul.msk.bf16.gmra.mxu2 %vm606_vm2, %v11791_v57 }
 0x3fa   : > { %v9569_v13 = vpop.f32.mrf.mxu1 }
 0x3fb   : > { %v2630_v47 = vadd.f32 %v9399_v10, %v2404_v29  ;;  %v11889_v29 = vld [vmem:[#allocation32_spill] sm:$0xff] }
 0x3fc   : > { %7446 = vmatmul.msk.bf16.gmra.mxu0 %vm606_vm2, %v11883_v34  ;;  %v2815_v22 = vpop.f32.mrf.mxu2 }
 0x3fd   : > { %v9578_v62 = vadd.f32 %v2815_v22, %v2630_v47  ;;  %v11891_v47 = vld [vmem:[#allocation69_spill] sm:$0xff] }
 0x3fe   : > { %v2138_v46 = vpop.f32.mrf.mxu3 }
 0x3ff   : > { %11885 = vst [vmem:[#allocation24_spill] sm:$0xff] %v9578_v62  ;;  %v2178_v19 = vadd.f32 %v2138_v46, %v11886_v52  ;;  %v9592_v62 = vpop.f32.mrf.mxu0 }
 0x401   : > { %v2405_v9 = vadd.f32 %v11887_v58, %v2178_v19  ;;  %v11892_v19 = vld [vmem:[#allocation54_spill] sm:$0xff] }
 0x402   : > { %v9582_v11 = vpop.f32.mrf.mxu1 }
 0x403   : > { %7341 = vmatmul.msk.bf16.gmra.mxu3 %vm606_vm2, %v11888_v43  ;;  %v2631_v10 = vadd.f32 %v9414_v45, %v2405_v9 }
 0x404   : > { %v2817_v34 = vpop.f32.mrf.mxu2 }
 0x405   : > { %7389 = vmatmul.msk.bf16.gmra.mxu1 %vm606_vm2, %v11889_v29  ;;  %v9589_v39 = vadd.f32 %v2817_v34, %v2631_v10  ;;  %v11894_v10 = vld [vmem:[#allocation72_spill] sm:$0xff] }
 0x406   : > { %v2141_v63 = vpop.f32.mrf.mxu3 }
 0x407   : > { %11890 = vst [vmem:[#allocation52_spill] sm:$0xff] %v9589_v39  ;;  %v2179_v22 = vadd.f32 %v2141_v63, %v11891_v47  ;;  %v9606_v47 = vpop.f32.mrf.mxu0 }
 0x409   : > { %v2406_v46 = vadd.f32 %v9210_v27, %v2179_v22  ;;  %7405 = vmatmul.msk.bf16.gmra.mxu2 %vm606_vm2, %v11796_v0  ;;  %v11895_v22 = vld [vmem:[#allocation70_spill] sm:$0xff] }
 0x40a   : > { %v9595_v52 = vpop.f32.mrf.mxu1 }
 0x40b   : > { %v2632_v45 = vadd.f32 %v9427_v4, %v2406_v46  ;;  %v11896_v46 = vld [vmem:[#allocation34_spill] sm:$0xff] }
 0x40c   : > { %7447 = vmatmul.msk.bf16.gmra.mxu0 %vm606_vm2, %v11892_v19  ;;  %v2820_v58 = vpop.f32.mrf.mxu2 }
 0x40d   : > { %v9602_v34 = vadd.f32 %v2820_v58, %v2632_v45  ;;  %v11898_v58 = vld [vmem:[#allocation74_spill] sm:$0xff] }
 0x40e   : > { %v2143_v9 = vpop.f32.mrf.mxu3 }
 0x40f   : > { %11893 = vst [vmem:[#allocation68_spill] sm:$0xff] %v9602_v34  ;;  %v2180_v63 = vadd.f32 %v2143_v9, %v11894_v10  ;;  %v9621_v10 = vpop.f32.mrf.mxu0 }
 0x411   : > { %v2407_v29 = vadd.f32 %v9223_v53, %v2180_v63 }
 0x412   : > { %v9608_v27 = vpop.f32.mrf.mxu1 }
 0x413   : > { %7342 = vmatmul.msk.bf16.gmra.mxu3 %vm606_vm2, %v11895_v22  ;;  %v2633_v4 = vadd.f32 %v9443_v7, %v2407_v29  ;;  %v11899_v7 = vld [vmem:[#allocation59_spill] sm:$0xff] }
 0x414   : > { %v2822_v39 = vpop.f32.mrf.mxu2 }
 0x415   : > { %7390 = vmatmul.msk.bf16.gmra.mxu1 %vm606_vm2, %v11896_v46  ;;  %v9615_v45 = vadd.f32 %v2822_v39, %v2633_v4  ;;  %v7906_v4 = vld [vmem:[%s11501_s5 + $0x30] sm:$0xff] }
 0x416   : > { %v2146_v19 = vpop.f32.mrf.mxu3  ;;  %3593 = vmatpush.bf16.msra.mxu1 %v7906_v4  ;;  %v11904_v4 = vld [vmem:[#allocation64_spill] sm:$0xff] }
 0x417   : > { %11897 = vst [vmem:[#allocation45_spill] sm:$0xff] %v9615_v45  ;;  %v2181_v9 = vadd.f32 %v2146_v19, %v11898_v58  ;;  %v11901_v58 = vld [vmem:[#allocation75_spill] sm:$0xff] }
 0x419   : > { %v2408_v53 = vadd.f32 %v9240_v25, %v2181_v9  ;;  %7406 = vmatmul.msk.bf16.gmra.mxu2 %vm606_vm2, %v11801_v14  ;;  %v11902_v9 = vld [vmem:[#allocation38_spill] sm:$0xff] }
 0x41a   : > { %v9624_v34 = vpop.f32.mrf.mxu1 }
 0x41b   : > { %v2634_v63 = vadd.f32 %v9456_v26, %v2408_v53 }
 0x41c   : > { %7448 = vmatmul.msk.bf16.gmra.mxu0 %vm606_vm2, %v11899_v7  ;;  %v2825_v29 = vpop.f32.mrf.mxu2 }
 0x41d   : > { %v9628_v39 = vadd.f32 %v2825_v29, %v2634_v63  ;;  %v9640_v63 = vpop.f32.mrf.mxu0 }
 0x41e   : > { %v2148_v46 = vpop.f32.mrf.mxu3 }
 0x41f   : > { %11900 = vst [vmem:[#allocation7_spill] sm:$0xff] %v9628_v39  ;;  %v2182_v19 = vadd.f32 %v2148_v46, %v9204_v18 }
 0x421   : > { %v2409_v25 = vadd.f32 %v9253_v12, %v2182_v19 }
 0x422   : > { %v9644_v12 = vpop.f32.mrf.mxu1 }
 0x423   : > { %7343 = vmatmul.msk.bf16.gmra.mxu3 %vm606_vm2, %v11901_v58  ;;  %v2635_v26 = vadd.f32 %v9469_v56, %v2409_v25 }
 0x424   : > { %v2827_v53 = vpop.f32.mrf.mxu2 }
 0x425   : > { %7391 = vmatmul.msk.bf16.gmra.mxu1 %vm606_vm2, %v11902_v9  ;;  %v9642_v29 = vadd.f32 %v2827_v53, %v2635_v26  ;;  %v9654_v39 = vpop.f32.mrf.mxu0 }
 0x426   : > { %v2882_v18 = vpop.f32.mrf.mxu3 }
 0x427   : > { %11903 = vst [vmem:[#allocation71_spill] sm:$0xff] %v9642_v29  ;;  %v2978_v46 = vadd.f32 %v9270_v1, %v2882_v18  ;;  %v11905_v29 = vld [vmem:[#allocation80_spill] sm:$0xff]  ;;  %v11906_v18 = vld [vmem:[#allocation46_spill] sm:$0xff] }
 0x429   : > { %7407 = vmatmul.msk.bf16.gmra.mxu2 %vm606_vm2, %v8404_v28  ;;  %v3155_v19 = vadd.f32 %v9482_v15, %v2978_v46 }
 0x42a   : > { %v9657_v53 = vpop.f32.mrf.mxu1 }
 0x42c   : > { %7449 = vmatmul.msk.bf16.gmra.mxu0 %vm606_vm2, %v11904_v4  ;;  %v3205_v56 = vpop.f32.mrf.mxu2  ;;  %v11907_v4 = vld [vmem:[#allocation13_spill] sm:$0xff] }
 0x42d   : > { %v9652_v9 = vadd.f32 %v3205_v56, %v3155_v19  ;;  %v9667_v56 = vpop.f32.mrf.mxu0 }
 0x42e   : > { %v2884_v25 = vpop.f32.mrf.mxu3 }
 0x42f   : > { %v2980_v26 = vadd.f32 %v9283_v6, %v2884_v25 }
 0x431   : > { %v3156_v1 = vadd.f32 %v9493_v61, %v2980_v26 }
 0x432   : > { %v9671_v6 = vpop.f32.mrf.mxu1 }
 0x433   : > { %7344 = vmatmul.msk.bf16.gmra.mxu3 %vm606_vm2, %v11905_v29 }
 0x434   : > { %v3207_v15 = vpop.f32.mrf.mxu2 }
 0x435   : > { %7392 = vmatmul.msk.bf16.gmra.mxu1 %vm606_vm2, %v11906_v18  ;;  %v9664_v45 = vadd.f32 %v3207_v15, %v3156_v1  ;;  %v11909_v15 = vld [vmem:[#allocation84_spill] sm:$0xff] }
 0x436   : > { %v2887_v46 = vpop.f32.mrf.mxu3 }
 0x437   : > { %v2983_v19 = vadd.f32 %v9298_v38, %v2887_v46  ;;  %v9681_v38 = vpop.f32.mrf.mxu0 }
 0x439   : > { %7408 = vmatmul.msk.bf16.gmra.mxu2 %vm606_vm2, %v8418_v41  ;;  %v3157_v25 = vadd.f32 %v9506_v20, %v2983_v19 }
 0x43a   : > { %v9684_v7 = vpop.f32.mrf.mxu1 }
 0x43c   : > { %7450 = vmatmul.msk.bf16.gmra.mxu0 %vm606_vm2, %v11907_v4  ;;  %v3210_v61 = vpop.f32.mrf.mxu2 }
 0x43d   : > { %v9676_v18 = vadd.f32 %v3210_v61, %v3157_v25  ;;  %v11910_v61 = vld [vmem:[#allocation15_spill] sm:$0xff] }
 0x43e   : > { %v2889_v26 = vpop.f32.mrf.mxu3 }
 0x43f   : > { %11908 = vst [vmem:[#allocation26_spill] sm:$0xff] %v9676_v18  ;;  %v2985_v1 = vadd.f32 %v9311_v8, %v2889_v26  ;;  %v9696_v26 = vpop.f32.mrf.mxu0 }
 0x441   : > { %v3158_v46 = vadd.f32 %v9519_v30, %v2985_v1 }
 0x443   : > { %7345 = vmatmul.msk.bf16.gmra.mxu3 %vm606_vm2, %v11909_v15 }
 0x444   : > { %v3212_v20 = vpop.f32.mrf.mxu2 }
 0x445   : > { %7465 = vmatmul.msk.bf16.vlgmr.msra.gmra.mxu1 %vm606_vm2, %v11760_v32  ;;  %v9688_v4 = vadd.f32 %v3212_v20, %v3158_v46  ;;  %v9700_v32 = vpop.f32.mrf.mxu1  ;;  %v11911_v20 = vld [vmem:[#allocation85_spill] sm:$0xff] }
 0x446   : > { %v2892_v19 = vpop.f32.mrf.mxu3 }
 0x447   : > { %v2988_v25 = vadd.f32 %v9326_v24, %v2892_v19 }
 0x449   : > { %7409 = vmatmul.msk.bf16.gmra.mxu2 %vm606_vm2, %v11815_v54  ;;  %v3159_v8 = vadd.f32 %v9532_v42, %v2988_v25 }
 0x44c   : > { %7451 = vmatmul.msk.bf16.gmra.mxu0 %vm606_vm2, %v11910_v61  ;;  %v3215_v30 = vpop.f32.mrf.mxu2  ;;  %v9710_v61 = vpop.f32.mrf.mxu0 }
 0x44d   : > { %v9698_v18 = vadd.f32 %v3215_v30, %v3159_v8  ;;  %v9713_v30 = vpop.f32.mrf.mxu1 }
 0x44e   : > { %v2894_v1 = vpop.f32.mrf.mxu3 }
 0x44f   : > { %v2990_v46 = vadd.f32 %v9339_v5, %v2894_v1  ;;  %v11913_v1 = vld [vmem:[#allocation77_spill] sm:$0xff] }
 0x451   : > { %v3160_v24 = vadd.f32 %v9545_v36, %v2990_v46 }
 0x453   : > { %7346 = vmatmul.msk.bf16.gmra.mxu3 %vm606_vm2, %v11911_v20 }
 0x454   : > { %v3217_v42 = vpop.f32.mrf.mxu2 }
 0x455   : > { %7466 = vmatmul.msk.bf16.gmra.mxu1 %vm606_vm2, %v11769_v23  ;;  %v9708_v25 = vadd.f32 %v3217_v42, %v3160_v24  ;;  %v9723_v42 = vpop.f32.mrf.mxu0 }
 0x456   : > { %v2897_v19 = vpop.f32.mrf.mxu3 }
 0x457   : > { %11912 = vst [vmem:[#allocation57_spill] sm:$0xff] %v9708_v25  ;;  %v2993_v8 = vadd.f32 %v9354_v2, %v2897_v19  ;;  %v9725_v25 = vpop.f32.mrf.mxu1  ;;  %v11914_v2 = vld [vmem:[#allocation86_spill] sm:$0xff] }
 0x459   : > { %7410 = vmatmul.msk.bf16.gmra.mxu2 %vm606_vm2, %v11822_v37  ;;  %v3161_v5 = vadd.f32 %v9556_v35, %v2993_v8 }
 0x45c   : > { %7452 = vmatmul.msk.bf16.gmra.mxu0 %vm606_vm2, %v11913_v1  ;;  %v3220_v36 = vpop.f32.mrf.mxu2 }
 0x45d   : > { %v9720_v46 = vadd.f32 %v3220_v36, %v3161_v5 }
 0x45e   : > { %v2899_v23 = vpop.f32.mrf.mxu3 }
 0x45f   : > { %v2995_v24 = vadd.f32 %v9367_v60, %v2899_v23  ;;  %v9737_v60 = vpop.f32.mrf.mxu0  ;;  %v9740_v23 = vpop.f32.mrf.mxu1 }
 0x461   : > { %v3162_v19 = vadd.f32 %v9569_v13, %v2995_v24 }
 0x463   : > { %7347 = vmatmul.msk.bf16.gmra.mxu3 %vm606_vm2, %v11914_v2 }
 0x464   : > { %v3222_v35 = vpop.f32.mrf.mxu2 }
 0x465   : > { %7467 = vmatmul.msk.bf16.gmra.mxu1 %vm606_vm2, %v11777_v50  ;;  %v9732_v1 = vadd.f32 %v3222_v35, %v3162_v19  ;;  %v11916_v35 = vld [vmem:[#allocation87_spill] sm:$0xff] }
 0x466   : > { %v2902_v8 = vpop.f32.mrf.mxu3 }
 0x467   : > { %11915 = vst [vmem:[#allocation9_spill] sm:$0xff] %v9732_v1  ;;  %v2998_v5 = vadd.f32 %v9388_v48, %v2902_v8  ;;  %v9752_v8 = vpop.f32.mrf.mxu0 }
 0x469   : > { %7411 = vmatmul.msk.bf16.gmra.mxu2 %vm606_vm2, %v11830_v33  ;;  %v3163_v36 = vadd.f32 %v9582_v11, %v2998_v5 }
 0x46c   : > { %7453 = vmatmul.msk.bf16.gmra.mxu0 %vm606_vm2, %v9237_v44  ;;  %v3225_v13 = vpop.f32.mrf.mxu2  ;;  %v9756_v44 = vpop.f32.mrf.mxu1 }
 0x46d   : > { %v9744_v24 = vadd.f32 %v3225_v13, %v3163_v36 }
 0x46e   : > { %v2904_v50 = vpop.f32.mrf.mxu3 }
 0x46f   : > { %v3000_v19 = vadd.f32 %v9401_v31, %v2904_v50  ;;  %v9766_v50 = vpop.f32.mrf.mxu0 }
 0x471   : > { %v3164_v48 = vadd.f32 %v9595_v52, %v3000_v19 }
 0x473   : > { %7348 = vmatmul.msk.bf16.gmra.mxu3 %vm606_vm2, %v11916_v35 }
 0x474   : > { %v3227_v11 = vpop.f32.mrf.mxu2 }
 0x475   : > { %7468 = vmatmul.msk.bf16.gmra.mxu1 %vm606_vm2, %v11785_v3  ;;  %v9754_v1 = vadd.f32 %v3227_v11, %v3164_v48  ;;  %v9769_v48 = vpop.f32.mrf.mxu1  ;;  %v11919_v11 = vld [vmem:[#allocation88_spill] sm:$0xff] }
 0x476   : > { %v2907_v5 = vpop.f32.mrf.mxu3 }
 0x477   : > { %11917 = vst [vmem:[#allocation67_spill] sm:$0xff] %v9754_v1  ;;  %v3003_v36 = vadd.f32 %v9416_v51, %v2907_v5  ;;  %v7907_v51 = vld [vmem:[%s11501_s5 + $0x38] sm:$0xff] }
 0x478   : > { %3723 = vmatpush.bf16.msrb.mxu2 %v7907_v51 }
 0x479   : > { %7412 = vmatmul.msk.bf16.gmra.mxu2 %vm606_vm2, %v11837_v55  ;;  %v3165_v31 = vadd.f32 %v9608_v27, %v3003_v36 }
 0x47c   : > { %7454 = vmatmul.msk.bf16.gmra.mxu0 %vm606_vm2, %v9265_v49  ;;  %v3230_v52 = vpop.f32.mrf.mxu2  ;;  %v11921_v49 = vld [vmem:[#allocation33_spill] sm:$0xff] }
 0x47d   : > { %v9764_v13 = vadd.f32 %v3230_v52, %v3165_v31 }
 0x47e   : > { %v2909_v3 = vpop.f32.mrf.mxu3 }
 0x47f   : > { %11918 = vst [vmem:[#allocation28_spill] sm:$0xff] %v9764_v13  ;;  %v3005_v19 = vadd.f32 %v9431_v21, %v2909_v3  ;;  %v7908_v21 = vld [vmem:[%s11501_s5 + $0x40] sm:$0xff]  ;;  %v9785_v3 = vpop.f32.mrf.mxu0 }
 0x480   : > { %3853 = vmatpush.bf16.msrb.mxu3 %v7908_v21  ;;  %v11925_v21 = vld [vmem:[#allocation90_spill] sm:$0xff] }
 0x481   : > { %v3166_v27 = vadd.f32 %v9624_v34, %v3005_v19  ;;  %v9789_v34 = vpop.f32.mrf.mxu1  ;;  %v11922_v19 = vld [vmem:[#allocation94_spill] sm:$0xff] }
 0x483   : > { %7349 = vmatmul.msk.bf16.gmra.mxu3 %vm606_vm2, %v11919_v11 }
 0x484   : > { %v3232_v5 = vpop.f32.mrf.mxu2 }
 0x485   : > { %7469 = vmatmul.msk.bf16.gmra.mxu1 %vm606_vm2, %v11791_v57  ;;  %v9782_v31 = vadd.f32 %v3232_v5, %v3166_v27  ;;  %v11924_v27 = vld [vmem:[#allocation29_spill] sm:$0xff] }
 0x486   : > { %v2912_v36 = vpop.f32.mrf.mxu3 }
 0x487   : > { %11920 = vst [vmem:[#allocation62_spill] sm:$0xff] %v9782_v31  ;;  %v3008_v52 = vadd.f32 %v9450_v17, %v2912_v36  ;;  %v9799_v17 = vpop.f32.mrf.mxu0 }
 0x489   : > { %7413 = vmatmul.msk.bf16.gmra.mxu2 %vm606_vm2, %v11921_v49  ;;  %v3167_v57 = vadd.f32 %v9644_v12, %v3008_v52  ;;  %v9802_v31 = vpop.f32.mrf.mxu1 }
 0x48c   : > { %7455 = vmatmul.msk.bf16.gmra.mxu0 %vm606_vm2, %v11922_v19  ;;  %v3235_v51 = vpop.f32.mrf.mxu2 }
 0x48d   : > { %v9794_v1 = vadd.f32 %v3235_v51, %v3167_v57  ;;  %v11927_v57 = vld [vmem:[#allocation35_spill] sm:$0xff] }
 0x48e   : > { %v2914_v13 = vpop.f32.mrf.mxu3 }
 0x48f   : > { %11923 = vst [vmem:[#allocation11_spill] sm:$0xff] %v9794_v1  ;;  %v3010_v5 = vadd.f32 %v11924_v27, %v2914_v13  ;;  %v11928_v1 = vld [vmem:[#allocation83_spill] sm:$0xff]  ;;  %v11929_v27 = vld [vmem:[#allocation96_spill] sm:$0xff] }
 0x491   : > { %v3168_v36 = vadd.f32 %v9657_v53, %v3010_v5  ;;  %v9814_v5 = vpop.f32.mrf.mxu0 }
 0x493   : > { %7350 = vmatmul.msk.bf16.gmra.mxu3 %vm606_vm2, %v11925_v21 }
 0x494   : > { %v3237_v12 = vpop.f32.mrf.mxu2 }
 0x495   : > { %7470 = vmatmul.msk.bf16.gmra.mxu1 %vm606_vm2, %v11796_v0  ;;  %v9806_v19 = vadd.f32 %v3237_v12, %v3168_v36  ;;  %v9818_v0 = vpop.f32.mrf.mxu1  ;;  %v11931_v36 = vld [vmem:[#allocation51_spill] sm:$0xff] }
 0x496   : > { %v2917_v52 = vpop.f32.mrf.mxu3 }
 0x497   : > { %11926 = vst [vmem:[#allocation78_spill] sm:$0xff] %v9806_v19  ;;  %v3013_v51 = vadd.f32 %v11927_v57, %v2917_v52  ;;  %v11932_v19 = vld [vmem:[#allocation36_spill] sm:$0xff] }
 0x499   : > { %7414 = vmatmul.msk.bf16.gmra.mxu2 %vm606_vm2, %v11928_v1  ;;  %v3169_v13 = vadd.f32 %v9671_v6, %v3013_v51 }
 0x49c   : > { %7456 = vmatmul.msk.bf16.gmra.mxu0 %vm606_vm2, %v11929_v27  ;;  %v3240_v53 = vpop.f32.mrf.mxu2  ;;  %v9828_v27 = vpop.f32.mrf.mxu0 }
 0x49d   : > { %v9816_v11 = vadd.f32 %v3240_v53, %v3169_v13  ;;  %v9831_v53 = vpop.f32.mrf.mxu1 }
 0x49e   : > { %v2919_v21 = vpop.f32.mrf.mxu3 }
 0x49f   : > { %11930 = vst [vmem:[#allocation30_spill] sm:$0xff] %v9816_v11  ;;  %v3015_v12 = vadd.f32 %v11931_v36, %v2919_v21  ;;  %v11934_v11 = vld [vmem:[#allocation43_spill] sm:$0xff]  ;;  %v11935_v21 = vld [vmem:[#allocation98_spill] sm:$0xff] }
 0x4a1   : > { %v3170_v52 = vadd.f32 %v9684_v7, %v3015_v12 }
 0x4a3   : > { %7421 = vmatmul.msk.bf16.vlgmr.msra.gmra.mxu3 %vm606_vm2, %v11932_v19 }
 0x4a4   : > { %v3242_v6 = vpop.f32.mrf.mxu2 }
 0x4a5   : > { %7471 = vmatmul.msk.bf16.gmra.mxu1 %vm606_vm2, %v11801_v14  ;;  %v9826_v51 = vadd.f32 %v3242_v6, %v3170_v52  ;;  %v9841_v52 = vpop.f32.mrf.mxu0  ;;  %v9843_v6 = vpop.f32.mrf.mxu1 }
 0x4a6   : > { %v2922_v57 = vpop.f32.mrf.mxu3 }
 0x4a7   : > { %11933 = vst [vmem:[#allocation73_spill] sm:$0xff] %v9826_v51  ;;  %v3018_v13 = vadd.f32 %v9513_v40, %v2922_v57  ;;  %v11942_v51 = vld [vmem:[#allocation55_spill] sm:$0xff] }
 0x4a9   : > { %7487 = vmatmul.msk.bf16.vlgmr.msrb.gmra.mxu2 %vm606_vm2, %v11934_v11  ;;  %v3171_v19 = vadd.f32 %v9700_v32, %v3018_v13 }
 0x4ac   : > { %7457 = vmatmul.msk.bf16.gmra.mxu0 %vm606_vm2, %v11935_v21  ;;  %v3245_v7 = vpop.f32.mrf.mxu2  ;;  %v11939_v21 = vld [vmem:[#allocation50_spill] sm:$0xff] }
 0x4ad   : > { %v9838_v36 = vadd.f32 %v3245_v7, %v3171_v19  ;;  %v11938_v19 = vld [vmem:[#allocation92_spill] sm:$0xff] }
 0x4ae   : > { %v2924_v14 = vpop.f32.mrf.mxu3 }
 0x4af   : > { %11936 = vst [vmem:[#allocation76_spill] sm:$0xff] %v9838_v36  ;;  %v3020_v12 = vadd.f32 %v9529_v16, %v2924_v14  ;;  %v9855_v16 = vpop.f32.mrf.mxu0  ;;  %v9858_v36 = vpop.f32.mrf.mxu1 }
 0x4b1   : > { %v3172_v40 = vadd.f32 %v9713_v30, %v3020_v12 }
 0x4b3   : > { %7422 = vmatmul.msk.bf16.gmra.mxu3 %vm606_vm2, %v11934_v11  ;;  %v11940_v11 = vld [vmem:[#allocation89_spill] sm:$0xff] }
 0x4b4   : > { %v3247_v32 = vpop.f32.mrf.mxu2 }
 0x4b5   : > { %7472 = vmatmul.msk.bf16.gmra.mxu1 %vm606_vm2, %v8404_v28  ;;  %v9850_v13 = vadd.f32 %v3247_v32, %v3172_v40 }
 0x4b6   : > { %v2927_v57 = vpop.f32.mrf.mxu3 }
 0x4b7   : > { %11937 = vst [vmem:[#allocation82_spill] sm:$0xff] %v9850_v13  ;;  %v3023_v7 = vadd.f32 %v11938_v19, %v2927_v57 }
 0x4b9   : > { %7488 = vmatmul.msk.bf16.gmra.mxu2 %vm606_vm2, %v11939_v21  ;;  %v3173_v14 = vadd.f32 %v9725_v25, %v3023_v7  ;;  %v3145_v7 = vpop.f32.mrf.mxu1 }
 0x4bc   : > { %7458 = vmatmul.msk.bf16.gmra.mxu0 %vm606_vm2, %v11940_v11  ;;  %v3250_v30 = vpop.f32.mrf.mxu2  ;;  %v11941_v11 = vld [vmem:[#allocation66_spill] sm:$0xff] }
 0x4bd   : > { %v9862_v12 = vadd.f32 %v3250_v30, %v3173_v14 }
 0x4be   : > { %v2929_v28 = vpop.f32.mrf.mxu3 }
 0x4bf   : > { %v3025_v40 = vadd.f32 %v9560_v59, %v2929_v28 }
 0x4c1   : > { %v3174_v32 = vadd.f32 %v9740_v23, %v3025_v40  ;;  %v3147_v28 = vpop.f32.mrf.mxu1 }
 0x4c3   : > { %7423 = vmatmul.msk.bf16.gmra.mxu3 %vm606_vm2, %v11939_v21 }
 0x4c4   : > { %v3252_v25 = vpop.f32.mrf.mxu2 }
 0x4c5   : > { %7473 = vmatmul.msk.bf16.gmra.mxu1 %vm606_vm2, %v8418_v41  ;;  %v9870_v19 = vadd.f32 %v3252_v25, %v3174_v32 }
 0x4c6   : > { %v2932_v57 = vpop.f32.mrf.mxu3 }
 0x4c7   : > { %v3028_v13 = vadd.f32 %v11941_v11, %v2932_v57 }
 0x4c9   : > { %7489 = vmatmul.msk.bf16.gmra.mxu2 %vm606_vm2, %v11942_v51  ;;  %v3175_v59 = vadd.f32 %v9756_v44, %v3028_v13  ;;  %v11943_v13 = vld [vmem:[#allocation60_spill] sm:$0xff]  ;;  %v3150_v25 = vpop.f32.mrf.mxu1 }
 0x4cc   : > { %v3255_v14 = vpop.f32.mrf.mxu2 }
 0x4cd   : > { %v9876_v21 = vadd.f32 %v3255_v14, %v3175_v59 }
 0x4ce   : > { %v2934_v30 = vpop.f32.mrf.mxu3 }
 0x4cf   : > { %v3030_v23 = vadd.f32 %v9592_v62, %v2934_v30 }
 0x4d1   : > { %v3176_v41 = vadd.f32 %v9769_v48, %v3030_v23  ;;  %v3152_v14 = vpop.f32.mrf.mxu1 }
 0x4d3   : > { %7424 = vmatmul.msk.bf16.gmra.mxu3 %vm606_vm2, %v11942_v51 }
 0x4d4   : > { %v3257_v11 = vpop.f32.mrf.mxu2 }
 0x4d5   : > { %7474 = vmatmul.msk.bf16.gmra.mxu1 %vm606_vm2, %v11815_v54  ;;  %v9884_v32 = vadd.f32 %v3257_v11, %v3176_v41 }
 0x4d6   : > { %v2937_v40 = vpop.f32.mrf.mxu3 }
 0x4d7   : > { %v3033_v44 = vadd.f32 %v9606_v47, %v2937_v40 }
 0x4d9   : > { %7490 = vmatmul.msk.bf16.gmra.mxu2 %vm606_vm2, %v11943_v13  ;;  %v3177_v62 = vadd.f32 %v9789_v34, %v3033_v44 }
 0x4dc   : > { %v3260_v57 = vpop.f32.mrf.mxu2 }
 0x4dd   : > { %v9890_v51 = vadd.f32 %v3260_v57, %v3177_v62 }
 0x4de   : > { %v2939_v59 = vpop.f32.mrf.mxu3 }
 0x4df   : > { %v3035_v48 = vadd.f32 %v9621_v10, %v2939_v59 }
 0x4e1   : > { %v3178_v54 = vadd.f32 %v9802_v31, %v3035_v48  ;;  %v3595_v31 = vpop.f32.mrf.mxu1 }
 0x4e3   : > { %7425 = vmatmul.msk.bf16.gmra.mxu3 %vm606_vm2, %v11943_v13 }
 0x4e4   : > { %v3262_v47 = vpop.f32.mrf.mxu2 }
 0x4e5   : > { %7475 = vmatmul.msk.bf16.gmra.mxu1 %vm606_vm2, %v11822_v37  ;;  %v9898_v23 = vadd.f32 %v3262_v47, %v3178_v54 }
 0x4e6   : > { %v2942_v30 = vpop.f32.mrf.mxu3 }
 0x4e7   : > { %v3038_v34 = vadd.f32 %v9640_v63, %v2942_v30 }
 0x4e9   : > { %7491 = vmatmul.msk.bf16.gmra.mxu2 %vm606_vm2, %v11888_v43  ;;  %v3179_v10 = vadd.f32 %v9818_v0, %v3038_v34  ;;  %v3597_v57 = vpop.f32.mrf.mxu1 }
 0x4ec   : > { %v3265_v41 = vpop.f32.mrf.mxu2 }
 0x4ed   : > { %v9904_v40 = vadd.f32 %v3265_v41, %v3179_v10 }
 0x4ee   : > { %v2944_v11 = vpop.f32.mrf.mxu3 }
 0x4ef   : > { %v3040_v44 = vadd.f32 %v9654_v39, %v2944_v11 }
 0x4f1   : > { %v3180_v37 = vadd.f32 %v9831_v53, %v3040_v44  ;;  %v9921_v54 = vpop.f32.mrf.mxu1 }
 0x4f3   : > { %7426 = vmatmul.msk.bf16.gmra.mxu3 %vm606_vm2, %v11888_v43 }
 0x4f4   : > { %v3267_v63 = vpop.f32.mrf.mxu2 }
 0x4f5   : > { %7476 = vmatmul.msk.bf16.gmra.mxu1 %vm606_vm2, %v11830_v33  ;;  %v9912_v62 = vadd.f32 %v3267_v63, %v3180_v37 }
 0x4f6   : > { %v2947_v13 = vpop.f32.mrf.mxu3 }
 0x4f7   : > { %v3043_v0 = vadd.f32 %v9667_v56, %v2947_v13 }
 0x4f9   : > { %7492 = vmatmul.msk.bf16.gmra.mxu2 %vm606_vm2, %v11895_v22  ;;  %v3181_v39 = vadd.f32 %v9843_v6, %v3043_v0  ;;  %v3602_v34 = vpop.f32.mrf.mxu1 }
 0x4fc   : > { %v3270_v59 = vpop.f32.mrf.mxu2 }
 0x4fd   : > { %v9918_v43 = vadd.f32 %v3270_v59, %v3181_v39 }
 0x4fe   : > { %v2949_v48 = vpop.f32.mrf.mxu3 }
 0x4ff   : > { %v3045_v53 = vadd.f32 %v9681_v38, %v2949_v48 }
 0x501   : > { %v3182_v33 = vadd.f32 %v9858_v36, %v3045_v53  ;;  %v3605_v37 = vpop.f32.mrf.mxu1 }
 0x503   : > { %7427 = vmatmul.msk.bf16.gmra.mxu3 %vm606_vm2, %v11895_v22 }
 0x504   : > { %v3272_v56 = vpop.f32.mrf.mxu2 }
 0x505   : > { %7477 = vmatmul.msk.bf16.gmra.mxu1 %vm606_vm2, %v11837_v55  ;;  %v9928_v30 = vadd.f32 %v3272_v56, %v3182_v33 }
 0x506   : > { %v2952_v47 = vpop.f32.mrf.mxu3 }
 0x507   : > { %v3048_v6 = vadd.f32 %v9696_v26, %v2952_v47  ;;  %v4195_v47 = vld [vmem:[%s11503_s7] sm:$0xf] }
 0x509   : > { %7493 = vmatmul.msk.bf16.gmra.mxu2 %vm606_vm2, %v11901_v58  ;;  %v3183_v38 = vadd.f32 %v3145_v7, %v3048_v6  ;;  %v11944_v6 = vld [vmem:[#allocation56_spill] sm:$0xff] }
 0x50c   : > { %v3275_v10 = vpop.f32.mrf.mxu2 }
 0x50d   : > { %v9933_v11 = vadd.f32 %v3275_v10, %v3183_v38 }
 0x50e   : > { %v2954_v41 = vpop.f32.mrf.mxu3 }
 0x50f   : > { %v3050_v22 = vadd.f32 %v9710_v61, %v2954_v41 }
 0x511   : > { %v3184_v55 = vadd.f32 %v3147_v28, %v3050_v22  ;;  %v3607_v28 = vpop.f32.mrf.mxu1  ;;  %v11945_v22 = vld [vmem:[#allocation26_spill] sm:$0xff] }
 0x513   : > { %7428 = vmatmul.msk.bf16.gmra.mxu3 %vm606_vm2, %v11901_v58 }
 0x514   : > { %v3277_v36 = vpop.f32.mrf.mxu2 }
 0x515   : > { %7478 = vmatmul.msk.bf16.gmra.mxu1 %vm606_vm2, %v11921_v49  ;;  %v9940_v44 = vadd.f32 %v3277_v36, %v3184_v55 }
 0x516   : > { %v2957_v26 = vpop.f32.mrf.mxu3 }
 0x517   : > { %v3053_v7 = vadd.f32 %v9723_v42, %v2957_v26 }
 0x519   : > { %7494 = vmatmul.msk.bf16.gmra.mxu2 %vm606_vm2, %v11905_v29  ;;  %v3185_v63 = vadd.f32 %v3150_v25, %v3053_v7 }
 0x51c   : > { %v3280_v13 = vpop.f32.mrf.mxu2 }
 0x51d   : > { %v9945_v0 = vadd.f32 %v3280_v13, %v3185_v63 }
 0x51e   : > { %v2959_v61 = vpop.f32.mrf.mxu3 }
 0x51f   : > { %v3055_v58 = vadd.f32 %v9737_v60, %v2959_v61  ;;  %v3610_v60 = vpop.f32.mrf.mxu1 }
 0x521   : > { %v3186_v49 = vadd.f32 %v3152_v14, %v3055_v58 }
 0x523   : > { %7429 = vmatmul.msk.bf16.gmra.mxu3 %vm606_vm2, %v11905_v29 }
 0x524   : > { %v3282_v39 = vpop.f32.mrf.mxu2 }
 0x525   : > { %7479 = vmatmul.msk.bf16.gmra.mxu1 %vm606_vm2, %v11928_v1  ;;  %v9952_v42 = vadd.f32 %v3282_v39, %v3186_v49 }
 0x526   : > { %v3335_v59 = vpop.f32.mrf.mxu3 }
 0x527   : > { %v3415_v25 = vadd.f32 %v3335_v59, %v9652_v9  ;;  %v4246_v9 = vsel %vm4244_vm4, %v4195_v47, 0 }
 0x528   : > { %4255 = vmatpush.bf16.msrb.mxu0 %v4246_v9 }
 0x529   : > { %v3545_v48 = vadd.f32 %v9752_v8, %v3415_v25  ;;  %7495 = vmatmul.msk.bf16.gmra.mxu2 %vm606_vm2, %v11909_v15  ;;  %v7541_v8 = vld [vmem:[%s11503_s7 + $0x4] sm:$0xf] }
 0x52b   : > { %v3675_v53 = vadd.f32 %v3595_v31, %v3545_v48  ;;  %v4468_v31 = vsel %vm4244_vm4, %v7541_v8, 0 }
 0x52c   : > { %v3725_v33 = vpop.f32.mrf.mxu2  ;;  %4477 = vmatpush.bf16.msrb.mxu1 %v4468_v31 }
 0x52d   : > { %v9958_v29 = vadd.f32 %v3725_v33, %v3675_v53 }
 0x52e   : > { %v3337_v56 = vpop.f32.mrf.mxu3 }
 0x52f   : > { %v3416_v14 = vadd.f32 %v3337_v56, %v9664_v45 }
 0x531   : > { %v3546_v1 = vadd.f32 %v9766_v50, %v3416_v14  ;;  %v3612_v50 = vpop.f32.mrf.mxu1 }
 0x533   : > { %7430 = vmatmul.msk.bf16.gmra.mxu3 %vm606_vm2, %v11909_v15  ;;  %v3676_v45 = vadd.f32 %v3597_v57, %v3546_v1 }
 0x534   : > { %v3727_v38 = vpop.f32.mrf.mxu2 }
 0x535   : > { %7480 = vmatmul.msk.bf16.gmra.mxu1 %vm606_vm2, %v11944_v6  ;;  %v9974_v41 = vadd.f32 %v3727_v38, %v3676_v45  ;;  %v11949_v38 = vld [vmem:[#allocation67_spill] sm:$0xff] }
 0x536   : > { %v3340_v10 = vpop.f32.mrf.mxu3 }
 0x537   : > { %v3417_v55 = vadd.f32 %v3340_v10, %v11945_v22  ;;  %v11951_v22 = vld [vmem:[#allocation90_spill] sm:$0xff] }
 0x539   : > { %v3547_v36 = vadd.f32 %v9785_v3, %v3417_v55  ;;  %7496 = vmatmul.msk.bf16.gmra.mxu2 %vm606_vm2, %v11911_v20 }
 0x53b   : > { %v3677_v15 = vadd.f32 %v9921_v54, %v3547_v36 }
 0x53c   : > { %v3730_v26 = vpop.f32.mrf.mxu2 }
 0x53d   : > { %v9981_v7 = vadd.f32 %v3730_v26, %v3677_v15  ;;  %v11953_v26 = vld [vmem:[#allocation11_spill] sm:$0xff] }
 0x53e   : > { %v3342_v57 = vpop.f32.mrf.mxu3 }
 0x53f   : > { %v3418_v63 = vadd.f32 %v3342_v57, %v9688_v4 }
 0x541   : > { %v3548_v13 = vadd.f32 %v9799_v17, %v3418_v63  ;;  %v11946_v17 = vld [vmem:[#allocation57_spill] sm:$0xff]  ;;  %v11954_v63 = vld [vmem:[#allocation40_spill] sm:$0xff] }
 0x543   : > { %7431 = vmatmul.msk.bf16.gmra.mxu3 %vm606_vm2, %v11911_v20  ;;  %v3678_v61 = vadd.f32 %v3602_v34, %v3548_v13 }
 0x544   : > { %v3732_v58 = vpop.f32.mrf.mxu2 }
 0x545   : > { %v9987_v3 = vadd.f32 %v3732_v58, %v3678_v61  ;;  %v11955_v61 = vld [vmem:[#allocation78_spill] sm:$0xff] }
 0x546   : > { %v3345_v49 = vpop.f32.mrf.mxu3 }
 0x547   : > { %v3419_v39 = vadd.f32 %v3345_v49, %v9698_v18 }
 0x549   : > { %v3549_v54 = vadd.f32 %v9814_v5, %v3419_v39  ;;  %7497 = vmatmul.msk.bf16.gmra.mxu2 %vm606_vm2, %v11914_v2  ;;  %v11956_v39 = vld [vmem:[#allocation30_spill] sm:$0xff] }
 0x54b   : > { %v3679_v59 = vadd.f32 %v3605_v37, %v3549_v54 }
 0x54c   : > { %v3735_v25 = vpop.f32.mrf.mxu2 }
 0x54d   : > { %v9993_v48 = vadd.f32 %v3735_v25, %v3679_v59  ;;  %v11957_v59 = vld [vmem:[#allocation79_spill] sm:$0xff] }
 0x54e   : > { %v3347_v4 = vpop.f32.mrf.mxu3 }
 0x54f   : > { %v3420_v53 = vadd.f32 %v3347_v4, %v11946_v17  ;;  %v11958_v4 = vld [vmem:[#allocation73_spill] sm:$0xff] }
 0x551   : > { %v3550_v20 = vadd.f32 %v9828_v27, %v3420_v53  ;;  %v11947_v27 = vld [vmem:[#allocation9_spill] sm:$0xff]  ;;  %v11959_v53 = vld [vmem:[#allocation39_spill] sm:$0xff] }
 0x553   : > { %7432 = vmatmul.msk.bf16.gmra.mxu3 %vm606_vm2, %v11914_v2  ;;  %v3680_v34 = vadd.f32 %v3607_v28, %v3550_v20 }
 0x554   : > { %v3737_v33 = vpop.f32.mrf.mxu2 }
 0x555   : > { %v9999_v56 = vadd.f32 %v3737_v33, %v3680_v34  ;;  %v11960_v34 = vld [vmem:[#allocation76_spill] sm:$0xff] }
 0x556   : > { %v3350_v18 = vpop.f32.mrf.mxu3 }
 0x557   : > { %v3421_v5 = vadd.f32 %v3350_v18, %v9720_v46 }
 0x559   : > { %v3551_v37 = vadd.f32 %v9841_v52, %v3421_v5  ;;  %7498 = vmatmul.msk.bf16.gmra.mxu2 %vm606_vm2, %v11916_v35  ;;  %v11961_v5 = vld [vmem:[#allocation82_spill] sm:$0xff] }
 0x55b   : > { %v3681_v14 = vadd.f32 %v3610_v60, %v3551_v37  ;;  %v11948_v60 = vld [vmem:[#allocation88_spill] sm:$0xff] }
 0x55c   : > { %v3740_v1 = vpop.f32.mrf.mxu2 }
 0x55d   : > { %v10005_v9 = vadd.f32 %v3740_v1, %v3681_v14  ;;  %v11962_v14 = vld [vmem:[#allocation47_spill] sm:$0xff] }
 0x55e   : > { %v3352_v47 = vpop.f32.mrf.mxu3 }
 0x55f   : > { %v3422_v8 = vadd.f32 %v3352_v47, %v11947_v27 }
 0x561   : > { %v3552_v2 = vadd.f32 %v9855_v16, %v3422_v8 }
 0x563   : > { %7433 = vmatmul.msk.bf16.gmra.mxu3 %vm606_vm2, %v11916_v35  ;;  %v3682_v28 = vadd.f32 %v3612_v50, %v3552_v2  ;;  %v11950_v35 = vld [vmem:[#allocation28_spill] sm:$0xff]  ;;  %v11963_v2 = vld [vmem:[#allocation58_spill] sm:$0xff] }
 0x564   : > { %v3742_v31 = vpop.f32.mrf.mxu2 }
 0x565   : > { %v10011_v45 = vadd.f32 %v3742_v31, %v3682_v28 }
 0x566   : > { %v3355_v46 = vpop.f32.mrf.mxu3 }
 0x567   : > { %v10014_v52 = vadd.f32 %v3355_v46, %v9744_v24  ;;  %v11952_v24 = vld [vmem:[#allocation62_spill] sm:$0xff] }
 0x569   : > { %7499 = vmatmul.msk.bf16.gmra.mxu2 %vm606_vm2, %v11948_v60 }
 0x56e   : > { %v3357_v6 = vpop.f32.mrf.mxu3 }
 0x56f   : > { %v10019_v10 = vadd.f32 %v3357_v6, %v11949_v38  ;;  %v11966_v6 = vld [vmem:[#allocation54_spill] sm:$0xff] }
 0x573   : > { %7434 = vmatmul.msk.bf16.gmra.mxu3 %vm606_vm2, %v11948_v60 }
 0x576   : > { %v3360_v16 = vpop.f32.mrf.mxu3 }
 0x577   : > { %v10024_v50 = vadd.f32 %v3360_v16, %v11950_v35  ;;  %v10083_v35 = vpop.f32.mrf.mxu0 }
 0x579   : > { %7500 = vmatmul.msk.bf16.gmra.mxu2 %vm606_vm2, %v11951_v22 }
 0x57e   : > { %v3362_v55 = vpop.f32.mrf.mxu3 }
 0x57f   : > { %v10029_v36 = vadd.f32 %v3362_v55, %v11952_v24  ;;  %v10092_v24 = vpop.f32.mrf.mxu0 }
 0x583   : > { %7435 = vmatmul.msk.bf16.gmra.mxu3 %vm606_vm2, %v11951_v22  ;;  %v10085_v22 = vpop.f32.mrf.mxu1 }
 0x586   : > { %v3365_v15 = vpop.f32.mrf.mxu3 }
 0x587   : > { %v10034_v57 = vadd.f32 %v3365_v15, %v11953_v26  ;;  %v10096_v26 = vpop.f32.mrf.mxu2 }
 0x589   : > { %7501 = vmatmul.msk.bf16.gmra.mxu2 %vm606_vm2, %v11954_v63 }
 0x58b   : > { %v10094_v15 = vpop.f32.mrf.mxu1 }
 0x58e   : > { %v3367_v13 = vpop.f32.mrf.mxu3 }
 0x58f   : > { %v10039_v58 = vadd.f32 %v3367_v13, %v11955_v61  ;;  %v10103_v13 = vpop.f32.mrf.mxu0 }
 0x593   : > { %7436 = vmatmul.msk.bf16.gmra.mxu3 %vm606_vm2, %v11954_v63  ;;  %v11972_v63 = vld [vmem:[#allocation64_spill] sm:$0xff]  ;;  %v10105_v61 = vpop.f32.mrf.mxu1 }
 0x596   : > { %v3370_v49 = vpop.f32.mrf.mxu3 }
 0x597   : > { %v10044_v54 = vadd.f32 %v3370_v49, %v11956_v39  ;;  %v10110_v39 = vpop.f32.mrf.mxu2 }
 0x599   : > { %7502 = vmatmul.msk.bf16.gmra.mxu2 %vm606_vm2, %v11957_v59 }
 0x59e   : > { %v3372_v25 = vpop.f32.mrf.mxu3 }
 0x59f   : > { %v10049_v17 = vadd.f32 %v3372_v25, %v11958_v4  ;;  %v10112_v25 = vpop.f32.mrf.mxu0  ;;  %v10114_v4 = vpop.f32.mrf.mxu1 }
 0x5a3   : > { %7509 = vmatmul.msk.bf16.vlgmr.msrb.gmra.mxu3 %vm606_vm2, %v11959_v53  ;;  %v10119_v53 = vpop.f32.mrf.mxu2 }
 0x5a6   : > { %v3375_v20 = vpop.f32.mrf.mxu3 }
 0x5a7   : > { %v10054_v33 = vadd.f32 %v3375_v20, %v11960_v34  ;;  %v11975_v20 = vld [vmem:[#allocation13_spill] sm:$0xff] }
 0x5ae   : > { %v3377_v18 = vpop.f32.mrf.mxu3 }
 0x5af   : > { %v10057_v37 = vadd.f32 %v3377_v18, %v11961_v5  ;;  %v10128_v5 = vpop.f32.mrf.mxu1 }
 0x5b3   : > { %7510 = vmatmul.msk.bf16.gmra.mxu3 %vm606_vm2, %v11962_v14  ;;  %v10130_v14 = vpop.f32.mrf.mxu2 }
 0x5b6   : > { %v3380_v1 = vpop.f32.mrf.mxu3 }
 0x5b7   : > { %v10062_v47 = vadd.f32 %v3380_v1, %v9862_v12 }
 0x5be   : > { %v3382_v27 = vpop.f32.mrf.mxu3 }
 0x5bf   : > { %v10065_v8 = vadd.f32 %v3382_v27, %v9870_v19 }
 0x5c3   : > { %7511 = vmatmul.msk.bf16.gmra.mxu3 %vm606_vm2, %v11963_v2  ;;  %v10137_v2 = vpop.f32.mrf.mxu1 }
 0x5c6   : > { %v3385_v28 = vpop.f32.mrf.mxu3 }
 0x5c7   : > { %v10070_v31 = vadd.f32 %v3385_v28, %v9876_v21  ;;  %v11969_v21 = vld [vmem:[#allocation59_spill] sm:$0xff] }
 0x5c8   : > { %v11978_v28 = vld [vmem:[#allocation15_spill] sm:$0xff] }
 0x5c9   : > { %11964 = vst [vmem:[#allocation65_spill] sm:$0xff] %v10070_v31 }
 0x5ce   : > { %v3387_v46 = vpop.f32.mrf.mxu3 }
 0x5cf   : > { %v10073_v60 = vadd.f32 %v3387_v46, %v9884_v32 }
 0x5d1   : > { %11965 = vst [vmem:[#allocation32_spill] sm:$0xff] %v10073_v60 }
 0x5d3   : > { %7512 = vmatmul.msk.bf16.gmra.mxu3 %vm606_vm2, %v11966_v6 }
 0x5d6   : > { %v3390_v12 = vpop.f32.mrf.mxu3 }
 0x5d7   : > { %v10078_v38 = vadd.f32 %v3390_v12, %v9890_v51 }
 0x5d9   : > { %11967 = vst [vmem:[#allocation69_spill] sm:$0xff] %v10078_v38 }
 0x5de   : > { %v3392_v19 = vpop.f32.mrf.mxu3 }
 0x5df   : > { %v10081_v16 = vadd.f32 %v3392_v19, %v9898_v23  ;;  %v10148_v19 = vpop.f32.mrf.mxu1 }
 0x5e1   : > { %11968 = vst [vmem:[#allocation72_spill] sm:$0xff] %v10081_v16 }
 0x5e3   : > { %7513 = vmatmul.msk.bf16.gmra.mxu3 %vm606_vm2, %v11969_v21 }
 0x5e6   : > { %v3395_v32 = vpop.f32.mrf.mxu3 }
 0x5e7   : > { %v10090_v55 = vadd.f32 %v3395_v32, %v9904_v40 }
 0x5e9   : > { %11970 = vst [vmem:[#allocation70_spill] sm:$0xff] %v10090_v55 }
 0x5ee   : > { %v3397_v51 = vpop.f32.mrf.mxu3 }
 0x5ef   : > { %v10099_v23 = vadd.f32 %v3397_v51, %v9912_v62  ;;  %v11981_v51 = vld [vmem:[#allocation77_spill] sm:$0xff] }
 0x5f1   : > { %11971 = vst [vmem:[#allocation34_spill] sm:$0xff] %v10099_v23 }
 0x5f3   : > { %7514 = vmatmul.msk.bf16.gmra.mxu3 %vm606_vm2, %v11972_v63  ;;  %v10160_v63 = vld [vmem:[%s11502_s6] ss:$0 sm:$0xff] }
 0x5f6   : > { %v3400_v49 = vpop.f32.mrf.mxu3 }
 0x5f7   : > { %v10108_v40 = vadd.f32 %v3400_v49, %v9918_v43  ;;  %v10126_v43 = vpop.f32.mrf.mxu0 }
 0x5f9   : > { %11973 = vst [vmem:[#allocation74_spill] sm:$0xff] %v10108_v40 }
 0x5fe   : > { %v3402_v59 = vpop.f32.mrf.mxu3 }
 0x5ff   : > { %v10117_v62 = vadd.f32 %v3402_v59, %v9928_v30  ;;  %v10135_v30 = vpop.f32.mrf.mxu0  ;;  %v10164_v59 = vpop.f32.mrf.mxu1 }
 0x601   : > { %11974 = vst [vmem:[#allocation75_spill] sm:$0xff] %v10117_v62  ;;  %v11983_v62 = vld [vmem:[#allocation93_spill] sm:$0xff] }
 0x603   : > { %7515 = vmatmul.msk.bf16.gmra.mxu3 %vm606_vm2, %v11975_v20 }
 0x606   : > { %v3405_v34 = vpop.f32.mrf.mxu3 }
 0x607   : > { %v10124_v18 = vadd.f32 %v3405_v34, %v9933_v11  ;;  %v10141_v11 = vpop.f32.mrf.mxu2  ;;  %v10146_v12 = vpop.f32.mrf.mxu0 }
 0x609   : > { %11976 = vst [vmem:[#allocation38_spill] sm:$0xff] %v10124_v18 }
 0x60e   : > { %v3407_v1 = vpop.f32.mrf.mxu3 }
 0x60f   : > { %v10133_v27 = vadd.f32 %v3407_v1, %v9940_v44  ;;  %v10153_v32 = vpop.f32.mrf.mxu2  ;;  %v10162_v49 = vpop.f32.mrf.mxu0 }
 0x611   : > { %11977 = vst [vmem:[#allocation80_spill] sm:$0xff] %v10133_v27 }
 0x613   : > { %7516 = vmatmul.msk.bf16.gmra.mxu3 %vm606_vm2, %v11978_v28 }
 0x616   : > { %v3410_v46 = vpop.f32.mrf.mxu3 }
 0x617   : > { %v10144_v6 = vadd.f32 %v3410_v46, %v9945_v0  ;;  %v10168_v34 = vpop.f32.mrf.mxu2 }
 0x619   : > { %11979 = vst [vmem:[#allocation46_spill] sm:$0xff] %v10144_v6 }
 0x61e   : > { %v3412_v21 = vpop.f32.mrf.mxu3 }
 0x61f   : > { %v10151_v44 = vadd.f32 %v3412_v21, %v9952_v42  ;;  %v7558_v21 = vld [vmem:[%s11503_s7 + $0x8] sm:$0xf] }
 0x621   : > { %11980 = vst [vmem:[#allocation84_spill] sm:$0xff] %v10151_v44  ;;  %v10177_v44 = vpop.f32.mrf.mxu1 }
 0x623   : > { %7517 = vmatmul.msk.bf16.gmra.mxu3 %vm606_vm2, %v11981_v51  ;;  %v10175_v51 = vpop.f32.mrf.mxu0 }
 0x626   : > { %v3855_v0 = vpop.f32.mrf.mxu3 }
 0x627   : > { %v3935_v20 = vadd.f32 %v3855_v0, %v9958_v29  ;;  %v4690_v0 = vsel %vm4244_vm4, %v7558_v21, 0 }
 0x628   : > { %4699 = vmatpush.bf16.msra.mxu2 %v4690_v0 }
 0x629   : > { %v3971_v42 = vadd.f32 %v10160_v63, %v3935_v20  ;;  %v10195_v6 = vpop.f32.mrf.mxu1 }
 0x62b   : > { %v4003_v1 = vmax.f32 %v3971_v42, 0.0  ;;  %v11982_v42 = vld [vmem:[#allocation20_spill] sm:$0xff] }
 0x62d   : > { %4037 = vst.msk [vmem:[#allocation3 + $0x19] sm:$0xff] %vm4036_vm5, %v4003_v1 }
 0x62e   : > { %v3857_v28 = vpop.f32.mrf.mxu3 }
 0x62f   : > { %v3936_v46 = vadd.f32 %v3857_v28, %v9974_v41  ;;  %v10183_v41 = vpop.f32.mrf.mxu2  ;;  %v7575_v28 = vld [vmem:[%s11503_s7 + $0xc] sm:$0xf] }
 0x630   : > { %v4912_v21 = vsel %vm4244_vm4, %v7575_v28, 0 }
 0x631   : > { %v3972_v29 = vadd.f32 %v10160_v63, %v3936_v46  ;;  %4921 = vmatpush.bf16.msra.mxu3 %v4912_v21  ;;  %v10216_v55 = vpop.f32.mrf.mxu1 }
 0x633   : > { %v4004_v20 = vmax.f32 %v3972_v29, 0.0  ;;  %7518 = vmatmul.msk.bf16.gmra.mxu3 %vm606_vm2, %v11982_v42  ;;  %v10193_v42 = vpop.f32.mrf.mxu0 }
 0x634   : > { %v4075_v1 = vld [vmem:[#allocation3 + $0x1a] sm:$0x1] }
 0x635   : > { %4094 = vst.msk [vmem:[#allocation3 + $0x18] sm:$0x1] %vm4092_vm6, %v4075_v1 }
 0x636   : > { %4038 = vst.msk [vmem:[#allocation3 + $0x21] sm:$0xff] %vm4036_vm5, %v4004_v20  ;;  %v3860_v46 = vpop.f32.mrf.mxu3  ;;  %v7592_v20 = vld [vmem:[%s11503_s7 + $0x10] sm:$0xf] }
 0x637   : > { %v3937_v0 = vadd.f32 %v3860_v46, %v9981_v7  ;;  %v7609_v7 = vld [vmem:[%s11503_s7 + $0x14] sm:$0xf]  ;;  %v10205_v28 = vpop.f32.mrf.mxu2  ;;  %v5134_v21 = vsel %vm4244_vm4, %v7592_v20, 0 }
 0x638   : > { %5143 = vmatpush.bf16.msra.mxu0 %v5134_v21 }
 0x639   : > { %v3973_v29 = vadd.f32 %v10160_v63, %v3937_v0  ;;  %v5356_v0 = vsel %vm4244_vm4, %v7609_v7, 0 }
 0x63a   : > { %5365 = vmatpush.bf16.msra.mxu1 %v5356_v0 }
 0x63b   : > { %v4005_v27 = vmax.f32 %v3973_v29, 0.0  ;;  %v10214_v23 = vpop.f32.mrf.mxu0 }
 0x63d   : > { %v4112_v1 = vld [vmem:[#allocation3 + $0x27] sm:$0x1]  ;;  %4039 = vst.msk [vmem:[#allocation3 + $0x31] sm:$0xff] %vm4036_vm5, %v4005_v27 }
 0x63e   : > { %4130 = vst.msk [vmem:[#allocation3 + $0x29] sm:$0x1] %vm4092_vm6, %v4112_v1  ;;  %v3862_v18 = vpop.f32.mrf.mxu3 }
 0x63f   : > { %4069 = vst.msk [vmem:[#allocation3 + $0x1] sm:$0xff] %vm4036_vm5, %v4005_v27  ;;  %v3938_v46 = vadd.f32 %v3862_v18, %v9987_v3  ;;  %v10223_v20 = vpop.f32.mrf.mxu2 }
 0x641   : > { %v3974_v29 = vadd.f32 %v10160_v63, %v3938_v46  ;;  %v6707_v46 = vld [vmem:[%s11504_s8] sm:$0x3] }
 0x642   : > { %v6757_v16 = vsel %vm462_vm0, %v6707_v46, 0 }
 0x643   : > { %v4006_v1 = vmax.f32 %v3974_v29, 0.0  ;;  %7519 = vmatmul.msk.bf16.gmra.mxu3 %vm606_vm2, %v11983_v62 }
 0x644   : > { %v4076_v40 = vld [vmem:[#allocation3 + $0x32] sm:$0x1] }
 0x645   : > { %4095 = vst.msk [vmem:[#allocation3 + $0x30] sm:$0x1] %vm4092_vm6, %v4076_v40 }
 0x646   : > { %v4074_v3 = vld [vmem:[#allocation3 + $0x2] sm:$0x1]  ;;  %4040 = vst.msk [vmem:[#allocation3 + $0x39] sm:$0xff] %vm4036_vm5, %v4006_v1  ;;  %v3865_v18 = vpop.f32.mrf.mxu3 }
 0x647   : > { %4093 = vst.msk [vmem:[#allocation3] sm:$0x1] %vm4092_vm6, %v4074_v3  ;;  %v3939_v27 = vadd.f32 %v3865_v18, %v9993_v48  ;;  %v4369_v29 = vld [vmem:[#allocation3 + $0x1] sm:$0xff]  ;;  %v10231_v48 = vpop.f32.mrf.mxu0  ;;  %v10241_v60 = vpop.f32.mrf.mxu2 }
 0x648   : > { %4070 = vst.msk [vmem:[#allocation3 + $0x9] sm:$0xff] %vm4036_vm5, %v4006_v1  ;;  %v10233_v1 = vpop.f32.mrf.mxu1 }
 0x649   : > { %v3975_v62 = vadd.f32 %v10160_v63, %v3939_v27  ;;  %11984 = vst [vmem:[#allocation85_spill] sm:$0xff] %v10233_v1  ;;  %v11985_v1 = vld [vmem:[#allocation94_spill] sm:$0xff] }
 0x64b   : > { %v4007_v7 = vmax.f32 %v3975_v62, 0.0 }
 0x64d   : > { %v4113_v40 = vld [vmem:[#allocation3 + $0x3f] sm:$0x1]  ;;  %4041 = vst.msk [vmem:[#allocation3 + $0x49] sm:$0xff] %vm4036_vm5, %v4007_v7 }
 0x64e   : > { %4131 = vst.msk [vmem:[#allocation3 + $0x41] sm:$0x1] %vm4092_vm6, %v4113_v40  ;;  %v3867_v21 = vpop.f32.mrf.mxu3  ;;  %v4147_v0 = vld [vmem:[#allocation3] sm:$0xff] }
 0x64f   : > { %v4111_v3 = vld [vmem:[#allocation3 + $0xf] sm:$0x1]  ;;  %v3940_v18 = vadd.f32 %v3867_v21, %v9999_v56 }
 0x650   : > { %v4148_v27 = vld [vmem:[#allocation3 + $0x8] sm:$0xff]  ;;  %4129 = vst.msk [vmem:[#allocation3 + $0x11] sm:$0x1] %vm4092_vm6, %v4111_v3  ;;  %v10248_v3 = vpop.f32.mrf.mxu0 }
 0x651   : > { %v4370_v62 = vld [vmem:[#allocation3 + $0x9] sm:$0xff]  ;;  %v4179_v38 = vpack.c.bf16 %v4148_v27, %v4147_v0  ;;  %v3976_v40 = vadd.f32 %v10160_v63, %v3940_v18  ;;  %v10250_v18 = vpop.f32.mrf.mxu1 }
 0x652   : > { %v4401_v7 = vpack.c.bf16 %v4370_v62, %v4369_v29  ;;  %v4591_v0 = vld [vmem:[#allocation3 + $0x2] sm:$0xff]  ;;  %v10254_v62 = vpop.f32.mrf.mxu2 }
 0x653   : > { %7525 = vmatmul.msk.bf16.vlgmr.msrb.gmra.mxu0 %vm4036_vm5, %v4179_v38  ;;  %v4008_v31 = vmax.f32 %v3976_v40, 0.0  ;;  %7520 = vmatmul.msk.bf16.gmra.mxu3 %vm606_vm2, %v11985_v1  ;;  %v4149_v1 = vld [vmem:[#allocation3 + $0x18] sm:$0xff] }
 0x654   : > { %7542 = vmatmul.msk.bf16.vlgmr.msrb.gmra.mxu1 %vm4036_vm5, %v4401_v7  ;;  %v4077_v56 = vld [vmem:[#allocation3 + $0x4a] sm:$0x1] }
 0x655   : > { %6766 = vmatpush.bf16.msrb.mxu1 %v6757_v16  ;;  %4096 = vst.msk [vmem:[#allocation3 + $0x48] sm:$0x1] %vm4092_vm6, %v4077_v56  ;;  %v3553_v56 = vadd.f32 %v10083_v35, %v10014_v52  ;;  %v11986_v35 = vld [vmem:[#allocation96_spill] sm:$0xff] }
 0x656   : > { %4042 = vst.msk [vmem:[#allocation3 + $0x51] sm:$0xff] %vm4036_vm5, %v4008_v31  ;;  %v3870_v46 = vpop.f32.mrf.mxu3  ;;  %v4150_v31 = vld [vmem:[#allocation3 + $0x20] sm:$0xff] }
 0x657   : > { %v3941_v21 = vadd.f32 %v3870_v46, %v10005_v9  ;;  %v4592_v29 = vld [vmem:[#allocation3 + $0xa] sm:$0xff]  ;;  %v4372_v9 = vld [vmem:[#allocation3 + $0x21] sm:$0xff] }
 0x658   : > { %v4623_v38 = vpack.c.bf16 %v4592_v29, %v4591_v0  ;;  %v10261_v0 = vpack.c.bf16 %v4150_v31, %v4149_v1  ;;  %v4594_v31 = vld [vmem:[#allocation3 + $0x22] sm:$0xff] }
 0x659   : > { %v3977_v27 = vadd.f32 %v10160_v63, %v3941_v21  ;;  %v4371_v21 = vld [vmem:[#allocation3 + $0x19] sm:$0xff] }
 0x65a   : > { %7559 = vmatmul.msk.bf16.vlgmr.msra.gmra.mxu2 %vm4036_vm5, %v4623_v38  ;;  %v4402_v29 = vpack.c.bf16 %v4372_v9, %v4371_v21 }
 0x65b   : > { %v4009_v16 = vmax.f32 %v3977_v27, 0.0  ;;  %v10267_v27 = vpop.f32.mrf.mxu0 }
 0x65d   : > { %v4114_v7 = vld [vmem:[#allocation3 + $0x57] sm:$0x1]  ;;  %4043 = vst.msk [vmem:[#allocation3 + $0x61] sm:$0xff] %vm4036_vm5, %v4009_v16  ;;  %v10269_v16 = vpop.f32.mrf.mxu1 }
 0x65e   : > { %4132 = vst.msk [vmem:[#allocation3 + $0x59] sm:$0x1] %vm4092_vm6, %v4114_v7  ;;  %v3872_v40 = vpop.f32.mrf.mxu3  ;;  %v3683_v7 = vadd.f32 %v10085_v22, %v3553_v56  ;;  %v4593_v22 = vld [vmem:[#allocation3 + $0x1a] sm:$0xff] }
 0x65f   : > { %v3942_v46 = vadd.f32 %v3872_v40, %v10011_v45  ;;  %v3554_v40 = vadd.f32 %v10092_v24, %v10019_v10  ;;  %v10281_v56 = vpack.c.bf16 %v4594_v31, %v4593_v22 }
 0x660   : > { %v3813_v1 = vadd.f32 %v10096_v26, %v3683_v7  ;;  %v4151_v7 = vld [vmem:[#allocation3 + $0x30] sm:$0xff] }
 0x661   : > { %v3978_v38 = vadd.f32 %v10160_v63, %v3942_v46  ;;  %v10279_v46 = vpop.f32.mrf.mxu2  ;;  %v3684_v26 = vadd.f32 %v10094_v15, %v3554_v40  ;;  %v4373_v40 = vld [vmem:[#allocation3 + $0x31] sm:$0xff] }
 0x663   : > { %7526 = vmatmul.msk.bf16.gmra.mxu0 %vm4036_vm5, %v10261_v0  ;;  %v4010_v52 = vmax.f32 %v3978_v38, 0.0  ;;  %7521 = vmatmul.msk.bf16.gmra.mxu3 %vm606_vm2, %v11986_v35  ;;  %v3814_v10 = vadd.f32 %v10110_v39, %v3684_v26 }
 0x664   : > { %7543 = vmatmul.msk.bf16.gmra.mxu1 %vm4036_vm5, %v4402_v29  ;;  %v4078_v45 = vld [vmem:[#allocation3 + $0x62] sm:$0x1] }
 0x665   : > { %4097 = vst.msk [vmem:[#allocation3 + $0x60] sm:$0x1] %vm4092_vm6, %v4078_v45  ;;  %v10289_v35 = vpop.f32.mrf.mxu1  ;;  %v4152_v45 = vld [vmem:[#allocation3 + $0x38] sm:$0xff] }
 0x666   : > { %4044 = vst.msk [vmem:[#allocation3 + $0x69] sm:$0xff] %vm4036_vm5, %v4010_v52  ;;  %v3875_v9 = vpop.f32.mrf.mxu3  ;;  %v10287_v52 = vpop.f32.mrf.mxu0 }
 0x667   : > { %v3943_v21 = vadd.f32 %v3875_v9, %v3813_v1  ;;  %v4374_v1 = vld [vmem:[#allocation3 + $0x39] sm:$0xff]  ;;  %v3555_v9 = vadd.f32 %v10103_v13, %v10024_v50 }
 0x668   : > { %v4403_v22 = vpack.c.bf16 %v4374_v1, %v4373_v40 }
 0x669   : > { %v3979_v29 = vadd.f32 %v10160_v63, %v3943_v21  ;;  %v10296_v21 = vpack.c.bf16 %v4152_v45, %v4151_v7  ;;  %v3685_v26 = vadd.f32 %v10105_v61, %v3555_v9  ;;  %v4596_v7 = vld [vmem:[#allocation3 + $0x3a] sm:$0xff]  ;;  %v3556_v61 = vadd.f32 %v10112_v25, %v10029_v36  ;;  %v4595_v9 = vld [vmem:[#allocation3 + $0x32] sm:$0xff] }
 0x66a   : > { %7560 = vmatmul.msk.bf16.gmra.mxu2 %vm4036_vm5, %v10281_v56  ;;  %v4376_v36 = vld [vmem:[#allocation3 + $0x51] sm:$0xff] }
 0x66b   : > { %v4011_v38 = vmax.f32 %v3979_v29, 0.0  ;;  %v10298_v29 = vpop.f32.mrf.mxu2  ;;  %v3815_v13 = vadd.f32 %v10119_v53, %v3685_v26  ;;  %v3686_v53 = vadd.f32 %v10114_v4, %v3556_v61  ;;  %v4153_v26 = vld [vmem:[#allocation3 + $0x48] sm:$0xff] }
 0x66d   : > { %v4115_v24 = vld [vmem:[#allocation3 + $0x6f] sm:$0x1]  ;;  %4045 = vst.msk [vmem:[#allocation3 + $0x79] sm:$0xff] %vm4036_vm5, %v4011_v38  ;;  %v10312_v1 = vpop.f32.mrf.mxu1 }
 0x66e   : > { %4133 = vst.msk [vmem:[#allocation3 + $0x71] sm:$0x1] %vm4092_vm6, %v4115_v24  ;;  %v3877_v31 = vpop.f32.mrf.mxu3  ;;  %v11987_v24 = vld [vmem:[#allocation98_spill] sm:$0xff]  ;;  %v10310_v45 = vpop.f32.mrf.mxu0 }
 0x66f   : > { %v3944_v15 = vadd.f32 %v3877_v31, %v3814_v10 }
 0x671   : > { %v3980_v39 = vadd.f32 %v10160_v63, %v3944_v15  ;;  %v4625_v15 = vpack.c.bf16 %v4596_v7, %v4595_v9 }
 0x673   : > { %7527 = vmatmul.msk.bf16.gmra.mxu0 %vm4036_vm5, %v10296_v21  ;;  %v4012_v38 = vmax.f32 %v3980_v39, 0.0  ;;  %7522 = vmatmul.msk.bf16.gmra.mxu3 %vm606_vm2, %v11987_v24 }
 0x674   : > { %7544 = vmatmul.msk.bf16.gmra.mxu1 %vm4036_vm5, %v4403_v22  ;;  %v4079_v50 = vld [vmem:[#allocation3 + $0x7a] sm:$0x1]  ;;  %v10319_v22 = vpop.f32.mrf.mxu2 }
 0x675   : > { %4098 = vst.msk [vmem:[#allocation3 + $0x78] sm:$0x1] %vm4092_vm6, %v4079_v50  ;;  %v4154_v50 = vld [vmem:[#allocation3 + $0x50] sm:$0xff]  ;;  %v10330_v9 = vpop.f32.mrf.mxu1 }
 0x676   : > { %4046 = vst.msk [vmem:[#allocation3 + $0x81] sm:$0xff] %vm4036_vm5, %v4012_v38  ;;  %v3880_v10 = vpop.f32.mrf.mxu3  ;;  %v3816_v38 = vadd.f32 %v10130_v14, %v3686_v53  ;;  %v10326_v4 = vpack.c.bf16 %v4154_v50, %v4153_v26  ;;  %v4598_v26 = vld [vmem:[#allocation3 + $0x52] sm:$0xff] }
 0x677   : > { %v3945_v31 = vadd.f32 %v3880_v10, %v3815_v13  ;;  %v3557_v13 = vadd.f32 %v10126_v43, %v10034_v57  ;;  %v4375_v10 = vld [vmem:[#allocation3 + $0x49] sm:$0xff]  ;;  %v11988_v57 = vld [vmem:[#allocation89_spill] sm:$0xff] }
 0x678   : > { %v4404_v61 = vpack.c.bf16 %v4376_v36, %v4375_v10 }
 0x679   : > { %v3981_v40 = vadd.f32 %v10160_v63, %v3945_v31  ;;  %v10328_v31 = vpop.f32.mrf.mxu0 }
 0x67a   : > { %7561 = vmatmul.msk.bf16.gmra.mxu2 %vm4036_vm5, %v4625_v15  ;;  %v3687_v15 = vadd.f32 %v10128_v5, %v3557_v13  ;;  %v4597_v5 = vld [vmem:[#allocation3 + $0x4a] sm:$0xff] }
 0x67b   : > { %v4013_v39 = vmax.f32 %v3981_v40, 0.0  ;;  %v4626_v36 = vpack.c.bf16 %v4598_v26, %v4597_v5  ;;  %v4377_v26 = vld [vmem:[#allocation3 + $0x61] sm:$0xff]  ;;  %v11989_v5 = vld [vmem:[#allocation27_spill] sm:$0xff] }
 0x67c   : > { %v3817_v53 = vadd.f32 %v10141_v11, %v3687_v15 }
 0x67d   : > { %v4116_v24 = vld [vmem:[#allocation3 + $0x87] sm:$0x1]  ;;  %4047 = vst.msk [vmem:[#allocation3 + $0x91] sm:$0xff] %vm4036_vm5, %v4013_v39  ;;  %v10340_v39 = vpop.f32.mrf.mxu2  ;;  %v10350_v11 = vpop.f32.mrf.mxu1 }
 0x67e   : > { %4134 = vst.msk [vmem:[#allocation3 + $0x89] sm:$0x1] %vm4092_vm6, %v4116_v24  ;;  %v3882_v25 = vpop.f32.mrf.mxu3  ;;  %v3558_v24 = vadd.f32 %v10135_v30, %v10039_v58  ;;  %v4156_v58 = vld [vmem:[#allocation3 + $0x68] sm:$0xff] }
 0x67f   : > { %v3946_v7 = vadd.f32 %v3882_v25, %v3816_v38  ;;  %v4378_v30 = vld [vmem:[#allocation3 + $0x69] sm:$0xff] }
 0x681   : > { %v3982_v14 = vadd.f32 %v10160_v63, %v3946_v7  ;;  %v10348_v13 = vpop.f32.mrf.mxu0  ;;  %v3688_v7 = vadd.f32 %v10137_v2, %v3558_v24 }
 0x683   : > { %7528 = vmatmul.msk.bf16.gmra.mxu0 %vm4036_vm5, %v10326_v4  ;;  %v4014_v40 = vmax.f32 %v3982_v14, 0.0  ;;  %7523 = vmatmul.msk.bf16.gmra.mxu3 %vm606_vm2, %v11988_v57  ;;  %v3818_v14 = vadd.f32 %v10153_v32, %v3688_v7  ;;  %v3559_v57 = vadd.f32 %v10146_v12, %v10044_v54  ;;  %v4600_v7 = vld [vmem:[#allocation3 + $0x6a] sm:$0xff] }
 0x684   : > { %7545 = vmatmul.msk.bf16.gmra.mxu1 %vm4036_vm5, %v4404_v61  ;;  %v4080_v43 = vld [vmem:[#allocation3 + $0x92] sm:$0x1]  ;;  %v4155_v61 = vld [vmem:[#allocation3 + $0x60] sm:$0xff] }
 0x685   : > { %4099 = vst.msk [vmem:[#allocation3 + $0x90] sm:$0x1] %vm4092_vm6, %v4080_v43  ;;  %v10358_v43 = vpop.f32.mrf.mxu2  ;;  %v10360_v2 = vpack.c.bf16 %v4156_v58, %v4155_v61  ;;  %v3689_v24 = vadd.f32 %v10148_v19, %v3559_v57  ;;  %v3560_v19 = vadd.f32 %v10162_v49, %v10049_v17  ;;  %v4157_v57 = vld [vmem:[#allocation3 + $0x78] sm:$0xff]  ;;  %v4380_v17 = vld [vmem:[#allocation3 + $0x81] sm:$0xff] }
 0x686   : > { %4048 = vst.msk [vmem:[#allocation3 + $0x99] sm:$0xff] %vm4036_vm5, %v4014_v40  ;;  %v3885_v38 = vpop.f32.mrf.mxu3 }
 0x687   : > { %v3947_v50 = vadd.f32 %v3885_v38, %v3817_v53  ;;  %v4405_v38 = vpack.c.bf16 %v4378_v30, %v4377_v26 }
 0x689   : > { %v3983_v25 = vadd.f32 %v10160_v63, %v3947_v50  ;;  %v10369_v12 = vpop.f32.mrf.mxu0 }
 0x68a   : > { %7562 = vmatmul.msk.bf16.gmra.mxu2 %vm4036_vm5, %v4626_v36  ;;  %v10371_v36 = vpop.f32.mrf.mxu1 }
 0x68b   : > { %v4015_v10 = vmax.f32 %v3983_v25, 0.0  ;;  %v3819_v25 = vadd.f32 %v10168_v34, %v3689_v24  ;;  %v3690_v34 = vadd.f32 %v10164_v59, %v3560_v19 }
 0x68d   : > { %v4117_v15 = vld [vmem:[#allocation3 + $0x9f] sm:$0x1]  ;;  %4049 = vst.msk [vmem:[#allocation3 + $0xa9] sm:$0xff] %vm4036_vm5, %v4015_v10  ;;  %v10378_v58 = vpop.f32.mrf.mxu2 }
 0x68e   : > { %4135 = vst.msk [vmem:[#allocation3 + $0xa1] sm:$0x1] %vm4092_vm6, %v4117_v15  ;;  %v3887_v40 = vpop.f32.mrf.mxu3 }
 0x68f   : > { %v3948_v53 = vadd.f32 %v3887_v40, %v3818_v14  ;;  %v4599_v14 = vld [vmem:[#allocation3 + $0x62] sm:$0xff] }
 0x690   : > { %v4627_v15 = vpack.c.bf16 %v4600_v7, %v4599_v14 }
 0x691   : > { %v3984_v32 = vadd.f32 %v10160_v63, %v3948_v53  ;;  %v3820_v53 = vadd.f32 %v10183_v41, %v3690_v34 }
 0x692   : > { %v10388_v24 = vpop.f32.mrf.mxu1 }
 0x693   : > { %7529 = vmatmul.msk.bf16.gmra.mxu0 %vm4036_vm5, %v10360_v2  ;;  %v4016_v50 = vmax.f32 %v3984_v32, 0.0  ;;  %7524 = vmatmul.msk.bf16.gmra.mxu3 %vm606_vm2, %v11989_v5  ;;  %v10386_v32 = vpop.f32.mrf.mxu0  ;;  %v4379_v5 = vld [vmem:[#allocation3 + $0x79] sm:$0xff] }
 0x694   : > { %7546 = vmatmul.msk.bf16.gmra.mxu1 %vm4036_vm5, %v4405_v38  ;;  %v4081_v54 = vld [vmem:[#allocation3 + $0xaa] sm:$0x1]  ;;  %v4158_v38 = vld [vmem:[#allocation3 + $0x80] sm:$0xff]  ;;  %v4406_v41 = vpack.c.bf16 %v4380_v17, %v4379_v5 }
 0x695   : > { %4100 = vst.msk [vmem:[#allocation3 + $0xa8] sm:$0x1] %vm4092_vm6, %v4081_v54  ;;  %v10392_v54 = vpack.c.bf16 %v4158_v38, %v4157_v57 }
 0x696   : > { %4050 = vst.msk [vmem:[#allocation3 + $0xb1] sm:$0xff] %vm4036_vm5, %v4016_v50  ;;  %v3890_v10 = vpop.f32.mrf.mxu3  ;;  %v3561_v50 = vadd.f32 %v10175_v51, %v10054_v33 }
 0x697   : > { %v3949_v61 = vadd.f32 %v3890_v10, %v3819_v25  ;;  %v10399_v10 = vpop.f32.mrf.mxu2 }
 0x698   : > { %v3691_v7 = vadd.f32 %v10177_v44, %v3561_v50  ;;  %v4601_v44 = vld [vmem:[#allocation3 + $0x7a] sm:$0xff] }
 0x699   : > { %v3985_v30 = vadd.f32 %v10160_v63, %v3949_v61  ;;  %v4602_v61 = vld [vmem:[#allocation3 + $0x82] sm:$0xff] }
 0x69a   : > { %7563 = vmatmul.msk.bf16.gmra.mxu2 %vm4036_vm5, %v4627_v15  ;;  %v3821_v51 = vadd.f32 %v10205_v28, %v3691_v7  ;;  %v3562_v15 = vadd.f32 %v10193_v42, %v10057_v37  ;;  %v4628_v34 = vpack.c.bf16 %v4602_v61, %v4601_v44  ;;  %v10410_v57 = vpop.f32.mrf.mxu1  ;;  %v4160_v42 = vld [vmem:[#allocation3 + $0x98] sm:$0xff] }
 0x69b   : > { %v4017_v40 = vmax.f32 %v3985_v30, 0.0  ;;  %v4604_v61 = vld [vmem:[#allocation3 + $0x9a] sm:$0xff] }
 0x69c   : > { %v3692_v28 = vadd.f32 %v10195_v6, %v3562_v15  ;;  %v3564_v15 = vadd.f32 %v10231_v48, %v10065_v8 }
 0x69d   : > { %v4118_v26 = vld [vmem:[#allocation3 + $0xb7] sm:$0x1]  ;;  %4051 = vst.msk [vmem:[#allocation3 + $0xc1] sm:$0xff] %vm4036_vm5, %v4017_v40  ;;  %v10408_v40 = vpop.f32.mrf.mxu0 }
 0x69e   : > { %4136 = vst.msk [vmem:[#allocation3 + $0xb9] sm:$0x1] %vm4092_vm6, %v4118_v26  ;;  %v3892_v49 = vpop.f32.mrf.mxu3  ;;  %v4159_v26 = vld [vmem:[#allocation3 + $0x90] sm:$0xff]  ;;  %v3822_v38 = vadd.f32 %v10223_v20, %v3692_v28 }
 0x69f   : > { %v3950_v59 = vadd.f32 %v3892_v49, %v3820_v53  ;;  %v10416_v17 = vpop.f32.mrf.mxu2  ;;  %v4382_v49 = vld [vmem:[#allocation3 + $0x99] sm:$0xff]  ;;  %v10422_v6 = vpack.c.bf16 %v4160_v42, %v4159_v26  ;;  %v4162_v48 = vld [vmem:[#allocation3 + $0xb0] sm:$0xff] }
 0x6a0   : > { %v4384_v42 = vld [vmem:[#allocation3 + $0xb1] sm:$0xff] }
 0x6a1   : > { %v3986_v25 = vadd.f32 %v10160_v63, %v3950_v59  ;;  %v3563_v59 = vadd.f32 %v10214_v23, %v10062_v47 }
 0x6a3   : > { %7530 = vmatmul.msk.bf16.gmra.mxu0 %vm4036_vm5, %v10392_v54  ;;  %v4018_v19 = vmax.f32 %v3986_v25, 0.0  ;;  %7576 = vmatmul.msk.bf16.vlgmr.msra.gmra.mxu3 %vm4036_vm5, %v10261_v0 }
 0x6a4   : > { %7547 = vmatmul.msk.bf16.gmra.mxu1 %vm4036_vm5, %v4406_v41  ;;  %v4082_v33 = vld [vmem:[#allocation3 + $0xc2] sm:$0x1]  ;;  %v4381_v41 = vld [vmem:[#allocation3 + $0x91] sm:$0xff] }
 0x6a5   : > { %4101 = vst.msk [vmem:[#allocation3 + $0xc0] sm:$0x1] %vm4092_vm6, %v4082_v33  ;;  %v4407_v25 = vpack.c.bf16 %v4382_v49, %v4381_v41  ;;  %v10428_v7 = vpop.f32.mrf.mxu0  ;;  %v3693_v33 = vadd.f32 %v10216_v55, %v3563_v59  ;;  %v4603_v55 = vld [vmem:[#allocation3 + $0x92] sm:$0xff]  ;;  %v4383_v41 = vld [vmem:[#allocation3 + $0xa9] sm:$0xff] }
 0x6a6   : > { %4052 = vst.msk [vmem:[#allocation3 + $0xc9] sm:$0xff] %vm4036_vm5, %v4018_v19  ;;  %v3895_v14 = vpop.f32.mrf.mxu3  ;;  %v10430_v19 = vpop.f32.mrf.mxu1 }
 0x6a7   : > { %v3951_v30 = vadd.f32 %v3895_v14, %v3821_v51  ;;  %v3823_v23 = vadd.f32 %v10241_v60, %v3693_v33 }
 0x6a9   : > { %v3987_v0 = vadd.f32 %v10160_v63, %v3951_v30  ;;  %v10440_v30 = vpop.f32.mrf.mxu2 }
 0x6aa   : > { %7564 = vmatmul.msk.bf16.gmra.mxu2 %vm4036_vm5, %v4628_v34  ;;  %v4629_v34 = vpack.c.bf16 %v4604_v61, %v4603_v55  ;;  %v4606_v61 = vld [vmem:[#allocation3 + $0xb2] sm:$0xff] }
 0x6ab   : > { %v4019_v53 = vmax.f32 %v3987_v0, 0.0  ;;  %v11992_v55 = vld [vmem:[#allocation32_spill] sm:$0xff] }
 0x6ad   : > { %v4119_v37 = vld [vmem:[#allocation3 + $0xcf] sm:$0x1]  ;;  %4053 = vst.msk [vmem:[#allocation3 + $0xd9] sm:$0xff] %vm4036_vm5, %v4019_v53  ;;  %v10445_v26 = vpop.f32.mrf.mxu0 }
 0x6ae   : > { %4137 = vst.msk [vmem:[#allocation3 + $0xd1] sm:$0x1] %vm4092_vm6, %v4119_v37  ;;  %v3897_v50 = vpop.f32.mrf.mxu3  ;;  %v4161_v53 = vld [vmem:[#allocation3 + $0xa8] sm:$0xff] }
 0x6af   : > { %v3952_v5 = vadd.f32 %v3897_v50, %v3822_v38  ;;  %v10447_v38 = vpop.f32.mrf.mxu1  ;;  %v11991_v50 = vld [vmem:[#allocation65_spill] sm:$0xff] }
 0x6b0   : > { %v3565_v59 = vadd.f32 %v10248_v3, %v11991_v50 }
 0x6b1   : > { %v3988_v20 = vadd.f32 %v10160_v63, %v3952_v5  ;;  %v10456_v33 = vpop.f32.mrf.mxu2 }
 0x6b3   : > { %7531 = vmatmul.msk.bf16.gmra.mxu0 %vm4036_vm5, %v10422_v6  ;;  %v4020_v51 = vmax.f32 %v3988_v20, 0.0  ;;  %7577 = vmatmul.msk.bf16.gmra.mxu3 %vm4036_vm5, %v10296_v21  ;;  %v11990_v21 = vld [vmem:[#allocation85_spill] sm:$0xff]  ;;  %v4408_v20 = vpack.c.bf16 %v4384_v42, %v4383_v41 }
 0x6b4   : > { %7548 = vmatmul.msk.bf16.gmra.mxu1 %vm4036_vm5, %v4407_v25  ;;  %v4083_v47 = vld [vmem:[#allocation3 + $0xda] sm:$0x1]  ;;  %v3694_v60 = vadd.f32 %v11990_v21, %v3564_v15  ;;  %v10454_v25 = vpack.c.bf16 %v4162_v48, %v4161_v53  ;;  %v4163_v53 = vld [vmem:[#allocation3 + $0xc0] sm:$0xff]  ;;  %v4164_v48 = vld [vmem:[#allocation3 + $0xc8] sm:$0xff] }
 0x6b5   : > { %4102 = vst.msk [vmem:[#allocation3 + $0xd8] sm:$0x1] %vm4092_vm6, %v4083_v47  ;;  %v10468_v15 = vpop.f32.mrf.mxu0  ;;  %v4385_v41 = vld [vmem:[#allocation3 + $0xc1] sm:$0xff] }
 0x6b6   : > { %4054 = vst.msk [vmem:[#allocation3 + $0xe1] sm:$0xff] %vm4036_vm5, %v4020_v51  ;;  %v3900_v14 = vpop.f32.mrf.mxu3  ;;  %v3824_v37 = vadd.f32 %v10254_v62, %v3694_v60  ;;  %v3695_v51 = vadd.f32 %v10250_v18, %v3565_v59  ;;  %v3566_v18 = vadd.f32 %v10267_v27, %v11992_v55  ;;  %v4386_v27 = vld [vmem:[#allocation3 + $0xc9] sm:$0xff] }
 0x6b7   : > { %v3953_v44 = vadd.f32 %v3900_v14, %v3823_v23 }
 0x6b8   : > { %v3825_v23 = vadd.f32 %v10279_v46, %v3695_v51  ;;  %v3696_v46 = vadd.f32 %v10269_v16, %v3566_v18  ;;  %v10485_v51 = vpack.c.bf16 %v4164_v48, %v4163_v53  ;;  %v4608_v18 = vld [vmem:[#allocation3 + $0xca] sm:$0xff]  ;;  %v11996_v53 = vld [vmem:[#allocation81_spill] sm:$0xff] }
 0x6b9   : > { %v3989_v0 = vadd.f32 %v10160_v63, %v3953_v44  ;;  %v10470_v44 = vpop.f32.mrf.mxu1  ;;  %v10477_v60 = vpop.f32.mrf.mxu2 }
 0x6ba   : > { %7565 = vmatmul.msk.bf16.gmra.mxu2 %vm4036_vm5, %v4629_v34 }
 0x6bb   : > { %v4021_v28 = vmax.f32 %v3989_v0, 0.0  ;;  %v4605_v0 = vld [vmem:[#allocation3 + $0xaa] sm:$0xff] }
 0x6bc   : > { %v4630_v21 = vpack.c.bf16 %v4606_v61, %v4605_v0  ;;  %v11995_v0 = vld [vmem:[#allocation72_spill] sm:$0xff] }
 0x6bd   : > { %v4120_v8 = vld [vmem:[#allocation3 + $0xe7] sm:$0x1]  ;;  %4055 = vst.msk [vmem:[#allocation3 + $0xf1] sm:$0xff] %vm4036_vm5, %v4021_v28 }
 0x6be   : > { %4138 = vst.msk [vmem:[#allocation3 + $0xe9] sm:$0x1] %vm4092_vm6, %v4120_v8  ;;  %v3902_v49 = vpop.f32.mrf.mxu3 }
 0x6bf   : > { %v3954_v5 = vadd.f32 %v3902_v49, %v3824_v37  ;;  %v3826_v37 = vadd.f32 %v10298_v29, %v3696_v46  ;;  %v11993_v49 = vld [vmem:[#allocation69_spill] sm:$0xff]  ;;  %v4409_v29 = vpack.c.bf16 %v4386_v27, %v4385_v41 }
 0x6c0   : > { %v3567_v50 = vadd.f32 %v10287_v52, %v11993_v49 }
 0x6c1   : > { %v3990_v62 = vadd.f32 %v10160_v63, %v3954_v5  ;;  %v10495_v55 = vpop.f32.mrf.mxu2 }
 0x6c3   : > { %7532 = vmatmul.msk.bf16.gmra.mxu0 %vm4036_vm5, %v10454_v25  ;;  %v4022_v47 = vmax.f32 %v3990_v62, 0.0  ;;  %7578 = vmatmul.msk.bf16.gmra.mxu3 %vm4036_vm5, %v10326_v4 }
 0x6c4   : > { %7549 = vmatmul.msk.bf16.gmra.mxu1 %vm4036_vm5, %v4408_v20  ;;  %v4084_v3 = vld [vmem:[#allocation3 + $0xf2] sm:$0x1]  ;;  %v11994_v20 = vld [vmem:[#allocation17_spill] sm:$0xff] }
 0x6c5   : > { %4103 = vst.msk [vmem:[#allocation3 + $0xf0] sm:$0x1] %vm4092_vm6, %v4084_v3 }
 0x6c6   : > { %4056 = vst.msk [vmem:[#allocation3 + $0xf9] sm:$0xff] %vm4036_vm5, %v4022_v47  ;;  %v3905_v14 = vpop.f32.mrf.mxu3 }
 0x6c7   : > { %v3955_v34 = vadd.f32 %v3905_v14, %v3825_v23  ;;  %v3697_v23 = vadd.f32 %v10289_v35, %v3567_v50 }
 0x6c9   : > { %v3991_v4 = vadd.f32 %v10160_v63, %v3955_v34  ;;  %v3827_v14 = vadd.f32 %v10319_v22, %v3697_v23  ;;  %v4387_v23 = vld [vmem:[#allocation3 + $0xd9] sm:$0xff] }
 0x6ca   : > { %7566 = vmatmul.msk.bf16.gmra.mxu2 %vm4036_vm5, %v4630_v21  ;;  %v3568_v21 = vadd.f32 %v10310_v45, %v11995_v0 }
 0x6cb   : > { %v4023_v28 = vmax.f32 %v3991_v4, 0.0 }
 0x6cc   : > { %v3698_v48 = vadd.f32 %v10312_v1, %v3568_v21 }
 0x6cd   : > { %v4121_v8 = vld [vmem:[#allocation3 + $0xff] sm:$0x1]  ;;  %4057 = vst.msk [vmem:[#allocation3 + $0x109] sm:$0xff] %vm4036_vm5, %v4023_v28  ;;  %v4607_v28 = vld [vmem:[#allocation3 + $0xc2] sm:$0xff] }
 0x6ce   : > { %4139 = vst.msk [vmem:[#allocation3 + $0x101] sm:$0x1] %vm4092_vm6, %v4121_v8  ;;  %v3907_v42 = vpop.f32.mrf.mxu3  ;;  %v3828_v49 = vadd.f32 %v10340_v39, %v3698_v48  ;;  %v4609_v48 = vld [vmem:[#allocation3 + $0xda] sm:$0xff] }
 0x6cf   : > { %v3956_v16 = vadd.f32 %v3907_v42, %v3826_v37  ;;  %v4631_v37 = vpack.c.bf16 %v4608_v18, %v4607_v28  ;;  %v4165_v42 = vld [vmem:[#allocation3 + $0xd8] sm:$0xff] }
 0x6d0   : > { %v4257_v59 = vpop.f32.mrf.mxu0 }
 0x6d1   : > { %v4479_v5 = vpop.f32.mrf.mxu1  ;;  %v4337_v62 = vadd.f32 %v4257_v59, %v11994_v20  ;;  %v3992_v47 = vadd.f32 %v10160_v63, %v3956_v16  ;;  %v4166_v59 = vld [vmem:[#allocation3 + $0xe0] sm:$0xff]  ;;  %v11997_v20 = vld [vmem:[#allocation70_spill] sm:$0xff] }
 0x6d3   : > { %v4559_v3 = vadd.f32 %v4479_v5, %v4337_v62  ;;  %7533 = vmatmul.msk.bf16.gmra.mxu0 %vm4036_vm5, %v10485_v51  ;;  %v4024_v52 = vmax.f32 %v3992_v47, 0.0  ;;  %7579 = vmatmul.msk.bf16.gmra.mxu3 %vm4036_vm5, %v10360_v2  ;;  %v4388_v5 = vld [vmem:[#allocation3 + $0xe1] sm:$0xff]  ;;  %v3569_v62 = vadd.f32 %v10328_v31, %v11997_v20  ;;  %v4390_v20 = vld [vmem:[#allocation3 + $0xf9] sm:$0xff] }
 0x6d4   : > { %7550 = vmatmul.msk.bf16.gmra.mxu1 %vm4036_vm5, %v4409_v29  ;;  %v4085_v61 = vld [vmem:[#allocation3 + $0x10a] sm:$0x1] }
 0x6d5   : > { %4104 = vst.msk [vmem:[#allocation3 + $0x108] sm:$0x1] %vm4092_vm6, %v4085_v61  ;;  %v10513_v61 = vpack.c.bf16 %v4166_v59, %v4165_v42 }
 0x6d6   : > { %4058 = vst.msk [vmem:[#allocation3 + $0x111] sm:$0xff] %vm4036_vm5, %v4024_v52  ;;  %v3910_v34 = vpop.f32.mrf.mxu3  ;;  %v11998_v52 = vld [vmem:[#allocation22_spill] sm:$0xff] }
 0x6d7   : > { %v3957_v46 = vadd.f32 %v3910_v34, %v3827_v14  ;;  %v4410_v14 = vpack.c.bf16 %v4388_v5, %v4387_v23 }
 0x6d8   : > { %v4259_v4 = vpop.f32.mrf.mxu0 }
 0x6d9   : > { %v4481_v35 = vpop.f32.mrf.mxu1  ;;  %v4338_v2 = vadd.f32 %v4259_v4, %v11996_v53  ;;  %v3993_v22 = vadd.f32 %v10160_v63, %v3957_v46  ;;  %v11999_v53 = vld [vmem:[#allocation34_spill] sm:$0xff] }
 0x6da   : > { %7567 = vmatmul.msk.bf16.gmra.mxu2 %vm4036_vm5, %v4631_v37 }
 0x6db   : > { %v4560_v8 = vadd.f32 %v4481_v35, %v4338_v2  ;;  %v4025_v27 = vmax.f32 %v3993_v22, 0.0  ;;  %v4610_v35 = vld [vmem:[#allocation3 + $0xe2] sm:$0xff]  ;;  %v3570_v2 = vadd.f32 %v10348_v13, %v11999_v53 }
 0x6dc   : > { %v4632_v42 = vpack.c.bf16 %v4610_v35, %v4609_v48 }
 0x6dd   : > { %v4122_v50 = vld [vmem:[#allocation3 + $0x117] sm:$0x1]  ;;  %4059 = vst.msk [vmem:[#allocation3 + $0x121] sm:$0xff] %vm4036_vm5, %v4025_v27  ;;  %v4701_v45 = vpop.f32.mrf.mxu2 }
 0x6de   : > { %4140 = vst.msk [vmem:[#allocation3 + $0x119] sm:$0x1] %vm4092_vm6, %v4122_v50  ;;  %v10508_v16 = vadd.f32 %v4701_v45, %v4559_v3  ;;  %v3912_v41 = vpop.f32.mrf.mxu3  ;;  %v3699_v3 = vadd.f32 %v10330_v9, %v3569_v62  ;;  %v3700_v50 = vadd.f32 %v10350_v11, %v3570_v2  ;;  %v4167_v45 = vld [vmem:[#allocation3 + $0xf0] sm:$0xff] }
 0x6df   : > { %v3958_v47 = vadd.f32 %v3912_v41, %v3828_v49  ;;  %v4168_v41 = vld [vmem:[#allocation3 + $0xf8] sm:$0xff] }
 0x6e0   : > { %v4262_v29 = vpop.f32.mrf.mxu0  ;;  %v3829_v21 = vadd.f32 %v10358_v43, %v3699_v3  ;;  %v3830_v59 = vadd.f32 %v10378_v58, %v3700_v50 }
 0x6e1   : > { %v4484_v1 = vpop.f32.mrf.mxu1  ;;  %v4339_v39 = vadd.f32 %v4262_v29, %v11998_v52  ;;  %v3994_v18 = vadd.f32 %v10160_v63, %v3958_v47 }
 0x6e3   : > { %v4561_v34 = vadd.f32 %v4484_v1, %v4339_v39  ;;  %7534 = vmatmul.msk.bf16.gmra.mxu0 %vm4036_vm5, %v10513_v61  ;;  %v4026_v31 = vmax.f32 %v3994_v18, 0.0  ;;  %7580 = vmatmul.msk.bf16.gmra.mxu3 %vm4036_vm5, %v10392_v54  ;;  %v12000_v54 = vld [vmem:[#allocation8_spill] sm:$0xff]  ;;  %v12001_v1 = vld [vmem:[#allocation74_spill] sm:$0xff]  ;;  %v10541_v18 = vpack.c.bf16 %v4168_v41, %v4167_v45 }
 0x6e4   : > { %7551 = vmatmul.msk.bf16.gmra.mxu1 %vm4036_vm5, %v4410_v14  ;;  %v4086_v0 = vld [vmem:[#allocation3 + $0x122] sm:$0x1]  ;;  %v3571_v47 = vadd.f32 %v10369_v12, %v12001_v1  ;;  %v4389_v39 = vld [vmem:[#allocation3 + $0xf1] sm:$0xff] }
 0x6e5   : > { %4105 = vst.msk [vmem:[#allocation3 + $0x120] sm:$0x1] %vm4092_vm6, %v4086_v0  ;;  %v4703_v4 = vpop.f32.mrf.mxu2  ;;  %v12002_v14 = vld [vmem:[#allocation19_spill] sm:$0xff]  ;;  %v4411_v3 = vpack.c.bf16 %v4390_v20, %v4389_v39  ;;  %v12005_v20 = vld [vmem:[#allocation38_spill] sm:$0xff] }
 0x6e6   : > { %4060 = vst.msk [vmem:[#allocation3 + $0x129] sm:$0xff] %vm4036_vm5, %v4026_v31  ;;  %v10525_v46 = vadd.f32 %v4703_v4, %v4560_v8  ;;  %v3915_v28 = vpop.f32.mrf.mxu3 }
 0x6e7   : > { %v3959_v22 = vadd.f32 %v3915_v28, %v3829_v21  ;;  %v4612_v28 = vld [vmem:[#allocation3 + $0xfa] sm:$0xff] }
 0x6e8   : > { %v4264_v9 = vpop.f32.mrf.mxu0 }
 0x6e9   : > { %v4486_v37 = vpop.f32.mrf.mxu1  ;;  %v4340_v27 = vadd.f32 %v4264_v9, %v12000_v54  ;;  %v3995_v43 = vadd.f32 %v10160_v63, %v3959_v22  ;;  %v12003_v9 = vld [vmem:[#allocation75_spill] sm:$0xff] }
 0x6ea   : > { %7568 = vmatmul.msk.bf16.gmra.mxu2 %vm4036_vm5, %v4632_v42  ;;  %v4611_v54 = vld [vmem:[#allocation3 + $0xf2] sm:$0xff] }
 0x6eb   : > { %v4562_v49 = vadd.f32 %v4486_v37, %v4340_v27  ;;  %v4027_v8 = vmax.f32 %v3995_v43, 0.0  ;;  %v3572_v37 = vadd.f32 %v10386_v32, %v12003_v9  ;;  %v10558_v42 = vpack.c.bf16 %v4612_v28, %v4611_v54  ;;  %v12007_v28 = vld [vmem:[#allocation80_spill] sm:$0xff] }
 0x6ed   : > { %v4123_v5 = vld [vmem:[#allocation3 + $0x12f] sm:$0x1]  ;;  %4061 = vst.msk [vmem:[#allocation3 + $0x139] sm:$0xff] %vm4036_vm5, %v4027_v8  ;;  %v4706_v13 = vpop.f32.mrf.mxu2 }
 0x6ee   : > { %4141 = vst.msk [vmem:[#allocation3 + $0x131] sm:$0x1] %vm4092_vm6, %v4123_v5  ;;  %v10536_v62 = vadd.f32 %v4706_v13, %v4561_v34  ;;  %v3917_v29 = vpop.f32.mrf.mxu3  ;;  %v3701_v34 = vadd.f32 %v10371_v36, %v3571_v47  ;;  %v4169_v8 = vld [vmem:[#allocation3 + $0x108] sm:$0xff]  ;;  %v4170_v5 = vld [vmem:[#allocation3 + $0x110] sm:$0xff] }
 0x6ef   : > { %v3960_v52 = vadd.f32 %v3917_v29, %v3830_v59  ;;  %v4392_v13 = vld [vmem:[#allocation3 + $0x111] sm:$0xff]  ;;  %v3573_v29 = vadd.f32 %v10408_v40, %v12005_v20  ;;  %v12010_v20 = vld [vmem:[#allocation97_spill] sm:$0xff] }
 0x6f0   : > { %v4267_v23 = vpop.f32.mrf.mxu0  ;;  %v3831_v4 = vadd.f32 %v10399_v10, %v3701_v34 }
 0x6f1   : > { %v4489_v11 = vpop.f32.mrf.mxu1  ;;  %v4341_v58 = vadd.f32 %v4267_v23, %v12002_v14  ;;  %v3996_v31 = vadd.f32 %v10160_v63, %v3960_v52  ;;  %v4391_v23 = vld [vmem:[#allocation3 + $0x109] sm:$0xff]  ;;  %v10572_v52 = vpack.c.bf16 %v4170_v5, %v4169_v8  ;;  %v3703_v40 = vadd.f32 %v10410_v57, %v3573_v29 }
 0x6f2   : > { %v10574_v39 = vpack.c.bf16 %v4392_v13, %v4391_v23  ;;  %v10579_v14 = vld [vmem:[%s11502_s6] ss:$0 sm:$0xff] }
 0x6f3   : > { %v4563_v0 = vadd.f32 %v4489_v11, %v4341_v58  ;;  %7535 = vmatmul.msk.bf16.gmra.mxu0 %vm4036_vm5, %v10541_v18  ;;  %v4028_v12 = vmax.f32 %v3996_v31, 0.0  ;;  %7581 = vmatmul.msk.bf16.gmra.mxu3 %vm4036_vm5, %v10422_v6  ;;  %v12004_v6 = vld [vmem:[#allocation10_spill] sm:$0xff]  ;;  %v12006_v11 = vld [vmem:[#allocation95_spill] sm:$0xff]  ;;  %v3833_v34 = vadd.f32 %v10440_v30, %v3703_v40 }
 0x6f4   : > { %7552 = vmatmul.msk.bf16.gmra.mxu1 %vm4036_vm5, %v4411_v3  ;;  %v4087_v21 = vld [vmem:[#allocation3 + $0x13a] sm:$0x1]  ;;  %v4394_v8 = vld [vmem:[#allocation3 + $0x129] sm:$0xff] }
 0x6f5   : > { %4106 = vst.msk [vmem:[#allocation3 + $0x138] sm:$0x1] %vm4092_vm6, %v4087_v21  ;;  %v4708_v35 = vpop.f32.mrf.mxu2  ;;  %v4614_v21 = vld [vmem:[#allocation3 + $0x112] sm:$0xff]  ;;  %v4616_v40 = vld [vmem:[#allocation3 + $0x12a] sm:$0xff] }
 0x6f6   : > { %4062 = vst.msk [vmem:[#allocation3 + $0x141] sm:$0xff] %vm4036_vm5, %v4028_v12  ;;  %v10553_v53 = vadd.f32 %v4708_v35, %v4562_v49  ;;  %v3920_v2 = vpop.f32.mrf.mxu3  ;;  %v3702_v49 = vadd.f32 %v10388_v24, %v3572_v37 }
 0x6f7   : > { %v3961_v48 = vadd.f32 %v3920_v2, %v3831_v4  ;;  %v3574_v2 = vadd.f32 %v10428_v7, %v12007_v28  ;;  %v4615_v28 = vld [vmem:[#allocation3 + $0x122] sm:$0xff] }
 0x6f8   : > { %v4269_v36 = vpop.f32.mrf.mxu0  ;;  %v3832_v32 = vadd.f32 %v10416_v17, %v3702_v49 }
 0x6f9   : > { %v4491_v22 = vpop.f32.mrf.mxu1  ;;  %v4342_v27 = vadd.f32 %v4269_v36, %v12004_v6  ;;  %v3997_v10 = vadd.f32 %v10160_v63, %v3961_v48  ;;  %v4613_v36 = vld [vmem:[#allocation3 + $0x10a] sm:$0xff]  ;;  %v3704_v6 = vadd.f32 %v10430_v19, %v3574_v2 }
 0x6fa   : > { %7569 = vmatmul.msk.bf16.gmra.mxu2 %vm4036_vm5, %v10558_v42  ;;  %v10597_v48 = vpack.c.bf16 %v4614_v21, %v4613_v36 }
 0x6fb   : > { %v4564_v43 = vadd.f32 %v4491_v22, %v4342_v27  ;;  %v4029_v50 = vmax.f32 %v3997_v10, 0.0  ;;  %v4171_v10 = vld [vmem:[#allocation3 + $0x120] sm:$0xff]  ;;  %v3834_v7 = vadd.f32 %v10456_v33, %v3704_v6 }
 0x6fc   : > { %v4393_v33 = vld [vmem:[#allocation3 + $0x121] sm:$0xff] }
 0x6fd   : > { %v4124_v45 = vld [vmem:[#allocation3 + $0x147] sm:$0x1]  ;;  %4063 = vst.msk [vmem:[#allocation3 + $0x151] sm:$0xff] %vm4036_vm5, %v4029_v50  ;;  %v4711_v59 = vpop.f32.mrf.mxu2  ;;  %v4172_v50 = vld [vmem:[#allocation3 + $0x128] sm:$0xff] }
 0x6fe   : > { %4142 = vst.msk [vmem:[#allocation3 + $0x149] sm:$0x1] %vm4092_vm6, %v4124_v45  ;;  %v10567_v41 = vadd.f32 %v4711_v59, %v4563_v0  ;;  %v3922_v63 = vpop.f32.mrf.mxu3  ;;  %v12009_v59 = vld [vmem:[#allocation46_spill] sm:$0xff]  ;;  %v4174_v6 = vld [vmem:[#allocation3 + $0x140] sm:$0xff] }
 0x6ff   : > { %v3962_v47 = vadd.f32 %v3922_v63, %v3832_v32  ;;  %v3575_v5 = vadd.f32 %v10445_v26, %v12009_v59 }
 0x700   : > { %v4272_v1 = vpop.f32.mrf.mxu0 }
 0x701   : > { %v4494_v24 = vpop.f32.mrf.mxu1  ;;  %v4343_v17 = vadd.f32 %v4272_v1, %v12006_v11  ;;  %v3998_v58 = vadd.f32 %v10579_v14, %v3962_v47  ;;  %v10612_v1 = vpack.c.bf16 %v4172_v50, %v4171_v10  ;;  %v3705_v26 = vadd.f32 %v10447_v38, %v3575_v5 }
 0x703   : > { %v4565_v3 = vadd.f32 %v4494_v24, %v4343_v17  ;;  %7536 = vmatmul.msk.bf16.gmra.mxu0 %vm4036_vm5, %v10572_v52  ;;  %v4030_v31 = vmax.f32 %v3998_v58, 0.0  ;;  %7582 = vmatmul.msk.bf16.gmra.mxu3 %vm4036_vm5, %v10454_v25  ;;  %v12008_v25 = vld [vmem:[#allocation12_spill] sm:$0xff]  ;;  %v10614_v24 = vpack.c.bf16 %v4394_v8, %v4393_v33  ;;  %v3835_v58 = vadd.f32 %v10477_v60, %v3705_v26  ;;  %v12012_v60 = vld [vmem:[#allocation14_spill] sm:$0xff] }
 0x704   : > { %7553 = vmatmul.msk.bf16.gmra.mxu1 %vm4036_vm5, %v10574_v39  ;;  %v4088_v0 = vld [vmem:[#allocation3 + $0x152] sm:$0x1] }
 0x705   : > { %4107 = vst.msk [vmem:[#allocation3 + $0x150] sm:$0x1] %vm4092_vm6, %v4088_v0  ;;  %v4713_v12 = vpop.f32.mrf.mxu2 }
 0x706   : > { %4064 = vst.msk [vmem:[#allocation3 + $0x159] sm:$0xff] %vm4036_vm5, %v4030_v31  ;;  %v10592_v4 = vadd.f32 %v4713_v12, %v4564_v43  ;;  %v3925_v35 = vpop.f32.mrf.mxu3  ;;  %v12011_v12 = vld [vmem:[#allocation84_spill] sm:$0xff] }
 0x707   : > { %v3963_v37 = vadd.f32 %v3925_v35, %v3833_v34  ;;  %v3576_v38 = vadd.f32 %v10468_v15, %v12011_v12 }
 0x708   : > { %v4274_v57 = vpop.f32.mrf.mxu0 }
 0x709   : > { %v4496_v9 = vpop.f32.mrf.mxu1  ;;  %v4344_v22 = vadd.f32 %v4274_v57, %v12008_v25  ;;  %v3999_v30 = vadd.f32 %v10579_v14, %v3963_v37  ;;  %v10634_v57 = vpack.c.bf16 %v4616_v40, %v4615_v28  ;;  %v3706_v15 = vadd.f32 %v10470_v44, %v3576_v38  ;;  %v4173_v25 = vld [vmem:[#allocation3 + $0x138] sm:$0xff] }
 0x70a   : > { %7570 = vmatmul.msk.bf16.gmra.mxu2 %vm4036_vm5, %v10597_v48  ;;  %v4395_v44 = vld [vmem:[#allocation3 + $0x139] sm:$0xff]  ;;  %v10647_v59 = vpack.c.bf16 %v4174_v6, %v4173_v25 }
 0x70b   : > { %v4566_v54 = vadd.f32 %v4496_v9, %v4344_v22  ;;  %v4031_v27 = vmax.f32 %v3999_v30, 0.0  ;;  %v3836_v22 = vadd.f32 %v10495_v55, %v3706_v15  ;;  %v12015_v25 = vld [vmem:[#allocation16_spill] sm:$0xff] }
 0x70c   : > { %v4175_v38 = vld [vmem:[#allocation3 + $0x150] sm:$0xff] }
 0x70d   : > { %v4125_v43 = vld [vmem:[#allocation3 + $0x15f] sm:$0x1]  ;;  %4065 = vst.msk [vmem:[#allocation3 + $0x169] sm:$0xff] %vm4036_vm5, %v4031_v27  ;;  %v4716_v49 = vpop.f32.mrf.mxu2 }
 0x70e   : > { %4143 = vst.msk [vmem:[#allocation3 + $0x161] sm:$0x1] %vm4092_vm6, %v4125_v43  ;;  %v10606_v32 = vadd.f32 %v4716_v49, %v4565_v3  ;;  %v3927_v45 = vpop.f32.mrf.mxu3  ;;  %v4398_v28 = vld [vmem:[#allocation3 + $0x159] sm:$0xff] }
 0x70f   : > { %4072 = vst.msk [vmem:[#allocation3 + $0x199] sm:$0xff] %vm4036_vm5, %v4031_v27  ;;  %v3964_v63 = vadd.f32 %v3927_v45, %v3834_v7  ;;  %v4396_v27 = vld [vmem:[#allocation3 + $0x141] sm:$0xff] }
 0x710   : > { %v4277_v19 = vpop.f32.mrf.mxu0  ;;  %v12013_v45 = vld [vmem:[#allocation41_spill] sm:$0xff]  ;;  %v10649_v5 = vpack.c.bf16 %v4396_v27, %v4395_v44  ;;  %v7660_v27 = vld [vmem:[%s11503_s7 + $0x20] sm:$0xf] }
 0x711   : > { %v4499_v13 = vpop.f32.mrf.mxu1  ;;  %v4345_v29 = vadd.f32 %v4277_v19, %v12010_v20  ;;  %v4000_v47 = vadd.f32 %v10579_v14, %v3964_v63 }
 0x713   : > { %v4567_v23 = vadd.f32 %v4499_v13, %v4345_v29  ;;  %7537 = vmatmul.msk.bf16.gmra.mxu0 %vm4036_vm5, %v10612_v1  ;;  %v4032_v11 = vmax.f32 %v4000_v47, 0.0  ;;  %7583 = vmatmul.msk.bf16.gmra.mxu3 %vm4036_vm5, %v10485_v51  ;;  %v4618_v29 = vld [vmem:[#allocation3 + $0x142] sm:$0xff] }
 0x714   : > { %7554 = vmatmul.msk.bf16.gmra.mxu1 %vm4036_vm5, %v10614_v24  ;;  %v4089_v17 = vld [vmem:[#allocation3 + $0x16a] sm:$0x1] }
 0x715   : > { %4108 = vst.msk [vmem:[#allocation3 + $0x168] sm:$0x1] %vm4092_vm6, %v4089_v17  ;;  %v4718_v3 = vpop.f32.mrf.mxu2  ;;  %v4617_v17 = vld [vmem:[#allocation3 + $0x13a] sm:$0xff] }
 0x716   : > { %v4091_v31 = vld [vmem:[#allocation3 + $0x19a] sm:$0x1]  ;;  %4066 = vst.msk [vmem:[#allocation3 + $0x171] sm:$0xff] %vm4036_vm5, %v4032_v11  ;;  %v10627_v0 = vadd.f32 %v4718_v3, %v4566_v54  ;;  %v3930_v34 = vpop.f32.mrf.mxu3  ;;  %v10666_v40 = vpack.c.bf16 %v4618_v29, %v4617_v17 }
 0x717   : > { %4110 = vst.msk [vmem:[#allocation3 + $0x198] sm:$0x1] %vm4092_vm6, %v4091_v31  ;;  %v3965_v35 = vadd.f32 %v3930_v34, %v3835_v58  ;;  %v12014_v58 = vld [vmem:[#allocation25_spill] sm:$0xff]  ;;  %v7626_v31 = vld [vmem:[%s11503_s7 + $0x18] sm:$0xf] }
 0x718   : > { %v4279_v21 = vpop.f32.mrf.mxu0  ;;  %4073 = vst.msk [vmem:[#allocation3 + $0x1a1] sm:$0xff] %vm4036_vm5, %v4032_v11  ;;  %v7643_v34 = vld [vmem:[%s11503_s7 + $0x1c] sm:$0xf] }
 0x719   : > { %v4501_v51 = vpop.f32.mrf.mxu1  ;;  %v4346_v2 = vadd.f32 %v4279_v21, %v12012_v60  ;;  %v4001_v9 = vadd.f32 %v10579_v14, %v3965_v35  ;;  %v5801_v12 = vsel %vm4244_vm4, %v7643_v34, 0  ;;  %v4176_v35 = vld [vmem:[#allocation3 + $0x158] sm:$0xff] }
 0x71a   : > { %7571 = vmatmul.msk.bf16.gmra.mxu2 %vm4036_vm5, %v10634_v57  ;;  %5810 = vmatpush.bf16.msrb.mxu3 %v5801_v12 }
 0x71b   : > { %v4568_v37 = vadd.f32 %v4501_v51, %v4346_v2  ;;  %v4033_v36 = vmax.f32 %v4001_v9, 0.0 }
 0x71d   : > { %v4126_v30 = vld [vmem:[#allocation3 + $0x177] sm:$0x1]  ;;  %4067 = vst.msk [vmem:[#allocation3 + $0x181] sm:$0xff] %vm4036_vm5, %v4033_v36  ;;  %v4721_v54 = vpop.f32.mrf.mxu2 }
 0x71e   : > { %4144 = vst.msk [vmem:[#allocation3 + $0x179] sm:$0x1] %vm4092_vm6, %v4126_v30  ;;  %v10643_v10 = vadd.f32 %v4721_v54, %v4567_v23  ;;  %v3932_v7 = vpop.f32.mrf.mxu3  ;;  %v4397_v36 = vld [vmem:[#allocation3 + $0x151] sm:$0xff]  ;;  %v10685_v30 = vpack.c.bf16 %v4176_v35, %v4175_v38 }
 0x71f   : > { %v4128_v43 = vld [vmem:[#allocation3 + $0x1a7] sm:$0x1]  ;;  %v3966_v8 = vadd.f32 %v3932_v7, %v3836_v22  ;;  %v10687_v54 = vpack.c.bf16 %v4398_v28, %v4397_v36  ;;  %v4178_v29 = vld [vmem:[#allocation3 + $0x170] sm:$0xff] }
 0x720   : > { %v4282_v49 = vpop.f32.mrf.mxu0  ;;  %4146 = vst.msk [vmem:[#allocation3 + $0x1a9] sm:$0x1] %vm4092_vm6, %v4128_v43  ;;  %v4620_v43 = vld [vmem:[#allocation3 + $0x15a] sm:$0xff] }
 0x721   : > { %v4504_v50 = vpop.f32.mrf.mxu1  ;;  %v4347_v55 = vadd.f32 %v4282_v49, %v12013_v45  ;;  %v4002_v19 = vadd.f32 %v10579_v14, %v3966_v8 }
 0x723   : > { %v4569_v13 = vadd.f32 %v4504_v50, %v4347_v55  ;;  %7538 = vmatmul.msk.bf16.gmra.mxu0 %vm4036_vm5, %v10647_v59  ;;  %v4034_v63 = vmax.f32 %v4002_v19, 0.0  ;;  %7584 = vmatmul.msk.bf16.gmra.mxu3 %vm4036_vm5, %v10513_v61  ;;  %v4619_v55 = vld [vmem:[#allocation3 + $0x152] sm:$0xff] }
 0x724   : > { %7555 = vmatmul.msk.bf16.gmra.mxu1 %vm4036_vm5, %v10649_v5  ;;  %v4090_v33 = vld [vmem:[#allocation3 + $0x182] sm:$0x1]  ;;  %v12016_v19 = vld [vmem:[#allocation91_spill] sm:$0xff] }
 0x725   : > { %4109 = vst.msk [vmem:[#allocation3 + $0x180] sm:$0x1] %vm4092_vm6, %v4090_v33  ;;  %v4723_v20 = vpop.f32.mrf.mxu2 }
 0x726   : > { %4068 = vst.msk [vmem:[#allocation3 + $0x189] sm:$0xff] %vm4036_vm5, %v4034_v63  ;;  %v10660_v47 = vadd.f32 %v4723_v20, %v4568_v37  ;;  %v4923_v14 = vpop.f32.mrf.mxu3  ;;  %v10705_v63 = vpack.c.bf16 %v4620_v43, %v4619_v55  ;;  %v4177_v20 = vld [vmem:[#allocation3 + $0x168] sm:$0xff] }
 0x727   : > { %v10663_v11 = vadd.f32 %v4923_v14, %v10508_v16  ;;  %v5579_v16 = vsel %vm4244_vm4, %v7626_v31, 0  ;;  %v4400_v14 = vld [vmem:[#allocation3 + $0x171] sm:$0xff]  ;;  %v10715_v34 = vpack.c.bf16 %v4178_v29, %v4177_v20 }
 0x728   : > { %v4284_v23 = vpop.f32.mrf.mxu0  ;;  %5588 = vmatpush.bf16.msrb.mxu2 %v5579_v16  ;;  %v5481_v20 = vld [vmem:[#allocation3 + $0x38] sm:$0xff] }
 0x729   : > { %v4506_v26 = vpop.f32.mrf.mxu1  ;;  %v4348_v3 = vadd.f32 %v4284_v23, %v12014_v58 }
 0x72a   : > { %7572 = vmatmul.msk.bf16.gmra.mxu2 %vm4036_vm5, %v10666_v40 }
 0x72b   : > { %v4570_v61 = vadd.f32 %v4506_v26, %v4348_v3  ;;  %v4399_v3 = vld [vmem:[#allocation3 + $0x169] sm:$0xff] }
 0x72c   : > { %v10717_v16 = vpack.c.bf16 %v4400_v14, %v4399_v3 }
 0x72d   : > { %v4127_v21 = vld [vmem:[#allocation3 + $0x18f] sm:$0x1]  ;;  %v4726_v51 = vpop.f32.mrf.mxu2 }
 0x72e   : > { %4145 = vst.msk [vmem:[#allocation3 + $0x191] sm:$0x1] %vm4092_vm6, %v4127_v21  ;;  %v10679_v60 = vadd.f32 %v4726_v51, %v4569_v13  ;;  %v4925_v2 = vpop.f32.mrf.mxu3 }
 0x72f   : > { %v10682_v15 = vadd.f32 %v4925_v2, %v10525_v46  ;;  %v6023_v46 = vsel %vm4244_vm4, %v7660_v27, 0  ;;  %v5036_v27 = vld [vmem:[#allocation3 + $0x21] sm:$0xff] }
 0x730   : > { %v4287_v9 = vpop.f32.mrf.mxu0  ;;  %6032 = vmatpush.bf16.msrb.mxu0 %v6023_v46 }
 0x731   : > { %v4509_v37 = vpop.f32.mrf.mxu1  ;;  %v4349_v22 = vadd.f32 %v4287_v9, %v12015_v25  ;;  %v4621_v9 = vld [vmem:[#allocation3 + $0x16a] sm:$0xff] }
 0x733   : > { %v4571_v6 = vadd.f32 %v4509_v37, %v4349_v22  ;;  %7539 = vmatmul.msk.bf16.gmra.mxu0 %vm4036_vm5, %v10685_v30  ;;  %7585 = vmatmul.msk.bf16.gmra.mxu3 %vm4036_vm5, %v10541_v18  ;;  %v12018_v37 = vld [vmem:[#allocation42_spill] sm:$0xff] }
 0x734   : > { %7556 = vmatmul.msk.bf16.gmra.mxu1 %vm4036_vm5, %v10687_v54 }
 0x735   : > { %v4728_v7 = vpop.f32.mrf.mxu2 }
 0x736   : > { %v10699_v49 = vadd.f32 %v4728_v7, %v4570_v61  ;;  %v4928_v50 = vpop.f32.mrf.mxu3  ;;  %v12017_v61 = vld [vmem:[#allocation37_spill] sm:$0xff] }
 0x737   : > { %v10702_v45 = vadd.f32 %v4928_v50, %v10536_v62 }
 0x738   : > { %v4289_v8 = vpop.f32.mrf.mxu0 }
 0x739   : > { %v4511_v44 = vpop.f32.mrf.mxu1  ;;  %v4350_v13 = vadd.f32 %v4289_v8, %v12016_v19 }
 0x73a   : > { %7573 = vmatmul.msk.bf16.gmra.mxu2 %vm4036_vm5, %v10705_v63 }
 0x73b   : > { %v4572_v33 = vadd.f32 %v4511_v44, %v4350_v13  ;;  %v12019_v44 = vld [vmem:[#allocation18_spill] sm:$0xff] }
 0x73d   : > { %v4731_v18 = vpop.f32.mrf.mxu2 }
 0x73e   : > { %v10709_v23 = vadd.f32 %v4731_v18, %v4571_v6  ;;  %v4930_v26 = vpop.f32.mrf.mxu3  ;;  %v5480_v18 = vld [vmem:[#allocation3 + $0x30] sm:$0xff] }
 0x73f   : > { %v10712_v62 = vadd.f32 %v4930_v26, %v10553_v53  ;;  %v4622_v53 = vld [vmem:[#allocation3 + $0x172] sm:$0xff] }
 0x740   : > { %v4292_v17 = vpop.f32.mrf.mxu0  ;;  %v10731_v25 = vpack.c.bf16 %v4622_v53, %v4621_v9 }
 0x741   : > { %v4514_v58 = vpop.f32.mrf.mxu1  ;;  %v4351_v31 = vadd.f32 %v4292_v17, %v12017_v61  ;;  %v5512_v61 = vpack.c.bf16 %v5481_v20, %v5480_v18 }
 0x743   : > { %v4573_v12 = vadd.f32 %v4514_v58, %v4351_v31  ;;  %7540 = vmatmul.msk.bf16.gmra.mxu0 %vm4036_vm5, %v10715_v34  ;;  %7586 = vmatmul.msk.bf16.gmra.mxu3 %vm4036_vm5, %v10572_v52  ;;  %v12020_v58 = vld [vmem:[#allocation44_spill] sm:$0xff] }
 0x744   : > { %7557 = vmatmul.msk.bf16.gmra.mxu1 %vm4036_vm5, %v10717_v16 }
 0x745   : > { %v4733_v38 = vpop.f32.mrf.mxu2 }
 0x746   : > { %v10725_v21 = vadd.f32 %v4733_v38, %v4572_v33  ;;  %v4933_v51 = vpop.f32.mrf.mxu3  ;;  %v5260_v38 = vld [vmem:[#allocation3 + $0x3a] sm:$0xff] }
 0x747   : > { %v10728_v2 = vadd.f32 %v4933_v51, %v10567_v41  ;;  %v5035_v41 = vld [vmem:[#allocation3 + $0x19] sm:$0xff] }
 0x748   : > { %v4294_v35 = vpop.f32.mrf.mxu0  ;;  %v5067_v19 = vpack.c.bf16 %v5036_v27, %v5035_v41 }
 0x749   : > { %v4516_v28 = vpop.f32.mrf.mxu1  ;;  %v4352_v36 = vadd.f32 %v4294_v35, %v12018_v37  ;;  %v5037_v37 = vld [vmem:[#allocation3 + $0x31] sm:$0xff] }
 0x74a   : > { %7574 = vmatmul.msk.bf16.gmra.mxu2 %vm4036_vm5, %v10731_v25 }
 0x74b   : > { %v4574_v22 = vadd.f32 %v4516_v28, %v4352_v36  ;;  %v12021_v36 = vld [vmem:[#allocation48_spill] sm:$0xff] }
 0x74d   : > { %v4736_v6 = vpop.f32.mrf.mxu2 }
 0x74e   : > { %v10735_v46 = vadd.f32 %v4736_v6, %v4573_v12  ;;  %v4935_v7 = vpop.f32.mrf.mxu3  ;;  %v5038_v12 = vld [vmem:[#allocation3 + $0x39] sm:$0xff] }
 0x74f   : > { %v10738_v8 = vadd.f32 %v4935_v7, %v10592_v4  ;;  %v10759_v6 = vpack.c.bf16 %v5038_v12, %v5037_v37 }
 0x750   : > { %v4297_v43 = vpop.f32.mrf.mxu0 }
 0x751   : > { %v4519_v50 = vpop.f32.mrf.mxu1  ;;  %v4353_v55 = vadd.f32 %v4297_v43, %v12019_v44  ;;  %v5482_v43 = vld [vmem:[#allocation3 + $0x48] sm:$0xff] }
 0x753   : > { %v4575_v13 = vadd.f32 %v4519_v50, %v4353_v55  ;;  %7593 = vmatmul.msk.bf16.vlgmr.msra.gmra.mxu0 %vm4036_vm5, %v5067_v19  ;;  %7587 = vmatmul.msk.bf16.gmra.mxu3 %vm4036_vm5, %v10612_v1  ;;  %v5483_v50 = vld [vmem:[#allocation3 + $0x50] sm:$0xff] }
 0x754   : > { %7610 = vmatmul.msk.bf16.vlgmr.msra.gmra.mxu1 %vm4036_vm5, %v10281_v56  ;;  %v5513_v20 = vpack.c.bf16 %v5483_v50, %v5482_v43 }
 0x755   : > { %v4738_v33 = vpop.f32.mrf.mxu2 }
 0x756   : > { %v10746_v29 = vadd.f32 %v4738_v33, %v4574_v22  ;;  %v4938_v4 = vpop.f32.mrf.mxu3  ;;  %v12023_v33 = vld [vmem:[#allocation21_spill] sm:$0xff] }
 0x757   : > { %v10749_v17 = vadd.f32 %v4938_v4, %v10606_v32  ;;  %v5259_v32 = vld [vmem:[#allocation3 + $0x32] sm:$0xff] }
 0x758   : > { %v4299_v14 = vpop.f32.mrf.mxu0  ;;  %v10761_v27 = vpack.c.bf16 %v5260_v38, %v5259_v32  ;;  %v5039_v38 = vld [vmem:[#allocation3 + $0x49] sm:$0xff] }
 0x759   : > { %v4521_v26 = vpop.f32.mrf.mxu1  ;;  %v4354_v3 = vadd.f32 %v4299_v14, %v12020_v58  ;;  %v5262_v58 = vld [vmem:[#allocation3 + $0x52] sm:$0xff] }
 0x75a   : > { %7627 = vmatmul.msk.bf16.vlgmr.msrb.gmra.mxu2 %vm4036_vm5, %v5512_v61  ;;  %12022 = vst [vmem:[#allocation86_spill] sm:$0xff] %v10761_v27 }
 0x75b   : > { %v4576_v31 = vadd.f32 %v4521_v26, %v4354_v3  ;;  %v5040_v26 = vld [vmem:[#allocation3 + $0x51] sm:$0xff] }
 0x75d   : > { %v4741_v56 = vpop.f32.mrf.mxu2 }
 0x75e   : > { %v10753_v53 = vadd.f32 %v4741_v56, %v4575_v13  ;;  %v4940_v51 = vpop.f32.mrf.mxu3 }
 0x75f   : > { %v10756_v9 = vadd.f32 %v4940_v51, %v10627_v0  ;;  %v12024_v51 = vld [vmem:[#allocation31_spill] sm:$0xff] }
 0x760   : > { %v4302_v35 = vpop.f32.mrf.mxu0 }
 0x761   : > { %v4524_v28 = vpop.f32.mrf.mxu1  ;;  %v4355_v22 = vadd.f32 %v4302_v35, %v12021_v36  ;;  %v5484_v36 = vld [vmem:[#allocation3 + $0x60] sm:$0xff] }
 0x763   : > { %v4577_v7 = vadd.f32 %v4524_v28, %v4355_v22  ;;  %7594 = vmatmul.msk.bf16.gmra.mxu0 %vm4036_vm5, %v10759_v6  ;;  %7588 = vmatmul.msk.bf16.gmra.mxu3 %vm4036_vm5, %v10647_v59  ;;  %v10782_v28 = vpack.c.bf16 %v5040_v26, %v5039_v38  ;;  %v5485_v22 = vld [vmem:[#allocation3 + $0x68] sm:$0xff] }
 0x764   : > { %7611 = vmatmul.msk.bf16.gmra.mxu1 %vm4036_vm5, %v10761_v27  ;;  %v5264_v26 = vld [vmem:[#allocation3 + $0x6a] sm:$0xff]  ;;  %v5041_v38 = vld [vmem:[#allocation3 + $0x61] sm:$0xff] }
 0x765   : > { %v4743_v0 = vpop.f32.mrf.mxu2 }
 0x766   : > { %v10769_v41 = vadd.f32 %v4743_v0, %v4576_v31  ;;  %v4943_v44 = vpop.f32.mrf.mxu3 }
 0x767   : > { %v10772_v13 = vadd.f32 %v4943_v44, %v10643_v10  ;;  %v5261_v10 = vld [vmem:[#allocation3 + $0x4a] sm:$0xff] }
 0x768   : > { %v4304_v55 = vpop.f32.mrf.mxu0  ;;  %v10784_v37 = vpack.c.bf16 %v5262_v58, %v5261_v10  ;;  %v12027_v10 = vld [vmem:[#allocation61_spill] sm:$0xff] }
 0x769   : > { %v4526_v19 = vpop.f32.mrf.mxu1  ;;  %v4356_v18 = vadd.f32 %v4304_v55, %v12023_v33  ;;  %v12026_v55 = vld [vmem:[#allocation53_spill] sm:$0xff]  ;;  %v5514_v33 = vpack.c.bf16 %v5485_v22, %v5484_v36  ;;  %v5486_v22 = vld [vmem:[#allocation3 + $0x78] sm:$0xff] }
 0x76a   : > { %7628 = vmatmul.msk.bf16.gmra.mxu2 %vm4036_vm5, %v5513_v20  ;;  %12025 = vst [vmem:[#allocation87_spill] sm:$0xff] %v10784_v37 }
 0x76b   : > { %v4578_v4 = vadd.f32 %v4526_v19, %v4356_v18 }
 0x76d   : > { %v4746_v14 = vpop.f32.mrf.mxu2 }
 0x76e   : > { %v10776_v3 = vadd.f32 %v4746_v14, %v4577_v7  ;;  %v4945_v61 = vpop.f32.mrf.mxu3  ;;  %v5042_v14 = vld [vmem:[#allocation3 + $0x69] sm:$0xff] }
 0x76f   : > { %v10779_v12 = vadd.f32 %v4945_v61, %v10660_v47 }
 0x770   : > { %v4307_v31 = vpop.f32.mrf.mxu0 }
 0x771   : > { %v4529_v56 = vpop.f32.mrf.mxu1  ;;  %v4357_v35 = vadd.f32 %v4307_v31, %v12024_v51 }
 0x773   : > { %v4579_v32 = vadd.f32 %v4529_v56, %v4357_v35  ;;  %7595 = vmatmul.msk.bf16.gmra.mxu0 %vm4036_vm5, %v10782_v28  ;;  %7589 = vmatmul.msk.bf16.gmra.mxu3 %vm4036_vm5, %v10685_v30  ;;  %v10805_v35 = vpack.c.bf16 %v5042_v14, %v5041_v38 }
 0x774   : > { %7612 = vmatmul.msk.bf16.gmra.mxu1 %vm4036_vm5, %v10784_v37 }
 0x775   : > { %v4748_v47 = vpop.f32.mrf.mxu2 }
 0x776   : > { %v10792_v7 = vadd.f32 %v4748_v47, %v4578_v4  ;;  %v4948_v0 = vpop.f32.mrf.mxu3 }
 0x777   : > { %v10795_v44 = vadd.f32 %v4948_v0, %v10679_v60  ;;  %v5263_v60 = vld [vmem:[#allocation3 + $0x62] sm:$0xff] }
 0x778   : > { %v4309_v43 = vpop.f32.mrf.mxu0  ;;  %v5292_v47 = vpack.c.bf16 %v5264_v26, %v5263_v60 }
 0x779   : > { %v4531_v50 = vpop.f32.mrf.mxu1  ;;  %v4358_v19 = vadd.f32 %v4309_v43, %v12026_v55 }
 0x77a   : > { %7629 = vmatmul.msk.bf16.gmra.mxu2 %vm4036_vm5, %v5514_v33  ;;  %v12028_v33 = vld [vmem:[#allocation23_spill] sm:$0xff] }
 0x77b   : > { %v4580_v18 = vadd.f32 %v4531_v50, %v4358_v19 }
 0x77d   : > { %v4751_v20 = vpop.f32.mrf.mxu2 }
 0x77e   : > { %v10799_v58 = vadd.f32 %v4751_v20, %v4579_v32  ;;  %v4950_v61 = vpop.f32.mrf.mxu3 }
 0x77f   : > { %v10802_v56 = vadd.f32 %v4950_v61, %v10699_v49  ;;  %v5487_v49 = vld [vmem:[#allocation3 + $0x80] sm:$0xff] }
 0x780   : > { %v4312_v4 = vpop.f32.mrf.mxu0  ;;  %v5515_v14 = vpack.c.bf16 %v5487_v49, %v5486_v22 }
 0x781   : > { %v4534_v31 = vpop.f32.mrf.mxu1  ;;  %v4359_v51 = vadd.f32 %v4312_v4, %v12027_v10  ;;  %v5044_v4 = vld [vmem:[#allocation3 + $0x81] sm:$0xff] }
 0x782   : > { %v4844_v10 = vld [vmem:[#allocation3 + $0x188] sm:$0xff] }
 0x783   : > { %v4581_v36 = vadd.f32 %v4534_v31, %v4359_v51  ;;  %7596 = vmatmul.msk.bf16.gmra.mxu0 %vm4036_vm5, %v10805_v35  ;;  %7590 = vmatmul.msk.bf16.gmra.mxu3 %vm4036_vm5, %v10715_v34  ;;  %v5266_v31 = vld [vmem:[#allocation3 + $0x82] sm:$0xff] }
 0x784   : > { %7613 = vmatmul.msk.bf16.gmra.mxu1 %vm4036_vm5, %v5292_v47 }
 0x785   : > { %v4753_v32 = vpop.f32.mrf.mxu2 }
 0x786   : > { %v10812_v0 = vadd.f32 %v4753_v32, %v4580_v18  ;;  %v4953_v43 = vpop.f32.mrf.mxu3  ;;  %v4843_v18 = vld [vmem:[#allocation3 + $0x180] sm:$0xff] }
 0x787   : > { %v10815_v19 = vadd.f32 %v4953_v43, %v10709_v23  ;;  %v5043_v23 = vld [vmem:[#allocation3 + $0x79] sm:$0xff] }
 0x788   : > { %v4314_v50 = vpop.f32.mrf.mxu0  ;;  %v5265_v43 = vld [vmem:[#allocation3 + $0x7a] sm:$0xff]  ;;  %v10825_v49 = vpack.c.bf16 %v5044_v4, %v5043_v23 }
 0x789   : > { %v4536_v55 = vpop.f32.mrf.mxu1  ;;  %v4360_v20 = vadd.f32 %v4314_v50, %v12028_v33  ;;  %v12029_v50 = vld [vmem:[#allocation63_spill] sm:$0xff]  ;;  %v10827_v33 = vpack.c.bf16 %v4844_v10, %v4843_v18  ;;  %v12032_v18 = vld [vmem:[#allocation49_spill] sm:$0xff] }
 0x78a   : > { %7630 = vmatmul.msk.bf16.gmra.mxu2 %vm4036_vm5, %v5515_v14  ;;  %v5489_v14 = vld [vmem:[#allocation3 + $0x98] sm:$0xff] }
 0x78b   : > { %v4582_v26 = vadd.f32 %v4536_v55, %v4360_v20  ;;  %v5293_v55 = vpack.c.bf16 %v5266_v31, %v5265_v43  ;;  %12030 = vst [vmem:[#allocation33_spill] sm:$0xff] %v10827_v33 }
 0x78d   : > { %v4756_v61 = vpop.f32.mrf.mxu2 }
 0x78e   : > { %v10819_v38 = vadd.f32 %v4756_v61, %v4581_v36  ;;  %v4955_v60 = vpop.f32.mrf.mxu3  ;;  %v5488_v36 = vld [vmem:[#allocation3 + $0x90] sm:$0xff] }
 0x78f   : > { %v10822_v32 = vadd.f32 %v4955_v60, %v10725_v21 }
 0x790   : > { %v4317_v51 = vpop.f32.mrf.mxu0 }
 0x791   : > { %v4539_v47 = vpop.f32.mrf.mxu1  ;;  %v4361_v22 = vadd.f32 %v4317_v51, %v12029_v50  ;;  %v5046_v50 = vld [vmem:[#allocation3 + $0x99] sm:$0xff] }
 0x793   : > { %v4583_v20 = vadd.f32 %v4539_v47, %v4361_v22  ;;  %7597 = vmatmul.msk.bf16.gmra.mxu0 %vm4036_vm5, %v10825_v49  ;;  %7591 = vmatmul.msk.bf16.gmra.mxu3 %vm4036_vm5, %v10827_v33  ;;  %v5516_v47 = vpack.c.bf16 %v5489_v14, %v5488_v36  ;;  %v5268_v22 = vld [vmem:[#allocation3 + $0x9a] sm:$0xff]  ;;  %v5045_v33 = vld [vmem:[#allocation3 + $0x91] sm:$0xff] }
 0x794   : > { %7614 = vmatmul.msk.bf16.gmra.mxu1 %vm4036_vm5, %v5293_v55 }
 0x795   : > { %v4758_v21 = vpop.f32.mrf.mxu2 }
 0x796   : > { %v10834_v61 = vadd.f32 %v4758_v21, %v4582_v26  ;;  %v4958_v60 = vpop.f32.mrf.mxu3 }
 0x797   : > { %v10837_v31 = vadd.f32 %v4958_v60, %v10735_v46  ;;  %v5267_v46 = vld [vmem:[#allocation3 + $0x92] sm:$0xff] }
 0x798   : > { %v4319_v4 = vpop.f32.mrf.mxu0  ;;  %v12034_v60 = vld [vmem:[#allocation24_spill] sm:$0xff]  ;;  %v5294_v36 = vpack.c.bf16 %v5268_v22, %v5267_v46 }
 0x799   : > { %v4541_v51 = vpop.f32.mrf.mxu1  ;;  %12031 = vst [vmem:[#allocation29_spill] sm:$0xff] %v10837_v31  ;;  %v4362_v10 = vadd.f32 %v4319_v4, %v12032_v18  ;;  %v10847_v4 = vpack.c.bf16 %v5046_v50, %v5045_v33 }
 0x79a   : > { %7631 = vmatmul.msk.bf16.gmra.mxu2 %vm4036_vm5, %v5516_v47 }
 0x79b   : > { %v4584_v23 = vadd.f32 %v4541_v51, %v4362_v10  ;;  %v5490_v51 = vld [vmem:[#allocation3 + $0xa8] sm:$0xff] }
 0x79d   : > { %v4761_v43 = vpop.f32.mrf.mxu2 }
 0x79e   : > { %v10841_v55 = vadd.f32 %v4761_v43, %v4583_v20  ;;  %v4960_v37 = vpop.f32.mrf.mxu3 }
 0x79f   : > { %v10844_v27 = vadd.f32 %v4960_v37, %v10746_v29  ;;  %v5491_v29 = vld [vmem:[#allocation3 + $0xb0] sm:$0xff] }
 0x7a0   : > { %v4322_v26 = vpop.f32.mrf.mxu0  ;;  %v5517_v50 = vpack.c.bf16 %v5491_v29, %v5490_v51 }
 0x7a1   : > { %v4544_v21 = vpop.f32.mrf.mxu1  ;;  %12033 = vst [vmem:[#allocation35_spill] sm:$0xff] %v10844_v27  ;;  %v4363_v31 = vadd.f32 %v4322_v26, %v12034_v60  ;;  %v5047_v27 = vld [vmem:[#allocation3 + $0xa9] sm:$0xff] }
 0x7a3   : > { %v4585_v14 = vadd.f32 %v4544_v21, %v4363_v31  ;;  %7598 = vmatmul.msk.bf16.gmra.mxu0 %vm4036_vm5, %v10847_v4  ;;  %7644 = vmatmul.msk.bf16.vlgmr.msrb.gmra.mxu3 %vm4036_vm5, %v10759_v6  ;;  %v12036_v31 = vld [vmem:[#allocation52_spill] sm:$0xff] }
 0x7a4   : > { %7615 = vmatmul.msk.bf16.gmra.mxu1 %vm4036_vm5, %v5294_v36  ;;  %v5048_v21 = vld [vmem:[#allocation3 + $0xb1] sm:$0xff] }
 0x7a5   : > { %v4763_v20 = vpop.f32.mrf.mxu2  ;;  %v5270_v6 = vld [vmem:[#allocation3 + $0xb2] sm:$0xff] }
 0x7a6   : > { %v10854_v37 = vadd.f32 %v4763_v20, %v4584_v23  ;;  %v4963_v18 = vpop.f32.mrf.mxu3 }
 0x7a7   : > { %v10857_v33 = vadd.f32 %v4963_v18, %v10753_v53  ;;  %v5269_v53 = vld [vmem:[#allocation3 + $0xaa] sm:$0xff]  ;;  %v12038_v18 = vld [vmem:[#allocation68_spill] sm:$0xff] }
 0x7a8   : > { %v4324_v10 = vpop.f32.mrf.mxu0  ;;  %v5295_v51 = vpack.c.bf16 %v5270_v6, %v5269_v53 }
 0x7a9   : > { %v4546_v47 = vpop.f32.mrf.mxu1  ;;  %12035 = vst [vmem:[#allocation83_spill] sm:$0xff] %v10857_v33  ;;  %v4364_v43 = vadd.f32 %v4324_v10, %v12036_v31  ;;  %v10867_v10 = vpack.c.bf16 %v5048_v21, %v5047_v27 }
 0x7aa   : > { %7632 = vmatmul.msk.bf16.gmra.mxu2 %vm4036_vm5, %v5517_v50 }
 0x7ab   : > { %v4586_v22 = vadd.f32 %v4546_v47, %v4364_v43  ;;  %v5492_v47 = vld [vmem:[#allocation3 + $0xc0] sm:$0xff] }
 0x7ad   : > { %v4766_v26 = vpop.f32.mrf.mxu2 }
 0x7ae   : > { %v10861_v46 = vadd.f32 %v4766_v26, %v4585_v14  ;;  %v4965_v60 = vpop.f32.mrf.mxu3 }
 0x7af   : > { %v10864_v20 = vadd.f32 %v4965_v60, %v10769_v41  ;;  %v5493_v41 = vld [vmem:[#allocation3 + $0xc8] sm:$0xff] }
 0x7b0   : > { %v4327_v23 = vpop.f32.mrf.mxu0  ;;  %v5518_v6 = vpack.c.bf16 %v5493_v41, %v5492_v47 }
 0x7b1   : > { %v4549_v36 = vpop.f32.mrf.mxu1  ;;  %12037 = vst [vmem:[#allocation51_spill] sm:$0xff] %v10864_v20  ;;  %v4365_v33 = vadd.f32 %v4327_v23, %v12038_v18  ;;  %v5049_v20 = vld [vmem:[#allocation3 + $0xc1] sm:$0xff] }
 0x7b3   : > { %v4587_v29 = vadd.f32 %v4549_v36, %v4365_v33  ;;  %7599 = vmatmul.msk.bf16.gmra.mxu0 %vm4036_vm5, %v10867_v10  ;;  %7645 = vmatmul.msk.bf16.gmra.mxu3 %vm4036_vm5, %v10782_v28  ;;  %v12040_v33 = vld [vmem:[#allocation45_spill] sm:$0xff]  ;;  %v5050_v36 = vld [vmem:[#allocation3 + $0xc9] sm:$0xff] }
 0x7b4   : > { %7616 = vmatmul.msk.bf16.gmra.mxu1 %vm4036_vm5, %v5295_v51  ;;  %v5272_v28 = vld [vmem:[#allocation3 + $0xca] sm:$0xff] }
 0x7b5   : > { %v4768_v14 = vpop.f32.mrf.mxu2 }
 0x7b6   : > { %v10874_v31 = vadd.f32 %v4768_v14, %v4586_v22  ;;  %v4968_v43 = vpop.f32.mrf.mxu3 }
 0x7b7   : > { %v10877_v27 = vadd.f32 %v4968_v43, %v10776_v3  ;;  %v5271_v3 = vld [vmem:[#allocation3 + $0xc2] sm:$0xff]  ;;  %v12042_v43 = vld [vmem:[#allocation7_spill] sm:$0xff] }
 0x7b8   : > { %v4329_v50 = vpop.f32.mrf.mxu0  ;;  %v5296_v47 = vpack.c.bf16 %v5272_v28, %v5271_v3 }
 0x7b9   : > { %v4551_v26 = vpop.f32.mrf.mxu1  ;;  %12039 = vst [vmem:[#allocation36_spill] sm:$0xff] %v10877_v27  ;;  %v4366_v21 = vadd.f32 %v4329_v50, %v12040_v33  ;;  %v10887_v50 = vpack.c.bf16 %v5050_v36, %v5049_v20 }
 0x7ba   : > { %7633 = vmatmul.msk.bf16.gmra.mxu2 %vm4036_vm5, %v5518_v6 }
 0x7bb   : > { %v4588_v60 = vadd.f32 %v4551_v26, %v4366_v21  ;;  %v5494_v26 = vld [vmem:[#allocation3 + $0xd8] sm:$0xff] }
 0x7bd   : > { %v4771_v23 = vpop.f32.mrf.mxu2 }
 0x7be   : > { %v10881_v53 = vadd.f32 %v4771_v23, %v4587_v29  ;;  %v4970_v18 = vpop.f32.mrf.mxu3 }
 0x7bf   : > { %v10884_v14 = vadd.f32 %v4970_v18, %v10792_v7  ;;  %v5495_v7 = vld [vmem:[#allocation3 + $0xe0] sm:$0xff] }
 0x7c0   : > { %v4332_v22 = vpop.f32.mrf.mxu0  ;;  %v5519_v28 = vpack.c.bf16 %v5495_v7, %v5494_v26 }
 0x7c1   : > { %v4554_v51 = vpop.f32.mrf.mxu1  ;;  %12041 = vst [vmem:[#allocation43_spill] sm:$0xff] %v10884_v14  ;;  %v4367_v27 = vadd.f32 %v4332_v22, %v12042_v43  ;;  %v5051_v14 = vld [vmem:[#allocation3 + $0xd9] sm:$0xff] }
 0x7c3   : > { %v4589_v41 = vadd.f32 %v4554_v51, %v4367_v27  ;;  %7600 = vmatmul.msk.bf16.gmra.mxu0 %vm4036_vm5, %v10887_v50  ;;  %7646 = vmatmul.msk.bf16.gmra.mxu3 %vm4036_vm5, %v10805_v35  ;;  %v12043_v27 = vld [vmem:[#allocation71_spill] sm:$0xff]  ;;  %v5052_v51 = vld [vmem:[#allocation3 + $0xe1] sm:$0xff] }
 0x7c4   : > { %7617 = vmatmul.msk.bf16.gmra.mxu1 %vm4036_vm5, %v5296_v47  ;;  %v5274_v35 = vld [vmem:[#allocation3 + $0xe2] sm:$0xff] }
 0x7c5   : > { %v4773_v29 = vpop.f32.mrf.mxu2 }
 0x7c6   : > { %v10894_v33 = vadd.f32 %v4773_v29, %v4588_v60  ;;  %v4973_v21 = vpop.f32.mrf.mxu3 }
 0x7c7   : > { %v10897_v20 = vadd.f32 %v4973_v21, %v10799_v58  ;;  %v5273_v58 = vld [vmem:[#allocation3 + $0xda] sm:$0xff] }
 0x7c8   : > { %v4334_v6 = vpop.f32.mrf.mxu0  ;;  %v5297_v26 = vpack.c.bf16 %v5274_v35, %v5273_v58 }
 0x7c9   : > { %v4556_v23 = vpop.f32.mrf.mxu1  ;;  %v4368_v36 = vadd.f32 %v4334_v6, %v12043_v27  ;;  %v10907_v6 = vpack.c.bf16 %v5052_v51, %v5051_v14 }
 0x7ca   : > { %7634 = vmatmul.msk.bf16.gmra.mxu2 %vm4036_vm5, %v5519_v28 }
 0x7cb   : > { %v4590_v18 = vadd.f32 %v4556_v23, %v4368_v36  ;;  %v5496_v23 = vld [vmem:[#allocation3 + $0xf0] sm:$0xff] }
 0x7cd   : > { %v4776_v22 = vpop.f32.mrf.mxu2 }
 0x7ce   : > { %v10901_v3 = vadd.f32 %v4776_v22, %v4589_v41  ;;  %v4975_v43 = vpop.f32.mrf.mxu3 }
 0x7cf   : > { %v10904_v29 = vadd.f32 %v4975_v43, %v10812_v0  ;;  %v5497_v0 = vld [vmem:[#allocation3 + $0xf8] sm:$0xff] }
 0x7d0   : > { %v5145_v60 = vpop.f32.mrf.mxu0  ;;  %v5520_v51 = vpack.c.bf16 %v5497_v0, %v5496_v23 }
 0x7d1   : > { %v5367_v47 = vpop.f32.mrf.mxu1  ;;  %v5225_v21 = vadd.f32 %v5145_v60, %v10663_v11  ;;  %v5054_v60 = vld [vmem:[#allocation3 + $0xf9] sm:$0xff] }
 0x7d3   : > { %v5447_v7 = vadd.f32 %v5367_v47, %v5225_v21  ;;  %7601 = vmatmul.msk.bf16.gmra.mxu0 %vm4036_vm5, %v10907_v6  ;;  %7647 = vmatmul.msk.bf16.gmra.mxu3 %vm4036_vm5, %v10825_v49 }
 0x7d4   : > { %7618 = vmatmul.msk.bf16.gmra.mxu1 %vm4036_vm5, %v5297_v26  ;;  %v5053_v26 = vld [vmem:[#allocation3 + $0xf1] sm:$0xff] }
 0x7d5   : > { %v4778_v41 = vpop.f32.mrf.mxu2 }
 0x7d6   : > { %v10914_v27 = vadd.f32 %v4778_v41, %v4590_v18  ;;  %v4978_v36 = vpop.f32.mrf.mxu3  ;;  %v10927_v41 = vpack.c.bf16 %v5054_v60, %v5053_v26 }
 0x7d7   : > { %v10917_v14 = vadd.f32 %v4978_v36, %v10819_v38 }
 0x7d8   : > { %v5147_v28 = vpop.f32.mrf.mxu0 }
 0x7d9   : > { %v5369_v11 = vpop.f32.mrf.mxu1  ;;  %v5226_v22 = vadd.f32 %v5147_v28, %v10682_v15 }
 0x7da   : > { %7635 = vmatmul.msk.bf16.gmra.mxu2 %vm4036_vm5, %v5520_v51 }
 0x7db   : > { %v5448_v35 = vadd.f32 %v5369_v11, %v5226_v22 }
 0x7dd   : > { %v5590_v43 = vpop.f32.mrf.mxu2 }
 0x7de   : > { %v10921_v49 = vadd.f32 %v5590_v43, %v5447_v7  ;;  %v4980_v47 = vpop.f32.mrf.mxu3 }
 0x7df   : > { %v10924_v21 = vadd.f32 %v4980_v47, %v10834_v61 }
 0x7e0   : > { %v5150_v58 = vpop.f32.mrf.mxu0 }
 0x7e1   : > { %v5372_v18 = vpop.f32.mrf.mxu1  ;;  %v5227_v38 = vadd.f32 %v5150_v58, %v10702_v45 }
 0x7e3   : > { %v5449_v15 = vadd.f32 %v5372_v18, %v5227_v38  ;;  %7602 = vmatmul.msk.bf16.gmra.mxu0 %vm4036_vm5, %v10927_v41  ;;  %7648 = vmatmul.msk.bf16.gmra.mxu3 %vm4036_vm5, %v10847_v4 }
 0x7e4   : > { %7619 = vmatmul.msk.bf16.gmra.mxu1 %vm4036_vm5, %v10558_v42 }
 0x7e5   : > { %v5592_v7 = vpop.f32.mrf.mxu2 }
 0x7e6   : > { %v10935_v23 = vadd.f32 %v5592_v7, %v5448_v35  ;;  %v4983_v61 = vpop.f32.mrf.mxu3 }
 0x7e7   : > { %v10938_v45 = vadd.f32 %v4983_v61, %v10841_v55 }
 0x7e8   : > { %v5152_v0 = vpop.f32.mrf.mxu0 }
 0x7e9   : > { %v5374_v36 = vpop.f32.mrf.mxu1  ;;  %v5228_v28 = vadd.f32 %v5152_v0, %v10712_v62 }
 0x7ea   : > { %7636 = vmatmul.msk.bf16.gmra.mxu2 %vm4036_vm5, %v10572_v52 }
 0x7eb   : > { %v5450_v11 = vadd.f32 %v5374_v36, %v5228_v28 }
 0x7ed   : > { %v5595_v22 = vpop.f32.mrf.mxu2 }
 0x7ee   : > { %v10943_v42 = vadd.f32 %v5595_v22, %v5449_v15  ;;  %v4985_v51 = vpop.f32.mrf.mxu3 }
 0x7ef   : > { %v10946_v35 = vadd.f32 %v4985_v51, %v10854_v37 }
 0x7f0   : > { %v5155_v4 = vpop.f32.mrf.mxu0 }
 0x7f1   : > { %v5377_v43 = vpop.f32.mrf.mxu1  ;;  %v5229_v60 = vadd.f32 %v5155_v4, %v10728_v2 }
 0x7f3   : > { %v5451_v47 = vadd.f32 %v5377_v43, %v5229_v60  ;;  %7603 = vmatmul.msk.bf16.gmra.mxu0 %vm4036_vm5, %v10574_v39  ;;  %7649 = vmatmul.msk.bf16.gmra.mxu3 %vm4036_vm5, %v10867_v10 }
 0x7f4   : > { %7620 = vmatmul.msk.bf16.gmra.mxu1 %vm4036_vm5, %v10597_v48 }
 0x7f5   : > { %v5597_v52 = vpop.f32.mrf.mxu2 }
 0x7f6   : > { %v10955_v62 = vadd.f32 %v5597_v52, %v5450_v11  ;;  %v4988_v55 = vpop.f32.mrf.mxu3 }
 0x7f7   : > { %v10958_v37 = vadd.f32 %v4988_v55, %v10861_v46 }
 0x7f8   : > { %v5157_v58 = vpop.f32.mrf.mxu0 }
 0x7f9   : > { %v5379_v18 = vpop.f32.mrf.mxu1  ;;  %v5230_v2 = vadd.f32 %v5157_v58, %v10738_v8 }
 0x7fa   : > { %7637 = vmatmul.msk.bf16.gmra.mxu2 %vm4036_vm5, %v10612_v1 }
 0x7fb   : > { %v5452_v26 = vadd.f32 %v5379_v18, %v5230_v2 }
 0x7fd   : > { %v5600_v39 = vpop.f32.mrf.mxu2 }
 0x7fe   : > { %v10963_v48 = vadd.f32 %v5600_v39, %v5451_v47  ;;  %v4990_v38 = vpop.f32.mrf.mxu3 }
 0x7ff   : > { %v10966_v7 = vadd.f32 %v4990_v38, %v10874_v31  ;;  %v6179_v38 = vld [vmem:[%s8136_s11 + $0x9] sm:$0xff] }
 0x800   : > { %v5160_v10 = vpop.f32.mrf.mxu0 }
 0x801   : > { %v5382_v15 = vpop.f32.mrf.mxu1  ;;  %v5231_v61 = vadd.f32 %v5160_v10, %v10749_v17 }
 0x803   : > { %v5453_v0 = vadd.f32 %v5382_v15, %v5231_v61  ;;  %7604 = vmatmul.msk.bf16.gmra.mxu0 %vm4036_vm5, %v10614_v24  ;;  %7650 = vmatmul.msk.bf16.gmra.mxu3 %vm4036_vm5, %v10887_v50  ;;  %v5721_v61 = vld [vmem:[#allocation3 + $0x111] sm:$0xff] }
 0x804   : > { %7621 = vmatmul.msk.bf16.gmra.mxu1 %vm4036_vm5, %v10634_v57 }
 0x805   : > { %v5602_v1 = vpop.f32.mrf.mxu2 }
 0x806   : > { %v10975_v8 = vadd.f32 %v5602_v1, %v5452_v26  ;;  %v4993_v46 = vpop.f32.mrf.mxu3  ;;  %v6146_v26 = vld [vmem:[%s8136_s11] sm:$0xff] }
 0x807   : > { %v10978_v31 = vadd.f32 %v4993_v46, %v10881_v53 }
 0x808   : > { %v5162_v36 = vpop.f32.mrf.mxu0 }
 0x809   : > { %v5384_v28 = vpop.f32.mrf.mxu1  ;;  %v5232_v17 = vadd.f32 %v5162_v36, %v10756_v9  ;;  %v5720_v36 = vld [vmem:[#allocation3 + $0x109] sm:$0xff] }
 0x80a   : > { %7638 = vmatmul.msk.bf16.gmra.mxu2 %vm4036_vm5, %v10647_v59 }
 0x80b   : > { %v5454_v11 = vadd.f32 %v5384_v28, %v5232_v17  ;;  %v5743_v28 = vpack.c.bf16 %v5721_v61, %v5720_v36  ;;  %v5065_v61 = vld [vmem:[#allocation3 + $0x181] sm:$0xff] }
 0x80c   : > { %v5722_v36 = vld [vmem:[#allocation3 + $0x121] sm:$0xff] }
 0x80d   : > { %v5605_v24 = vpop.f32.mrf.mxu2 }
 0x80e   : > { %v10983_v57 = vadd.f32 %v5605_v24, %v5453_v0  ;;  %v4995_v22 = vpop.f32.mrf.mxu3  ;;  %v6242_v0 = vld [vmem:[%s8136_s11 + $0x2] sm:$0xff] }
 0x80f   : > { %v10986_v4 = vadd.f32 %v4995_v22, %v10894_v33  ;;  %v7677_v22 = vld [vmem:[%s8136_s11 + $0x18] sm:$0xff] }
 0x810   : > { %v5165_v50 = vpop.f32.mrf.mxu0 }
 0x811   : > { %v5387_v51 = vpop.f32.mrf.mxu1  ;;  %v5233_v43 = vadd.f32 %v5165_v50, %v10772_v13  ;;  %v7678_v50 = vld [vmem:[%s8136_s11 + $0x20] sm:$0xff] }
 0x813   : > { %v10989_v60 = vadd.f32 %v5387_v51, %v5233_v43  ;;  %7605 = vmatmul.msk.bf16.gmra.mxu0 %vm4036_vm5, %v10649_v5  ;;  %7651 = vmatmul.msk.bf16.gmra.mxu3 %vm4036_vm5, %v10907_v6  ;;  %v7709_v43 = vld [vmem:[%s8136_s11 + $0x19] sm:$0xff] }
 0x814   : > { %7622 = vmatmul.msk.bf16.gmra.mxu1 %vm4036_vm5, %v10666_v40 }
 0x815   : > { %v5607_v59 = vpop.f32.mrf.mxu2 }
 0x816   : > { %v10997_v9 = vadd.f32 %v5607_v59, %v5454_v11  ;;  %v4998_v53 = vpop.f32.mrf.mxu3  ;;  %v7710_v59 = vld [vmem:[%s8136_s11 + $0x21] sm:$0xff] }
 0x817   : > { %v11000_v52 = vadd.f32 %v4998_v53, %v10901_v3 }
 0x818   : > { %v5167_v47 = vpop.f32.mrf.mxu0 }
 0x819   : > { %v5389_v33 = vpop.f32.mrf.mxu1  ;;  %v5234_v13 = vadd.f32 %v5167_v47, %v10779_v12 }
 0x81a   : > { %7639 = vmatmul.msk.bf16.gmra.mxu2 %vm4036_vm5, %v10685_v30 }
 0x81b   : > { %v11003_v55 = vadd.f32 %v5389_v33, %v5234_v13 }
 0x81e   : > { %v5000_v5 = vpop.f32.mrf.mxu3 }
 0x81f   : > { %v11008_v58 = vadd.f32 %v5000_v5, %v10914_v27 }
 0x820   : > { %v5170_v40 = vpop.f32.mrf.mxu0 }
 0x821   : > { %v5392_v6 = vpop.f32.mrf.mxu1  ;;  %v5235_v3 = vadd.f32 %v5170_v40, %v10795_v44  ;;  %v12044_v40 = vld [vmem:[#allocation33_spill] sm:$0xff] }
 0x823   : > { %v11011_v18 = vadd.f32 %v5392_v6, %v5235_v3  ;;  %7606 = vmatmul.msk.bf16.gmra.mxu0 %vm4036_vm5, %v10687_v54  ;;  %7652 = vmatmul.msk.bf16.gmra.mxu3 %vm4036_vm5, %v10927_v41  ;;  %v6147_v54 = vld [vmem:[%s8136_s11 + $0x8] sm:$0xff]  ;;  %v7741_v6 = vld [vmem:[%s8136_s11 + $0x1a] sm:$0xff] }
 0x824   : > { %7623 = vmatmul.msk.bf16.gmra.mxu1 %vm4036_vm5, %v10705_v63  ;;  %v6178_v63 = vld [vmem:[%s8136_s11 + $0x1] sm:$0xff]  ;;  %v6211_v10 = vmax.f32 %v6147_v54, %v6179_v38  ;;  %v5723_v54 = vld [vmem:[#allocation3 + $0x129] sm:$0xff]  ;;  %v6212_v38 = vmax.f32 %v7677_v22, %v7709_v43 }
 0x825   : > { %v6210_v41 = vmax.f32 %v6146_v26, %v6178_v63  ;;  %v7742_v3 = vld [vmem:[%s8136_s11 + $0x22] sm:$0xff]  ;;  %v7773_v63 = vld [vmem:[%s8136_s11 + $0x30] sm:$0xff] }
 0x826   : > { %v5812_v30 = vpop.f32.mrf.mxu3 }
 0x827   : > { %v11020_v2 = vadd.f32 %v5812_v30, %v10921_v49  ;;  %v6243_v49 = vld [vmem:[%s8136_s11 + $0xa] sm:$0xff]  ;;  %v6274_v17 = vmax.f32 %v6210_v41, %v6242_v0  ;;  %v5066_v30 = vld [vmem:[#allocation3 + $0x189] sm:$0xff]  ;;  %v6213_v41 = vmax.f32 %v7678_v50, %v7710_v59 }
 0x828   : > { %v5172_v12 = vpop.f32.mrf.mxu0  ;;  %v6275_v11 = vmax.f32 %v6211_v10, %v6243_v49  ;;  %v5287_v0 = vld [vmem:[#allocation3 + $0x182] sm:$0xff] }
 0x829   : > { %v5394_v27 = vpop.f32.mrf.mxu1  ;;  %v5236_v44 = vadd.f32 %v5172_v12, %v10802_v56  ;;  %v5288_v12 = vld [vmem:[#allocation3 + $0x18a] sm:$0xff]  ;;  %v12045_v49 = vld [vmem:[#allocation29_spill] sm:$0xff] }
 0x82a   : > { %7640 = vmatmul.msk.bf16.gmra.mxu2 %vm4036_vm5, %v10715_v34 }
 0x82b   : > { %v11024_v39 = vadd.f32 %v5394_v27, %v5236_v44 }
 0x82e   : > { %v5814_v15 = vpop.f32.mrf.mxu3 }
 0x82f   : > { %v11034_v56 = vadd.f32 %v5814_v15, %v10935_v23  ;;  %v6338_v23 = vmax.f32 %v6274_v17, %v7677_v22 }
 0x830   : > { %v5175_v1 = vpop.f32.mrf.mxu0 }
 0x831   : > { %v5397_v46 = vpop.f32.mrf.mxu1  ;;  %v5237_v34 = vadd.f32 %v5175_v1, %v10815_v19  ;;  %v6339_v19 = vmax.f32 %v6275_v11, %v7678_v50  ;;  %v6402_v33 = vmax.f32 %v6338_v23, %v7709_v43  ;;  %v6276_v50 = vmax.f32 %v6212_v38, %v7741_v6  ;;  %v5511_v43 = vld [vmem:[#allocation3 + $0x1a0] sm:$0xff] }
 0x832   : > { %v6277_v23 = vmax.f32 %v6213_v41, %v7742_v3 }
 0x833   : > { %v11037_v24 = vadd.f32 %v5397_v46, %v5237_v34  ;;  %7607 = vmatmul.msk.bf16.gmra.mxu0 %vm4036_vm5, %v10717_v16  ;;  %7653 = vmatmul.msk.bf16.gmra.mxu3 %vm4036_vm5, %v5743_v28  ;;  %v6403_v13 = vmax.f32 %v6339_v19, %v7710_v59  ;;  %v6466_v27 = vmax.f32 %v6402_v33, %v7741_v6  ;;  %v7806_v19 = vld [vmem:[%s8136_s11 + $0x39] sm:$0xff] }
 0x834   : > { %7624 = vmatmul.msk.bf16.gmra.mxu1 %vm4036_vm5, %v10731_v25  ;;  %v11064_v46 = vpack.c.bf16 %v5066_v30, %v5065_v61  ;;  %v5304_v34 = vpack.c.bf16 %v5288_v12, %v5287_v0  ;;  %v5744_v28 = vpack.c.bf16 %v5723_v54, %v5722_v36  ;;  %v6340_v33 = vmax.f32 %v6276_v50, %v7773_v63  ;;  %v7776_v50 = vld [vmem:[%s8136_s11 + $0x50] sm:$0xff] }
 0x835   : > { %v6467_v44 = vmax.f32 %v6403_v13, %v7742_v3  ;;  %v6531_v17 = vmax.f32 %v6466_v27, %v7773_v63  ;;  %v7838_v27 = vld [vmem:[%s8136_s11 + $0x3a] sm:$0xff] }
 0x836   : > { %v5817_v51 = vpop.f32.mrf.mxu3 }
 0x837   : > { %v11049_v16 = vadd.f32 %v5817_v51, %v10943_v42  ;;  %v7774_v42 = vld [vmem:[%s8136_s11 + $0x38] sm:$0xff]  ;;  %v5510_v51 = vld [vmem:[#allocation3 + $0x198] sm:$0xff] }
 0x838   : > { %v5177_v53 = vpop.f32.mrf.mxu0  ;;  %v6532_v11 = vmax.f32 %v6467_v44, %v7774_v42  ;;  %v6341_v13 = vmax.f32 %v6277_v23, %v7774_v42  ;;  %v12046_v44 = vld [vmem:[#allocation35_spill] sm:$0xff]  ;;  %v5527_v3 = vpack.c.bf16 %v5511_v43, %v5510_v51  ;;  %v6215_v61 = vmax.f32 %v7774_v42, %v7806_v19  ;;  %v5724_v43 = vld [vmem:[#allocation3 + $0x139] sm:$0xff] }
 0x839   : > { %v5399_v47 = vpop.f32.mrf.mxu1  ;;  %v5238_v25 = vadd.f32 %v5177_v53, %v10822_v32  ;;  %v12047_v23 = vld [vmem:[#allocation83_spill] sm:$0xff] }
 0x83a   : > { %7641 = vmatmul.msk.bf16.gmra.mxu2 %vm4036_vm5, %v12044_v40  ;;  %v6279_v42 = vmax.f32 %v6215_v61, %v7838_v27 }
 0x83b   : > { %v11052_v5 = vadd.f32 %v5399_v47, %v5238_v25  ;;  %v6596_v47 = vmax.f32 %v6532_v11, %v7806_v19  ;;  %v7837_v25 = vld [vmem:[%s8136_s11 + $0x32] sm:$0xff]  ;;  %v7775_v11 = vld [vmem:[%s8136_s11 + $0x48] sm:$0xff] }
 0x83d   : > { %v6660_v38 = vmax.f32 %v6596_v47, %v7838_v27  ;;  %v7807_v47 = vld [vmem:[%s8136_s11 + $0x49] sm:$0xff] }
 0x83e   : > { %v5819_v26 = vpop.f32.mrf.mxu3 }
 0x83f   : > { %v11061_v15 = vadd.f32 %v5819_v26, %v10955_v62  ;;  %v7805_v62 = vld [vmem:[%s8136_s11 + $0x31] sm:$0xff] }
 0x840   : > { %v5180_v32 = vpop.f32.mrf.mxu0  ;;  %v6595_v59 = vmax.f32 %v6531_v17, %v7805_v62  ;;  %v6404_v41 = vmax.f32 %v6340_v33, %v7805_v62  ;;  %v7808_v33 = vld [vmem:[%s8136_s11 + $0x51] sm:$0xff] }
 0x841   : > { %v5402_v10 = vpop.f32.mrf.mxu1  ;;  %v5239_v1 = vadd.f32 %v5180_v32, %v12045_v49  ;;  %v6405_v32 = vmax.f32 %v6341_v13, %v7806_v19  ;;  %v12048_v19 = vld [vmem:[#allocation86_spill] sm:$0xff] }
 0x842   : > { %v6659_v26 = vmax.f32 %v6595_v59, %v7837_v25 }
 0x843   : > { %v11066_v22 = vadd.f32 %v5402_v10, %v5239_v1  ;;  %7608 = vmatmul.msk.bf16.gmra.mxu0 %vm4036_vm5, %v11064_v46  ;;  %7654 = vmatmul.msk.bf16.gmra.mxu3 %vm4036_vm5, %v5744_v28  ;;  %v6214_v10 = vmax.f32 %v7773_v63, %v7805_v62  ;;  %v6468_v1 = vmax.f32 %v6404_v41, %v7837_v25  ;;  %v12049_v41 = vld [vmem:[#allocation51_spill] sm:$0xff] }
 0x844   : > { %7625 = vmatmul.msk.bf16.gmra.mxu1 %vm4036_vm5, %v5304_v34  ;;  %v6691_v49 = vpack.c.bf16 %v6660_v38, %v6659_v26  ;;  %v6469_v34 = vmax.f32 %v6405_v32, %v7838_v27  ;;  %v7839_v26 = vld [vmem:[%s8136_s11 + $0x4a] sm:$0xff]  ;;  %v7840_v38 = vld [vmem:[%s8136_s11 + $0x52] sm:$0xff] }
 0x845   : > { %v6278_v63 = vmax.f32 %v6214_v10, %v7837_v25 }
 0x846   : > { %v5822_v53 = vpop.f32.mrf.mxu3 }
 0x847   : > { %v11076_v12 = vadd.f32 %v5822_v53, %v10963_v48  ;;  %v5725_v48 = vld [vmem:[#allocation3 + $0x141] sm:$0xff]  ;;  %v6533_v53 = vmax.f32 %v6468_v1, %v7775_v11  ;;  %v6342_v13 = vmax.f32 %v6278_v63, %v7775_v11 }
 0x848   : > { %v5182_v40 = vpop.f32.mrf.mxu0  ;;  %v5745_v59 = vpack.c.bf16 %v5725_v48, %v5724_v43  ;;  %v7778_v43 = vld [vmem:[%s8136_s11 + $0x68] sm:$0xff] }
 0x849   : > { %v5404_v30 = vpop.f32.mrf.mxu1  ;;  %v5240_v6 = vadd.f32 %v5182_v40, %v12046_v44  ;;  %v6343_v40 = vmax.f32 %v6279_v42, %v7776_v50  ;;  %v6597_v25 = vmax.f32 %v6533_v53, %v7807_v47  ;;  %v6406_v10 = vmax.f32 %v6342_v13, %v7807_v47  ;;  %v12050_v53 = vld [vmem:[#allocation36_spill] sm:$0xff] }
 0x84a   : > { %7642 = vmatmul.msk.bf16.gmra.mxu2 %vm4036_vm5, %v5527_v3  ;;  %v5726_v13 = vld [vmem:[#allocation3 + $0x151] sm:$0xff] }
 0x84b   : > { %v11080_v54 = vadd.f32 %v5404_v30, %v5240_v6  ;;  %v6407_v61 = vmax.f32 %v6343_v40, %v7808_v33  ;;  %v6470_v1 = vmax.f32 %v6406_v10, %v7839_v26 }
 0x84e   : > { %v5824_v0 = vpop.f32.mrf.mxu3 }
 0x84f   : > { %v11084_v17 = vadd.f32 %v5824_v0, %v10975_v8  ;;  %v6534_v8 = vmax.f32 %v6469_v34, %v7776_v50  ;;  %v6471_v34 = vmax.f32 %v6407_v61, %v7840_v38 }
 0x850   : > { %v5185_v36 = vpop.f32.mrf.mxu0 }
 0x851   : > { %v5407_v28 = vpop.f32.mrf.mxu1  ;;  %v5241_v51 = vadd.f32 %v5185_v36, %v12047_v23  ;;  %v6598_v27 = vmax.f32 %v6534_v8, %v7808_v33  ;;  %v5727_v23 = vld [vmem:[#allocation3 + $0x159] sm:$0xff] }
 0x852   : > { %v5746_v40 = vpack.c.bf16 %v5727_v23, %v5726_v13 }
 0x853   : > { %v11089_v62 = vadd.f32 %v5407_v28, %v5241_v51  ;;  %7661 = vmatmul.msk.bf16.vlgmr.msrb.gmra.mxu0 %vm4036_vm5, %v12048_v19  ;;  %7655 = vmatmul.msk.bf16.gmra.mxu3 %vm4036_vm5, %v5745_v59  ;;  %v6662_v48 = vmax.f32 %v6598_v27, %v7840_v38  ;;  %v7777_v51 = vld [vmem:[%s8136_s11 + $0x60] sm:$0xff]  ;;  %v6217_v59 = vmax.f32 %v7776_v50, %v7808_v33 }
 0x854   : > { %7869 = vmatmul.msk.bf16.vlgmr.msrb.gmra.mxu1 %vm413_vm1, %v6691_v49  ;;  %v6661_v49 = vmax.f32 %v6597_v25, %v7839_v26  ;;  %v6536_v25 = vmax.f32 %v6471_v34, %v7778_v43 }
 0x856   : > { %v5827_v30 = vpop.f32.mrf.mxu3  ;;  %v6692_v28 = vpack.c.bf16 %v6662_v48, %v6661_v49  ;;  %v7842_v48 = vld [vmem:[%s8136_s11 + $0x6a] sm:$0xff] }
 0x857   : > { %v11098_v3 = vadd.f32 %v5827_v30, %v10983_v57  ;;  %v6216_v57 = vmax.f32 %v7775_v11, %v7807_v47  ;;  %v6535_v30 = vmax.f32 %v6470_v1, %v7777_v51  ;;  %v7809_v11 = vld [vmem:[%s8136_s11 + $0x61] sm:$0xff]  ;;  %v6281_v47 = vmax.f32 %v6217_v59, %v7840_v38 }
 0x858   : > { %v5187_v44 = vpop.f32.mrf.mxu0  ;;  %v12052_v1 = vld [vmem:[#allocation43_spill] sm:$0xff]  ;;  %v6218_v59 = vmax.f32 %v7777_v51, %v7809_v11 }
 0x859   : > { %v5409_v6 = vpop.f32.mrf.mxu1  ;;  %v5242_v32 = vadd.f32 %v5187_v44, %v12049_v41  ;;  %v12051_v44 = vld [vmem:[#allocation87_spill] sm:$0xff]  ;;  %v6280_v50 = vmax.f32 %v6216_v57, %v7839_v26  ;;  %v6599_v33 = vmax.f32 %v6535_v30, %v7809_v11  ;;  %v6345_v10 = vmax.f32 %v6281_v47, %v7778_v43 }
 0x85a   : > { %v7841_v41 = vld [vmem:[%s8136_s11 + $0x62] sm:$0xff]  ;;  %v5929_v57 = vld [vmem:[#allocation3 + $0x6a] sm:$0xff] }
 0x85b   : > { %v11103_v0 = vadd.f32 %v5409_v6, %v5242_v32  ;;  %v6344_v32 = vmax.f32 %v6280_v50, %v7777_v51  ;;  %v7780_v50 = vld [vmem:[%s8136_s11 + $0x80] sm:$0xff] }
 0x85d   : > { %v6408_v38 = vmax.f32 %v6344_v32, %v7809_v11 }
 0x85e   : > { %v5829_v36 = vpop.f32.mrf.mxu3 }
 0x85f   : > { %v11108_v19 = vadd.f32 %v5829_v36, %v10997_v9  ;;  %v7810_v9 = vld [vmem:[%s8136_s11 + $0x69] sm:$0xff]  ;;  %v6663_v36 = vmax.f32 %v6599_v33, %v7841_v41 }
 0x860   : > { %v5190_v63 = vpop.f32.mrf.mxu0  ;;  %v6600_v6 = vmax.f32 %v6536_v25, %v7810_v9  ;;  %v6409_v23 = vmax.f32 %v6345_v10, %v7810_v9  ;;  %v5928_v25 = vld [vmem:[#allocation3 + $0x62] sm:$0xff]  ;;  %v6282_v10 = vmax.f32 %v6218_v59, %v7841_v41 }
 0x861   : > { %v5412_v42 = vpop.f32.mrf.mxu1  ;;  %v5243_v8 = vadd.f32 %v5190_v63, %v12050_v53  ;;  %v6219_v63 = vmax.f32 %v7778_v43, %v7810_v9  ;;  %v5729_v53 = vld [vmem:[#allocation3 + $0x171] sm:$0xff]  ;;  %v5958_v33 = vpack.c.bf16 %v5929_v57, %v5928_v25  ;;  %v7781_v25 = vld [vmem:[%s8136_s11 + $0x90] sm:$0xff] }
 0x862   : > { %v6664_v26 = vmax.f32 %v6600_v6, %v7842_v48  ;;  %v6473_v13 = vmax.f32 %v6409_v23, %v7842_v48  ;;  %v5728_v6 = vld [vmem:[#allocation3 + $0x169] sm:$0xff] }
 0x863   : > { %v11111_v27 = vadd.f32 %v5412_v42, %v5243_v8  ;;  %7662 = vmatmul.msk.bf16.gmra.mxu0 %vm4036_vm5, %v12051_v44  ;;  %7656 = vmatmul.msk.bf16.gmra.mxu3 %vm4036_vm5, %v5746_v40  ;;  %v6472_v8 = vmax.f32 %v6408_v38, %v7841_v41  ;;  %v7779_v44 = vld [vmem:[%s8136_s11 + $0x78] sm:$0xff]  ;;  %v5747_v32 = vpack.c.bf16 %v5729_v53, %v5728_v6  ;;  %v7844_v38 = vld [vmem:[%s8136_s11 + $0x82] sm:$0xff] }
 0x864   : > { %7870 = vmatmul.msk.bf16.gmra.mxu1 %vm413_vm1, %v6692_v28  ;;  %v6693_v42 = vpack.c.bf16 %v6664_v26, %v6663_v36  ;;  %v6283_v51 = vmax.f32 %v6219_v63, %v7842_v48  ;;  %v6538_v9 = vmax.f32 %v6473_v13, %v7780_v50  ;;  %v7843_v26 = vld [vmem:[%s8136_s11 + $0x7a] sm:$0xff] }
 0x865   : > { %v6537_v11 = vmax.f32 %v6472_v8, %v7779_v44  ;;  %v5931_v8 = vld [vmem:[#allocation3 + $0x82] sm:$0xff] }
 0x868   : > { %v5192_v61 = vpop.f32.mrf.mxu0 }
 0x869   : > { %v5414_v49 = vpop.f32.mrf.mxu1  ;;  %v5244_v34 = vadd.f32 %v5192_v61, %v12052_v1  ;;  %v7811_v61 = vld [vmem:[%s8136_s11 + $0x79] sm:$0xff]  ;;  %v6347_v1 = vmax.f32 %v6283_v51, %v7780_v50 }
 0x86b   : > { %v11122_v28 = vadd.f32 %v5414_v49, %v5244_v34  ;;  %v7812_v49 = vld [vmem:[%s8136_s11 + $0x81] sm:$0xff]  ;;  %v6601_v34 = vmax.f32 %v6537_v11, %v7811_v61 }
 0x86c   : > { %v6602_v41 = vmax.f32 %v6538_v9, %v7812_v49  ;;  %v6411_v59 = vmax.f32 %v6347_v1, %v7812_v49  ;;  %v6221_v6 = vmax.f32 %v7780_v50, %v7812_v49  ;;  %v7814_v50 = vld [vmem:[%s8136_s11 + $0x99] sm:$0xff] }
 0x86e   : > { %v6666_v53 = vmax.f32 %v6602_v41, %v7844_v38 }
 0x870   : > { %v5195_v40 = vpop.f32.mrf.mxu0 }
 0x871   : > { %v5417_v30 = vpop.f32.mrf.mxu1  ;;  %v5245_v47 = vadd.f32 %v5195_v40, %v10897_v20  ;;  %v6346_v20 = vmax.f32 %v6282_v10, %v7779_v44  ;;  %v6475_v40 = vmax.f32 %v6411_v59, %v7844_v38  ;;  %v7846_v59 = vld [vmem:[%s8136_s11 + $0x9a] sm:$0xff] }
 0x873   : > { %v11127_v43 = vadd.f32 %v5417_v30, %v5245_v47  ;;  %7663 = vmatmul.msk.bf16.gmra.mxu0 %vm4036_vm5, %v5958_v33  ;;  %7657 = vmatmul.msk.bf16.gmra.mxu3 %vm4036_vm5, %v5747_v32  ;;  %v6410_v57 = vmax.f32 %v6346_v20, %v7811_v61  ;;  %v7782_v47 = vld [vmem:[%s8136_s11 + $0x98] sm:$0xff]  ;;  %v6220_v33 = vmax.f32 %v7779_v44, %v7811_v61 }
 0x874   : > { %7871 = vmatmul.msk.bf16.gmra.mxu1 %vm413_vm1, %v6693_v42  ;;  %v6665_v42 = vmax.f32 %v6601_v34, %v7843_v26  ;;  %v6540_v20 = vmax.f32 %v6475_v40, %v7782_v47  ;;  %v7813_v34 = vld [vmem:[%s8136_s11 + $0x91] sm:$0xff]  ;;  %v6285_v61 = vmax.f32 %v6221_v6, %v7844_v38 }
 0x875   : > { %v6474_v13 = vmax.f32 %v6410_v57, %v7843_v26  ;;  %v6284_v44 = vmax.f32 %v6220_v33, %v7843_v26  ;;  %v6222_v40 = vmax.f32 %v7781_v25, %v7813_v34  ;;  %v5733_v6 = vld [vmem:[#allocation3 + $0x1a1] sm:$0xff] }
 0x876   : > { %v6694_v30 = vpack.c.bf16 %v6666_v53, %v6665_v42  ;;  %v6604_v41 = vmax.f32 %v6540_v20, %v7814_v50 }
 0x877   : > { %v6539_v9 = vmax.f32 %v6474_v13, %v7781_v25 }
 0x878   : > { %v5197_v48 = vpop.f32.mrf.mxu0  ;;  %v6668_v26 = vmax.f32 %v6604_v41, %v7846_v59 }
 0x879   : > { %v5419_v36 = vpop.f32.mrf.mxu1  ;;  %v5246_v23 = vadd.f32 %v5197_v48, %v10904_v29  ;;  %v5930_v29 = vld [vmem:[#allocation3 + $0x7a] sm:$0xff]  ;;  %v6603_v49 = vmax.f32 %v6539_v9, %v7813_v34  ;;  %v6348_v48 = vmax.f32 %v6284_v44, %v7781_v25 }
 0x87a   : > { %v5959_v11 = vpack.c.bf16 %v5931_v8, %v5930_v29  ;;  %v7784_v9 = vld [vmem:[%s8136_s11 + $0xb0] sm:$0xff] }
 0x87b   : > { %v11137_v63 = vadd.f32 %v5419_v36, %v5246_v23  ;;  %v6349_v36 = vmax.f32 %v6285_v61, %v7782_v47  ;;  %v6412_v38 = vmax.f32 %v6348_v48, %v7813_v34  ;;  %v5732_v61 = vld [vmem:[#allocation3 + $0x199] sm:$0xff] }
 0x87c   : > { %v7815_v48 = vld [vmem:[%s8136_s11 + $0xa9] sm:$0xff] }
 0x87d   : > { %v6413_v13 = vmax.f32 %v6349_v36, %v7814_v50  ;;  %v7816_v36 = vld [vmem:[%s8136_s11 + $0xb1] sm:$0xff] }
 0x880   : > { %v5200_v32 = vpop.f32.mrf.mxu0 }
 0x881   : > { %v5422_v10 = vpop.f32.mrf.mxu1  ;;  %v5247_v51 = vadd.f32 %v5200_v32, %v10917_v14  ;;  %v7845_v14 = vld [vmem:[%s8136_s11 + $0x92] sm:$0xff] }
 0x882   : > { %v6667_v53 = vmax.f32 %v6603_v49, %v7845_v14  ;;  %v6476_v32 = vmax.f32 %v6412_v38, %v7845_v14  ;;  %v5749_v49 = vpack.c.bf16 %v5733_v6, %v5732_v61  ;;  %v6286_v41 = vmax.f32 %v6222_v40, %v7845_v14  ;;  %v5935_v6 = vld [vmem:[#allocation3 + $0xb2] sm:$0xff] }
 0x883   : > { %v11142_v1 = vadd.f32 %v5422_v10, %v5247_v51  ;;  %7664 = vmatmul.msk.bf16.gmra.mxu0 %vm4036_vm5, %v5959_v11  ;;  %7658 = vmatmul.msk.bf16.gmra.mxu3 %vm4036_vm5, %v11064_v46  ;;  %v5933_v46 = vld [vmem:[#allocation3 + $0x9a] sm:$0xff]  ;;  %v6477_v10 = vmax.f32 %v6413_v13, %v7846_v59  ;;  %v5932_v11 = vld [vmem:[#allocation3 + $0x92] sm:$0xff] }
 0x884   : > { %7872 = vmatmul.msk.bf16.gmra.mxu1 %vm413_vm1, %v6694_v30  ;;  %v6223_v30 = vmax.f32 %v7782_v47, %v7814_v50  ;;  %v6695_v33 = vpack.c.bf16 %v6668_v26, %v6667_v53  ;;  %v5960_v44 = vpack.c.bf16 %v5933_v46, %v5932_v11  ;;  %v7847_v53 = vld [vmem:[%s8136_s11 + $0xaa] sm:$0xff]  ;;  %v7848_v26 = vld [vmem:[%s8136_s11 + $0xb2] sm:$0xff] }
 0x885   : > { %v6542_v50 = vmax.f32 %v6477_v10, %v7784_v9  ;;  %v7786_v11 = vld [vmem:[%s8136_s11 + $0xc8] sm:$0xff] }
 0x886   : > { %v6287_v25 = vmax.f32 %v6223_v30, %v7846_v59 }
 0x887   : > { %v6606_v14 = vmax.f32 %v6542_v50, %v7816_v36 }
 0x888   : > { %v5202_v23 = vpop.f32.mrf.mxu0 }
 0x889   : > { %v5424_v57 = vpop.f32.mrf.mxu1  ;;  %v5248_v42 = vadd.f32 %v5202_v23, %v10924_v21  ;;  %v7783_v21 = vld [vmem:[%s8136_s11 + $0xa8] sm:$0xff]  ;;  %v6351_v23 = vmax.f32 %v6287_v25, %v7784_v9 }
 0x88a   : > { %v6541_v34 = vmax.f32 %v6476_v32, %v7783_v21 }
 0x88b   : > { %v11153_v8 = vadd.f32 %v5424_v57, %v5248_v42  ;;  %v6415_v46 = vmax.f32 %v6351_v23, %v7816_v36  ;;  %v7817_v23 = vld [vmem:[%s8136_s11 + $0xc1] sm:$0xff] }
 0x88c   : > { %v6605_v57 = vmax.f32 %v6541_v34, %v7815_v48 }
 0x88d   : > { %v6479_v10 = vmax.f32 %v6415_v46, %v7848_v26 }
 0x88e   : > { %v6669_v30 = vmax.f32 %v6605_v57, %v7847_v53 }
 0x88f   : > { %v6544_v50 = vmax.f32 %v6479_v10, %v7786_v11 }
 0x890   : > { %v5205_v29 = vpop.f32.mrf.mxu0 }
 0x891   : > { %v5427_v51 = vpop.f32.mrf.mxu1  ;;  %v5249_v20 = vadd.f32 %v5205_v29, %v10938_v45  ;;  %v6350_v45 = vmax.f32 %v6286_v41, %v7783_v21 }
 0x893   : > { %v11158_v47 = vadd.f32 %v5427_v51, %v5249_v20  ;;  %7665 = vmatmul.msk.bf16.gmra.mxu0 %vm4036_vm5, %v5960_v44  ;;  %7659 = vmatmul.msk.bf16.gmra.mxu3 %vm4036_vm5, %v5749_v49  ;;  %v6414_v13 = vmax.f32 %v6350_v45, %v7815_v48  ;;  %v7785_v51 = vld [vmem:[%s8136_s11 + $0xc0] sm:$0xff]  ;;  %v6224_v20 = vmax.f32 %v7783_v21, %v7815_v48 }
 0x894   : > { %7873 = vmatmul.msk.bf16.gmra.mxu1 %vm413_vm1, %v6695_v33  ;;  %v6670_v33 = vmax.f32 %v6606_v14, %v7848_v26  ;;  %v6225_v44 = vmax.f32 %v7784_v9, %v7816_v36  ;;  %v7818_v9 = vld [vmem:[%s8136_s11 + $0xc9] sm:$0xff]  ;;  %v6226_v10 = vmax.f32 %v7785_v51, %v7817_v23 }
 0x895   : > { %v6478_v32 = vmax.f32 %v6414_v13, %v7847_v53  ;;  %v6288_v57 = vmax.f32 %v6224_v20, %v7847_v53  ;;  %v6608_v36 = vmax.f32 %v6544_v50, %v7818_v9  ;;  %v7849_v14 = vld [vmem:[%s8136_s11 + $0xc2] sm:$0xff]  ;;  %v7850_v13 = vld [vmem:[%s8136_s11 + $0xca] sm:$0xff] }
 0x896   : > { %v6696_v29 = vpack.c.bf16 %v6670_v33, %v6669_v30  ;;  %v6289_v21 = vmax.f32 %v6225_v44, %v7848_v26  ;;  %v5937_v26 = vld [vmem:[#allocation3 + $0xca] sm:$0xff] }
 0x897   : > { %v6543_v34 = vmax.f32 %v6478_v32, %v7785_v51 }
 0x898   : > { %v5207_v59 = vpop.f32.mrf.mxu0 }
 0x899   : > { %v5429_v42 = vpop.f32.mrf.mxu1  ;;  %v5250_v38 = vadd.f32 %v5207_v59, %v10946_v35  ;;  %v5934_v35 = vld [vmem:[#allocation3 + $0xaa] sm:$0xff]  ;;  %v6607_v48 = vmax.f32 %v6543_v34, %v7817_v23  ;;  %v6352_v59 = vmax.f32 %v6288_v57, %v7785_v51  ;;  %v6290_v57 = vmax.f32 %v6226_v10, %v7849_v14  ;;  %v5939_v10 = vld [vmem:[#allocation3 + $0xe2] sm:$0xff] }
 0x89a   : > { %v5961_v25 = vpack.c.bf16 %v5935_v6, %v5934_v35  ;;  %v6672_v6 = vmax.f32 %v6608_v36, %v7850_v13 }
 0x89b   : > { %v11168_v40 = vadd.f32 %v5429_v42, %v5250_v38  ;;  %v6353_v42 = vmax.f32 %v6289_v21, %v7786_v11  ;;  %v6671_v30 = vmax.f32 %v6607_v48, %v7849_v14  ;;  %v6416_v32 = vmax.f32 %v6352_v59, %v7817_v23  ;;  %v7819_v23 = vld [vmem:[%s8136_s11 + $0xd9] sm:$0xff] }
 0x89d   : > { %v6417_v53 = vmax.f32 %v6353_v42, %v7818_v9  ;;  %v6697_v20 = vpack.c.bf16 %v6672_v6, %v6671_v30  ;;  %v6480_v44 = vmax.f32 %v6416_v32, %v7849_v14 }
 0x8a0   : > { %v5210_v61 = vpop.f32.mrf.mxu0 }
 0x8a1   : > { %v5432_v49 = vpop.f32.mrf.mxu1  ;;  %v5251_v41 = vadd.f32 %v5210_v61, %v10958_v37  ;;  %v6481_v61 = vmax.f32 %v6417_v53, %v7850_v13 }
 0x8a3   : > { %v11173_v45 = vadd.f32 %v5432_v49, %v5251_v41  ;;  %7666 = vmatmul.msk.bf16.gmra.mxu0 %vm4036_vm5, %v5961_v25  ;;  %v5936_v41 = vld [vmem:[#allocation3 + $0xc2] sm:$0xff] }
 0x8a4   : > { %7874 = vmatmul.msk.bf16.gmra.mxu1 %vm413_vm1, %v6696_v29  ;;  %v6227_v29 = vmax.f32 %v7786_v11, %v7818_v9  ;;  %v7787_v25 = vld [vmem:[%s8136_s11 + $0xd8] sm:$0xff]  ;;  %v5962_v50 = vpack.c.bf16 %v5937_v26, %v5936_v41  ;;  %v7820_v9 = vld [vmem:[%s8136_s11 + $0xe1] sm:$0xff] }
 0x8a5   : > { %v6545_v51 = vmax.f32 %v6480_v44, %v7787_v25  ;;  %v6354_v36 = vmax.f32 %v6290_v57, %v7787_v25 }
 0x8a6   : > { %v6291_v21 = vmax.f32 %v6227_v29, %v7850_v13  ;;  %v7852_v13 = vld [vmem:[%s8136_s11 + $0xe2] sm:$0xff] }
 0x8a7   : > { %v6609_v42 = vmax.f32 %v6545_v51, %v7819_v23  ;;  %v6418_v30 = vmax.f32 %v6354_v36, %v7819_v23 }
 0x8a8   : > { %v5212_v37 = vpop.f32.mrf.mxu0 }
 0x8a9   : > { %v5434_v38 = vpop.f32.mrf.mxu1  ;;  %v5252_v46 = vadd.f32 %v5212_v37, %v10966_v7  ;;  %v7788_v7 = vld [vmem:[%s8136_s11 + $0xe0] sm:$0xff] }
 0x8aa   : > { %v6546_v11 = vmax.f32 %v6481_v61, %v7788_v7  ;;  %v6355_v59 = vmax.f32 %v6291_v21, %v7788_v7  ;;  %v7789_v61 = vld [vmem:[%s8136_s11 + $0xf0] sm:$0xff]  ;;  %v6229_v41 = vmax.f32 %v7788_v7, %v7820_v9  ;;  %v7822_v7 = vld [vmem:[%s8136_s11 + $0xf9] sm:$0xff] }
 0x8ab   : > { %v11182_v33 = vadd.f32 %v5434_v38, %v5252_v46  ;;  %v7851_v38 = vld [vmem:[%s8136_s11 + $0xda] sm:$0xff] }
 0x8ac   : > { %v6419_v6 = vmax.f32 %v6355_v59, %v7820_v9  ;;  %v6673_v53 = vmax.f32 %v6609_v42, %v7851_v38  ;;  %v6482_v29 = vmax.f32 %v6418_v30, %v7851_v38  ;;  %v7821_v59 = vld [vmem:[%s8136_s11 + $0xf1] sm:$0xff]  ;;  %v7854_v30 = vld [vmem:[%s8136_s11 + $0xfa] sm:$0xff] }
 0x8ae   : > { %v6547_v51 = vmax.f32 %v6482_v29, %v7789_v61  ;;  %v5941_v29 = vld [vmem:[#allocation3 + $0xfa] sm:$0xff] }
 0x8b0   : > { %v5215_v49 = vpop.f32.mrf.mxu0 }
 0x8b1   : > { %v5437_v35 = vpop.f32.mrf.mxu1  ;;  %v5253_v34 = vadd.f32 %v5215_v49, %v10978_v31  ;;  %v6610_v31 = vmax.f32 %v6546_v11, %v7820_v9  ;;  %v7790_v49 = vld [vmem:[%s8136_s11 + $0xf8] sm:$0xff] }
 0x8b3   : > { %v11187_v48 = vadd.f32 %v5437_v35, %v5253_v34  ;;  %7667 = vmatmul.msk.bf16.gmra.mxu0 %vm4036_vm5, %v5962_v50  ;;  %v6674_v26 = vmax.f32 %v6610_v31, %v7852_v13  ;;  %v6228_v35 = vmax.f32 %v7787_v25, %v7819_v23  ;;  %v6293_v25 = vmax.f32 %v6229_v41, %v7852_v13  ;;  %v7853_v31 = vld [vmem:[%s8136_s11 + $0xf2] sm:$0xff] }
 0x8b4   : > { %7875 = vmatmul.msk.bf16.gmra.mxu1 %vm413_vm1, %v6697_v20  ;;  %v6483_v20 = vmax.f32 %v6419_v6, %v7852_v13  ;;  %v6611_v23 = vmax.f32 %v6547_v51, %v7821_v59 }
 0x8b5   : > { %v6698_v44 = vpack.c.bf16 %v6674_v26, %v6673_v53  ;;  %v6292_v42 = vmax.f32 %v6228_v35, %v7851_v38 }
 0x8b6   : > { %v6548_v11 = vmax.f32 %v6483_v20, %v7790_v49  ;;  %v6675_v53 = vmax.f32 %v6611_v23, %v7853_v31  ;;  %v6230_v20 = vmax.f32 %v7789_v61, %v7821_v59  ;;  %v7824_v23 = vld [vmem:[%s8136_s11 + $0x111] sm:$0xff] }
 0x8b8   : > { %v5217_v37 = vpop.f32.mrf.mxu0  ;;  %v6612_v9 = vmax.f32 %v6548_v11, %v7822_v7  ;;  %v11219_v11 = vld [vmem:[%s11505_s9] ss:$0 sm:$0xff] }
 0x8b9   : > { %v5439_v14 = vpop.f32.mrf.mxu1  ;;  %v5254_v46 = vadd.f32 %v5217_v37, %v10986_v4  ;;  %v5938_v4 = vld [vmem:[#allocation3 + $0xda] sm:$0xff]  ;;  %v6356_v37 = vmax.f32 %v6292_v42, %v7789_v61 }
 0x8ba   : > { %v5963_v21 = vpack.c.bf16 %v5939_v10, %v5938_v4  ;;  %v6676_v10 = vmax.f32 %v6612_v9, %v7854_v30 }
 0x8bb   : > { %v11196_v32 = vadd.f32 %v5439_v14, %v5254_v46  ;;  %v6357_v14 = vmax.f32 %v6293_v25, %v7790_v49  ;;  %v6420_v38 = vmax.f32 %v6356_v37, %v7821_v59 }
 0x8bc   : > { %v6699_v35 = vpack.c.bf16 %v6676_v10, %v6675_v53  ;;  %v7855_v53 = vld [vmem:[%s8136_s11 + $0x10a] sm:$0xff]  ;;  %v7856_v10 = vld [vmem:[%s8136_s11 + $0x112] sm:$0xff] }
 0x8bd   : > { %v6421_v13 = vmax.f32 %v6357_v14, %v7822_v7  ;;  %v6484_v41 = vmax.f32 %v6420_v38, %v7853_v31 }
 0x8c0   : > { %v5220_v34 = vpop.f32.mrf.mxu0 }
 0x8c1   : > { %v5442_v50 = vpop.f32.mrf.mxu1  ;;  %v5255_v57 = vadd.f32 %v5220_v34, %v11000_v52  ;;  %v6485_v34 = vmax.f32 %v6421_v13, %v7854_v30 }
 0x8c3   : > { %v11201_v36 = vadd.f32 %v5442_v50, %v5255_v57  ;;  %7668 = vmatmul.msk.bf16.gmra.mxu0 %vm4036_vm5, %v5963_v21  ;;  %v7791_v57 = vld [vmem:[%s8136_s11 + $0x108] sm:$0xff]  ;;  %v7792_v21 = vld [vmem:[%s8136_s11 + $0x110] sm:$0xff] }
 0x8c4   : > { %7876 = vmatmul.msk.bf16.gmra.mxu1 %vm413_vm1, %v6698_v44  ;;  %v6231_v44 = vmax.f32 %v7790_v49, %v7822_v7  ;;  %v6294_v49 = vmax.f32 %v6230_v20, %v7853_v31  ;;  %v6549_v25 = vmax.f32 %v6484_v41, %v7791_v57  ;;  %v6550_v7 = vmax.f32 %v6485_v34, %v7792_v21  ;;  %v11235_v20 = vpop.f32.mrf.mxu2  ;;  %v11237_v34 = vpop.f32.mrf.mxu3 }
 0x8c6   : > { %v6295_v59 = vmax.f32 %v6231_v44, %v7854_v30  ;;  %v6358_v37 = vmax.f32 %v6294_v49, %v7791_v57 }
 0x8c8   : > { %v5222_v52 = vpop.f32.mrf.mxu0  ;;  %v6359_v14 = vmax.f32 %v6295_v59, %v7792_v21  ;;  %v7793_v59 = vld [vmem:[%s8136_s11 + $0x120] sm:$0xff] }
 0x8c9   : > { %v5444_v46 = vpop.f32.mrf.mxu1  ;;  %v5256_v6 = vadd.f32 %v5222_v52, %v11008_v58  ;;  %v5940_v58 = vld [vmem:[#allocation3 + $0xf2] sm:$0xff] }
 0x8ca   : > { %v5964_v61 = vpack.c.bf16 %v5941_v29, %v5940_v58  ;;  %v6423_v29 = vmax.f32 %v6359_v14, %v7824_v23 }
 0x8cb   : > { %v11210_v26 = vadd.f32 %v5444_v46, %v5256_v6  ;;  %v6614_v46 = vmax.f32 %v6550_v7, %v7824_v23 }
 0x8cd   : > { %v6678_v41 = vmax.f32 %v6614_v46, %v7856_v10 }
 0x8d0   : > { %v6034_v50 = vpop.f32.mrf.mxu0 }
 0x8d1   : > { %v6768_v4 = vpop.f32.mrf.mxu1  ;;  %v6114_v51 = vadd.f32 %v6034_v50, %v11020_v2  ;;  %v7823_v2 = vld [vmem:[%s8136_s11 + $0x109] sm:$0xff] }
 0x8d2   : > { %v6613_v52 = vmax.f32 %v6549_v25, %v7823_v2  ;;  %v6422_v13 = vmax.f32 %v6358_v37, %v7823_v2  ;;  %v6233_v25 = vmax.f32 %v7792_v21, %v7824_v23  ;;  %v5942_v37 = vld [vmem:[#allocation3 + $0x10a] sm:$0xff]  ;;  %v7826_v23 = vld [vmem:[%s8136_s11 + $0x129] sm:$0xff] }
 0x8d3   : > { %v6848_v42 = vadd.f32 %v6768_v4, %v6114_v51  ;;  %7669 = vmatmul.msk.bf16.gmra.mxu0 %vm4036_vm5, %v5964_v61  ;;  %v5943_v4 = vld [vmem:[#allocation3 + $0x112] sm:$0xff]  ;;  %v6487_v51 = vmax.f32 %v6423_v29, %v7856_v10 }
 0x8d4   : > { %7877 = vmatmul.msk.bf16.gmra.mxu1 %vm413_vm1, %v6699_v35  ;;  %v6677_v35 = vmax.f32 %v6613_v52, %v7855_v53  ;;  %v6486_v58 = vmax.f32 %v6422_v13, %v7855_v53  ;;  %v11252_v13 = vpop.f32.mrf.mxu3 }
 0x8d5   : > { %v6884_v9 = vadd.f32 %v11219_v11, %v6848_v42  ;;  %v6232_v42 = vmax.f32 %v7791_v57, %v7823_v2  ;;  %v7825_v57 = vld [vmem:[%s8136_s11 + $0x121] sm:$0xff]  ;;  %v6297_v2 = vmax.f32 %v6233_v25, %v7856_v10 }
 0x8d6   : > { %v6700_v49 = vpack.c.bf16 %v6678_v41, %v6677_v35  ;;  %v6551_v52 = vmax.f32 %v6486_v58, %v7793_v59  ;;  %v7857_v35 = vld [vmem:[%s8136_s11 + $0x122] sm:$0xff] }
 0x8d7   : > { %v6916_v31 = vmax.f32 %v6884_v9, 0.0  ;;  %v6296_v21 = vmax.f32 %v6232_v42, %v7855_v53 }
 0x8d8   : > { %v6036_v30 = vpop.f32.mrf.mxu0 }
 0x8d9   : > { %v6770_v6 = vpop.f32.mrf.mxu1  ;;  %6949 = vst.msk [vmem:[%s11230_s29] sm:$0xff] %vm6948_vm7, %v6916_v31  ;;  %v6115_v38 = vadd.f32 %v6036_v30, %v11034_v56  ;;  %v7794_v56 = vld [vmem:[%s8136_s11 + $0x128] sm:$0xff]  ;;  %v5965_v31 = vpack.c.bf16 %v5943_v4, %v5942_v37  ;;  %v6360_v41 = vmax.f32 %v6296_v21, %v7793_v59  ;;  %v6234_v37 = vmax.f32 %v7793_v59, %v7825_v57 }
 0x8da   : > { %v6552_v46 = vmax.f32 %v6487_v51, %v7794_v56  ;;  %v7858_v51 = vld [vmem:[%s8136_s11 + $0x12a] sm:$0xff] }
 0x8db   : > { %v6849_v44 = vadd.f32 %v6770_v6, %v6115_v38  ;;  %v11249_v6 = vpop.f32.mrf.mxu2  ;;  %v6424_v42 = vmax.f32 %v6360_v41, %v7825_v57 }
 0x8dd   : > { %v6885_v50 = vadd.f32 %v11219_v11, %v6849_v44  ;;  %v6616_v44 = vmax.f32 %v6552_v46, %v7826_v23 }
 0x8df   : > { %v6917_v61 = vmax.f32 %v6885_v50, 0.0  ;;  %v6361_v50 = vmax.f32 %v6297_v2, %v7794_v56 }
 0x8e0   : > { %v6039_v7 = vpop.f32.mrf.mxu0 }
 0x8e1   : > { %v6773_v9 = vpop.f32.mrf.mxu1  ;;  %6950 = vst.msk [vmem:[%s11230_s29 + $0x8] sm:$0xff] %vm6948_vm7, %v6917_v61  ;;  %v6116_v14 = vadd.f32 %v6039_v7, %v11049_v16  ;;  %v6615_v16 = vmax.f32 %v6551_v52, %v7825_v57  ;;  %v6425_v25 = vmax.f32 %v6361_v50, %v7826_v23  ;;  %v6298_v57 = vmax.f32 %v6234_v37, %v7857_v35 }
 0x8e3   : > { %v6850_v30 = vadd.f32 %v6773_v9, %v6116_v14  ;;  %7670 = vmatmul.msk.bf16.gmra.mxu0 %vm4036_vm5, %v5965_v31  ;;  %v6679_v10 = vmax.f32 %v6615_v16, %v7857_v35  ;;  %v5945_v9 = vld [vmem:[#allocation3 + $0x12a] sm:$0xff]  ;;  %v6235_v14 = vmax.f32 %v7794_v56, %v7826_v23  ;;  %v11260_v31 = vpop.f32.mrf.mxu2  ;;  %v6489_v21 = vmax.f32 %v6425_v25, %v7858_v51 }
 0x8e4   : > { %7878 = vmatmul.msk.bf16.gmra.mxu1 %vm413_vm1, %v6700_v49  ;;  %v6680_v49 = vmax.f32 %v6616_v44, %v7858_v51  ;;  %v7795_v16 = vld [vmem:[%s8136_s11 + $0x138] sm:$0xff]  ;;  %v11264_v44 = vpop.f32.mrf.mxu3 }
 0x8e5   : > { %v6886_v38 = vadd.f32 %v11219_v11, %v6850_v30  ;;  %v6488_v30 = vmax.f32 %v6424_v42, %v7857_v35  ;;  %v6299_v23 = vmax.f32 %v6235_v14, %v7858_v51 }
 0x8e6   : > { %v6701_v46 = vpack.c.bf16 %v6680_v49, %v6679_v10 }
 0x8e7   : > { %v6918_v29 = vmax.f32 %v6886_v38, 0.0  ;;  %v5944_v38 = vld [vmem:[#allocation3 + $0x122] sm:$0xff]  ;;  %v6553_v50 = vmax.f32 %v6488_v30, %v7795_v16 }
 0x8e8   : > { %v6041_v4 = vpop.f32.mrf.mxu0  ;;  %v5966_v56 = vpack.c.bf16 %v5945_v9, %v5944_v38  ;;  %v7860_v9 = vld [vmem:[%s8136_s11 + $0x142] sm:$0xff] }
 0x8e9   : > { %v6775_v58 = vpop.f32.mrf.mxu1  ;;  %6951 = vst.msk [vmem:[%s11230_s29 + $0x10] sm:$0xff] %vm6948_vm7, %v6918_v29  ;;  %v6117_v53 = vadd.f32 %v6041_v4, %v11061_v15  ;;  %v7796_v29 = vld [vmem:[%s8136_s11 + $0x140] sm:$0xff] }
 0x8ea   : > { %v6554_v4 = vmax.f32 %v6489_v21, %v7796_v29  ;;  %v6363_v49 = vmax.f32 %v6299_v23, %v7796_v29 }
 0x8eb   : > { %v6851_v61 = vadd.f32 %v6775_v58, %v6117_v53  ;;  %v7827_v58 = vld [vmem:[%s8136_s11 + $0x139] sm:$0xff]  ;;  %v7828_v53 = vld [vmem:[%s8136_s11 + $0x141] sm:$0xff]  ;;  %v11276_v37 = vpop.f32.mrf.mxu2 }
 0x8ec   : > { %v6617_v42 = vmax.f32 %v6553_v50, %v7827_v58  ;;  %v6618_v35 = vmax.f32 %v6554_v4, %v7828_v53  ;;  %v11281_v30 = vpop.f32.mrf.mxu3  ;;  %v7797_v50 = vld [vmem:[%s8136_s11 + $0x150] sm:$0xff]  ;;  %v7798_v4 = vld [vmem:[%s8136_s11 + $0x158] sm:$0xff] }
 0x8ed   : > { %v6887_v7 = vadd.f32 %v11219_v11, %v6851_v61  ;;  %v6362_v61 = vmax.f32 %v6298_v57, %v7795_v16 }
 0x8ef   : > { %v6919_v52 = vmax.f32 %v6887_v7, 0.0  ;;  %v7859_v7 = vld [vmem:[%s8136_s11 + $0x13a] sm:$0xff] }
 0x8f0   : > { %v6044_v15 = vpop.f32.mrf.mxu0 }
 0x8f1   : > { %v6778_v2 = vpop.f32.mrf.mxu1  ;;  %6952 = vst.msk [vmem:[%s11230_s29 + $0x18] sm:$0xff] %vm6948_vm7, %v6919_v52  ;;  %v6118_v59 = vadd.f32 %v6044_v15, %v11076_v12  ;;  %v6426_v52 = vmax.f32 %v6362_v61, %v7827_v58  ;;  %v6681_v15 = vmax.f32 %v6617_v42, %v7859_v7 }
 0x8f3   : > { %v6852_v41 = vadd.f32 %v6778_v2, %v6118_v59  ;;  %7671 = vmatmul.msk.bf16.gmra.mxu0 %vm4036_vm5, %v5966_v56  ;;  %v6682_v2 = vmax.f32 %v6618_v35, %v7860_v9  ;;  %v5947_v59 = vld [vmem:[#allocation3 + $0x142] sm:$0xff]  ;;  %v6490_v56 = vmax.f32 %v6426_v52, %v7859_v7 }
 0x8f4   : > { %7879 = vmatmul.msk.bf16.gmra.mxu1 %vm413_vm1, %v6701_v46  ;;  %v6427_v46 = vmax.f32 %v6363_v49, %v7828_v53 }
 0x8f5   : > { %v6888_v10 = vadd.f32 %v11219_v11, %v6852_v41  ;;  %v6702_v41 = vpack.c.bf16 %v6682_v2, %v6681_v15 }
 0x8f6   : > { %v6491_v57 = vmax.f32 %v6427_v46, %v7860_v9  ;;  %v11295_v46 = vpop.f32.mrf.mxu3 }
 0x8f7   : > { %v6920_v12 = vmax.f32 %v6888_v10, 0.0  ;;  %v6236_v10 = vmax.f32 %v7795_v16, %v7827_v58  ;;  %v7829_v16 = vld [vmem:[%s8136_s11 + $0x151] sm:$0xff] }
 0x8f8   : > { %v6046_v51 = vpop.f32.mrf.mxu0 }
 0x8f9   : > { %v6780_v25 = vpop.f32.mrf.mxu1  ;;  %6953 = vst.msk [vmem:[%s11230_s29 + $0x20] sm:$0xff] %vm6948_vm7, %v6920_v12  ;;  %v6119_v14 = vadd.f32 %v6046_v51, %v11084_v17  ;;  %v6237_v17 = vmax.f32 %v7796_v29, %v7828_v53  ;;  %v5946_v12 = vld [vmem:[#allocation3 + $0x13a] sm:$0xff]  ;;  %v6555_v51 = vmax.f32 %v6490_v56, %v7797_v50  ;;  %v6300_v29 = vmax.f32 %v6236_v10, %v7859_v7  ;;  %v7830_v53 = vld [vmem:[%s8136_s11 + $0x159] sm:$0xff] }
 0x8fa   : > { %v5967_v35 = vpack.c.bf16 %v5947_v59, %v5946_v12  ;;  %v5678_v12 = vadd.f32 %v11235_v20, %v10989_v60  ;;  %v5948_v20 = vld [vmem:[#allocation3 + $0x152] sm:$0xff] }
 0x8fb   : > { %v6853_v21 = vadd.f32 %v6780_v25, %v6119_v14  ;;  %v6556_v25 = vmax.f32 %v6491_v57, %v7798_v4  ;;  %v11289_v14 = vpop.f32.mrf.mxu2  ;;  %v6301_v58 = vmax.f32 %v6237_v17, %v7860_v9  ;;  %v6364_v59 = vmax.f32 %v6300_v29, %v7797_v50 }
 0x8fd   : > { %v6889_v38 = vadd.f32 %v11219_v11, %v6853_v21  ;;  %v6619_v21 = vmax.f32 %v6555_v51, %v7829_v16  ;;  %v6620_v2 = vmax.f32 %v6556_v25, %v7830_v53  ;;  %v6365_v56 = vmax.f32 %v6301_v58, %v7798_v4  ;;  %v5949_v25 = vld [vmem:[#allocation3 + $0x15a] sm:$0xff] }
 0x8fe   : > { %v6428_v17 = vmax.f32 %v6364_v59, %v7829_v16  ;;  %v5900_v51 = vadd.f32 %v11237_v34, %v5678_v12  ;;  %v11309_v29 = vpop.f32.mrf.mxu3  ;;  %v7799_v59 = vld [vmem:[%s8136_s11 + $0x168] sm:$0xff]  ;;  %v5968_v34 = vpack.c.bf16 %v5949_v25, %v5948_v20 }
 0x8ff   : > { %v6921_v23 = vmax.f32 %v6889_v38, 0.0  ;;  %v7861_v38 = vld [vmem:[%s8136_s11 + $0x152] sm:$0xff] }
 0x900   : > { %v6049_v61 = vpop.f32.mrf.mxu0  ;;  %v6683_v7 = vmax.f32 %v6619_v21, %v7861_v38  ;;  %v6492_v21 = vmax.f32 %v6428_v17, %v7861_v38 }
 0x901   : > { %v6783_v49 = vpop.f32.mrf.mxu1  ;;  %6954 = vst.msk [vmem:[%s11230_s29 + $0x28] sm:$0xff] %vm6948_vm7, %v6921_v23  ;;  %v6120_v42 = vadd.f32 %v6049_v61, %v11098_v3  ;;  %v7862_v61 = vld [vmem:[%s8136_s11 + $0x15a] sm:$0xff] }
 0x902   : > { %v6684_v10 = vmax.f32 %v6620_v2, %v7862_v61 }
 0x903   : > { %v6854_v52 = vadd.f32 %v6783_v49, %v6120_v42  ;;  %7672 = vmatmul.msk.bf16.gmra.mxu0 %vm4036_vm5, %v5967_v35  ;;  %v6429_v49 = vmax.f32 %v6365_v56, %v7830_v53  ;;  %v11305_v42 = vpop.f32.mrf.mxu2  ;;  %v7800_v56 = vld [vmem:[%s8136_s11 + $0x170] sm:$0xff] }
 0x904   : > { %7880 = vmatmul.msk.bf16.gmra.mxu1 %vm413_vm1, %v6702_v41 }
 0x905   : > { %v6890_v3 = vadd.f32 %v11219_v11, %v6854_v52  ;;  %v6238_v52 = vmax.f32 %v7797_v50, %v7829_v16  ;;  %v6557_v16 = vmax.f32 %v6492_v21, %v7799_v59 }
 0x907   : > { %v6922_v15 = vmax.f32 %v6890_v3, 0.0  ;;  %v6703_v3 = vpack.c.bf16 %v6684_v10, %v6683_v7  ;;  %v7832_v7 = vld [vmem:[%s8136_s11 + $0x171] sm:$0xff] }
 0x908   : > { %v6051_v57 = vpop.f32.mrf.mxu0 }
 0x909   : > { %v6785_v23 = vpop.f32.mrf.mxu1  ;;  %6955 = vst.msk [vmem:[%s11230_s29 + $0x30] sm:$0xff] %vm6948_vm7, %v6922_v15  ;;  %v6121_v41 = vadd.f32 %v6051_v57, %v11108_v19  ;;  %v6239_v19 = vmax.f32 %v7798_v4, %v7830_v53  ;;  %v6493_v15 = vmax.f32 %v6429_v49, %v7862_v61 }
 0x90b   : > { %v6855_v9 = vadd.f32 %v6785_v23, %v6121_v41  ;;  %v6302_v23 = vmax.f32 %v6238_v52, %v7861_v38  ;;  %v6303_v50 = vmax.f32 %v6239_v19, %v7862_v61  ;;  %v6558_v53 = vmax.f32 %v6493_v15, %v7800_v56  ;;  %v7831_v41 = vld [vmem:[%s8136_s11 + $0x169] sm:$0xff]  ;;  %v11322_v61 = vpop.f32.mrf.mxu2 }
 0x90c   : > { %v7863_v19 = vld [vmem:[%s8136_s11 + $0x16a] sm:$0xff] }
 0x90d   : > { %v6891_v35 = vadd.f32 %v11219_v11, %v6855_v9  ;;  %v5679_v9 = vadd.f32 %v11249_v6, %v11003_v55  ;;  %v6366_v17 = vmax.f32 %v6302_v23, %v7799_v59  ;;  %v6367_v38 = vmax.f32 %v6303_v50, %v7800_v56 }
 0x90f   : > { %v6923_v58 = vmax.f32 %v6891_v35, 0.0  ;;  %v5901_v49 = vadd.f32 %v11252_v13, %v5679_v9  ;;  %v6621_v35 = vmax.f32 %v6557_v16, %v7831_v41  ;;  %v6430_v6 = vmax.f32 %v6366_v17, %v7831_v41  ;;  %v7802_v9 = vld [vmem:[%s8136_s11 + $0x188] sm:$0xff] }
 0x910   : > { %v6054_v2 = vpop.f32.mrf.mxu0  ;;  %v6431_v21 = vmax.f32 %v6367_v38, %v7832_v7  ;;  %v5680_v13 = vadd.f32 %v11260_v31, %v11011_v18  ;;  %v6241_v17 = vmax.f32 %v7800_v56, %v7832_v7 }
 0x911   : > { %v6788_v60 = vpop.f32.mrf.mxu1  ;;  %6956 = vst.msk [vmem:[%s11230_s29 + $0x38] sm:$0xff] %vm6948_vm7, %v6923_v58  ;;  %v6122_v57 = vadd.f32 %v6054_v2, %v5900_v51  ;;  %v6622_v51 = vmax.f32 %v6558_v53, %v7832_v7  ;;  %v7864_v58 = vld [vmem:[%s8136_s11 + $0x172] sm:$0xff]  ;;  %v6685_v2 = vmax.f32 %v6621_v35, %v7863_v19  ;;  %v6494_v23 = vmax.f32 %v6430_v6, %v7863_v19  ;;  %v7801_v53 = vld [vmem:[%s8136_s11 + $0x180] sm:$0xff] }
 0x912   : > { %v6495_v50 = vmax.f32 %v6431_v21, %v7864_v58  ;;  %v5681_v7 = vadd.f32 %v11276_v37, %v11024_v39 }
 0x913   : > { %v6856_v4 = vadd.f32 %v6788_v60, %v6122_v57  ;;  %7673 = vmatmul.msk.bf16.gmra.mxu0 %vm4036_vm5, %v5968_v34  ;;  %v6686_v60 = vmax.f32 %v6622_v51, %v7864_v58  ;;  %v5902_v57 = vadd.f32 %v11264_v44, %v5680_v13  ;;  %v5951_v34 = vld [vmem:[#allocation3 + $0x172] sm:$0xff]  ;;  %v11337_v18 = vpop.f32.mrf.mxu2  ;;  %v6559_v35 = vmax.f32 %v6494_v23, %v7801_v53 }
 0x914   : > { %7881 = vmatmul.msk.bf16.gmra.mxu1 %vm413_vm1, %v6703_v3  ;;  %v11327_v3 = vpop.f32.mrf.mxu3  ;;  %v6560_v51 = vmax.f32 %v6495_v50, %v7802_v9  ;;  %v5903_v21 = vadd.f32 %v11281_v30, %v5681_v7  ;;  %v7865_v13 = vld [vmem:[%s8136_s11 + $0x182] sm:$0xff]  ;;  %v7866_v50 = vld [vmem:[%s8136_s11 + $0x18a] sm:$0xff] }
 0x915   : > { %v6892_v10 = vadd.f32 %v11219_v11, %v6856_v4  ;;  %v6704_v16 = vpack.c.bf16 %v6686_v60, %v6685_v2 }
 0x917   : > { %v6924_v12 = vmax.f32 %v6892_v10, 0.0  ;;  %v6240_v10 = vmax.f32 %v7799_v59, %v7831_v41  ;;  %v7833_v59 = vld [vmem:[%s8136_s11 + $0x181] sm:$0xff]  ;;  %v6305_v41 = vmax.f32 %v6241_v17, %v7864_v58 }
 0x918   : > { %v6056_v25 = vpop.f32.mrf.mxu0 }
 0x919   : > { %v6790_v52 = vpop.f32.mrf.mxu1  ;;  %6957 = vst.msk [vmem:[%s11230_s29 + $0x40] sm:$0xff] %vm6948_vm7, %v6924_v12  ;;  %v6123_v55 = vadd.f32 %v6056_v25, %v5901_v49  ;;  %v5950_v12 = vld [vmem:[#allocation3 + $0x16a] sm:$0xff]  ;;  %v6304_v56 = vmax.f32 %v6240_v10, %v7863_v19 }
 0x91a   : > { %v5969_v44 = vpack.c.bf16 %v5951_v34, %v5950_v12 }
 0x91b   : > { %v6857_v15 = vadd.f32 %v6790_v52, %v6123_v55  ;;  %v7834_v55 = vld [vmem:[%s8136_s11 + $0x189] sm:$0xff] }
 0x91c   : > { %v11341_v25 = vpop.f32.mrf.mxu3  ;;  %v6624_v60 = vmax.f32 %v6560_v51, %v7834_v55 }
 0x91d   : > { %v6893_v20 = vadd.f32 %v11219_v11, %v6857_v15  ;;  %v6623_v15 = vmax.f32 %v6559_v35, %v7833_v59 }
 0x91e   : > { %v6688_v37 = vmax.f32 %v6624_v60, %v7866_v50 }
 0x91f   : > { %v6925_v4 = vmax.f32 %v6893_v20, 0.0  ;;  %v6368_v20 = vmax.f32 %v6304_v56, %v7801_v53  ;;  %v6687_v58 = vmax.f32 %v6623_v15, %v7865_v13  ;;  %v5682_v53 = vadd.f32 %v11289_v14, %v11037_v24  ;;  %v7804_v56 = vld [vmem:[%s8136_s11 + $0x1a0] sm:$0xff] }
 0x920   : > { %v6059_v38 = vpop.f32.mrf.mxu0 }
 0x921   : > { %v6793_v49 = vpop.f32.mrf.mxu1  ;;  %6958 = vst.msk [vmem:[%s11230_s29 + $0x48] sm:$0xff] %vm6948_vm7, %v6925_v4  ;;  %v6124_v31 = vadd.f32 %v6059_v38, %v5902_v57  ;;  %v6369_v57 = vmax.f32 %v6305_v41, %v7802_v9  ;;  %v11355_v4 = vpop.f32.mrf.mxu2  ;;  %v6432_v30 = vmax.f32 %v6368_v20, %v7833_v59  ;;  %v5904_v17 = vadd.f32 %v11295_v46, %v5682_v53  ;;  %v5953_v38 = vld [vmem:[#allocation3 + $0x18a] sm:$0xff] }
 0x922   : > { %v6705_v12 = vpack.c.bf16 %v6688_v37, %v6687_v58  ;;  %v7803_v59 = vld [vmem:[%s8136_s11 + $0x198] sm:$0xff]  ;;  %v7868_v58 = vld [vmem:[%s8136_s11 + $0x1a2] sm:$0xff] }
 0x923   : > { %v6858_v52 = vadd.f32 %v6793_v49, %v6124_v31  ;;  %7674 = vmatmul.msk.bf16.gmra.mxu0 %vm4036_vm5, %v5969_v44  ;;  %v6496_v31 = vmax.f32 %v6432_v30, %v7865_v13 }
 0x924   : > { %7882 = vmatmul.msk.bf16.gmra.mxu1 %vm413_vm1, %v6704_v16  ;;  %v6433_v16 = vmax.f32 %v6369_v57, %v7834_v55  ;;  %v11359_v9 = vpop.f32.mrf.mxu3  ;;  %v7835_v55 = vld [vmem:[%s8136_s11 + $0x199] sm:$0xff] }
 0x925   : > { %v6894_v6 = vadd.f32 %v11219_v11, %v6858_v52  ;;  %v5952_v52 = vld [vmem:[#allocation3 + $0x182] sm:$0xff]  ;;  %v6561_v46 = vmax.f32 %v6496_v31, %v7803_v59  ;;  %v5954_v31 = vld [vmem:[#allocation3 + $0x19a] sm:$0xff] }
 0x926   : > { %v6497_v44 = vmax.f32 %v6433_v16, %v7866_v50  ;;  %v5970_v14 = vpack.c.bf16 %v5953_v38, %v5952_v52  ;;  %v5955_v16 = vld [vmem:[#allocation3 + $0x1a2] sm:$0xff] }
 0x927   : > { %v6926_v2 = vmax.f32 %v6894_v6, 0.0  ;;  %v7836_v6 = vld [vmem:[%s8136_s11 + $0x1a1] sm:$0xff]  ;;  %v6625_v57 = vmax.f32 %v6561_v46, %v7835_v55  ;;  %v5686_v55 = vadd.f32 %v11355_v4, %v11089_v62 }
 0x928   : > { %v6061_v34 = vpop.f32.mrf.mxu0  ;;  %v6562_v7 = vmax.f32 %v6497_v44, %v7804_v56 }
 0x929   : > { %v6795_v23 = vpop.f32.mrf.mxu1  ;;  %6959 = vst.msk [vmem:[%s11230_s29 + $0x50] sm:$0xff] %vm6948_vm7, %v6926_v2  ;;  %v6125_v19 = vadd.f32 %v6061_v34, %v5903_v21  ;;  %v5683_v21 = vadd.f32 %v11305_v42, %v11052_v5  ;;  %v5632_v15 = vpop.f32.mrf.mxu2  ;;  %v5684_v42 = vadd.f32 %v11322_v61, %v11066_v22  ;;  %v5685_v22 = vadd.f32 %v11337_v18, %v11080_v54 }
 0x92a   : > { %v6626_v34 = vmax.f32 %v6562_v7, %v7836_v6  ;;  %v5908_v54 = vadd.f32 %v11359_v9, %v5686_v55 }
 0x92b   : > { %v6859_v39 = vadd.f32 %v6795_v23, %v6125_v19  ;;  %v5905_v60 = vadd.f32 %v11309_v29, %v5683_v21  ;;  %v7867_v19 = vld [vmem:[%s8136_s11 + $0x19a] sm:$0xff]  ;;  %s7909_s11 = sshll.u32 %s8100_s17, 8  ;;  %s6982_s17 = scalar_lea.sflag [#allocation5], %s350_s25 }
 0x92c   : > { %v5854_v13 = vpop.f32.mrf.mxu3  ;;  %v6689_v30 = vmax.f32 %v6625_v57, %v7867_v19  ;;  %v6690_v5 = vmax.f32 %v6626_v34, %v7868_v58  ;;  %v5687_v57 = vadd.f32 %v5632_v15, %v11103_v0  ;;  %s6993_s18 = scalar_lea.hbm %s11506_s10, %s7909_s11 }
 0x92d   : > { %v6895_v10 = vadd.f32 %v11219_v11, %v6859_v39  ;;  %s6996_s21 = sshll.u32 %s6993_s18, 4  ;;  %s6997_s21 = int_to_ptr.hbm [resolvable:$true] %s6996_s21 }
 0x92e   : > { %v6706_v38 = vpack.c.bf16 %v6690_v5, %v6689_v30  ;;  %v5909_v62 = vadd.f32 %v5854_v13, %v5687_v57  ;;  %s7972_s26 = sshra.s32 %s6997_s21, 4  ;;  %s7973_s26 = int_to_ptr.hbm [resolvable:$true] %s7972_s26 }
 0x92f   : > { %v6927_v49 = vmax.f32 %v6895_v10, 0.0  ;;  %v5906_v10 = vadd.f32 %v11327_v3, %v5684_v42  ;;  %v5907_v3 = vadd.f32 %v11341_v25, %v5685_v22  ;;  %s7974_s27 = scalar_lea.hbm %s7973_s26, 256  ;;  %p7979_p0 = scmp.lt.s32.totalorder %s7973_s26, %s11506_s10 }
 0x930   : > { %v6064_v35 = vpop.f32.mrf.mxu0  ;;  %p7975_p11 = scmp.ne.s32.totalorder %s7973_s26, %s7974_s27  ;;  %p7980_p1 = scmp.lt.s32.totalorder %s7978_s30, %s7974_s27 }
 0x931   : > { %v6798_v51 = vpop.f32.mrf.mxu1  ;;  %6960 = vst.msk [vmem:[%s11230_s29 + $0x58] sm:$0xff] %vm6948_vm7, %v6927_v49  ;;  %v6126_v24 = vadd.f32 %v6064_v35, %v5904_v17  ;;  %v5635_v53 = vpop.f32.mrf.mxu2 }
 0x932   : > { %p7976_p12 = pnand %p7975_p11, %p8117_p5  ;;  %p7981_p2 = por %p7980_p1, %p7979_p0 }
 0x933   : > { %v6860_v41 = vadd.f32 %v6798_v51, %v6126_v24  ;;  %7675 = vmatmul.msk.bf16.gmra.mxu0 %vm4036_vm5, %v5970_v14  ;;  %v5971_v51 = vpack.c.bf16 %v5955_v16, %v5954_v31 }
 0x934   : > { %7883 = vmatmul.msk.bf16.gmra.mxu1 %vm413_vm1, %v6705_v12  ;;  %v5857_v44 = vpop.f32.mrf.mxu3  ;;  %p7977_p13 = pneg %p7976_p12 }
 0x935   : > { %v6896_v2 = vadd.f32 %v11219_v11, %v6860_v41 }
 0x936   : > { %p7982_p3 = pnand %p7981_p2, %p7977_p13 }
 0x937   : > { %v6928_v20 = vmax.f32 %v6896_v2, 0.0 }
 0x938   : > { %v6066_v23 = vpop.f32.mrf.mxu0 }
 0x939   : > { %v6800_v50 = vpop.f32.mrf.mxu1  ;;  %6961 = vst.msk [vmem:[%s11230_s29 + $0x60] sm:$0xff] %vm6948_vm7, %v6928_v20  ;;  %v6127_v39 = vadd.f32 %v6066_v23, %v5905_v60  ;;  %v5637_v14 = vpop.f32.mrf.mxu2 }
 0x93b   : > { %v6861_v37 = vadd.f32 %v6800_v50, %v6127_v39  ;;  %v5688_v39 = vadd.f32 %v5635_v53, %v11111_v27 }
 0x93c   : > { %v5859_v46 = vpop.f32.mrf.mxu3 }
 0x93d   : > { %v6897_v29 = vadd.f32 %v11219_v11, %v6861_v37  ;;  %v5910_v5 = vadd.f32 %v5857_v44, %v5688_v39 }
 0x93f   : > { %v6929_v17 = vmax.f32 %v6897_v29, 0.0 }
 0x940   : > { %v6069_v49 = vpop.f32.mrf.mxu0 }
 0x941   : > { %v6803_v12 = vpop.f32.mrf.mxu1  ;;  %6962 = vst.msk [vmem:[%s11230_s29 + $0x68] sm:$0xff] %vm6948_vm7, %v6929_v17  ;;  %v6128_v35 = vadd.f32 %v6069_v49, %v5906_v10  ;;  %v5640_v60 = vpop.f32.mrf.mxu2  ;;  %v5689_v10 = vadd.f32 %v5637_v14, %v11122_v28 }
 0x943   : > { %v6862_v52 = vadd.f32 %v6803_v12, %v6128_v35  ;;  %7676 = vmatmul.msk.bf16.gmra.mxu0 %vm4036_vm5, %v5971_v51  ;;  %v5911_v27 = vadd.f32 %v5859_v46, %v5689_v10  ;;  %v5690_v51 = vadd.f32 %v5640_v60, %v11127_v43 }
 0x944   : > { %7884 = vmatmul.msk.bf16.gmra.mxu1 %vm413_vm1, %v6706_v38  ;;  %v5862_v34 = vpop.f32.mrf.mxu3 }
 0x945   : > { %v6898_v61 = vadd.f32 %v11219_v11, %v6862_v52  ;;  %v5912_v22 = vadd.f32 %v5862_v34, %v5690_v51 }
 0x947   : > { %v6930_v59 = vmax.f32 %v6898_v61, 0.0 }
 0x948   : > { %v6071_v56 = vpop.f32.mrf.mxu0 }
 0x949   : > { %v6805_v24 = vpop.f32.mrf.mxu1  ;;  %6963 = vst.msk [vmem:[%s11230_s29 + $0x70] sm:$0xff] %vm6948_vm7, %v6930_v59  ;;  %v6129_v41 = vadd.f32 %v6071_v56, %v5907_v3  ;;  %v5642_v37 = vpop.f32.mrf.mxu2 }
 0x94b   : > { %v6863_v7 = vadd.f32 %v6805_v24, %v6129_v41  ;;  %v5691_v41 = vadd.f32 %v5642_v37, %v11137_v63 }
 0x94c   : > { %v5864_v0 = vpop.f32.mrf.mxu3 }
 0x94d   : > { %v6899_v6 = vadd.f32 %v11219_v11, %v6863_v7  ;;  %v5913_v7 = vadd.f32 %v5864_v0, %v5691_v41 }
 0x94f   : > { %v6931_v18 = vmax.f32 %v6899_v6, 0.0 }
 0x950   : > { %v6074_v21 = vpop.f32.mrf.mxu0 }
 0x951   : > { %v6808_v25 = vpop.f32.mrf.mxu1  ;;  %6964 = vst.msk [vmem:[%s11230_s29 + $0x78] sm:$0xff] %vm6948_vm7, %v6931_v18  ;;  %v6130_v2 = vadd.f32 %v6074_v21, %v5908_v54  ;;  %v5645_v38 = vpop.f32.mrf.mxu2 }
 0x953   : > { %v6864_v20 = vadd.f32 %v6808_v25, %v6130_v2  ;;  %v5692_v25 = vadd.f32 %v5645_v38, %v11142_v1 }
 0x954   : > { %v5867_v31 = vpop.f32.mrf.mxu3 }
 0x955   : > { %v6900_v23 = vadd.f32 %v11219_v11, %v6864_v20  ;;  %v5914_v20 = vadd.f32 %v5867_v31, %v5692_v25 }
 0x957   : > { %v6932_v4 = vmax.f32 %v6900_v23, 0.0 }
 0x958   : > { %v6076_v50 = vpop.f32.mrf.mxu0 }
 0x959   : > { %v6810_v19 = vpop.f32.mrf.mxu1  ;;  %6965 = vst.msk [vmem:[%s11230_s29 + $0x80] sm:$0xff] %vm6948_vm7, %v6932_v4  ;;  %v6131_v9 = vadd.f32 %v6076_v50, %v5909_v62  ;;  %v5647_v59 = vpop.f32.mrf.mxu2 }
 0x95a   : > { %v5693_v4 = vadd.f32 %v5647_v59, %v11153_v8 }
 0x95b   : > { %v6865_v58 = vadd.f32 %v6810_v19, %v6131_v9 }
 0x95c   : > { %v5869_v24 = vpop.f32.mrf.mxu3 }
 0x95d   : > { %v6901_v30 = vadd.f32 %v11219_v11, %v6865_v58  ;;  %v5915_v9 = vadd.f32 %v5869_v24, %v5693_v4 }
 0x95f   : > { %v6933_v15 = vmax.f32 %v6901_v30, 0.0 }
 0x960   : > { %v6079_v42 = vpop.f32.mrf.mxu0 }
 0x961   : > { %v6813_v29 = vpop.f32.mrf.mxu1  ;;  %6966 = vst.msk [vmem:[%s11230_s29 + $0x88] sm:$0xff] %vm6948_vm7, %v6933_v15  ;;  %v6132_v13 = vadd.f32 %v6079_v42, %v5910_v5  ;;  %v5650_v18 = vpop.f32.mrf.mxu2 }
 0x962   : > { %v5694_v0 = vadd.f32 %v5650_v18, %v11158_v47 }
 0x963   : > { %v6866_v16 = vadd.f32 %v6813_v29, %v6132_v13 }
 0x964   : > { %v5872_v2 = vpop.f32.mrf.mxu3 }
 0x965   : > { %v6902_v17 = vadd.f32 %v11219_v11, %v6866_v16  ;;  %v5916_v8 = vadd.f32 %v5872_v2, %v5694_v0 }
 0x967   : > { %v6934_v53 = vmax.f32 %v6902_v17, 0.0 }
 0x968   : > { %v6081_v49 = vpop.f32.mrf.mxu0 }
 0x969   : > { %v6815_v12 = vpop.f32.mrf.mxu1  ;;  %6967 = vst.msk [vmem:[%s11230_s29 + $0x90] sm:$0xff] %vm6948_vm7, %v6934_v53  ;;  %v6133_v44 = vadd.f32 %v6081_v49, %v5911_v27  ;;  %v5652_v50 = vpop.f32.mrf.mxu2 }
 0x96a   : > { %v5695_v27 = vadd.f32 %v5652_v50, %v11168_v40 }
 0x96b   : > { %v6867_v35 = vadd.f32 %v6815_v12, %v6133_v44 }
 0x96c   : > { %v5874_v1 = vpop.f32.mrf.mxu3 }
 0x96d   : > { %v6903_v52 = vadd.f32 %v11219_v11, %v6867_v35  ;;  %v5917_v49 = vadd.f32 %v5874_v1, %v5695_v27 }
 0x96f   : > { %v6935_v28 = vmax.f32 %v6903_v52, 0.0 }
 0x970   : > { %v6084_v61 = vpop.f32.mrf.mxu0 }
 0x971   : > { %v6818_v3 = vpop.f32.mrf.mxu1  ;;  %6968 = vst.msk [vmem:[%s11230_s29 + $0x98] sm:$0xff] %vm6948_vm7, %v6935_v28  ;;  %v6134_v56 = vadd.f32 %v6084_v61, %v5912_v22  ;;  %v5655_v42 = vpop.f32.mrf.mxu2 }
 0x972   : > { %v5696_v22 = vadd.f32 %v5655_v42, %v11173_v45 }
 0x973   : > { %v6868_v14 = vadd.f32 %v6818_v3, %v6134_v56 }
 0x974   : > { %v5877_v10 = vpop.f32.mrf.mxu3 }
 0x975   : > { %v6904_v46 = vadd.f32 %v11219_v11, %v6868_v14  ;;  %v5918_v61 = vadd.f32 %v5877_v10, %v5696_v22 }
 0x977   : > { %v6936_v43 = vmax.f32 %v6904_v46, 0.0 }
 0x978   : > { %v6086_v55 = vpop.f32.mrf.mxu0 }
 0x979   : > { %v6820_v6 = vpop.f32.mrf.mxu1  ;;  %6969 = vst.msk [vmem:[%s11230_s29 + $0xa0] sm:$0xff] %vm6948_vm7, %v6936_v43  ;;  %v6135_v54 = vadd.f32 %v6086_v55, %v5913_v7  ;;  %v5657_v44 = vpop.f32.mrf.mxu2 }
 0x97a   : > { %v5697_v41 = vadd.f32 %v5657_v44, %v11182_v33 }
 0x97b   : > { %v6869_v21 = vadd.f32 %v6820_v6, %v6135_v54 }
 0x97c   : > { %v5879_v51 = vpop.f32.mrf.mxu3 }
 0x97d   : > { %v6905_v60 = vadd.f32 %v11219_v11, %v6869_v21  ;;  %v5919_v43 = vadd.f32 %v5879_v51, %v5697_v41 }
 0x97f   : > { %v6937_v63 = vmax.f32 %v6905_v60, 0.0 }
 0x980   : > { %v6089_v57 = vpop.f32.mrf.mxu0 }
 0x981   : > { %v6823_v34 = vpop.f32.mrf.mxu1  ;;  %6970 = vst.msk [vmem:[%s11230_s29 + $0xa8] sm:$0xff] %vm6948_vm7, %v6937_v63  ;;  %v6136_v23 = vadd.f32 %v6089_v57, %v5914_v20  ;;  %v5660_v24 = vpop.f32.mrf.mxu2 }
 0x982   : > { %v5698_v21 = vadd.f32 %v5660_v24, %v11187_v48 }
 0x983   : > { %v6870_v62 = vadd.f32 %v6823_v34, %v6136_v23 }
 0x984   : > { %v5882_v46 = vpop.f32.mrf.mxu3 }
 0x985   : > { %v6906_v19 = vadd.f32 %v11219_v11, %v6870_v62  ;;  %v5920_v60 = vadd.f32 %v5882_v46, %v5698_v21 }
 0x987   : > { %v6938_v58 = vmax.f32 %v6906_v19, 0.0 }
 0x988   : > { %v6091_v39 = vpop.f32.mrf.mxu0 }
 0x989   : > { %v6825_v37 = vpop.f32.mrf.mxu1  ;;  %6971 = vst.msk [vmem:[%s11230_s29 + $0xb0] sm:$0xff] %vm6948_vm7, %v6938_v58  ;;  %v6137_v30 = vadd.f32 %v6091_v39, %v5915_v9  ;;  %v5662_v25 = vpop.f32.mrf.mxu2 }
 0x98a   : > { %v5699_v62 = vadd.f32 %v5662_v25, %v11196_v32 }
 0x98b   : > { %v6871_v5 = vadd.f32 %v6825_v37, %v6137_v30 }
 0x98c   : > { %v5884_v33 = vpop.f32.mrf.mxu3 }
 0x98d   : > { %v6907_v15 = vadd.f32 %v11219_v11, %v6871_v5  ;;  %v5921_v48 = vadd.f32 %v5884_v33, %v5699_v62 }
 0x98f   : > { %v6939_v29 = vmax.f32 %v6907_v15, 0.0 }
 0x990   : > { %v6094_v13 = vpop.f32.mrf.mxu0 }
 0x991   : > { %v6828_v16 = vpop.f32.mrf.mxu1  ;;  %6972 = vst.msk [vmem:[%s11230_s29 + $0xb8] sm:$0xff] %vm6948_vm7, %v6939_v29  ;;  %v6138_v17 = vadd.f32 %v6094_v13, %v5916_v8  ;;  %v5665_v50 = vpop.f32.mrf.mxu2 }
 0x992   : > { %v5700_v30 = vadd.f32 %v5665_v50, %v11201_v36 }
 0x993   : > { %v6872_v38 = vadd.f32 %v6828_v16, %v6138_v17 }
 0x994   : > { %v5887_v39 = vpop.f32.mrf.mxu3 }
 0x995   : > { %v6908_v53 = vadd.f32 %v11219_v11, %v6872_v38  ;;  %v5922_v0 = vadd.f32 %v5887_v39, %v5700_v30 }
 0x997   : > { %v6940_v47 = vmax.f32 %v6908_v53, 0.0 }
 0x998   : > { %v6096_v12 = vpop.f32.mrf.mxu0 }
 0x999   : > { %v6830_v31 = vpop.f32.mrf.mxu1  ;;  %6973 = vst.msk [vmem:[%s11230_s29 + $0xc0] sm:$0xff] %vm6948_vm7, %v6940_v47  ;;  %v6139_v35 = vadd.f32 %v6096_v12, %v5917_v49  ;;  %v5667_v29 = vpop.f32.mrf.mxu2 }
 0x99a   : > { %v5701_v10 = vadd.f32 %v5667_v29, %v11210_v26 }
 0x99b   : > { %v6873_v52 = vadd.f32 %v6830_v31, %v6139_v35 }
 0x99c   : > { %v5889_v16 = vpop.f32.mrf.mxu3 }
 0x99d   : > { %v6909_v28 = vadd.f32 %v11219_v11, %v6873_v52  ;;  %v5923_v36 = vadd.f32 %v5889_v16, %v5701_v10 }
 0x99f   : > { %v6941_v40 = vmax.f32 %v6909_v28, 0.0 }
 0x9a0   : > { %v6099_v3 = vpop.f32.mrf.mxu0 }
 0x9a1   : > { %v6833_v59 = vpop.f32.mrf.mxu1  ;;  %6974 = vst.msk [vmem:[%s11230_s29 + $0xc8] sm:$0xff] %vm6948_vm7, %v6941_v40  ;;  %v6140_v56 = vadd.f32 %v6099_v3, %v5918_v61 }
 0x9a3   : > { %v6874_v14 = vadd.f32 %v6833_v59, %v6140_v56 }
 0x9a5   : > { %v6910_v7 = vadd.f32 %v11219_v11, %v6874_v14 }
 0x9a7   : > { %v6942_v45 = vmax.f32 %v6910_v7, 0.0 }
 0x9a8   : > { %v6101_v55 = vpop.f32.mrf.mxu0 }
 0x9a9   : > { %v6835_v6 = vpop.f32.mrf.mxu1  ;;  %6975 = vst.msk [vmem:[%s11230_s29 + $0xd0] sm:$0xff] %vm6948_vm7, %v6942_v45  ;;  %v6141_v54 = vadd.f32 %v6101_v55, %v5919_v43 }
 0x9ab   : > { %v6875_v18 = vadd.f32 %v6835_v6, %v6141_v54 }
 0x9ad   : > { %v6911_v2 = vadd.f32 %v11219_v11, %v6875_v18 }
 0x9af   : > { %v6943_v20 = vmax.f32 %v6911_v2, 0.0 }
 0x9b0   : > { %v6104_v63 = vpop.f32.mrf.mxu0 }
 0x9b1   : > { %v6838_v57 = vpop.f32.mrf.mxu1  ;;  %6976 = vst.msk [vmem:[%s11230_s29 + $0xd8] sm:$0xff] %vm6948_vm7, %v6943_v20  ;;  %v6142_v34 = vadd.f32 %v6104_v63, %v5920_v60 }
 0x9b3   : > { %v6876_v23 = vadd.f32 %v6838_v57, %v6142_v34 }
 0x9b5   : > { %v6912_v4 = vadd.f32 %v11219_v11, %v6876_v23 }
 0x9b7   : > { %v6944_v19 = vmax.f32 %v6912_v4, 0.0 }
 0x9b8   : > { %v6106_v9 = vpop.f32.mrf.mxu0 }
 0x9b9   : > { %v6840_v1 = vpop.f32.mrf.mxu1  ;;  %6977 = vst.msk [vmem:[%s11230_s29 + $0xe0] sm:$0xff] %vm6948_vm7, %v6944_v19  ;;  %v6143_v58 = vadd.f32 %v6106_v9, %v5921_v48 }
 0x9bb   : > { %v6877_v37 = vadd.f32 %v6840_v1, %v6143_v58 }
 0x9bd   : > { %v6913_v5 = vadd.f32 %v11219_v11, %v6877_v37 }
 0x9bf   : > { %v6945_v32 = vmax.f32 %v6913_v5, 0.0 }
 0x9c0   : > { %v6109_v15 = vpop.f32.mrf.mxu0 }
 0x9c1   : > { %v6843_v42 = vpop.f32.mrf.mxu1  ;;  %6978 = vst.msk [vmem:[%s11230_s29 + $0xe8] sm:$0xff] %vm6948_vm7, %v6945_v32  ;;  %v6144_v8 = vadd.f32 %v6109_v15, %v5922_v0 }
 0x9c3   : > { %v6878_v13 = vadd.f32 %v6843_v42, %v6144_v8 }
 0x9c5   : > { %v6914_v17 = vadd.f32 %v11219_v11, %v6878_v13 }
 0x9c7   : > { %v6946_v38 = vmax.f32 %v6914_v17, 0.0 }
 0x9c8   : > { %v6111_v27 = vpop.f32.mrf.mxu0 }
 0x9c9   : > { %6979 = vst.msk [vmem:[%s11230_s29 + $0xf0] sm:$0xff] %vm6948_vm7, %v6946_v38  ;;  %v6145_v53 = vadd.f32 %v6111_v27, %v5923_v36  ;;  %v6845_v49 = vpop.f32.mrf.mxu1 }
 0x9cb   : > { %v6879_v47 = vadd.f32 %v6845_v49, %v6145_v53 }
 0x9cd   : > { %v6915_v26 = vadd.f32 %v11219_v11, %v6879_v47 }
 0x9cf   : > { %v6947_v12 = vmax.f32 %v6915_v26, 0.0 }
 0x9d1   : > { %6980 = vst.msk [vmem:[%s11230_s29 + $0xf8] sm:$0xff] %vm6948_vm7, %v6947_v12 }
 0x9d2   : > { %7985 = shalt.err (!%p7982_p3)
}
 0x9d3   : > { %s8022_s25 = smov 128   ;;  %s8023_s29 = smov 8  }
 0x9d4   : > { %7913 = dma.vmem_to_hbm [thread:$0]  (%p8117_p5), %s6995_s20, 4096, %s6997_s21, %s6982_s17, %s8022_s25, %s8022_s25, %s8023_s29  }
 0x9d5 PF: > { %p7919_p4 = scmp.ge.s32.totalorder %s8020_s16, 2  ;;  %s7011_s28 = sand.u32 1, %s8008_s13  }
 0x9d6   : > { %s7012_s11 = scalar_lea.sflag [#allocation5], %s7011_s28 }
 0x9d7   : > { %p7916_p7 = pnand %p7919_p4, %p8121_p6 }
 0x9d9   : > { %p7917_p8 = pneg %p7916_p7 }
 0x9db   : > { %8003 = dma.done.wait (%p7917_p8), %s7012_s11, 4096  }
 0x9dc   : > { %8005 = vsyncadd (%p7917_p8), %s7012_s11, 4294963200  ;;  %p20_p9 = scmp.ge.s32.totalorder %s8104_s19, 4   ;;  %s12053_s13 = smov %s8012_s14 }
 0x9dd   : > { %s12054_s14 = smov %s8016_s15  ;;  %s12055_s15 = smov %s8115_s22 }
 0x9de   : > { %s12056_s16 = smov %s8104_s19  ;;  %22 = sbr.rel (!%p20_p9) target bundleno = 3 (0x3), region = 127 }
 0x9e3   :  { %7018 = vsyncpa [#allocation5], 1 }
 0x9e4   :  { %7020 = vsyncpa [#allocation5 + $0x1], 1 }

</bundles_post_ra>
